<compile_context>
chip_gen: v7x
topology: tpu7x:2x2x1
jax: 0.10.0
libtpu: 0.0.40
codegen_flags: <defaults>
</compile_context>

<pallas_src>
import functools
import math

import jax
import jax.numpy as jnp
from jax.experimental import pallas as pl
from jax.experimental.pallas import tpu as pltpu

# ----------------------------- configuration -------------------------------
B = 2               # batch
C_IN = 3            # image channels
IMG = 32            # image H = W
PATCH = 16          # patch size  -> grid side = 2, num_patches = 4
GRID_SIDE = IMG // PATCH
NUM_PATCHES = GRID_SIDE * GRID_SIDE
VIS_SEQ = NUM_PATCHES + 1          # +1 class token
VIS_WIDTH = 64
VIS_HEADS = 4
VIS_LAYERS = 2

EMBED = 32                          # shared CLIP embedding dim

CTX_DIM = 64                        # text transformer width
TXT_HEADS = 4
TXT_LAYERS = 2
SEQ_LEN = 16                        # text context length
N_CLS = 3
N_CTX = 4
NAME_LENS = [1, 2, 3]

DTYPE = jnp.float32                 # clip_model.dtype
NEG_INF = float(jnp.finfo(jnp.float32).min)

VMEM_SPEC = pl.BlockSpec(memory_space=pltpu.MemorySpace.VMEM)
SMEM_SPEC = pl.BlockSpec(memory_space=pltpu.MemorySpace.SMEM)

# order of stacked per-layer block weights (leading dim = n_layers)
BLOCK_KEYS = ("ln1_g", "ln1_b", "wqkv", "bqkv", "wo", "bo",
              "ln2_g", "ln2_b", "w1", "b1", "w2", "b2")


# ------------------------------ in-kernel math ------------------------------
def _ln(x, g, b, eps=1e-5):
    mu = jnp.mean(x, axis=-1, keepdims=True)
    var = jnp.mean((x - mu) ** 2, axis=-1, keepdims=True)
    return (x - mu) * jax.lax.rsqrt(var + eps) * g + b


def _softmax(s):
    s = s - jnp.max(s, axis=-1, keepdims=True)
    e = jnp.exp(s)
    return e * pl.reciprocal(jnp.sum(e, axis=-1, keepdims=True), approx=True)


def _transformer(x, n_samples, seq, width, n_heads, n_layers, blk, causal):
    """Pre-norm residual CLIP transformer on the flattened (n_samples*seq, width) matrix."""
    (ln1_g, ln1_b, wqkv, bqkv, wo, bo, ln2_g, ln2_b, w1, b1, w2, b2) = blk
    f32 = jnp.float32
    hd = width // n_heads
    sm_scale = 1.0 / math.sqrt(hd)

    # causal mask built once, reused across all layers / samples / heads
    mask = None
    if causal:
        row = jax.lax.broadcasted_iota(jnp.int32, (seq, seq), 0)
        col = jax.lax.broadcasted_iota(jnp.int32, (seq, seq), 1)
        mask = col <= row

    for l in range(n_layers):                         # static unroll (2 layers)
        # --- LN1 + fused QKV projection on all rows at once ---
        y = _ln(x, ln1_g[l].astype(f32), ln1_b[l].astype(f32))
        qkv = jnp.dot(y, wqkv[l].astype(f32),
                      preferred_element_type=f32) + bqkv[l].astype(f32)
        wo_l = wo[l].astype(f32)

        # --- attention: small static per-sample loop; heads folded into out-proj ---
        attn_rows = []
        for n in range(n_samples):
            q = qkv[n * seq:(n + 1) * seq, 0 * width:1 * width]
            k = qkv[n * seq:(n + 1) * seq, 1 * width:2 * width]
            v = qkv[n * seq:(n + 1) * seq, 2 * width:3 * width]
            acc = jnp.zeros((seq, width), f32)
            for h in range(n_heads):
                lo, hi = h * hd, (h + 1) * hd
                s = jax.lax.dot_general(q[:, lo:hi], k[:, lo:hi],
                                        (((1,), (1,)), ((), ())),
                                        preferred_element_type=f32) * sm_scale
                if causal:
                    s = jnp.where(mask, s, NEG_INF)
                p = _softmax(s)
                oh = jnp.dot(p, v[:, lo:hi], preferred_element_type=f32)
                # no lane concat: accumulate the output projection per head
                acc = acc + jnp.dot(oh, wo_l[lo:hi, :],
                                    preferred_element_type=f32)
            attn_rows.append(acc)
        a = jnp.concatenate(attn_rows, axis=0) + bo[l].astype(f32)
        h1 = x + a                                    # residual (in-kernel)

        # --- LN2 + QuickGELU MLP + residual, all rows at once ---
        y2 = _ln(h1, ln2_g[l].astype(f32), ln2_b[l].astype(f32))
        hm = jnp.dot(y2, w1[l].astype(f32),
                     preferred_element_type=f32) + b1[l].astype(f32)
        hm = hm * jax.nn.sigmoid(1.702 * hm)          # QuickGELU (CLIP)
        mlp = jnp.dot(hm, w2[l].astype(f32),
                      preferred_element_type=f32) + b2[l].astype(f32)
        x = h1 + mlp
    return x


# ------------------------------ the fused kernel -----------------------------
def locoop_kernel(n_img, *refs):
    # unpack (flat input list built by the wrapper, output ref last)
    (scale_ref, patches_ref, patch_w_ref, cls_ref, vis_pos_ref,
     ln_pre_g, ln_pre_b) = refs[0:7]
    vis_blk = refs[7:19]
    ln_post_g, ln_post_b, vis_proj = refs[19:22]
    ctx_ref, prefix_ref, suffix_ref, txt_pos_ref = refs[22:26]
    txt_blk = refs[26:38]
    ln_final_g, ln_final_b, text_proj, eot_sel_ref = refs[38:42]
    out_ref = refs[42]

    f32 = jnp.float32

    # ---------------- visual path: stem + blocks + ln_post + proj ------------
    # patch-embed matmul over ALL batch rows at once (M = B*P)
    patch_emb = jnp.dot(patches_ref[...].astype(f32),
                        patch_w_ref[...].astype(f32),
                        preferred_element_type=f32)           # (B*P, W)
    vis_pos = vis_pos_ref[...].astype(f32)
    cls_row = cls_ref[...].astype(f32) + vis_pos[0:1]
    rows = []
    for n in range(n_img):
        rows.append(cls_row)
        rows.append(patch_emb[n * NUM_PATCHES:(n + 1) * NUM_PATCHES]
                    + vis_pos[1:])
    xv = jnp.concatenate(rows, axis=0)                         # (B*(P+1), W)
    xv = _ln(xv, ln_pre_g[...].astype(f32), ln_pre_b[...].astype(f32))
    xv = _transformer(xv, n_img, VIS_SEQ, VIS_WIDTH, VIS_HEADS, VIS_LAYERS,
                      vis_blk, causal=False)
    xv = _ln(xv, ln_post_g[...].astype(f32), ln_post_b[...].astype(f32))
    img_feats = jnp.dot(xv, vis_proj[...].astype(f32),
                        preferred_element_type=f32)            # (B*(P+1), E)

    # ---------------- text path: prompt learner + text encoder ---------------
    txt_pos = txt_pos_ref[...].astype(f32)
    ctx = ctx_ref[...].astype(f32)                             # generic context
    prefix = prefix_ref[...].astype(f32)                       # (n_cls, 1, D)
    suffix = suffix_ref[...].astype(f32)                       # (n_cls, L-1-n_ctx, D)
    trows = []
    for c in range(N_CLS):                                     # 'end' position
        trows.append(prefix[c] + txt_pos[0:1])
        trows.append(ctx + txt_pos[1:1 + N_CTX])
        trows.append(suffix[c] + txt_pos[1 + N_CTX:])
    xt = jnp.concatenate(trows, axis=0)                        # (n_cls*L, D)
    xt = _transformer(xt, N_CLS, SEQ_LEN, CTX_DIM, TXT_HEADS, TXT_LAYERS,
                      txt_blk, causal=True)
    # EOT gather as a one-hot matmul; ln_final per-row so select-then-LN == LN-then-select
    sel = jnp.dot(eot_sel_ref[...].astype(f32), xt,
                  preferred_element_type=f32)                  # (n_cls, D)
    sel = _ln(sel, ln_final_g[...].astype(f32), ln_final_b[...].astype(f32))
    txt_feats = jnp.dot(sel, text_proj[...].astype(f32),
                        preferred_element_type=f32)            # (n_cls, E)

    # ---------------- L2-normalize + scaled cosine similarity ----------------
    fi = img_feats * jax.lax.rsqrt(jnp.sum(img_feats * img_feats, -1,
                                           keepdims=True))
    ft = txt_feats * jax.lax.rsqrt(jnp.sum(txt_feats * txt_feats, -1,
                                           keepdims=True))
    sim = jax.lax.dot_general(fi, ft, (((1,), (1,)), ((), ())),
                              preferred_element_type=f32)      # (B*(P+1), n_cls)
    logit_scale = jnp.exp(scale_ref[0, 0])
    out_ref[...] = (logit_scale * sim).astype(out_ref.dtype)


# ------------------------------ wrapper --------------------------------------
def locoop_forward(params, image):
    v, t, pr = params["visual"], params["text"], params["prompt"]
    Bn, C, H, W = image.shape
    gs = H // PATCH
    # conv1(kernel=stride=PATCH, no bias) == per-patch flatten + matmul.
    # Layout transpose done on the host (pure glue); batch folded into matmul M.
    patches = image.reshape(Bn, C, gs, PATCH, gs, PATCH)
    patches = patches.transpose(0, 2, 4, 1, 3, 5).reshape(
        Bn * gs * gs, C * PATCH * PATCH)

    scale11 = params["logit_scale"].reshape(1, 1).astype(jnp.float32)

    inputs = [scale11, patches, v["patch_w"], v["cls"], v["pos"],
              v["ln_pre_g"], v["ln_pre_b"]]
    inputs += [v["blk"][k] for k in BLOCK_KEYS]
    inputs += [v["ln_post_g"], v["ln_post_b"], v["proj"],
               pr["ctx"], pr["token_prefix"], pr["token_suffix"], t["pos"]]
    inputs += [t["blk"][k] for k in BLOCK_KEYS]
    inputs += [t["ln_final_g"], t["ln_final_b"], t["text_proj"], pr["eot_sel"]]

    in_specs = [SMEM_SPEC] + [VMEM_SPEC] * (len(inputs) - 1)

    # TODO(synk): for real ViT-B/16 dims, store weights in bf16 and K-tile the
    # MLP matmuls (pltpu.emit_pipeline) to respect v7x's 64 MiB VMEM.
    out = pl.pallas_call(
        functools.partial(locoop_kernel, Bn),
        in_specs=in_specs,
        out_specs=VMEM_SPEC,
        out_shape=jax.ShapeDtypeStruct((Bn * VIS_SEQ, N_CLS), jnp.float32),
    )(*inputs)

    out = out.reshape(Bn, VIS_SEQ, N_CLS)
    logits = out[:, 0, :]                       # global (class-token) logits
    logits_local = out[:, 1:, :]                # local (patch-token) logits
    return logits, logits_local


# ------------------------------ parameter init -------------------------------
def init_params(key):
    keys = iter(jax.random.split(key, 64))

    def nrm(shape, std=0.02):
        return (std * jax.random.normal(next(keys), shape)).astype(DTYPE)

    def blocks(n_layers, width):
        # per-layer weights stacked on a leading n_layers axis
        return dict(
            ln1_g=jnp.ones((n_layers, 1, width), DTYPE),
            ln1_b=jnp.zeros((n_layers, 1, width), DTYPE),
            wqkv=nrm((n_layers, width, 3 * width)),
            bqkv=jnp.zeros((n_layers, 1, 3 * width), DTYPE),
            wo=nrm((n_layers, width, width)),
            bo=jnp.zeros((n_layers, 1, width), DTYPE),
            ln2_g=jnp.ones((n_layers, 1, width), DTYPE),
            ln2_b=jnp.zeros((n_layers, 1, width), DTYPE),
            w1=nrm((n_layers, width, 4 * width)),
            b1=jnp.zeros((n_layers, 1, 4 * width), DTYPE),
            w2=nrm((n_layers, 4 * width, width)),
            b2=jnp.zeros((n_layers, 1, width), DTYPE),
        )

    visual = dict(
        patch_w=nrm((C_IN * PATCH * PATCH, VIS_WIDTH)),
        cls=nrm((1, VIS_WIDTH)),
        pos=nrm((VIS_SEQ, VIS_WIDTH)),
        ln_pre_g=jnp.ones((1, VIS_WIDTH), DTYPE),
        ln_pre_b=jnp.zeros((1, VIS_WIDTH), DTYPE),
        ln_post_g=jnp.ones((1, VIS_WIDTH), DTYPE),
        ln_post_b=jnp.zeros((1, VIS_WIDTH), DTYPE),
        proj=nrm((VIS_WIDTH, EMBED)),
        blk=blocks(VIS_LAYERS, VIS_WIDTH),
    )

    text = dict(
        pos=nrm((SEQ_LEN, CTX_DIM)),
        ln_final_g=jnp.ones((1, CTX_DIM), DTYPE),
        ln_final_b=jnp.zeros((1, CTX_DIM), DTYPE),
        text_proj=nrm((CTX_DIM, EMBED)),
        blk=blocks(TXT_LAYERS, CTX_DIM),
    )

    # synthetic tokenized prompts: SOT=49406, fillers, EOT=49407 (argmax -> EOT)
    rows = []
    for nl in NAME_LENS:
        row = [49406] + [330 + j for j in range(N_CTX + nl + 1)] + [49407]
        row = row + [0] * (SEQ_LEN - len(row))
        rows.append(row)
    tokenized = jnp.array(rows, dtype=jnp.int32)

    # EOT selection as a one-hot matrix over the flattened (n_cls*L) rows so the
    # gather becomes a single in-kernel matmul.
    eot = jnp.argmax(tokenized, axis=-1)
    eot_sel = jax.nn.one_hot(jnp.arange(N_CLS) * SEQ_LEN + eot,
                             N_CLS * SEQ_LEN, dtype=DTYPE)      # (n_cls, n_cls*L)

    prompt = dict(
        ctx=nrm((N_CTX, CTX_DIM)),                               # generic context
        token_prefix=nrm((N_CLS, 1, CTX_DIM)),                   # SOT embedding
        token_suffix=nrm((N_CLS, SEQ_LEN - 1 - N_CTX, CTX_DIM)), # class + EOT + pad
        tokenized_prompts=tokenized,
        eot_sel=eot_sel,
    )

    return dict(
        visual=visual,
        text=text,
        prompt=prompt,
        logit_scale=jnp.array(math.log(1.0 / 0.07), DTYPE),
    )


# ----------------------------------- main ------------------------------------
if __name__ == "__main__":
    key = jax.random.PRNGKey(0)
    pkey, ikey = jax.random.split(key)
    params = init_params(pkey)
    image = jax.random.normal(ikey, (B, C_IN, IMG, IMG), dtype=DTYPE)

    logits, logits_local = jax.jit(locoop_forward)(params, image)
    jax.block_until_ready((logits, logits_local))

    assert logits.shape == (B, N_CLS), logits.shape
    assert logits_local.shape == (B, NUM_PATCHES, N_CLS), logits_local.shape
    assert bool(jnp.all(jnp.isfinite(logits))) and bool(jnp.all(jnp.isfinite(logits_local)))
    print("KERNEL_OK")
</pallas_src>

<mosaic_0001>
module attributes {stable_mosaic.version = 11 : i64} {
  func.func @locoop_kernel(%arg0: memref<1x1xf32, #tpu.memory_space<smem>>, %arg1: memref<8x768xf32, #tpu.memory_space<vmem>>, %arg2: memref<768x64xf32, #tpu.memory_space<vmem>>, %arg3: memref<1x64xf32, #tpu.memory_space<vmem>>, %arg4: memref<5x64xf32, #tpu.memory_space<vmem>>, %arg5: memref<1x64xf32, #tpu.memory_space<vmem>>, %arg6: memref<1x64xf32, #tpu.memory_space<vmem>>, %arg7: memref<2x1x64xf32, #tpu.memory_space<vmem>>, %arg8: memref<2x1x64xf32, #tpu.memory_space<vmem>>, %arg9: memref<2x64x192xf32, #tpu.memory_space<vmem>>, %arg10: memref<2x1x192xf32, #tpu.memory_space<vmem>>, %arg11: memref<2x64x64xf32, #tpu.memory_space<vmem>>, %arg12: memref<2x1x64xf32, #tpu.memory_space<vmem>>, %arg13: memref<2x1x64xf32, #tpu.memory_space<vmem>>, %arg14: memref<2x1x64xf32, #tpu.memory_space<vmem>>, %arg15: memref<2x64x256xf32, #tpu.memory_space<vmem>>, %arg16: memref<2x1x256xf32, #tpu.memory_space<vmem>>, %arg17: memref<2x256x64xf32, #tpu.memory_space<vmem>>, %arg18: memref<2x1x64xf32, #tpu.memory_space<vmem>>, %arg19: memref<1x64xf32, #tpu.memory_space<vmem>>, %arg20: memref<1x64xf32, #tpu.memory_space<vmem>>, %arg21: memref<64x32xf32, #tpu.memory_space<vmem>>, %arg22: memref<4x64xf32, #tpu.memory_space<vmem>>, %arg23: memref<3x1x64xf32, #tpu.memory_space<vmem>>, %arg24: memref<3x11x64xf32, #tpu.memory_space<vmem>>, %arg25: memref<16x64xf32, #tpu.memory_space<vmem>>, %arg26: memref<2x1x64xf32, #tpu.memory_space<vmem>>, %arg27: memref<2x1x64xf32, #tpu.memory_space<vmem>>, %arg28: memref<2x64x192xf32, #tpu.memory_space<vmem>>, %arg29: memref<2x1x192xf32, #tpu.memory_space<vmem>>, %arg30: memref<2x64x64xf32, #tpu.memory_space<vmem>>, %arg31: memref<2x1x64xf32, #tpu.memory_space<vmem>>, %arg32: memref<2x1x64xf32, #tpu.memory_space<vmem>>, %arg33: memref<2x1x64xf32, #tpu.memory_space<vmem>>, %arg34: memref<2x64x256xf32, #tpu.memory_space<vmem>>, %arg35: memref<2x1x256xf32, #tpu.memory_space<vmem>>, %arg36: memref<2x256x64xf32, #tpu.memory_space<vmem>>, %arg37: memref<2x1x64xf32, #tpu.memory_space<vmem>>, %arg38: memref<1x64xf32, #tpu.memory_space<vmem>>, %arg39: memref<1x64xf32, #tpu.memory_space<vmem>>, %arg40: memref<64x32xf32, #tpu.memory_space<vmem>>, %arg41: memref<3x48xf32, #tpu.memory_space<vmem>>, %arg42: memref<10x3xf32, #tpu.memory_space<vmem>>) attributes {dimension_semantics = [], scalar_prefetch = 0 : i64, scratch_operands = 0 : i64, tpu.core_type = #tpu.core_type<tc>} {
    %c0 = arith.constant 0 : index
    %c0_0 = arith.constant 0 : index
    %0 = vector.load %arg1[%c0, %c0_0] : memref<8x768xf32, #tpu.memory_space<vmem>>, vector<8x768xf32>
    %c0_1 = arith.constant 0 : index
    %c0_2 = arith.constant 0 : index
    %1 = vector.load %arg2[%c0_1, %c0_2] : memref<768x64xf32, #tpu.memory_space<vmem>>, vector<768x64xf32>
    %cst = arith.constant dense<0.000000e+00> : vector<8x64xf32>
    %2 = tpu.matmul %0, %1, %cst {dimension_numbers = #tpu.dot_dimension_numbers<[1], [0], [0], [1], [0, 0, 1, 1], [], []>} : vector<8x768xf32>, vector<768x64xf32>, vector<8x64xf32> -> vector<8x64xf32>
    %c0_3 = arith.constant 0 : index
    %c0_4 = arith.constant 0 : index
    %3 = vector.load %arg4[%c0_3, %c0_4] : memref<5x64xf32, #tpu.memory_space<vmem>>, vector<5x64xf32>
    %c0_5 = arith.constant 0 : index
    %c0_6 = arith.constant 0 : index
    %4 = vector.load %arg3[%c0_5, %c0_6] : memref<1x64xf32, #tpu.memory_space<vmem>>, vector<1x64xf32>
    %5 = vector.extract_strided_slice %3 {offsets = [0, 0], sizes = [1, 64], strides = [1, 1]} : vector<5x64xf32> to vector<1x64xf32>
    %6 = arith.addf %4, %5 : vector<1x64xf32>
    %7 = vector.extract_strided_slice %2 {offsets = [0, 0], sizes = [4, 64], strides = [1, 1]} : vector<8x64xf32> to vector<4x64xf32>
    %8 = vector.extract_strided_slice %3 {offsets = [1, 0], sizes = [4, 64], strides = [1, 1]} : vector<5x64xf32> to vector<4x64xf32>
    %9 = arith.addf %7, %8 : vector<4x64xf32>
    %10 = vector.extract_strided_slice %2 {offsets = [4, 0], sizes = [4, 64], strides = [1, 1]} : vector<8x64xf32> to vector<4x64xf32>
    %11 = vector.extract_strided_slice %3 {offsets = [1, 0], sizes = [4, 64], strides = [1, 1]} : vector<5x64xf32> to vector<4x64xf32>
    %12 = arith.addf %10, %11 : vector<4x64xf32>
    %13 = tpu.concatenate %6, %9, %6, %12 in 0 : vector<1x64xf32>, vector<4x64xf32>, vector<1x64xf32>, vector<4x64xf32> -> vector<10x64xf32>
    %c0_7 = arith.constant 0 : index
    %c0_8 = arith.constant 0 : index
    %14 = vector.load %arg5[%c0_7, %c0_8] : memref<1x64xf32, #tpu.memory_space<vmem>>, vector<1x64xf32>
    %c0_9 = arith.constant 0 : index
    %c0_10 = arith.constant 0 : index
    %15 = vector.load %arg6[%c0_9, %c0_10] : memref<1x64xf32, #tpu.memory_space<vmem>>, vector<1x64xf32>
    %cst_11 = arith.constant dense<0.000000e+00> : vector<10xf32>
    %16 = vector.multi_reduction <add>, %13, %cst_11 [1] : vector<10x64xf32> to vector<10xf32>
    %17 = vector.shape_cast %16 : vector<10xf32> to vector<10x1xf32>
    %cst_12 = arith.constant 6.400000e+01 : f32
    %18 = vector.broadcast %cst_12 : f32 to vector<10x1xf32>
    %19 = arith.divf %17, %18 : vector<10x1xf32>
    %20 = vector.broadcast %19 : vector<10x1xf32> to vector<10x64xf32>
    %21 = arith.subf %13, %20 : vector<10x64xf32>
    %22 = arith.mulf %21, %21 : vector<10x64xf32>
    %cst_13 = arith.constant dense<0.000000e+00> : vector<10xf32>
    %23 = vector.multi_reduction <add>, %22, %cst_13 [1] : vector<10x64xf32> to vector<10xf32>
    %24 = vector.shape_cast %23 : vector<10xf32> to vector<10x1xf32>
    %cst_14 = arith.constant 6.400000e+01 : f32
    %25 = vector.broadcast %cst_14 : f32 to vector<10x1xf32>
    %26 = arith.divf %24, %25 : vector<10x1xf32>
    %27 = vector.broadcast %19 : vector<10x1xf32> to vector<10x64xf32>
    %28 = arith.subf %13, %27 : vector<10x64xf32>
    %cst_15 = arith.constant 9.99999974E-6 : f32
    %29 = vector.broadcast %cst_15 : f32 to vector<10x1xf32>
    %30 = arith.addf %26, %29 : vector<10x1xf32>
    %31 = math.rsqrt %30 : vector<10x1xf32>
    %32 = vector.broadcast %31 : vector<10x1xf32> to vector<10x64xf32>
    %33 = arith.mulf %28, %32 : vector<10x64xf32>
    %34 = vector.broadcast %14 : vector<1x64xf32> to vector<10x64xf32>
    %35 = arith.mulf %33, %34 : vector<10x64xf32>
    %36 = vector.broadcast %15 : vector<1x64xf32> to vector<10x64xf32>
    %37 = arith.addf %35, %36 : vector<10x64xf32>
    %c0_16 = arith.constant 0 : index
    %c0_17 = arith.constant 0 : index
    %c0_18 = arith.constant 0 : index
    %38 = vector.load %arg7[%c0_16, %c0_17, %c0_18] : memref<2x1x64xf32, #tpu.memory_space<vmem>>, vector<1x1x64xf32>
    %39 = vector.shape_cast %38 : vector<1x1x64xf32> to vector<1x64xf32>
    %c0_19 = arith.constant 0 : index
    %c0_20 = arith.constant 0 : index
    %c0_21 = arith.constant 0 : index
    %40 = vector.load %arg8[%c0_19, %c0_20, %c0_21] : memref<2x1x64xf32, #tpu.memory_space<vmem>>, vector<1x1x64xf32>
    %41 = vector.shape_cast %40 : vector<1x1x64xf32> to vector<1x64xf32>
    %cst_22 = arith.constant dense<0.000000e+00> : vector<10xf32>
    %42 = vector.multi_reduction <add>, %37, %cst_22 [1] : vector<10x64xf32> to vector<10xf32>
    %43 = vector.shape_cast %42 : vector<10xf32> to vector<10x1xf32>
    %cst_23 = arith.constant 6.400000e+01 : f32
    %44 = vector.broadcast %cst_23 : f32 to vector<10x1xf32>
    %45 = arith.divf %43, %44 : vector<10x1xf32>
    %46 = vector.broadcast %45 : vector<10x1xf32> to vector<10x64xf32>
    %47 = arith.subf %37, %46 : vector<10x64xf32>
    %48 = arith.mulf %47, %47 : vector<10x64xf32>
    %cst_24 = arith.constant dense<0.000000e+00> : vector<10xf32>
    %49 = vector.multi_reduction <add>, %48, %cst_24 [1] : vector<10x64xf32> to vector<10xf32>
    %50 = vector.shape_cast %49 : vector<10xf32> to vector<10x1xf32>
    %cst_25 = arith.constant 6.400000e+01 : f32
    %51 = vector.broadcast %cst_25 : f32 to vector<10x1xf32>
    %52 = arith.divf %50, %51 : vector<10x1xf32>
    %53 = vector.broadcast %45 : vector<10x1xf32> to vector<10x64xf32>
    %54 = arith.subf %37, %53 : vector<10x64xf32>
    %cst_26 = arith.constant 9.99999974E-6 : f32
    %55 = vector.broadcast %cst_26 : f32 to vector<10x1xf32>
    %56 = arith.addf %52, %55 : vector<10x1xf32>
    %57 = math.rsqrt %56 : vector<10x1xf32>
    %58 = vector.broadcast %57 : vector<10x1xf32> to vector<10x64xf32>
    %59 = arith.mulf %54, %58 : vector<10x64xf32>
    %60 = vector.broadcast %39 : vector<1x64xf32> to vector<10x64xf32>
    %61 = arith.mulf %59, %60 : vector<10x64xf32>
    %62 = vector.broadcast %41 : vector<1x64xf32> to vector<10x64xf32>
    %63 = arith.addf %61, %62 : vector<10x64xf32>
    %c0_27 = arith.constant 0 : index
    %c0_28 = arith.constant 0 : index
    %c0_29 = arith.constant 0 : index
    %64 = vector.load %arg9[%c0_27, %c0_28, %c0_29] : memref<2x64x192xf32, #tpu.memory_space<vmem>>, vector<1x64x192xf32>
    %65 = vector.shape_cast %64 : vector<1x64x192xf32> to vector<64x192xf32>
    %cst_30 = arith.constant dense<0.000000e+00> : vector<10x192xf32>
    %66 = tpu.matmul %63, %65, %cst_30 {dimension_numbers = #tpu.dot_dimension_numbers<[1], [0], [0], [1], [0, 0, 1, 1], [], []>} : vector<10x64xf32>, vector<64x192xf32>, vector<10x192xf32> -> vector<10x192xf32>
    %c0_31 = arith.constant 0 : index
    %c0_32 = arith.constant 0 : index
    %c0_33 = arith.constant 0 : index
    %67 = vector.load %arg10[%c0_31, %c0_32, %c0_33] : memref<2x1x192xf32, #tpu.memory_space<vmem>>, vector<1x1x192xf32>
    %68 = vector.shape_cast %67 : vector<1x1x192xf32> to vector<1x192xf32>
    %69 = vector.broadcast %68 : vector<1x192xf32> to vector<10x192xf32>
    %70 = arith.addf %66, %69 : vector<10x192xf32>
    %c0_34 = arith.constant 0 : index
    %c0_35 = arith.constant 0 : index
    %c0_36 = arith.constant 0 : index
    %71 = vector.load %arg11[%c0_34, %c0_35, %c0_36] : memref<2x64x64xf32, #tpu.memory_space<vmem>>, vector<1x64x64xf32>
    %72 = vector.shape_cast %71 : vector<1x64x64xf32> to vector<64x64xf32>
    %73 = vector.extract_strided_slice %70 {offsets = [0, 0], sizes = [5, 64], strides = [1, 1]} : vector<10x192xf32> to vector<5x64xf32>
    %74 = vector.extract_strided_slice %70 {offsets = [0, 64], sizes = [5, 64], strides = [1, 1]} : vector<10x192xf32> to vector<5x64xf32>
    %75 = vector.extract_strided_slice %70 {offsets = [0, 128], sizes = [5, 64], strides = [1, 1]} : vector<10x192xf32> to vector<5x64xf32>
    %cst_37 = arith.constant 0.000000e+00 : f32
    %76 = vector.broadcast %cst_37 : f32 to vector<5x64xf32>
    %77 = vector.extract_strided_slice %73 {offsets = [0, 0], sizes = [5, 16], strides = [1, 1]} : vector<5x64xf32> to vector<5x16xf32>
    %78 = vector.extract_strided_slice %74 {offsets = [0, 0], sizes = [5, 16], strides = [1, 1]} : vector<5x64xf32> to vector<5x16xf32>
    %cst_38 = arith.constant dense<0.000000e+00> : vector<5x5xf32>
    %79 = tpu.matmul %77, %78, %cst_38 {dimension_numbers = #tpu.dot_dimension_numbers<[1], [1], [0], [0], [0, 0, 1, 0], [], []>} : vector<5x16xf32>, vector<5x16xf32>, vector<5x5xf32> -> vector<5x5xf32>
    %cst_39 = arith.constant 2.500000e-01 : f32
    %80 = vector.broadcast %cst_39 : f32 to vector<5x5xf32>
    %81 = arith.mulf %79, %80 : vector<5x5xf32>
    %cst_40 = arith.constant dense<0xFF800000> : vector<5xf32>
    %82 = vector.multi_reduction <maximumf>, %81, %cst_40 [1] : vector<5x5xf32> to vector<5xf32>
    %83 = vector.shape_cast %82 : vector<5xf32> to vector<5x1xf32>
    %84 = vector.broadcast %83 : vector<5x1xf32> to vector<5x5xf32>
    %85 = arith.subf %81, %84 : vector<5x5xf32>
    %86 = math.exp %85 : vector<5x5xf32>
    %cst_41 = arith.constant dense<0.000000e+00> : vector<5xf32>
    %87 = vector.multi_reduction <add>, %86, %cst_41 [1] : vector<5x5xf32> to vector<5xf32>
    %88 = vector.shape_cast %87 : vector<5xf32> to vector<5x1xf32>
    %89 = tpu.reciprocal %88 {approx = true} : vector<5x1xf32> -> vector<5x1xf32>
    %90 = vector.broadcast %89 : vector<5x1xf32> to vector<5x5xf32>
    %91 = arith.mulf %86, %90 : vector<5x5xf32>
    %92 = vector.extract_strided_slice %75 {offsets = [0, 0], sizes = [5, 16], strides = [1, 1]} : vector<5x64xf32> to vector<5x16xf32>
    %cst_42 = arith.constant dense<0.000000e+00> : vector<5x16xf32>
    %93 = tpu.matmul %91, %92, %cst_42 {dimension_numbers = #tpu.dot_dimension_numbers<[1], [0], [0], [1], [0, 0, 1, 1], [], []>} : vector<5x5xf32>, vector<5x16xf32>, vector<5x16xf32> -> vector<5x16xf32>
    %94 = vector.extract_strided_slice %72 {offsets = [0, 0], sizes = [16, 64], strides = [1, 1]} : vector<64x64xf32> to vector<16x64xf32>
    %cst_43 = arith.constant dense<0.000000e+00> : vector<5x64xf32>
    %95 = tpu.matmul %93, %94, %cst_43 {dimension_numbers = #tpu.dot_dimension_numbers<[1], [0], [0], [1], [0, 0, 1, 1], [], []>} : vector<5x16xf32>, vector<16x64xf32>, vector<5x64xf32> -> vector<5x64xf32>
    %96 = arith.addf %76, %95 : vector<5x64xf32>
    %97 = vector.extract_strided_slice %73 {offsets = [0, 16], sizes = [5, 16], strides = [1, 1]} : vector<5x64xf32> to vector<5x16xf32>
    %98 = vector.extract_strided_slice %74 {offsets = [0, 16], sizes = [5, 16], strides = [1, 1]} : vector<5x64xf32> to vector<5x16xf32>
    %cst_44 = arith.constant dense<0.000000e+00> : vector<5x5xf32>
    %99 = tpu.matmul %97, %98, %cst_44 {dimension_numbers = #tpu.dot_dimension_numbers<[1], [1], [0], [0], [0, 0, 1, 0], [], []>} : vector<5x16xf32>, vector<5x16xf32>, vector<5x5xf32> -> vector<5x5xf32>
    %cst_45 = arith.constant 2.500000e-01 : f32
    %100 = vector.broadcast %cst_45 : f32 to vector<5x5xf32>
    %101 = arith.mulf %99, %100 : vector<5x5xf32>
    %cst_46 = arith.constant dense<0xFF800000> : vector<5xf32>
    %102 = vector.multi_reduction <maximumf>, %101, %cst_46 [1] : vector<5x5xf32> to vector<5xf32>
    %103 = vector.shape_cast %102 : vector<5xf32> to vector<5x1xf32>
    %104 = vector.broadcast %103 : vector<5x1xf32> to vector<5x5xf32>
    %105 = arith.subf %101, %104 : vector<5x5xf32>
    %106 = math.exp %105 : vector<5x5xf32>
    %cst_47 = arith.constant dense<0.000000e+00> : vector<5xf32>
    %107 = vector.multi_reduction <add>, %106, %cst_47 [1] : vector<5x5xf32> to vector<5xf32>
    %108 = vector.shape_cast %107 : vector<5xf32> to vector<5x1xf32>
    %109 = tpu.reciprocal %108 {approx = true} : vector<5x1xf32> -> vector<5x1xf32>
    %110 = vector.broadcast %109 : vector<5x1xf32> to vector<5x5xf32>
    %111 = arith.mulf %106, %110 : vector<5x5xf32>
    %112 = vector.extract_strided_slice %75 {offsets = [0, 16], sizes = [5, 16], strides = [1, 1]} : vector<5x64xf32> to vector<5x16xf32>
    %cst_48 = arith.constant dense<0.000000e+00> : vector<5x16xf32>
    %113 = tpu.matmul %111, %112, %cst_48 {dimension_numbers = #tpu.dot_dimension_numbers<[1], [0], [0], [1], [0, 0, 1, 1], [], []>} : vector<5x5xf32>, vector<5x16xf32>, vector<5x16xf32> -> vector<5x16xf32>
    %114 = vector.extract_strided_slice %72 {offsets = [16, 0], sizes = [16, 64], strides = [1, 1]} : vector<64x64xf32> to vector<16x64xf32>
    %cst_49 = arith.constant dense<0.000000e+00> : vector<5x64xf32>
    %115 = tpu.matmul %113, %114, %cst_49 {dimension_numbers = #tpu.dot_dimension_numbers<[1], [0], [0], [1], [0, 0, 1, 1], [], []>} : vector<5x16xf32>, vector<16x64xf32>, vector<5x64xf32> -> vector<5x64xf32>
    %116 = arith.addf %96, %115 : vector<5x64xf32>
    %117 = vector.extract_strided_slice %73 {offsets = [0, 32], sizes = [5, 16], strides = [1, 1]} : vector<5x64xf32> to vector<5x16xf32>
    %118 = vector.extract_strided_slice %74 {offsets = [0, 32], sizes = [5, 16], strides = [1, 1]} : vector<5x64xf32> to vector<5x16xf32>
    %cst_50 = arith.constant dense<0.000000e+00> : vector<5x5xf32>
    %119 = tpu.matmul %117, %118, %cst_50 {dimension_numbers = #tpu.dot_dimension_numbers<[1], [1], [0], [0], [0, 0, 1, 0], [], []>} : vector<5x16xf32>, vector<5x16xf32>, vector<5x5xf32> -> vector<5x5xf32>
    %cst_51 = arith.constant 2.500000e-01 : f32
    %120 = vector.broadcast %cst_51 : f32 to vector<5x5xf32>
    %121 = arith.mulf %119, %120 : vector<5x5xf32>
    %cst_52 = arith.constant dense<0xFF800000> : vector<5xf32>
    %122 = vector.multi_reduction <maximumf>, %121, %cst_52 [1] : vector<5x5xf32> to vector<5xf32>
    %123 = vector.shape_cast %122 : vector<5xf32> to vector<5x1xf32>
    %124 = vector.broadcast %123 : vector<5x1xf32> to vector<5x5xf32>
    %125 = arith.subf %121, %124 : vector<5x5xf32>
    %126 = math.exp %125 : vector<5x5xf32>
    %cst_53 = arith.constant dense<0.000000e+00> : vector<5xf32>
    %127 = vector.multi_reduction <add>, %126, %cst_53 [1] : vector<5x5xf32> to vector<5xf32>
    %128 = vector.shape_cast %127 : vector<5xf32> to vector<5x1xf32>
    %129 = tpu.reciprocal %128 {approx = true} : vector<5x1xf32> -> vector<5x1xf32>
    %130 = vector.broadcast %129 : vector<5x1xf32> to vector<5x5xf32>
    %131 = arith.mulf %126, %130 : vector<5x5xf32>
    %132 = vector.extract_strided_slice %75 {offsets = [0, 32], sizes = [5, 16], strides = [1, 1]} : vector<5x64xf32> to vector<5x16xf32>
    %cst_54 = arith.constant dense<0.000000e+00> : vector<5x16xf32>
    %133 = tpu.matmul %131, %132, %cst_54 {dimension_numbers = #tpu.dot_dimension_numbers<[1], [0], [0], [1], [0, 0, 1, 1], [], []>} : vector<5x5xf32>, vector<5x16xf32>, vector<5x16xf32> -> vector<5x16xf32>
    %134 = vector.extract_strided_slice %72 {offsets = [32, 0], sizes = [16, 64], strides = [1, 1]} : vector<64x64xf32> to vector<16x64xf32>
    %cst_55 = arith.constant dense<0.000000e+00> : vector<5x64xf32>
    %135 = tpu.matmul %133, %134, %cst_55 {dimension_numbers = #tpu.dot_dimension_numbers<[1], [0], [0], [1], [0, 0, 1, 1], [], []>} : vector<5x16xf32>, vector<16x64xf32>, vector<5x64xf32> -> vector<5x64xf32>
    %136 = arith.addf %116, %135 : vector<5x64xf32>
    %137 = vector.extract_strided_slice %73 {offsets = [0, 48], sizes = [5, 16], strides = [1, 1]} : vector<5x64xf32> to vector<5x16xf32>
    %138 = vector.extract_strided_slice %74 {offsets = [0, 48], sizes = [5, 16], strides = [1, 1]} : vector<5x64xf32> to vector<5x16xf32>
    %cst_56 = arith.constant dense<0.000000e+00> : vector<5x5xf32>
    %139 = tpu.matmul %137, %138, %cst_56 {dimension_numbers = #tpu.dot_dimension_numbers<[1], [1], [0], [0], [0, 0, 1, 0], [], []>} : vector<5x16xf32>, vector<5x16xf32>, vector<5x5xf32> -> vector<5x5xf32>
    %cst_57 = arith.constant 2.500000e-01 : f32
    %140 = vector.broadcast %cst_57 : f32 to vector<5x5xf32>
    %141 = arith.mulf %139, %140 : vector<5x5xf32>
    %cst_58 = arith.constant dense<0xFF800000> : vector<5xf32>
    %142 = vector.multi_reduction <maximumf>, %141, %cst_58 [1] : vector<5x5xf32> to vector<5xf32>
    %143 = vector.shape_cast %142 : vector<5xf32> to vector<5x1xf32>
    %144 = vector.broadcast %143 : vector<5x1xf32> to vector<5x5xf32>
    %145 = arith.subf %141, %144 : vector<5x5xf32>
    %146 = math.exp %145 : vector<5x5xf32>
    %cst_59 = arith.constant dense<0.000000e+00> : vector<5xf32>
    %147 = vector.multi_reduction <add>, %146, %cst_59 [1] : vector<5x5xf32> to vector<5xf32>
    %148 = vector.shape_cast %147 : vector<5xf32> to vector<5x1xf32>
    %149 = tpu.reciprocal %148 {approx = true} : vector<5x1xf32> -> vector<5x1xf32>
    %150 = vector.broadcast %149 : vector<5x1xf32> to vector<5x5xf32>
    %151 = arith.mulf %146, %150 : vector<5x5xf32>
    %152 = vector.extract_strided_slice %75 {offsets = [0, 48], sizes = [5, 16], strides = [1, 1]} : vector<5x64xf32> to vector<5x16xf32>
    %cst_60 = arith.constant dense<0.000000e+00> : vector<5x16xf32>
    %153 = tpu.matmul %151, %152, %cst_60 {dimension_numbers = #tpu.dot_dimension_numbers<[1], [0], [0], [1], [0, 0, 1, 1], [], []>} : vector<5x5xf32>, vector<5x16xf32>, vector<5x16xf32> -> vector<5x16xf32>
    %154 = vector.extract_strided_slice %72 {offsets = [48, 0], sizes = [16, 64], strides = [1, 1]} : vector<64x64xf32> to vector<16x64xf32>
    %cst_61 = arith.constant dense<0.000000e+00> : vector<5x64xf32>
    %155 = tpu.matmul %153, %154, %cst_61 {dimension_numbers = #tpu.dot_dimension_numbers<[1], [0], [0], [1], [0, 0, 1, 1], [], []>} : vector<5x16xf32>, vector<16x64xf32>, vector<5x64xf32> -> vector<5x64xf32>
    %156 = arith.addf %136, %155 : vector<5x64xf32>
    %157 = vector.extract_strided_slice %70 {offsets = [5, 0], sizes = [5, 64], strides = [1, 1]} : vector<10x192xf32> to vector<5x64xf32>
    %158 = vector.extract_strided_slice %70 {offsets = [5, 64], sizes = [5, 64], strides = [1, 1]} : vector<10x192xf32> to vector<5x64xf32>
    %159 = vector.extract_strided_slice %70 {offsets = [5, 128], sizes = [5, 64], strides = [1, 1]} : vector<10x192xf32> to vector<5x64xf32>
    %cst_62 = arith.constant 0.000000e+00 : f32
    %160 = vector.broadcast %cst_62 : f32 to vector<5x64xf32>
    %161 = vector.extract_strided_slice %157 {offsets = [0, 0], sizes = [5, 16], strides = [1, 1]} : vector<5x64xf32> to vector<5x16xf32>
    %162 = vector.extract_strided_slice %158 {offsets = [0, 0], sizes = [5, 16], strides = [1, 1]} : vector<5x64xf32> to vector<5x16xf32>
    %cst_63 = arith.constant dense<0.000000e+00> : vector<5x5xf32>
    %163 = tpu.matmul %161, %162, %cst_63 {dimension_numbers = #tpu.dot_dimension_numbers<[1], [1], [0], [0], [0, 0, 1, 0], [], []>} : vector<5x16xf32>, vector<5x16xf32>, vector<5x5xf32> -> vector<5x5xf32>
    %cst_64 = arith.constant 2.500000e-01 : f32
    %164 = vector.broadcast %cst_64 : f32 to vector<5x5xf32>
    %165 = arith.mulf %163, %164 : vector<5x5xf32>
    %cst_65 = arith.constant dense<0xFF800000> : vector<5xf32>
    %166 = vector.multi_reduction <maximumf>, %165, %cst_65 [1] : vector<5x5xf32> to vector<5xf32>
    %167 = vector.shape_cast %166 : vector<5xf32> to vector<5x1xf32>
    %168 = vector.broadcast %167 : vector<5x1xf32> to vector<5x5xf32>
    %169 = arith.subf %165, %168 : vector<5x5xf32>
    %170 = math.exp %169 : vector<5x5xf32>
    %cst_66 = arith.constant dense<0.000000e+00> : vector<5xf32>
    %171 = vector.multi_reduction <add>, %170, %cst_66 [1] : vector<5x5xf32> to vector<5xf32>
    %172 = vector.shape_cast %171 : vector<5xf32> to vector<5x1xf32>
    %173 = tpu.reciprocal %172 {approx = true} : vector<5x1xf32> -> vector<5x1xf32>
    %174 = vector.broadcast %173 : vector<5x1xf32> to vector<5x5xf32>
    %175 = arith.mulf %170, %174 : vector<5x5xf32>
    %176 = vector.extract_strided_slice %159 {offsets = [0, 0], sizes = [5, 16], strides = [1, 1]} : vector<5x64xf32> to vector<5x16xf32>
    %cst_67 = arith.constant dense<0.000000e+00> : vector<5x16xf32>
    %177 = tpu.matmul %175, %176, %cst_67 {dimension_numbers = #tpu.dot_dimension_numbers<[1], [0], [0], [1], [0, 0, 1, 1], [], []>} : vector<5x5xf32>, vector<5x16xf32>, vector<5x16xf32> -> vector<5x16xf32>
    %178 = vector.extract_strided_slice %72 {offsets = [0, 0], sizes = [16, 64], strides = [1, 1]} : vector<64x64xf32> to vector<16x64xf32>
    %cst_68 = arith.constant dense<0.000000e+00> : vector<5x64xf32>
    %179 = tpu.matmul %177, %178, %cst_68 {dimension_numbers = #tpu.dot_dimension_numbers<[1], [0], [0], [1], [0, 0, 1, 1], [], []>} : vector<5x16xf32>, vector<16x64xf32>, vector<5x64xf32> -> vector<5x64xf32>
    %180 = arith.addf %160, %179 : vector<5x64xf32>
    %181 = vector.extract_strided_slice %157 {offsets = [0, 16], sizes = [5, 16], strides = [1, 1]} : vector<5x64xf32> to vector<5x16xf32>
    %182 = vector.extract_strided_slice %158 {offsets = [0, 16], sizes = [5, 16], strides = [1, 1]} : vector<5x64xf32> to vector<5x16xf32>
    %cst_69 = arith.constant dense<0.000000e+00> : vector<5x5xf32>
    %183 = tpu.matmul %181, %182, %cst_69 {dimension_numbers = #tpu.dot_dimension_numbers<[1], [1], [0], [0], [0, 0, 1, 0], [], []>} : vector<5x16xf32>, vector<5x16xf32>, vector<5x5xf32> -> vector<5x5xf32>
    %cst_70 = arith.constant 2.500000e-01 : f32
    %184 = vector.broadcast %cst_70 : f32 to vector<5x5xf32>
    %185 = arith.mulf %183, %184 : vector<5x5xf32>
    %cst_71 = arith.constant dense<0xFF800000> : vector<5xf32>
    %186 = vector.multi_reduction <maximumf>, %185, %cst_71 [1] : vector<5x5xf32> to vector<5xf32>
    %187 = vector.shape_cast %186 : vector<5xf32> to vector<5x1xf32>
    %188 = vector.broadcast %187 : vector<5x1xf32> to vector<5x5xf32>
    %189 = arith.subf %185, %188 : vector<5x5xf32>
    %190 = math.exp %189 : vector<5x5xf32>
    %cst_72 = arith.constant dense<0.000000e+00> : vector<5xf32>
    %191 = vector.multi_reduction <add>, %190, %cst_72 [1] : vector<5x5xf32> to vector<5xf32>
    %192 = vector.shape_cast %191 : vector<5xf32> to vector<5x1xf32>
    %193 = tpu.reciprocal %192 {approx = true} : vector<5x1xf32> -> vector<5x1xf32>
    %194 = vector.broadcast %193 : vector<5x1xf32> to vector<5x5xf32>
    %195 = arith.mulf %190, %194 : vector<5x5xf32>
    %196 = vector.extract_strided_slice %159 {offsets = [0, 16], sizes = [5, 16], strides = [1, 1]} : vector<5x64xf32> to vector<5x16xf32>
    %cst_73 = arith.constant dense<0.000000e+00> : vector<5x16xf32>
    %197 = tpu.matmul %195, %196, %cst_73 {dimension_numbers = #tpu.dot_dimension_numbers<[1], [0], [0], [1], [0, 0, 1, 1], [], []>} : vector<5x5xf32>, vector<5x16xf32>, vector<5x16xf32> -> vector<5x16xf32>
    %198 = vector.extract_strided_slice %72 {offsets = [16, 0], sizes = [16, 64], strides = [1, 1]} : vector<64x64xf32> to vector<16x64xf32>
    %cst_74 = arith.constant dense<0.000000e+00> : vector<5x64xf32>
    %199 = tpu.matmul %197, %198, %cst_74 {dimension_numbers = #tpu.dot_dimension_numbers<[1], [0], [0], [1], [0, 0, 1, 1], [], []>} : vector<5x16xf32>, vector<16x64xf32>, vector<5x64xf32> -> vector<5x64xf32>
    %200 = arith.addf %180, %199 : vector<5x64xf32>
    %201 = vector.extract_strided_slice %157 {offsets = [0, 32], sizes = [5, 16], strides = [1, 1]} : vector<5x64xf32> to vector<5x16xf32>
    %202 = vector.extract_strided_slice %158 {offsets = [0, 32], sizes = [5, 16], strides = [1, 1]} : vector<5x64xf32> to vector<5x16xf32>
    %cst_75 = arith.constant dense<0.000000e+00> : vector<5x5xf32>
    %203 = tpu.matmul %201, %202, %cst_75 {dimension_numbers = #tpu.dot_dimension_numbers<[1], [1], [0], [0], [0, 0, 1, 0], [], []>} : vector<5x16xf32>, vector<5x16xf32>, vector<5x5xf32> -> vector<5x5xf32>
    %cst_76 = arith.constant 2.500000e-01 : f32
    %204 = vector.broadcast %cst_76 : f32 to vector<5x5xf32>
    %205 = arith.mulf %203, %204 : vector<5x5xf32>
    %cst_77 = arith.constant dense<0xFF800000> : vector<5xf32>
    %206 = vector.multi_reduction <maximumf>, %205, %cst_77 [1] : vector<5x5xf32> to vector<5xf32>
    %207 = vector.shape_cast %206 : vector<5xf32> to vector<5x1xf32>
    %208 = vector.broadcast %207 : vector<5x1xf32> to vector<5x5xf32>
    %209 = arith.subf %205, %208 : vector<5x5xf32>
    %210 = math.exp %209 : vector<5x5xf32>
    %cst_78 = arith.constant dense<0.000000e+00> : vector<5xf32>
    %211 = vector.multi_reduction <add>, %210, %cst_78 [1] : vector<5x5xf32> to vector<5xf32>
    %212 = vector.shape_cast %211 : vector<5xf32> to vector<5x1xf32>
    %213 = tpu.reciprocal %212 {approx = true} : vector<5x1xf32> -> vector<5x1xf32>
    %214 = vector.broadcast %213 : vector<5x1xf32> to vector<5x5xf32>
    %215 = arith.mulf %210, %214 : vector<5x5xf32>
    %216 = vector.extract_strided_slice %159 {offsets = [0, 32], sizes = [5, 16], strides = [1, 1]} : vector<5x64xf32> to vector<5x16xf32>
    %cst_79 = arith.constant dense<0.000000e+00> : vector<5x16xf32>
    %217 = tpu.matmul %215, %216, %cst_79 {dimension_numbers = #tpu.dot_dimension_numbers<[1], [0], [0], [1], [0, 0, 1, 1], [], []>} : vector<5x5xf32>, vector<5x16xf32>, vector<5x16xf32> -> vector<5x16xf32>
    %218 = vector.extract_strided_slice %72 {offsets = [32, 0], sizes = [16, 64], strides = [1, 1]} : vector<64x64xf32> to vector<16x64xf32>
    %cst_80 = arith.constant dense<0.000000e+00> : vector<5x64xf32>
    %219 = tpu.matmul %217, %218, %cst_80 {dimension_numbers = #tpu.dot_dimension_numbers<[1], [0], [0], [1], [0, 0, 1, 1], [], []>} : vector<5x16xf32>, vector<16x64xf32>, vector<5x64xf32> -> vector<5x64xf32>
    %220 = arith.addf %200, %219 : vector<5x64xf32>
    %221 = vector.extract_strided_slice %157 {offsets = [0, 48], sizes = [5, 16], strides = [1, 1]} : vector<5x64xf32> to vector<5x16xf32>
    %222 = vector.extract_strided_slice %158 {offsets = [0, 48], sizes = [5, 16], strides = [1, 1]} : vector<5x64xf32> to vector<5x16xf32>
    %cst_81 = arith.constant dense<0.000000e+00> : vector<5x5xf32>
    %223 = tpu.matmul %221, %222, %cst_81 {dimension_numbers = #tpu.dot_dimension_numbers<[1], [1], [0], [0], [0, 0, 1, 0], [], []>} : vector<5x16xf32>, vector<5x16xf32>, vector<5x5xf32> -> vector<5x5xf32>
    %cst_82 = arith.constant 2.500000e-01 : f32
    %224 = vector.broadcast %cst_82 : f32 to vector<5x5xf32>
    %225 = arith.mulf %223, %224 : vector<5x5xf32>
    %cst_83 = arith.constant dense<0xFF800000> : vector<5xf32>
    %226 = vector.multi_reduction <maximumf>, %225, %cst_83 [1] : vector<5x5xf32> to vector<5xf32>
    %227 = vector.shape_cast %226 : vector<5xf32> to vector<5x1xf32>
    %228 = vector.broadcast %227 : vector<5x1xf32> to vector<5x5xf32>
    %229 = arith.subf %225, %228 : vector<5x5xf32>
    %230 = math.exp %229 : vector<5x5xf32>
    %cst_84 = arith.constant dense<0.000000e+00> : vector<5xf32>
    %231 = vector.multi_reduction <add>, %230, %cst_84 [1] : vector<5x5xf32> to vector<5xf32>
    %232 = vector.shape_cast %231 : vector<5xf32> to vector<5x1xf32>
    %233 = tpu.reciprocal %232 {approx = true} : vector<5x1xf32> -> vector<5x1xf32>
    %234 = vector.broadcast %233 : vector<5x1xf32> to vector<5x5xf32>
    %235 = arith.mulf %230, %234 : vector<5x5xf32>
    %236 = vector.extract_strided_slice %159 {offsets = [0, 48], sizes = [5, 16], strides = [1, 1]} : vector<5x64xf32> to vector<5x16xf32>
    %cst_85 = arith.constant dense<0.000000e+00> : vector<5x16xf32>
    %237 = tpu.matmul %235, %236, %cst_85 {dimension_numbers = #tpu.dot_dimension_numbers<[1], [0], [0], [1], [0, 0, 1, 1], [], []>} : vector<5x5xf32>, vector<5x16xf32>, vector<5x16xf32> -> vector<5x16xf32>
    %238 = vector.extract_strided_slice %72 {offsets = [48, 0], sizes = [16, 64], strides = [1, 1]} : vector<64x64xf32> to vector<16x64xf32>
    %cst_86 = arith.constant dense<0.000000e+00> : vector<5x64xf32>
    %239 = tpu.matmul %237, %238, %cst_86 {dimension_numbers = #tpu.dot_dimension_numbers<[1], [0], [0], [1], [0, 0, 1, 1], [], []>} : vector<5x16xf32>, vector<16x64xf32>, vector<5x64xf32> -> vector<5x64xf32>
    %240 = arith.addf %220, %239 : vector<5x64xf32>
    %241 = tpu.concatenate %156, %240 in 0 : vector<5x64xf32>, vector<5x64xf32> -> vector<10x64xf32>
    %c0_87 = arith.constant 0 : index
    %c0_88 = arith.constant 0 : index
    %c0_89 = arith.constant 0 : index
    %242 = vector.load %arg12[%c0_87, %c0_88, %c0_89] : memref<2x1x64xf32, #tpu.memory_space<vmem>>, vector<1x1x64xf32>
    %243 = vector.shape_cast %242 : vector<1x1x64xf32> to vector<1x64xf32>
    %244 = vector.broadcast %243 : vector<1x64xf32> to vector<10x64xf32>
    %245 = arith.addf %241, %244 : vector<10x64xf32>
    %246 = arith.addf %37, %245 : vector<10x64xf32>
    %c0_90 = arith.constant 0 : index
    %c0_91 = arith.constant 0 : index
    %c0_92 = arith.constant 0 : index
    %247 = vector.load %arg13[%c0_90, %c0_91, %c0_92] : memref<2x1x64xf32, #tpu.memory_space<vmem>>, vector<1x1x64xf32>
    %248 = vector.shape_cast %247 : vector<1x1x64xf32> to vector<1x64xf32>
    %c0_93 = arith.constant 0 : index
    %c0_94 = arith.constant 0 : index
    %c0_95 = arith.constant 0 : index
    %249 = vector.load %arg14[%c0_93, %c0_94, %c0_95] : memref<2x1x64xf32, #tpu.memory_space<vmem>>, vector<1x1x64xf32>
    %250 = vector.shape_cast %249 : vector<1x1x64xf32> to vector<1x64xf32>
    %cst_96 = arith.constant dense<0.000000e+00> : vector<10xf32>
    %251 = vector.multi_reduction <add>, %246, %cst_96 [1] : vector<10x64xf32> to vector<10xf32>
    %252 = vector.shape_cast %251 : vector<10xf32> to vector<10x1xf32>
    %cst_97 = arith.constant 6.400000e+01 : f32
    %253 = vector.broadcast %cst_97 : f32 to vector<10x1xf32>
    %254 = arith.divf %252, %253 : vector<10x1xf32>
    %255 = vector.broadcast %254 : vector<10x1xf32> to vector<10x64xf32>
    %256 = arith.subf %246, %255 : vector<10x64xf32>
    %257 = arith.mulf %256, %256 : vector<10x64xf32>
    %cst_98 = arith.constant dense<0.000000e+00> : vector<10xf32>
    %258 = vector.multi_reduction <add>, %257, %cst_98 [1] : vector<10x64xf32> to vector<10xf32>
    %259 = vector.shape_cast %258 : vector<10xf32> to vector<10x1xf32>
    %cst_99 = arith.constant 6.400000e+01 : f32
    %260 = vector.broadcast %cst_99 : f32 to vector<10x1xf32>
    %261 = arith.divf %259, %260 : vector<10x1xf32>
    %262 = vector.broadcast %254 : vector<10x1xf32> to vector<10x64xf32>
    %263 = arith.subf %246, %262 : vector<10x64xf32>
    %cst_100 = arith.constant 9.99999974E-6 : f32
    %264 = vector.broadcast %cst_100 : f32 to vector<10x1xf32>
    %265 = arith.addf %261, %264 : vector<10x1xf32>
    %266 = math.rsqrt %265 : vector<10x1xf32>
    %267 = vector.broadcast %266 : vector<10x1xf32> to vector<10x64xf32>
    %268 = arith.mulf %263, %267 : vector<10x64xf32>
    %269 = vector.broadcast %248 : vector<1x64xf32> to vector<10x64xf32>
    %270 = arith.mulf %268, %269 : vector<10x64xf32>
    %271 = vector.broadcast %250 : vector<1x64xf32> to vector<10x64xf32>
    %272 = arith.addf %270, %271 : vector<10x64xf32>
    %c0_101 = arith.constant 0 : index
    %c0_102 = arith.constant 0 : index
    %c0_103 = arith.constant 0 : index
    %273 = vector.load %arg15[%c0_101, %c0_102, %c0_103] : memref<2x64x256xf32, #tpu.memory_space<vmem>>, vector<1x64x256xf32>
    %274 = vector.shape_cast %273 : vector<1x64x256xf32> to vector<64x256xf32>
    %cst_104 = arith.constant dense<0.000000e+00> : vector<10x256xf32>
    %275 = tpu.matmul %272, %274, %cst_104 {dimension_numbers = #tpu.dot_dimension_numbers<[1], [0], [0], [1], [0, 0, 1, 1], [], []>} : vector<10x64xf32>, vector<64x256xf32>, vector<10x256xf32> -> vector<10x256xf32>
    %c0_105 = arith.constant 0 : index
    %c0_106 = arith.constant 0 : index
    %c0_107 = arith.constant 0 : index
    %276 = vector.load %arg16[%c0_105, %c0_106, %c0_107] : memref<2x1x256xf32, #tpu.memory_space<vmem>>, vector<1x1x256xf32>
    %277 = vector.shape_cast %276 : vector<1x1x256xf32> to vector<1x256xf32>
    %278 = vector.broadcast %277 : vector<1x256xf32> to vector<10x256xf32>
    %279 = arith.addf %275, %278 : vector<10x256xf32>
    %cst_108 = arith.constant 1.702000e+00 : f32
    %280 = vector.broadcast %cst_108 : f32 to vector<10x256xf32>
    %281 = arith.mulf %280, %279 : vector<10x256xf32>
    %282 = arith.negf %281 : vector<10x256xf32>
    %283 = math.exp %282 : vector<10x256xf32>
    %cst_109 = arith.constant 1.000000e+00 : f32
    %284 = vector.broadcast %cst_109 : f32 to vector<10x256xf32>
    %285 = arith.addf %284, %283 : vector<10x256xf32>
    %286 = arith.divf %284, %285 : vector<10x256xf32>
    %287 = arith.mulf %279, %286 : vector<10x256xf32>
    %c0_110 = arith.constant 0 : index
    %c0_111 = arith.constant 0 : index
    %c0_112 = arith.constant 0 : index
    %288 = vector.load %arg17[%c0_110, %c0_111, %c0_112] : memref<2x256x64xf32, #tpu.memory_space<vmem>>, vector<1x256x64xf32>
    %289 = vector.shape_cast %288 : vector<1x256x64xf32> to vector<256x64xf32>
    %cst_113 = arith.constant dense<0.000000e+00> : vector<10x64xf32>
    %290 = tpu.matmul %287, %289, %cst_113 {dimension_numbers = #tpu.dot_dimension_numbers<[1], [0], [0], [1], [0, 0, 1, 1], [], []>} : vector<10x256xf32>, vector<256x64xf32>, vector<10x64xf32> -> vector<10x64xf32>
    %c0_114 = arith.constant 0 : index
    %c0_115 = arith.constant 0 : index
    %c0_116 = arith.constant 0 : index
    %291 = vector.load %arg18[%c0_114, %c0_115, %c0_116] : memref<2x1x64xf32, #tpu.memory_space<vmem>>, vector<1x1x64xf32>
    %292 = vector.shape_cast %291 : vector<1x1x64xf32> to vector<1x64xf32>
    %293 = vector.broadcast %292 : vector<1x64xf32> to vector<10x64xf32>
    %294 = arith.addf %290, %293 : vector<10x64xf32>
    %295 = arith.addf %246, %294 : vector<10x64xf32>
    %c1 = arith.constant 1 : index
    %c0_117 = arith.constant 0 : index
    %c0_118 = arith.constant 0 : index
    %296 = vector.load %arg7[%c1, %c0_117, %c0_118] : memref<2x1x64xf32, #tpu.memory_space<vmem>>, vector<1x1x64xf32>
    %297 = vector.shape_cast %296 : vector<1x1x64xf32> to vector<1x64xf32>
    %c1_119 = arith.constant 1 : index
    %c0_120 = arith.constant 0 : index
    %c0_121 = arith.constant 0 : index
    %298 = vector.load %arg8[%c1_119, %c0_120, %c0_121] : memref<2x1x64xf32, #tpu.memory_space<vmem>>, vector<1x1x64xf32>
    %299 = vector.shape_cast %298 : vector<1x1x64xf32> to vector<1x64xf32>
    %cst_122 = arith.constant dense<0.000000e+00> : vector<10xf32>
    %300 = vector.multi_reduction <add>, %295, %cst_122 [1] : vector<10x64xf32> to vector<10xf32>
    %301 = vector.shape_cast %300 : vector<10xf32> to vector<10x1xf32>
    %cst_123 = arith.constant 6.400000e+01 : f32
    %302 = vector.broadcast %cst_123 : f32 to vector<10x1xf32>
    %303 = arith.divf %301, %302 : vector<10x1xf32>
    %304 = vector.broadcast %303 : vector<10x1xf32> to vector<10x64xf32>
    %305 = arith.subf %295, %304 : vector<10x64xf32>
    %306 = arith.mulf %305, %305 : vector<10x64xf32>
    %cst_124 = arith.constant dense<0.000000e+00> : vector<10xf32>
    %307 = vector.multi_reduction <add>, %306, %cst_124 [1] : vector<10x64xf32> to vector<10xf32>
    %308 = vector.shape_cast %307 : vector<10xf32> to vector<10x1xf32>
    %cst_125 = arith.constant 6.400000e+01 : f32
    %309 = vector.broadcast %cst_125 : f32 to vector<10x1xf32>
    %310 = arith.divf %308, %309 : vector<10x1xf32>
    %311 = vector.broadcast %303 : vector<10x1xf32> to vector<10x64xf32>
    %312 = arith.subf %295, %311 : vector<10x64xf32>
    %cst_126 = arith.constant 9.99999974E-6 : f32
    %313 = vector.broadcast %cst_126 : f32 to vector<10x1xf32>
    %314 = arith.addf %310, %313 : vector<10x1xf32>
    %315 = math.rsqrt %314 : vector<10x1xf32>
    %316 = vector.broadcast %315 : vector<10x1xf32> to vector<10x64xf32>
    %317 = arith.mulf %312, %316 : vector<10x64xf32>
    %318 = vector.broadcast %297 : vector<1x64xf32> to vector<10x64xf32>
    %319 = arith.mulf %317, %318 : vector<10x64xf32>
    %320 = vector.broadcast %299 : vector<1x64xf32> to vector<10x64xf32>
    %321 = arith.addf %319, %320 : vector<10x64xf32>
    %c1_127 = arith.constant 1 : index
    %c0_128 = arith.constant 0 : index
    %c0_129 = arith.constant 0 : index
    %322 = vector.load %arg9[%c1_127, %c0_128, %c0_129] : memref<2x64x192xf32, #tpu.memory_space<vmem>>, vector<1x64x192xf32>
    %323 = vector.shape_cast %322 : vector<1x64x192xf32> to vector<64x192xf32>
    %cst_130 = arith.constant dense<0.000000e+00> : vector<10x192xf32>
    %324 = tpu.matmul %321, %323, %cst_130 {dimension_numbers = #tpu.dot_dimension_numbers<[1], [0], [0], [1], [0, 0, 1, 1], [], []>} : vector<10x64xf32>, vector<64x192xf32>, vector<10x192xf32> -> vector<10x192xf32>
    %c1_131 = arith.constant 1 : index
    %c0_132 = arith.constant 0 : index
    %c0_133 = arith.constant 0 : index
    %325 = vector.load %arg10[%c1_131, %c0_132, %c0_133] : memref<2x1x192xf32, #tpu.memory_space<vmem>>, vector<1x1x192xf32>
    %326 = vector.shape_cast %325 : vector<1x1x192xf32> to vector<1x192xf32>
    %327 = vector.broadcast %326 : vector<1x192xf32> to vector<10x192xf32>
    %328 = arith.addf %324, %327 : vector<10x192xf32>
    %c1_134 = arith.constant 1 : index
    %c0_135 = arith.constant 0 : index
    %c0_136 = arith.constant 0 : index
    %329 = vector.load %arg11[%c1_134, %c0_135, %c0_136] : memref<2x64x64xf32, #tpu.memory_space<vmem>>, vector<1x64x64xf32>
    %330 = vector.shape_cast %329 : vector<1x64x64xf32> to vector<64x64xf32>
    %331 = vector.extract_strided_slice %328 {offsets = [0, 0], sizes = [5, 64], strides = [1, 1]} : vector<10x192xf32> to vector<5x64xf32>
    %332 = vector.extract_strided_slice %328 {offsets = [0, 64], sizes = [5, 64], strides = [1, 1]} : vector<10x192xf32> to vector<5x64xf32>
    %333 = vector.extract_strided_slice %328 {offsets = [0, 128], sizes = [5, 64], strides = [1, 1]} : vector<10x192xf32> to vector<5x64xf32>
    %cst_137 = arith.constant 0.000000e+00 : f32
    %334 = vector.broadcast %cst_137 : f32 to vector<5x64xf32>
    %335 = vector.extract_strided_slice %331 {offsets = [0, 0], sizes = [5, 16], strides = [1, 1]} : vector<5x64xf32> to vector<5x16xf32>
    %336 = vector.extract_strided_slice %332 {offsets = [0, 0], sizes = [5, 16], strides = [1, 1]} : vector<5x64xf32> to vector<5x16xf32>
    %cst_138 = arith.constant dense<0.000000e+00> : vector<5x5xf32>
    %337 = tpu.matmul %335, %336, %cst_138 {dimension_numbers = #tpu.dot_dimension_numbers<[1], [1], [0], [0], [0, 0, 1, 0], [], []>} : vector<5x16xf32>, vector<5x16xf32>, vector<5x5xf32> -> vector<5x5xf32>
    %cst_139 = arith.constant 2.500000e-01 : f32
    %338 = vector.broadcast %cst_139 : f32 to vector<5x5xf32>
    %339 = arith.mulf %337, %338 : vector<5x5xf32>
    %cst_140 = arith.constant dense<0xFF800000> : vector<5xf32>
    %340 = vector.multi_reduction <maximumf>, %339, %cst_140 [1] : vector<5x5xf32> to vector<5xf32>
    %341 = vector.shape_cast %340 : vector<5xf32> to vector<5x1xf32>
    %342 = vector.broadcast %341 : vector<5x1xf32> to vector<5x5xf32>
    %343 = arith.subf %339, %342 : vector<5x5xf32>
    %344 = math.exp %343 : vector<5x5xf32>
    %cst_141 = arith.constant dense<0.000000e+00> : vector<5xf32>
    %345 = vector.multi_reduction <add>, %344, %cst_141 [1] : vector<5x5xf32> to vector<5xf32>
    %346 = vector.shape_cast %345 : vector<5xf32> to vector<5x1xf32>
    %347 = tpu.reciprocal %346 {approx = true} : vector<5x1xf32> -> vector<5x1xf32>
    %348 = vector.broadcast %347 : vector<5x1xf32> to vector<5x5xf32>
    %349 = arith.mulf %344, %348 : vector<5x5xf32>
    %350 = vector.extract_strided_slice %333 {offsets = [0, 0], sizes = [5, 16], strides = [1, 1]} : vector<5x64xf32> to vector<5x16xf32>
    %cst_142 = arith.constant dense<0.000000e+00> : vector<5x16xf32>
    %351 = tpu.matmul %349, %350, %cst_142 {dimension_numbers = #tpu.dot_dimension_numbers<[1], [0], [0], [1], [0, 0, 1, 1], [], []>} : vector<5x5xf32>, vector<5x16xf32>, vector<5x16xf32> -> vector<5x16xf32>
    %352 = vector.extract_strided_slice %330 {offsets = [0, 0], sizes = [16, 64], strides = [1, 1]} : vector<64x64xf32> to vector<16x64xf32>
    %cst_143 = arith.constant dense<0.000000e+00> : vector<5x64xf32>
    %353 = tpu.matmul %351, %352, %cst_143 {dimension_numbers = #tpu.dot_dimension_numbers<[1], [0], [0], [1], [0, 0, 1, 1], [], []>} : vector<5x16xf32>, vector<16x64xf32>, vector<5x64xf32> -> vector<5x64xf32>
    %354 = arith.addf %334, %353 : vector<5x64xf32>
    %355 = vector.extract_strided_slice %331 {offsets = [0, 16], sizes = [5, 16], strides = [1, 1]} : vector<5x64xf32> to vector<5x16xf32>
    %356 = vector.extract_strided_slice %332 {offsets = [0, 16], sizes = [5, 16], strides = [1, 1]} : vector<5x64xf32> to vector<5x16xf32>
    %cst_144 = arith.constant dense<0.000000e+00> : vector<5x5xf32>
    %357 = tpu.matmul %355, %356, %cst_144 {dimension_numbers = #tpu.dot_dimension_numbers<[1], [1], [0], [0], [0, 0, 1, 0], [], []>} : vector<5x16xf32>, vector<5x16xf32>, vector<5x5xf32> -> vector<5x5xf32>
    %cst_145 = arith.constant 2.500000e-01 : f32
    %358 = vector.broadcast %cst_145 : f32 to vector<5x5xf32>
    %359 = arith.mulf %357, %358 : vector<5x5xf32>
    %cst_146 = arith.constant dense<0xFF800000> : vector<5xf32>
    %360 = vector.multi_reduction <maximumf>, %359, %cst_146 [1] : vector<5x5xf32> to vector<5xf32>
    %361 = vector.shape_cast %360 : vector<5xf32> to vector<5x1xf32>
    %362 = vector.broadcast %361 : vector<5x1xf32> to vector<5x5xf32>
    %363 = arith.subf %359, %362 : vector<5x5xf32>
    %364 = math.exp %363 : vector<5x5xf32>
    %cst_147 = arith.constant dense<0.000000e+00> : vector<5xf32>
    %365 = vector.multi_reduction <add>, %364, %cst_147 [1] : vector<5x5xf32> to vector<5xf32>
    %366 = vector.shape_cast %365 : vector<5xf32> to vector<5x1xf32>
    %367 = tpu.reciprocal %366 {approx = true} : vector<5x1xf32> -> vector<5x1xf32>
    %368 = vector.broadcast %367 : vector<5x1xf32> to vector<5x5xf32>
    %369 = arith.mulf %364, %368 : vector<5x5xf32>
    %370 = vector.extract_strided_slice %333 {offsets = [0, 16], sizes = [5, 16], strides = [1, 1]} : vector<5x64xf32> to vector<5x16xf32>
    %cst_148 = arith.constant dense<0.000000e+00> : vector<5x16xf32>
    %371 = tpu.matmul %369, %370, %cst_148 {dimension_numbers = #tpu.dot_dimension_numbers<[1], [0], [0], [1], [0, 0, 1, 1], [], []>} : vector<5x5xf32>, vector<5x16xf32>, vector<5x16xf32> -> vector<5x16xf32>
    %372 = vector.extract_strided_slice %330 {offsets = [16, 0], sizes = [16, 64], strides = [1, 1]} : vector<64x64xf32> to vector<16x64xf32>
    %cst_149 = arith.constant dense<0.000000e+00> : vector<5x64xf32>
    %373 = tpu.matmul %371, %372, %cst_149 {dimension_numbers = #tpu.dot_dimension_numbers<[1], [0], [0], [1], [0, 0, 1, 1], [], []>} : vector<5x16xf32>, vector<16x64xf32>, vector<5x64xf32> -> vector<5x64xf32>
    %374 = arith.addf %354, %373 : vector<5x64xf32>
    %375 = vector.extract_strided_slice %331 {offsets = [0, 32], sizes = [5, 16], strides = [1, 1]} : vector<5x64xf32> to vector<5x16xf32>
    %376 = vector.extract_strided_slice %332 {offsets = [0, 32], sizes = [5, 16], strides = [1, 1]} : vector<5x64xf32> to vector<5x16xf32>
    %cst_150 = arith.constant dense<0.000000e+00> : vector<5x5xf32>
    %377 = tpu.matmul %375, %376, %cst_150 {dimension_numbers = #tpu.dot_dimension_numbers<[1], [1], [0], [0], [0, 0, 1, 0], [], []>} : vector<5x16xf32>, vector<5x16xf32>, vector<5x5xf32> -> vector<5x5xf32>
    %cst_151 = arith.constant 2.500000e-01 : f32
    %378 = vector.broadcast %cst_151 : f32 to vector<5x5xf32>
    %379 = arith.mulf %377, %378 : vector<5x5xf32>
    %cst_152 = arith.constant dense<0xFF800000> : vector<5xf32>
    %380 = vector.multi_reduction <maximumf>, %379, %cst_152 [1] : vector<5x5xf32> to vector<5xf32>
    %381 = vector.shape_cast %380 : vector<5xf32> to vector<5x1xf32>
    %382 = vector.broadcast %381 : vector<5x1xf32> to vector<5x5xf32>
    %383 = arith.subf %379, %382 : vector<5x5xf32>
    %384 = math.exp %383 : vector<5x5xf32>
    %cst_153 = arith.constant dense<0.000000e+00> : vector<5xf32>
    %385 = vector.multi_reduction <add>, %384, %cst_153 [1] : vector<5x5xf32> to vector<5xf32>
    %386 = vector.shape_cast %385 : vector<5xf32> to vector<5x1xf32>
    %387 = tpu.reciprocal %386 {approx = true} : vector<5x1xf32> -> vector<5x1xf32>
    %388 = vector.broadcast %387 : vector<5x1xf32> to vector<5x5xf32>
    %389 = arith.mulf %384, %388 : vector<5x5xf32>
    %390 = vector.extract_strided_slice %333 {offsets = [0, 32], sizes = [5, 16], strides = [1, 1]} : vector<5x64xf32> to vector<5x16xf32>
    %cst_154 = arith.constant dense<0.000000e+00> : vector<5x16xf32>
    %391 = tpu.matmul %389, %390, %cst_154 {dimension_numbers = #tpu.dot_dimension_numbers<[1], [0], [0], [1], [0, 0, 1, 1], [], []>} : vector<5x5xf32>, vector<5x16xf32>, vector<5x16xf32> -> vector<5x16xf32>
    %392 = vector.extract_strided_slice %330 {offsets = [32, 0], sizes = [16, 64], strides = [1, 1]} : vector<64x64xf32> to vector<16x64xf32>
    %cst_155 = arith.constant dense<0.000000e+00> : vector<5x64xf32>
    %393 = tpu.matmul %391, %392, %cst_155 {dimension_numbers = #tpu.dot_dimension_numbers<[1], [0], [0], [1], [0, 0, 1, 1], [], []>} : vector<5x16xf32>, vector<16x64xf32>, vector<5x64xf32> -> vector<5x64xf32>
    %394 = arith.addf %374, %393 : vector<5x64xf32>
    %395 = vector.extract_strided_slice %331 {offsets = [0, 48], sizes = [5, 16], strides = [1, 1]} : vector<5x64xf32> to vector<5x16xf32>
    %396 = vector.extract_strided_slice %332 {offsets = [0, 48], sizes = [5, 16], strides = [1, 1]} : vector<5x64xf32> to vector<5x16xf32>
    %cst_156 = arith.constant dense<0.000000e+00> : vector<5x5xf32>
    %397 = tpu.matmul %395, %396, %cst_156 {dimension_numbers = #tpu.dot_dimension_numbers<[1], [1], [0], [0], [0, 0, 1, 0], [], []>} : vector<5x16xf32>, vector<5x16xf32>, vector<5x5xf32> -> vector<5x5xf32>
    %cst_157 = arith.constant 2.500000e-01 : f32
    %398 = vector.broadcast %cst_157 : f32 to vector<5x5xf32>
    %399 = arith.mulf %397, %398 : vector<5x5xf32>
    %cst_158 = arith.constant dense<0xFF800000> : vector<5xf32>
    %400 = vector.multi_reduction <maximumf>, %399, %cst_158 [1] : vector<5x5xf32> to vector<5xf32>
    %401 = vector.shape_cast %400 : vector<5xf32> to vector<5x1xf32>
    %402 = vector.broadcast %401 : vector<5x1xf32> to vector<5x5xf32>
    %403 = arith.subf %399, %402 : vector<5x5xf32>
    %404 = math.exp %403 : vector<5x5xf32>
    %cst_159 = arith.constant dense<0.000000e+00> : vector<5xf32>
    %405 = vector.multi_reduction <add>, %404, %cst_159 [1] : vector<5x5xf32> to vector<5xf32>
    %406 = vector.shape_cast %405 : vector<5xf32> to vector<5x1xf32>
    %407 = tpu.reciprocal %406 {approx = true} : vector<5x1xf32> -> vector<5x1xf32>
    %408 = vector.broadcast %407 : vector<5x1xf32> to vector<5x5xf32>
    %409 = arith.mulf %404, %408 : vector<5x5xf32>
    %410 = vector.extract_strided_slice %333 {offsets = [0, 48], sizes = [5, 16], strides = [1, 1]} : vector<5x64xf32> to vector<5x16xf32>
    %cst_160 = arith.constant dense<0.000000e+00> : vector<5x16xf32>
    %411 = tpu.matmul %409, %410, %cst_160 {dimension_numbers = #tpu.dot_dimension_numbers<[1], [0], [0], [1], [0, 0, 1, 1], [], []>} : vector<5x5xf32>, vector<5x16xf32>, vector<5x16xf32> -> vector<5x16xf32>
    %412 = vector.extract_strided_slice %330 {offsets = [48, 0], sizes = [16, 64], strides = [1, 1]} : vector<64x64xf32> to vector<16x64xf32>
    %cst_161 = arith.constant dense<0.000000e+00> : vector<5x64xf32>
    %413 = tpu.matmul %411, %412, %cst_161 {dimension_numbers = #tpu.dot_dimension_numbers<[1], [0], [0], [1], [0, 0, 1, 1], [], []>} : vector<5x16xf32>, vector<16x64xf32>, vector<5x64xf32> -> vector<5x64xf32>
    %414 = arith.addf %394, %413 : vector<5x64xf32>
    %415 = vector.extract_strided_slice %328 {offsets = [5, 0], sizes = [5, 64], strides = [1, 1]} : vector<10x192xf32> to vector<5x64xf32>
    %416 = vector.extract_strided_slice %328 {offsets = [5, 64], sizes = [5, 64], strides = [1, 1]} : vector<10x192xf32> to vector<5x64xf32>
    %417 = vector.extract_strided_slice %328 {offsets = [5, 128], sizes = [5, 64], strides = [1, 1]} : vector<10x192xf32> to vector<5x64xf32>
    %cst_162 = arith.constant 0.000000e+00 : f32
    %418 = vector.broadcast %cst_162 : f32 to vector<5x64xf32>
    %419 = vector.extract_strided_slice %415 {offsets = [0, 0], sizes = [5, 16], strides = [1, 1]} : vector<5x64xf32> to vector<5x16xf32>
    %420 = vector.extract_strided_slice %416 {offsets = [0, 0], sizes = [5, 16], strides = [1, 1]} : vector<5x64xf32> to vector<5x16xf32>
    %cst_163 = arith.constant dense<0.000000e+00> : vector<5x5xf32>
    %421 = tpu.matmul %419, %420, %cst_163 {dimension_numbers = #tpu.dot_dimension_numbers<[1], [1], [0], [0], [0, 0, 1, 0], [], []>} : vector<5x16xf32>, vector<5x16xf32>, vector<5x5xf32> -> vector<5x5xf32>
    %cst_164 = arith.constant 2.500000e-01 : f32
    %422 = vector.broadcast %cst_164 : f32 to vector<5x5xf32>
    %423 = arith.mulf %421, %422 : vector<5x5xf32>
    %cst_165 = arith.constant dense<0xFF800000> : vector<5xf32>
    %424 = vector.multi_reduction <maximumf>, %423, %cst_165 [1] : vector<5x5xf32> to vector<5xf32>
    %425 = vector.shape_cast %424 : vector<5xf32> to vector<5x1xf32>
    %426 = vector.broadcast %425 : vector<5x1xf32> to vector<5x5xf32>
    %427 = arith.subf %423, %426 : vector<5x5xf32>
    %428 = math.exp %427 : vector<5x5xf32>
    %cst_166 = arith.constant dense<0.000000e+00> : vector<5xf32>
    %429 = vector.multi_reduction <add>, %428, %cst_166 [1] : vector<5x5xf32> to vector<5xf32>
    %430 = vector.shape_cast %429 : vector<5xf32> to vector<5x1xf32>
    %431 = tpu.reciprocal %430 {approx = true} : vector<5x1xf32> -> vector<5x1xf32>
    %432 = vector.broadcast %431 : vector<5x1xf32> to vector<5x5xf32>
    %433 = arith.mulf %428, %432 : vector<5x5xf32>
    %434 = vector.extract_strided_slice %417 {offsets = [0, 0], sizes = [5, 16], strides = [1, 1]} : vector<5x64xf32> to vector<5x16xf32>
    %cst_167 = arith.constant dense<0.000000e+00> : vector<5x16xf32>
    %435 = tpu.matmul %433, %434, %cst_167 {dimension_numbers = #tpu.dot_dimension_numbers<[1], [0], [0], [1], [0, 0, 1, 1], [], []>} : vector<5x5xf32>, vector<5x16xf32>, vector<5x16xf32> -> vector<5x16xf32>
    %436 = vector.extract_strided_slice %330 {offsets = [0, 0], sizes = [16, 64], strides = [1, 1]} : vector<64x64xf32> to vector<16x64xf32>
    %cst_168 = arith.constant dense<0.000000e+00> : vector<5x64xf32>
    %437 = tpu.matmul %435, %436, %cst_168 {dimension_numbers = #tpu.dot_dimension_numbers<[1], [0], [0], [1], [0, 0, 1, 1], [], []>} : vector<5x16xf32>, vector<16x64xf32>, vector<5x64xf32> -> vector<5x64xf32>
    %438 = arith.addf %418, %437 : vector<5x64xf32>
    %439 = vector.extract_strided_slice %415 {offsets = [0, 16], sizes = [5, 16], strides = [1, 1]} : vector<5x64xf32> to vector<5x16xf32>
    %440 = vector.extract_strided_slice %416 {offsets = [0, 16], sizes = [5, 16], strides = [1, 1]} : vector<5x64xf32> to vector<5x16xf32>
    %cst_169 = arith.constant dense<0.000000e+00> : vector<5x5xf32>
    %441 = tpu.matmul %439, %440, %cst_169 {dimension_numbers = #tpu.dot_dimension_numbers<[1], [1], [0], [0], [0, 0, 1, 0], [], []>} : vector<5x16xf32>, vector<5x16xf32>, vector<5x5xf32> -> vector<5x5xf32>
    %cst_170 = arith.constant 2.500000e-01 : f32
    %442 = vector.broadcast %cst_170 : f32 to vector<5x5xf32>
    %443 = arith.mulf %441, %442 : vector<5x5xf32>
    %cst_171 = arith.constant dense<0xFF800000> : vector<5xf32>
    %444 = vector.multi_reduction <maximumf>, %443, %cst_171 [1] : vector<5x5xf32> to vector<5xf32>
    %445 = vector.shape_cast %444 : vector<5xf32> to vector<5x1xf32>
    %446 = vector.broadcast %445 : vector<5x1xf32> to vector<5x5xf32>
    %447 = arith.subf %443, %446 : vector<5x5xf32>
    %448 = math.exp %447 : vector<5x5xf32>
    %cst_172 = arith.constant dense<0.000000e+00> : vector<5xf32>
    %449 = vector.multi_reduction <add>, %448, %cst_172 [1] : vector<5x5xf32> to vector<5xf32>
    %450 = vector.shape_cast %449 : vector<5xf32> to vector<5x1xf32>
    %451 = tpu.reciprocal %450 {approx = true} : vector<5x1xf32> -> vector<5x1xf32>
    %452 = vector.broadcast %451 : vector<5x1xf32> to vector<5x5xf32>
    %453 = arith.mulf %448, %452 : vector<5x5xf32>
    %454 = vector.extract_strided_slice %417 {offsets = [0, 16], sizes = [5, 16], strides = [1, 1]} : vector<5x64xf32> to vector<5x16xf32>
    %cst_173 = arith.constant dense<0.000000e+00> : vector<5x16xf32>
    %455 = tpu.matmul %453, %454, %cst_173 {dimension_numbers = #tpu.dot_dimension_numbers<[1], [0], [0], [1], [0, 0, 1, 1], [], []>} : vector<5x5xf32>, vector<5x16xf32>, vector<5x16xf32> -> vector<5x16xf32>
    %456 = vector.extract_strided_slice %330 {offsets = [16, 0], sizes = [16, 64], strides = [1, 1]} : vector<64x64xf32> to vector<16x64xf32>
    %cst_174 = arith.constant dense<0.000000e+00> : vector<5x64xf32>
    %457 = tpu.matmul %455, %456, %cst_174 {dimension_numbers = #tpu.dot_dimension_numbers<[1], [0], [0], [1], [0, 0, 1, 1], [], []>} : vector<5x16xf32>, vector<16x64xf32>, vector<5x64xf32> -> vector<5x64xf32>
    %458 = arith.addf %438, %457 : vector<5x64xf32>
    %459 = vector.extract_strided_slice %415 {offsets = [0, 32], sizes = [5, 16], strides = [1, 1]} : vector<5x64xf32> to vector<5x16xf32>
    %460 = vector.extract_strided_slice %416 {offsets = [0, 32], sizes = [5, 16], strides = [1, 1]} : vector<5x64xf32> to vector<5x16xf32>
    %cst_175 = arith.constant dense<0.000000e+00> : vector<5x5xf32>
    %461 = tpu.matmul %459, %460, %cst_175 {dimension_numbers = #tpu.dot_dimension_numbers<[1], [1], [0], [0], [0, 0, 1, 0], [], []>} : vector<5x16xf32>, vector<5x16xf32>, vector<5x5xf32> -> vector<5x5xf32>
    %cst_176 = arith.constant 2.500000e-01 : f32
    %462 = vector.broadcast %cst_176 : f32 to vector<5x5xf32>
    %463 = arith.mulf %461, %462 : vector<5x5xf32>
    %cst_177 = arith.constant dense<0xFF800000> : vector<5xf32>
    %464 = vector.multi_reduction <maximumf>, %463, %cst_177 [1] : vector<5x5xf32> to vector<5xf32>
    %465 = vector.shape_cast %464 : vector<5xf32> to vector<5x1xf32>
    %466 = vector.broadcast %465 : vector<5x1xf32> to vector<5x5xf32>
    %467 = arith.subf %463, %466 : vector<5x5xf32>
    %468 = math.exp %467 : vector<5x5xf32>
    %cst_178 = arith.constant dense<0.000000e+00> : vector<5xf32>
    %469 = vector.multi_reduction <add>, %468, %cst_178 [1] : vector<5x5xf32> to vector<5xf32>
    %470 = vector.shape_cast %469 : vector<5xf32> to vector<5x1xf32>
    %471 = tpu.reciprocal %470 {approx = true} : vector<5x1xf32> -> vector<5x1xf32>
    %472 = vector.broadcast %471 : vector<5x1xf32> to vector<5x5xf32>
    %473 = arith.mulf %468, %472 : vector<5x5xf32>
    %474 = vector.extract_strided_slice %417 {offsets = [0, 32], sizes = [5, 16], strides = [1, 1]} : vector<5x64xf32> to vector<5x16xf32>
    %cst_179 = arith.constant dense<0.000000e+00> : vector<5x16xf32>
    %475 = tpu.matmul %473, %474, %cst_179 {dimension_numbers = #tpu.dot_dimension_numbers<[1], [0], [0], [1], [0, 0, 1, 1], [], []>} : vector<5x5xf32>, vector<5x16xf32>, vector<5x16xf32> -> vector<5x16xf32>
    %476 = vector.extract_strided_slice %330 {offsets = [32, 0], sizes = [16, 64], strides = [1, 1]} : vector<64x64xf32> to vector<16x64xf32>
    %cst_180 = arith.constant dense<0.000000e+00> : vector<5x64xf32>
    %477 = tpu.matmul %475, %476, %cst_180 {dimension_numbers = #tpu.dot_dimension_numbers<[1], [0], [0], [1], [0, 0, 1, 1], [], []>} : vector<5x16xf32>, vector<16x64xf32>, vector<5x64xf32> -> vector<5x64xf32>
    %478 = arith.addf %458, %477 : vector<5x64xf32>
    %479 = vector.extract_strided_slice %415 {offsets = [0, 48], sizes = [5, 16], strides = [1, 1]} : vector<5x64xf32> to vector<5x16xf32>
    %480 = vector.extract_strided_slice %416 {offsets = [0, 48], sizes = [5, 16], strides = [1, 1]} : vector<5x64xf32> to vector<5x16xf32>
    %cst_181 = arith.constant dense<0.000000e+00> : vector<5x5xf32>
    %481 = tpu.matmul %479, %480, %cst_181 {dimension_numbers = #tpu.dot_dimension_numbers<[1], [1], [0], [0], [0, 0, 1, 0], [], []>} : vector<5x16xf32>, vector<5x16xf32>, vector<5x5xf32> -> vector<5x5xf32>
    %cst_182 = arith.constant 2.500000e-01 : f32
    %482 = vector.broadcast %cst_182 : f32 to vector<5x5xf32>
    %483 = arith.mulf %481, %482 : vector<5x5xf32>
    %cst_183 = arith.constant dense<0xFF800000> : vector<5xf32>
    %484 = vector.multi_reduction <maximumf>, %483, %cst_183 [1] : vector<5x5xf32> to vector<5xf32>
    %485 = vector.shape_cast %484 : vector<5xf32> to vector<5x1xf32>
    %486 = vector.broadcast %485 : vector<5x1xf32> to vector<5x5xf32>
    %487 = arith.subf %483, %486 : vector<5x5xf32>
    %488 = math.exp %487 : vector<5x5xf32>
    %cst_184 = arith.constant dense<0.000000e+00> : vector<5xf32>
    %489 = vector.multi_reduction <add>, %488, %cst_184 [1] : vector<5x5xf32> to vector<5xf32>
    %490 = vector.shape_cast %489 : vector<5xf32> to vector<5x1xf32>
    %491 = tpu.reciprocal %490 {approx = true} : vector<5x1xf32> -> vector<5x1xf32>
    %492 = vector.broadcast %491 : vector<5x1xf32> to vector<5x5xf32>
    %493 = arith.mulf %488, %492 : vector<5x5xf32>
    %494 = vector.extract_strided_slice %417 {offsets = [0, 48], sizes = [5, 16], strides = [1, 1]} : vector<5x64xf32> to vector<5x16xf32>
    %cst_185 = arith.constant dense<0.000000e+00> : vector<5x16xf32>
    %495 = tpu.matmul %493, %494, %cst_185 {dimension_numbers = #tpu.dot_dimension_numbers<[1], [0], [0], [1], [0, 0, 1, 1], [], []>} : vector<5x5xf32>, vector<5x16xf32>, vector<5x16xf32> -> vector<5x16xf32>
    %496 = vector.extract_strided_slice %330 {offsets = [48, 0], sizes = [16, 64], strides = [1, 1]} : vector<64x64xf32> to vector<16x64xf32>
    %cst_186 = arith.constant dense<0.000000e+00> : vector<5x64xf32>
    %497 = tpu.matmul %495, %496, %cst_186 {dimension_numbers = #tpu.dot_dimension_numbers<[1], [0], [0], [1], [0, 0, 1, 1], [], []>} : vector<5x16xf32>, vector<16x64xf32>, vector<5x64xf32> -> vector<5x64xf32>
    %498 = arith.addf %478, %497 : vector<5x64xf32>
    %499 = tpu.concatenate %414, %498 in 0 : vector<5x64xf32>, vector<5x64xf32> -> vector<10x64xf32>
    %c1_187 = arith.constant 1 : index
    %c0_188 = arith.constant 0 : index
    %c0_189 = arith.constant 0 : index
    %500 = vector.load %arg12[%c1_187, %c0_188, %c0_189] : memref<2x1x64xf32, #tpu.memory_space<vmem>>, vector<1x1x64xf32>
    %501 = vector.shape_cast %500 : vector<1x1x64xf32> to vector<1x64xf32>
    %502 = vector.broadcast %501 : vector<1x64xf32> to vector<10x64xf32>
    %503 = arith.addf %499, %502 : vector<10x64xf32>
    %504 = arith.addf %295, %503 : vector<10x64xf32>
    %c1_190 = arith.constant 1 : index
    %c0_191 = arith.constant 0 : index
    %c0_192 = arith.constant 0 : index
    %505 = vector.load %arg13[%c1_190, %c0_191, %c0_192] : memref<2x1x64xf32, #tpu.memory_space<vmem>>, vector<1x1x64xf32>
    %506 = vector.shape_cast %505 : vector<1x1x64xf32> to vector<1x64xf32>
    %c1_193 = arith.constant 1 : index
    %c0_194 = arith.constant 0 : index
    %c0_195 = arith.constant 0 : index
    %507 = vector.load %arg14[%c1_193, %c0_194, %c0_195] : memref<2x1x64xf32, #tpu.memory_space<vmem>>, vector<1x1x64xf32>
    %508 = vector.shape_cast %507 : vector<1x1x64xf32> to vector<1x64xf32>
    %cst_196 = arith.constant dense<0.000000e+00> : vector<10xf32>
    %509 = vector.multi_reduction <add>, %504, %cst_196 [1] : vector<10x64xf32> to vector<10xf32>
    %510 = vector.shape_cast %509 : vector<10xf32> to vector<10x1xf32>
    %cst_197 = arith.constant 6.400000e+01 : f32
    %511 = vector.broadcast %cst_197 : f32 to vector<10x1xf32>
    %512 = arith.divf %510, %511 : vector<10x1xf32>
    %513 = vector.broadcast %512 : vector<10x1xf32> to vector<10x64xf32>
    %514 = arith.subf %504, %513 : vector<10x64xf32>
    %515 = arith.mulf %514, %514 : vector<10x64xf32>
    %cst_198 = arith.constant dense<0.000000e+00> : vector<10xf32>
    %516 = vector.multi_reduction <add>, %515, %cst_198 [1] : vector<10x64xf32> to vector<10xf32>
    %517 = vector.shape_cast %516 : vector<10xf32> to vector<10x1xf32>
    %cst_199 = arith.constant 6.400000e+01 : f32
    %518 = vector.broadcast %cst_199 : f32 to vector<10x1xf32>
    %519 = arith.divf %517, %518 : vector<10x1xf32>
    %520 = vector.broadcast %512 : vector<10x1xf32> to vector<10x64xf32>
    %521 = arith.subf %504, %520 : vector<10x64xf32>
    %cst_200 = arith.constant 9.99999974E-6 : f32
    %522 = vector.broadcast %cst_200 : f32 to vector<10x1xf32>
    %523 = arith.addf %519, %522 : vector<10x1xf32>
    %524 = math.rsqrt %523 : vector<10x1xf32>
    %525 = vector.broadcast %524 : vector<10x1xf32> to vector<10x64xf32>
    %526 = arith.mulf %521, %525 : vector<10x64xf32>
    %527 = vector.broadcast %506 : vector<1x64xf32> to vector<10x64xf32>
    %528 = arith.mulf %526, %527 : vector<10x64xf32>
    %529 = vector.broadcast %508 : vector<1x64xf32> to vector<10x64xf32>
    %530 = arith.addf %528, %529 : vector<10x64xf32>
    %c1_201 = arith.constant 1 : index
    %c0_202 = arith.constant 0 : index
    %c0_203 = arith.constant 0 : index
    %531 = vector.load %arg15[%c1_201, %c0_202, %c0_203] : memref<2x64x256xf32, #tpu.memory_space<vmem>>, vector<1x64x256xf32>
    %532 = vector.shape_cast %531 : vector<1x64x256xf32> to vector<64x256xf32>
    %cst_204 = arith.constant dense<0.000000e+00> : vector<10x256xf32>
    %533 = tpu.matmul %530, %532, %cst_204 {dimension_numbers = #tpu.dot_dimension_numbers<[1], [0], [0], [1], [0, 0, 1, 1], [], []>} : vector<10x64xf32>, vector<64x256xf32>, vector<10x256xf32> -> vector<10x256xf32>
    %c1_205 = arith.constant 1 : index
    %c0_206 = arith.constant 0 : index
    %c0_207 = arith.constant 0 : index
    %534 = vector.load %arg16[%c1_205, %c0_206, %c0_207] : memref<2x1x256xf32, #tpu.memory_space<vmem>>, vector<1x1x256xf32>
    %535 = vector.shape_cast %534 : vector<1x1x256xf32> to vector<1x256xf32>
    %536 = vector.broadcast %535 : vector<1x256xf32> to vector<10x256xf32>
    %537 = arith.addf %533, %536 : vector<10x256xf32>
    %cst_208 = arith.constant 1.702000e+00 : f32
    %538 = vector.broadcast %cst_208 : f32 to vector<10x256xf32>
    %539 = arith.mulf %538, %537 : vector<10x256xf32>
    %540 = arith.negf %539 : vector<10x256xf32>
    %541 = math.exp %540 : vector<10x256xf32>
    %cst_209 = arith.constant 1.000000e+00 : f32
    %542 = vector.broadcast %cst_209 : f32 to vector<10x256xf32>
    %543 = arith.addf %542, %541 : vector<10x256xf32>
    %544 = arith.divf %542, %543 : vector<10x256xf32>
    %545 = arith.mulf %537, %544 : vector<10x256xf32>
    %c1_210 = arith.constant 1 : index
    %c0_211 = arith.constant 0 : index
    %c0_212 = arith.constant 0 : index
    %546 = vector.load %arg17[%c1_210, %c0_211, %c0_212] : memref<2x256x64xf32, #tpu.memory_space<vmem>>, vector<1x256x64xf32>
    %547 = vector.shape_cast %546 : vector<1x256x64xf32> to vector<256x64xf32>
    %cst_213 = arith.constant dense<0.000000e+00> : vector<10x64xf32>
    %548 = tpu.matmul %545, %547, %cst_213 {dimension_numbers = #tpu.dot_dimension_numbers<[1], [0], [0], [1], [0, 0, 1, 1], [], []>} : vector<10x256xf32>, vector<256x64xf32>, vector<10x64xf32> -> vector<10x64xf32>
    %c1_214 = arith.constant 1 : index
    %c0_215 = arith.constant 0 : index
    %c0_216 = arith.constant 0 : index
    %549 = vector.load %arg18[%c1_214, %c0_215, %c0_216] : memref<2x1x64xf32, #tpu.memory_space<vmem>>, vector<1x1x64xf32>
    %550 = vector.shape_cast %549 : vector<1x1x64xf32> to vector<1x64xf32>
    %551 = vector.broadcast %550 : vector<1x64xf32> to vector<10x64xf32>
    %552 = arith.addf %548, %551 : vector<10x64xf32>
    %553 = arith.addf %504, %552 : vector<10x64xf32>
    %c0_217 = arith.constant 0 : index
    %c0_218 = arith.constant 0 : index
    %554 = vector.load %arg19[%c0_217, %c0_218] : memref<1x64xf32, #tpu.memory_space<vmem>>, vector<1x64xf32>
    %c0_219 = arith.constant 0 : index
    %c0_220 = arith.constant 0 : index
    %555 = vector.load %arg20[%c0_219, %c0_220] : memref<1x64xf32, #tpu.memory_space<vmem>>, vector<1x64xf32>
    %cst_221 = arith.constant dense<0.000000e+00> : vector<10xf32>
    %556 = vector.multi_reduction <add>, %553, %cst_221 [1] : vector<10x64xf32> to vector<10xf32>
    %557 = vector.shape_cast %556 : vector<10xf32> to vector<10x1xf32>
    %cst_222 = arith.constant 6.400000e+01 : f32
    %558 = vector.broadcast %cst_222 : f32 to vector<10x1xf32>
    %559 = arith.divf %557, %558 : vector<10x1xf32>
    %560 = vector.broadcast %559 : vector<10x1xf32> to vector<10x64xf32>
    %561 = arith.subf %553, %560 : vector<10x64xf32>
    %562 = arith.mulf %561, %561 : vector<10x64xf32>
    %cst_223 = arith.constant dense<0.000000e+00> : vector<10xf32>
    %563 = vector.multi_reduction <add>, %562, %cst_223 [1] : vector<10x64xf32> to vector<10xf32>
    %564 = vector.shape_cast %563 : vector<10xf32> to vector<10x1xf32>
    %cst_224 = arith.constant 6.400000e+01 : f32
    %565 = vector.broadcast %cst_224 : f32 to vector<10x1xf32>
    %566 = arith.divf %564, %565 : vector<10x1xf32>
    %567 = vector.broadcast %559 : vector<10x1xf32> to vector<10x64xf32>
    %568 = arith.subf %553, %567 : vector<10x64xf32>
    %cst_225 = arith.constant 9.99999974E-6 : f32
    %569 = vector.broadcast %cst_225 : f32 to vector<10x1xf32>
    %570 = arith.addf %566, %569 : vector<10x1xf32>
    %571 = math.rsqrt %570 : vector<10x1xf32>
    %572 = vector.broadcast %571 : vector<10x1xf32> to vector<10x64xf32>
    %573 = arith.mulf %568, %572 : vector<10x64xf32>
    %574 = vector.broadcast %554 : vector<1x64xf32> to vector<10x64xf32>
    %575 = arith.mulf %573, %574 : vector<10x64xf32>
    %576 = vector.broadcast %555 : vector<1x64xf32> to vector<10x64xf32>
    %577 = arith.addf %575, %576 : vector<10x64xf32>
    %c0_226 = arith.constant 0 : index
    %c0_227 = arith.constant 0 : index
    %578 = vector.load %arg21[%c0_226, %c0_227] : memref<64x32xf32, #tpu.memory_space<vmem>>, vector<64x32xf32>
    %cst_228 = arith.constant dense<0.000000e+00> : vector<10x32xf32>
    %579 = tpu.matmul %577, %578, %cst_228 {dimension_numbers = #tpu.dot_dimension_numbers<[1], [0], [0], [1], [0, 0, 1, 1], [], []>} : vector<10x64xf32>, vector<64x32xf32>, vector<10x32xf32> -> vector<10x32xf32>
    %c0_229 = arith.constant 0 : index
    %c0_230 = arith.constant 0 : index
    %580 = vector.load %arg25[%c0_229, %c0_230] : memref<16x64xf32, #tpu.memory_space<vmem>>, vector<16x64xf32>
    %c0_231 = arith.constant 0 : index
    %c0_232 = arith.constant 0 : index
    %581 = vector.load %arg22[%c0_231, %c0_232] : memref<4x64xf32, #tpu.memory_space<vmem>>, vector<4x64xf32>
    %c0_233 = arith.constant 0 : index
    %c0_234 = arith.constant 0 : index
    %c0_235 = arith.constant 0 : index
    %582 = vector.load %arg23[%c0_233, %c0_234, %c0_235] : memref<3x1x64xf32, #tpu.memory_space<vmem>>, vector<3x1x64xf32>
    %c0_236 = arith.constant 0 : index
    %c0_237 = arith.constant 0 : index
    %c0_238 = arith.constant 0 : index
    %583 = vector.load %arg24[%c0_236, %c0_237, %c0_238] : memref<3x11x64xf32, #tpu.memory_space<vmem>>, vector<3x11x64xf32>
    %584 = vector.extract_strided_slice %582 {offsets = [0, 0, 0], sizes = [1, 1, 64], strides = [1, 1, 1]} : vector<3x1x64xf32> to vector<1x1x64xf32>
    %585 = vector.shape_cast %584 : vector<1x1x64xf32> to vector<1x64xf32>
    %586 = vector.extract_strided_slice %580 {offsets = [0, 0], sizes = [1, 64], strides = [1, 1]} : vector<16x64xf32> to vector<1x64xf32>
    %587 = arith.addf %585, %586 : vector<1x64xf32>
    %588 = vector.extract_strided_slice %580 {offsets = [1, 0], sizes = [4, 64], strides = [1, 1]} : vector<16x64xf32> to vector<4x64xf32>
    %589 = arith.addf %581, %588 : vector<4x64xf32>
    %590 = vector.extract_strided_slice %583 {offsets = [0, 0, 0], sizes = [1, 11, 64], strides = [1, 1, 1]} : vector<3x11x64xf32> to vector<1x11x64xf32>
    %591 = vector.shape_cast %590 : vector<1x11x64xf32> to vector<11x64xf32>
    %592 = vector.extract_strided_slice %580 {offsets = [5, 0], sizes = [11, 64], strides = [1, 1]} : vector<16x64xf32> to vector<11x64xf32>
    %593 = arith.addf %591, %592 : vector<11x64xf32>
    %594 = vector.extract_strided_slice %582 {offsets = [1, 0, 0], sizes = [1, 1, 64], strides = [1, 1, 1]} : vector<3x1x64xf32> to vector<1x1x64xf32>
    %595 = vector.shape_cast %594 : vector<1x1x64xf32> to vector<1x64xf32>
    %596 = vector.extract_strided_slice %580 {offsets = [0, 0], sizes = [1, 64], strides = [1, 1]} : vector<16x64xf32> to vector<1x64xf32>
    %597 = arith.addf %595, %596 : vector<1x64xf32>
    %598 = vector.extract_strided_slice %580 {offsets = [1, 0], sizes = [4, 64], strides = [1, 1]} : vector<16x64xf32> to vector<4x64xf32>
    %599 = arith.addf %581, %598 : vector<4x64xf32>
    %600 = vector.extract_strided_slice %583 {offsets = [1, 0, 0], sizes = [1, 11, 64], strides = [1, 1, 1]} : vector<3x11x64xf32> to vector<1x11x64xf32>
    %601 = vector.shape_cast %600 : vector<1x11x64xf32> to vector<11x64xf32>
    %602 = vector.extract_strided_slice %580 {offsets = [5, 0], sizes = [11, 64], strides = [1, 1]} : vector<16x64xf32> to vector<11x64xf32>
    %603 = arith.addf %601, %602 : vector<11x64xf32>
    %604 = vector.extract_strided_slice %582 {offsets = [2, 0, 0], sizes = [1, 1, 64], strides = [1, 1, 1]} : vector<3x1x64xf32> to vector<1x1x64xf32>
    %605 = vector.shape_cast %604 : vector<1x1x64xf32> to vector<1x64xf32>
    %606 = vector.extract_strided_slice %580 {offsets = [0, 0], sizes = [1, 64], strides = [1, 1]} : vector<16x64xf32> to vector<1x64xf32>
    %607 = arith.addf %605, %606 : vector<1x64xf32>
    %608 = vector.extract_strided_slice %580 {offsets = [1, 0], sizes = [4, 64], strides = [1, 1]} : vector<16x64xf32> to vector<4x64xf32>
    %609 = arith.addf %581, %608 : vector<4x64xf32>
    %610 = vector.extract_strided_slice %583 {offsets = [2, 0, 0], sizes = [1, 11, 64], strides = [1, 1, 1]} : vector<3x11x64xf32> to vector<1x11x64xf32>
    %611 = vector.shape_cast %610 : vector<1x11x64xf32> to vector<11x64xf32>
    %612 = vector.extract_strided_slice %580 {offsets = [5, 0], sizes = [11, 64], strides = [1, 1]} : vector<16x64xf32> to vector<11x64xf32>
    %613 = arith.addf %611, %612 : vector<11x64xf32>
    %614 = tpu.concatenate %587, %589, %593, %597, %599, %603, %607, %609, %613 in 0 : vector<1x64xf32>, vector<4x64xf32>, vector<11x64xf32>, vector<1x64xf32>, vector<4x64xf32>, vector<11x64xf32>, vector<1x64xf32>, vector<4x64xf32>, vector<11x64xf32> -> vector<48x64xf32>
    %615 = tpu.iota {dimensions = array<i32: 0>} : vector<16x16xi32>
    %616 = tpu.iota {dimensions = array<i32: 1>} : vector<16x16xi32>
    %617 = arith.cmpi sle, %616, %615 : vector<16x16xi32>
    %c0_239 = arith.constant 0 : index
    %c0_240 = arith.constant 0 : index
    %c0_241 = arith.constant 0 : index
    %618 = vector.load %arg26[%c0_239, %c0_240, %c0_241] : memref<2x1x64xf32, #tpu.memory_space<vmem>>, vector<1x1x64xf32>
    %619 = vector.shape_cast %618 : vector<1x1x64xf32> to vector<1x64xf32>
    %c0_242 = arith.constant 0 : index
    %c0_243 = arith.constant 0 : index
    %c0_244 = arith.constant 0 : index
    %620 = vector.load %arg27[%c0_242, %c0_243, %c0_244] : memref<2x1x64xf32, #tpu.memory_space<vmem>>, vector<1x1x64xf32>
    %621 = vector.shape_cast %620 : vector<1x1x64xf32> to vector<1x64xf32>
    %cst_245 = arith.constant dense<0.000000e+00> : vector<48xf32>
    %622 = vector.multi_reduction <add>, %614, %cst_245 [1] : vector<48x64xf32> to vector<48xf32>
    %623 = vector.shape_cast %622 : vector<48xf32> to vector<48x1xf32>
    %cst_246 = arith.constant 6.400000e+01 : f32
    %624 = vector.broadcast %cst_246 : f32 to vector<48x1xf32>
    %625 = arith.divf %623, %624 : vector<48x1xf32>
    %626 = vector.broadcast %625 : vector<48x1xf32> to vector<48x64xf32>
    %627 = arith.subf %614, %626 : vector<48x64xf32>
    %628 = arith.mulf %627, %627 : vector<48x64xf32>
    %cst_247 = arith.constant dense<0.000000e+00> : vector<48xf32>
    %629 = vector.multi_reduction <add>, %628, %cst_247 [1] : vector<48x64xf32> to vector<48xf32>
    %630 = vector.shape_cast %629 : vector<48xf32> to vector<48x1xf32>
    %cst_248 = arith.constant 6.400000e+01 : f32
    %631 = vector.broadcast %cst_248 : f32 to vector<48x1xf32>
    %632 = arith.divf %630, %631 : vector<48x1xf32>
    %633 = vector.broadcast %625 : vector<48x1xf32> to vector<48x64xf32>
    %634 = arith.subf %614, %633 : vector<48x64xf32>
    %cst_249 = arith.constant 9.99999974E-6 : f32
    %635 = vector.broadcast %cst_249 : f32 to vector<48x1xf32>
    %636 = arith.addf %632, %635 : vector<48x1xf32>
    %637 = math.rsqrt %636 : vector<48x1xf32>
    %638 = vector.broadcast %637 : vector<48x1xf32> to vector<48x64xf32>
    %639 = arith.mulf %634, %638 : vector<48x64xf32>
    %640 = vector.broadcast %619 : vector<1x64xf32> to vector<48x64xf32>
    %641 = arith.mulf %639, %640 : vector<48x64xf32>
    %642 = vector.broadcast %621 : vector<1x64xf32> to vector<48x64xf32>
    %643 = arith.addf %641, %642 : vector<48x64xf32>
    %c0_250 = arith.constant 0 : index
    %c0_251 = arith.constant 0 : index
    %c0_252 = arith.constant 0 : index
    %644 = vector.load %arg28[%c0_250, %c0_251, %c0_252] : memref<2x64x192xf32, #tpu.memory_space<vmem>>, vector<1x64x192xf32>
    %645 = vector.shape_cast %644 : vector<1x64x192xf32> to vector<64x192xf32>
    %cst_253 = arith.constant dense<0.000000e+00> : vector<48x192xf32>
    %646 = tpu.matmul %643, %645, %cst_253 {dimension_numbers = #tpu.dot_dimension_numbers<[1], [0], [0], [1], [0, 0, 1, 1], [], []>} : vector<48x64xf32>, vector<64x192xf32>, vector<48x192xf32> -> vector<48x192xf32>
    %c0_254 = arith.constant 0 : index
    %c0_255 = arith.constant 0 : index
    %c0_256 = arith.constant 0 : index
    %647 = vector.load %arg29[%c0_254, %c0_255, %c0_256] : memref<2x1x192xf32, #tpu.memory_space<vmem>>, vector<1x1x192xf32>
    %648 = vector.shape_cast %647 : vector<1x1x192xf32> to vector<1x192xf32>
    %649 = vector.broadcast %648 : vector<1x192xf32> to vector<48x192xf32>
    %650 = arith.addf %646, %649 : vector<48x192xf32>
    %c0_257 = arith.constant 0 : index
    %c0_258 = arith.constant 0 : index
    %c0_259 = arith.constant 0 : index
    %651 = vector.load %arg30[%c0_257, %c0_258, %c0_259] : memref<2x64x64xf32, #tpu.memory_space<vmem>>, vector<1x64x64xf32>
    %652 = vector.shape_cast %651 : vector<1x64x64xf32> to vector<64x64xf32>
    %653 = vector.extract_strided_slice %650 {offsets = [0, 0], sizes = [16, 64], strides = [1, 1]} : vector<48x192xf32> to vector<16x64xf32>
    %654 = vector.extract_strided_slice %650 {offsets = [0, 64], sizes = [16, 64], strides = [1, 1]} : vector<48x192xf32> to vector<16x64xf32>
    %655 = vector.extract_strided_slice %650 {offsets = [0, 128], sizes = [16, 64], strides = [1, 1]} : vector<48x192xf32> to vector<16x64xf32>
    %cst_260 = arith.constant 0.000000e+00 : f32
    %656 = vector.broadcast %cst_260 : f32 to vector<16x64xf32>
    %657 = vector.extract_strided_slice %653 {offsets = [0, 0], sizes = [16, 16], strides = [1, 1]} : vector<16x64xf32> to vector<16x16xf32>
    %658 = vector.extract_strided_slice %654 {offsets = [0, 0], sizes = [16, 16], strides = [1, 1]} : vector<16x64xf32> to vector<16x16xf32>
    %cst_261 = arith.constant dense<0.000000e+00> : vector<16x16xf32>
    %659 = tpu.matmul %657, %658, %cst_261 {dimension_numbers = #tpu.dot_dimension_numbers<[1], [1], [0], [0], [0, 0, 1, 0], [], []>} : vector<16x16xf32>, vector<16x16xf32>, vector<16x16xf32> -> vector<16x16xf32>
    %cst_262 = arith.constant 2.500000e-01 : f32
    %660 = vector.broadcast %cst_262 : f32 to vector<16x16xf32>
    %661 = arith.mulf %659, %660 : vector<16x16xf32>
    %cst_263 = arith.constant -3.40282347E+38 : f32
    %662 = vector.broadcast %cst_263 : f32 to vector<16x16xf32>
    %663 = arith.select %617, %661, %662 : vector<16x16xi1>, vector<16x16xf32>
    %cst_264 = arith.constant dense<0xFF800000> : vector<16xf32>
    %664 = vector.multi_reduction <maximumf>, %663, %cst_264 [1] : vector<16x16xf32> to vector<16xf32>
    %665 = vector.shape_cast %664 : vector<16xf32> to vector<16x1xf32>
    %666 = vector.broadcast %665 : vector<16x1xf32> to vector<16x16xf32>
    %667 = arith.subf %663, %666 : vector<16x16xf32>
    %668 = math.exp %667 : vector<16x16xf32>
    %cst_265 = arith.constant dense<0.000000e+00> : vector<16xf32>
    %669 = vector.multi_reduction <add>, %668, %cst_265 [1] : vector<16x16xf32> to vector<16xf32>
    %670 = vector.shape_cast %669 : vector<16xf32> to vector<16x1xf32>
    %671 = tpu.reciprocal %670 {approx = true} : vector<16x1xf32> -> vector<16x1xf32>
    %672 = vector.broadcast %671 : vector<16x1xf32> to vector<16x16xf32>
    %673 = arith.mulf %668, %672 : vector<16x16xf32>
    %674 = vector.extract_strided_slice %655 {offsets = [0, 0], sizes = [16, 16], strides = [1, 1]} : vector<16x64xf32> to vector<16x16xf32>
    %cst_266 = arith.constant dense<0.000000e+00> : vector<16x16xf32>
    %675 = tpu.matmul %673, %674, %cst_266 {dimension_numbers = #tpu.dot_dimension_numbers<[1], [0], [0], [1], [0, 0, 1, 1], [], []>} : vector<16x16xf32>, vector<16x16xf32>, vector<16x16xf32> -> vector<16x16xf32>
    %676 = vector.extract_strided_slice %652 {offsets = [0, 0], sizes = [16, 64], strides = [1, 1]} : vector<64x64xf32> to vector<16x64xf32>
    %cst_267 = arith.constant dense<0.000000e+00> : vector<16x64xf32>
    %677 = tpu.matmul %675, %676, %cst_267 {dimension_numbers = #tpu.dot_dimension_numbers<[1], [0], [0], [1], [0, 0, 1, 1], [], []>} : vector<16x16xf32>, vector<16x64xf32>, vector<16x64xf32> -> vector<16x64xf32>
    %678 = arith.addf %656, %677 : vector<16x64xf32>
    %679 = vector.extract_strided_slice %653 {offsets = [0, 16], sizes = [16, 16], strides = [1, 1]} : vector<16x64xf32> to vector<16x16xf32>
    %680 = vector.extract_strided_slice %654 {offsets = [0, 16], sizes = [16, 16], strides = [1, 1]} : vector<16x64xf32> to vector<16x16xf32>
    %cst_268 = arith.constant dense<0.000000e+00> : vector<16x16xf32>
    %681 = tpu.matmul %679, %680, %cst_268 {dimension_numbers = #tpu.dot_dimension_numbers<[1], [1], [0], [0], [0, 0, 1, 0], [], []>} : vector<16x16xf32>, vector<16x16xf32>, vector<16x16xf32> -> vector<16x16xf32>
    %cst_269 = arith.constant 2.500000e-01 : f32
    %682 = vector.broadcast %cst_269 : f32 to vector<16x16xf32>
    %683 = arith.mulf %681, %682 : vector<16x16xf32>
    %cst_270 = arith.constant -3.40282347E+38 : f32
    %684 = vector.broadcast %cst_270 : f32 to vector<16x16xf32>
    %685 = arith.select %617, %683, %684 : vector<16x16xi1>, vector<16x16xf32>
    %cst_271 = arith.constant dense<0xFF800000> : vector<16xf32>
    %686 = vector.multi_reduction <maximumf>, %685, %cst_271 [1] : vector<16x16xf32> to vector<16xf32>
    %687 = vector.shape_cast %686 : vector<16xf32> to vector<16x1xf32>
    %688 = vector.broadcast %687 : vector<16x1xf32> to vector<16x16xf32>
    %689 = arith.subf %685, %688 : vector<16x16xf32>
    %690 = math.exp %689 : vector<16x16xf32>
    %cst_272 = arith.constant dense<0.000000e+00> : vector<16xf32>
    %691 = vector.multi_reduction <add>, %690, %cst_272 [1] : vector<16x16xf32> to vector<16xf32>
    %692 = vector.shape_cast %691 : vector<16xf32> to vector<16x1xf32>
    %693 = tpu.reciprocal %692 {approx = true} : vector<16x1xf32> -> vector<16x1xf32>
    %694 = vector.broadcast %693 : vector<16x1xf32> to vector<16x16xf32>
    %695 = arith.mulf %690, %694 : vector<16x16xf32>
    %696 = vector.extract_strided_slice %655 {offsets = [0, 16], sizes = [16, 16], strides = [1, 1]} : vector<16x64xf32> to vector<16x16xf32>
    %cst_273 = arith.constant dense<0.000000e+00> : vector<16x16xf32>
    %697 = tpu.matmul %695, %696, %cst_273 {dimension_numbers = #tpu.dot_dimension_numbers<[1], [0], [0], [1], [0, 0, 1, 1], [], []>} : vector<16x16xf32>, vector<16x16xf32>, vector<16x16xf32> -> vector<16x16xf32>
    %698 = vector.extract_strided_slice %652 {offsets = [16, 0], sizes = [16, 64], strides = [1, 1]} : vector<64x64xf32> to vector<16x64xf32>
    %cst_274 = arith.constant dense<0.000000e+00> : vector<16x64xf32>
    %699 = tpu.matmul %697, %698, %cst_274 {dimension_numbers = #tpu.dot_dimension_numbers<[1], [0], [0], [1], [0, 0, 1, 1], [], []>} : vector<16x16xf32>, vector<16x64xf32>, vector<16x64xf32> -> vector<16x64xf32>
    %700 = arith.addf %678, %699 : vector<16x64xf32>
    %701 = vector.extract_strided_slice %653 {offsets = [0, 32], sizes = [16, 16], strides = [1, 1]} : vector<16x64xf32> to vector<16x16xf32>
    %702 = vector.extract_strided_slice %654 {offsets = [0, 32], sizes = [16, 16], strides = [1, 1]} : vector<16x64xf32> to vector<16x16xf32>
    %cst_275 = arith.constant dense<0.000000e+00> : vector<16x16xf32>
    %703 = tpu.matmul %701, %702, %cst_275 {dimension_numbers = #tpu.dot_dimension_numbers<[1], [1], [0], [0], [0, 0, 1, 0], [], []>} : vector<16x16xf32>, vector<16x16xf32>, vector<16x16xf32> -> vector<16x16xf32>
    %cst_276 = arith.constant 2.500000e-01 : f32
    %704 = vector.broadcast %cst_276 : f32 to vector<16x16xf32>
    %705 = arith.mulf %703, %704 : vector<16x16xf32>
    %cst_277 = arith.constant -3.40282347E+38 : f32
    %706 = vector.broadcast %cst_277 : f32 to vector<16x16xf32>
    %707 = arith.select %617, %705, %706 : vector<16x16xi1>, vector<16x16xf32>
    %cst_278 = arith.constant dense<0xFF800000> : vector<16xf32>
    %708 = vector.multi_reduction <maximumf>, %707, %cst_278 [1] : vector<16x16xf32> to vector<16xf32>
    %709 = vector.shape_cast %708 : vector<16xf32> to vector<16x1xf32>
    %710 = vector.broadcast %709 : vector<16x1xf32> to vector<16x16xf32>
    %711 = arith.subf %707, %710 : vector<16x16xf32>
    %712 = math.exp %711 : vector<16x16xf32>
    %cst_279 = arith.constant dense<0.000000e+00> : vector<16xf32>
    %713 = vector.multi_reduction <add>, %712, %cst_279 [1] : vector<16x16xf32> to vector<16xf32>
    %714 = vector.shape_cast %713 : vector<16xf32> to vector<16x1xf32>
    %715 = tpu.reciprocal %714 {approx = true} : vector<16x1xf32> -> vector<16x1xf32>
    %716 = vector.broadcast %715 : vector<16x1xf32> to vector<16x16xf32>
    %717 = arith.mulf %712, %716 : vector<16x16xf32>
    %718 = vector.extract_strided_slice %655 {offsets = [0, 32], sizes = [16, 16], strides = [1, 1]} : vector<16x64xf32> to vector<16x16xf32>
    %cst_280 = arith.constant dense<0.000000e+00> : vector<16x16xf32>
    %719 = tpu.matmul %717, %718, %cst_280 {dimension_numbers = #tpu.dot_dimension_numbers<[1], [0], [0], [1], [0, 0, 1, 1], [], []>} : vector<16x16xf32>, vector<16x16xf32>, vector<16x16xf32> -> vector<16x16xf32>
    %720 = vector.extract_strided_slice %652 {offsets = [32, 0], sizes = [16, 64], strides = [1, 1]} : vector<64x64xf32> to vector<16x64xf32>
    %cst_281 = arith.constant dense<0.000000e+00> : vector<16x64xf32>
    %721 = tpu.matmul %719, %720, %cst_281 {dimension_numbers = #tpu.dot_dimension_numbers<[1], [0], [0], [1], [0, 0, 1, 1], [], []>} : vector<16x16xf32>, vector<16x64xf32>, vector<16x64xf32> -> vector<16x64xf32>
    %722 = arith.addf %700, %721 : vector<16x64xf32>
    %723 = vector.extract_strided_slice %653 {offsets = [0, 48], sizes = [16, 16], strides = [1, 1]} : vector<16x64xf32> to vector<16x16xf32>
    %724 = vector.extract_strided_slice %654 {offsets = [0, 48], sizes = [16, 16], strides = [1, 1]} : vector<16x64xf32> to vector<16x16xf32>
    %cst_282 = arith.constant dense<0.000000e+00> : vector<16x16xf32>
    %725 = tpu.matmul %723, %724, %cst_282 {dimension_numbers = #tpu.dot_dimension_numbers<[1], [1], [0], [0], [0, 0, 1, 0], [], []>} : vector<16x16xf32>, vector<16x16xf32>, vector<16x16xf32> -> vector<16x16xf32>
    %cst_283 = arith.constant 2.500000e-01 : f32
    %726 = vector.broadcast %cst_283 : f32 to vector<16x16xf32>
    %727 = arith.mulf %725, %726 : vector<16x16xf32>
    %cst_284 = arith.constant -3.40282347E+38 : f32
    %728 = vector.broadcast %cst_284 : f32 to vector<16x16xf32>
    %729 = arith.select %617, %727, %728 : vector<16x16xi1>, vector<16x16xf32>
    %cst_285 = arith.constant dense<0xFF800000> : vector<16xf32>
    %730 = vector.multi_reduction <maximumf>, %729, %cst_285 [1] : vector<16x16xf32> to vector<16xf32>
    %731 = vector.shape_cast %730 : vector<16xf32> to vector<16x1xf32>
    %732 = vector.broadcast %731 : vector<16x1xf32> to vector<16x16xf32>
    %733 = arith.subf %729, %732 : vector<16x16xf32>
    %734 = math.exp %733 : vector<16x16xf32>
    %cst_286 = arith.constant dense<0.000000e+00> : vector<16xf32>
    %735 = vector.multi_reduction <add>, %734, %cst_286 [1] : vector<16x16xf32> to vector<16xf32>
    %736 = vector.shape_cast %735 : vector<16xf32> to vector<16x1xf32>
    %737 = tpu.reciprocal %736 {approx = true} : vector<16x1xf32> -> vector<16x1xf32>
    %738 = vector.broadcast %737 : vector<16x1xf32> to vector<16x16xf32>
    %739 = arith.mulf %734, %738 : vector<16x16xf32>
    %740 = vector.extract_strided_slice %655 {offsets = [0, 48], sizes = [16, 16], strides = [1, 1]} : vector<16x64xf32> to vector<16x16xf32>
    %cst_287 = arith.constant dense<0.000000e+00> : vector<16x16xf32>
    %741 = tpu.matmul %739, %740, %cst_287 {dimension_numbers = #tpu.dot_dimension_numbers<[1], [0], [0], [1], [0, 0, 1, 1], [], []>} : vector<16x16xf32>, vector<16x16xf32>, vector<16x16xf32> -> vector<16x16xf32>
    %742 = vector.extract_strided_slice %652 {offsets = [48, 0], sizes = [16, 64], strides = [1, 1]} : vector<64x64xf32> to vector<16x64xf32>
    %cst_288 = arith.constant dense<0.000000e+00> : vector<16x64xf32>
    %743 = tpu.matmul %741, %742, %cst_288 {dimension_numbers = #tpu.dot_dimension_numbers<[1], [0], [0], [1], [0, 0, 1, 1], [], []>} : vector<16x16xf32>, vector<16x64xf32>, vector<16x64xf32> -> vector<16x64xf32>
    %744 = arith.addf %722, %743 : vector<16x64xf32>
    %745 = vector.extract_strided_slice %650 {offsets = [16, 0], sizes = [16, 64], strides = [1, 1]} : vector<48x192xf32> to vector<16x64xf32>
    %746 = vector.extract_strided_slice %650 {offsets = [16, 64], sizes = [16, 64], strides = [1, 1]} : vector<48x192xf32> to vector<16x64xf32>
    %747 = vector.extract_strided_slice %650 {offsets = [16, 128], sizes = [16, 64], strides = [1, 1]} : vector<48x192xf32> to vector<16x64xf32>
    %cst_289 = arith.constant 0.000000e+00 : f32
    %748 = vector.broadcast %cst_289 : f32 to vector<16x64xf32>
    %749 = vector.extract_strided_slice %745 {offsets = [0, 0], sizes = [16, 16], strides = [1, 1]} : vector<16x64xf32> to vector<16x16xf32>
    %750 = vector.extract_strided_slice %746 {offsets = [0, 0], sizes = [16, 16], strides = [1, 1]} : vector<16x64xf32> to vector<16x16xf32>
    %cst_290 = arith.constant dense<0.000000e+00> : vector<16x16xf32>
    %751 = tpu.matmul %749, %750, %cst_290 {dimension_numbers = #tpu.dot_dimension_numbers<[1], [1], [0], [0], [0, 0, 1, 0], [], []>} : vector<16x16xf32>, vector<16x16xf32>, vector<16x16xf32> -> vector<16x16xf32>
    %cst_291 = arith.constant 2.500000e-01 : f32
    %752 = vector.broadcast %cst_291 : f32 to vector<16x16xf32>
    %753 = arith.mulf %751, %752 : vector<16x16xf32>
    %cst_292 = arith.constant -3.40282347E+38 : f32
    %754 = vector.broadcast %cst_292 : f32 to vector<16x16xf32>
    %755 = arith.select %617, %753, %754 : vector<16x16xi1>, vector<16x16xf32>
    %cst_293 = arith.constant dense<0xFF800000> : vector<16xf32>
    %756 = vector.multi_reduction <maximumf>, %755, %cst_293 [1] : vector<16x16xf32> to vector<16xf32>
    %757 = vector.shape_cast %756 : vector<16xf32> to vector<16x1xf32>
    %758 = vector.broadcast %757 : vector<16x1xf32> to vector<16x16xf32>
    %759 = arith.subf %755, %758 : vector<16x16xf32>
    %760 = math.exp %759 : vector<16x16xf32>
    %cst_294 = arith.constant dense<0.000000e+00> : vector<16xf32>
    %761 = vector.multi_reduction <add>, %760, %cst_294 [1] : vector<16x16xf32> to vector<16xf32>
    %762 = vector.shape_cast %761 : vector<16xf32> to vector<16x1xf32>
    %763 = tpu.reciprocal %762 {approx = true} : vector<16x1xf32> -> vector<16x1xf32>
    %764 = vector.broadcast %763 : vector<16x1xf32> to vector<16x16xf32>
    %765 = arith.mulf %760, %764 : vector<16x16xf32>
    %766 = vector.extract_strided_slice %747 {offsets = [0, 0], sizes = [16, 16], strides = [1, 1]} : vector<16x64xf32> to vector<16x16xf32>
    %cst_295 = arith.constant dense<0.000000e+00> : vector<16x16xf32>
    %767 = tpu.matmul %765, %766, %cst_295 {dimension_numbers = #tpu.dot_dimension_numbers<[1], [0], [0], [1], [0, 0, 1, 1], [], []>} : vector<16x16xf32>, vector<16x16xf32>, vector<16x16xf32> -> vector<16x16xf32>
    %768 = vector.extract_strided_slice %652 {offsets = [0, 0], sizes = [16, 64], strides = [1, 1]} : vector<64x64xf32> to vector<16x64xf32>
    %cst_296 = arith.constant dense<0.000000e+00> : vector<16x64xf32>
    %769 = tpu.matmul %767, %768, %cst_296 {dimension_numbers = #tpu.dot_dimension_numbers<[1], [0], [0], [1], [0, 0, 1, 1], [], []>} : vector<16x16xf32>, vector<16x64xf32>, vector<16x64xf32> -> vector<16x64xf32>
    %770 = arith.addf %748, %769 : vector<16x64xf32>
    %771 = vector.extract_strided_slice %745 {offsets = [0, 16], sizes = [16, 16], strides = [1, 1]} : vector<16x64xf32> to vector<16x16xf32>
    %772 = vector.extract_strided_slice %746 {offsets = [0, 16], sizes = [16, 16], strides = [1, 1]} : vector<16x64xf32> to vector<16x16xf32>
    %cst_297 = arith.constant dense<0.000000e+00> : vector<16x16xf32>
    %773 = tpu.matmul %771, %772, %cst_297 {dimension_numbers = #tpu.dot_dimension_numbers<[1], [1], [0], [0], [0, 0, 1, 0], [], []>} : vector<16x16xf32>, vector<16x16xf32>, vector<16x16xf32> -> vector<16x16xf32>
    %cst_298 = arith.constant 2.500000e-01 : f32
    %774 = vector.broadcast %cst_298 : f32 to vector<16x16xf32>
    %775 = arith.mulf %773, %774 : vector<16x16xf32>
    %cst_299 = arith.constant -3.40282347E+38 : f32
    %776 = vector.broadcast %cst_299 : f32 to vector<16x16xf32>
    %777 = arith.select %617, %775, %776 : vector<16x16xi1>, vector<16x16xf32>
    %cst_300 = arith.constant dense<0xFF800000> : vector<16xf32>
    %778 = vector.multi_reduction <maximumf>, %777, %cst_300 [1] : vector<16x16xf32> to vector<16xf32>
    %779 = vector.shape_cast %778 : vector<16xf32> to vector<16x1xf32>
    %780 = vector.broadcast %779 : vector<16x1xf32> to vector<16x16xf32>
    %781 = arith.subf %777, %780 : vector<16x16xf32>
    %782 = math.exp %781 : vector<16x16xf32>
    %cst_301 = arith.constant dense<0.000000e+00> : vector<16xf32>
    %783 = vector.multi_reduction <add>, %782, %cst_301 [1] : vector<16x16xf32> to vector<16xf32>
    %784 = vector.shape_cast %783 : vector<16xf32> to vector<16x1xf32>
    %785 = tpu.reciprocal %784 {approx = true} : vector<16x1xf32> -> vector<16x1xf32>
    %786 = vector.broadcast %785 : vector<16x1xf32> to vector<16x16xf32>
    %787 = arith.mulf %782, %786 : vector<16x16xf32>
    %788 = vector.extract_strided_slice %747 {offsets = [0, 16], sizes = [16, 16], strides = [1, 1]} : vector<16x64xf32> to vector<16x16xf32>
    %cst_302 = arith.constant dense<0.000000e+00> : vector<16x16xf32>
    %789 = tpu.matmul %787, %788, %cst_302 {dimension_numbers = #tpu.dot_dimension_numbers<[1], [0], [0], [1], [0, 0, 1, 1], [], []>} : vector<16x16xf32>, vector<16x16xf32>, vector<16x16xf32> -> vector<16x16xf32>
    %790 = vector.extract_strided_slice %652 {offsets = [16, 0], sizes = [16, 64], strides = [1, 1]} : vector<64x64xf32> to vector<16x64xf32>
    %cst_303 = arith.constant dense<0.000000e+00> : vector<16x64xf32>
    %791 = tpu.matmul %789, %790, %cst_303 {dimension_numbers = #tpu.dot_dimension_numbers<[1], [0], [0], [1], [0, 0, 1, 1], [], []>} : vector<16x16xf32>, vector<16x64xf32>, vector<16x64xf32> -> vector<16x64xf32>
    %792 = arith.addf %770, %791 : vector<16x64xf32>
    %793 = vector.extract_strided_slice %745 {offsets = [0, 32], sizes = [16, 16], strides = [1, 1]} : vector<16x64xf32> to vector<16x16xf32>
    %794 = vector.extract_strided_slice %746 {offsets = [0, 32], sizes = [16, 16], strides = [1, 1]} : vector<16x64xf32> to vector<16x16xf32>
    %cst_304 = arith.constant dense<0.000000e+00> : vector<16x16xf32>
    %795 = tpu.matmul %793, %794, %cst_304 {dimension_numbers = #tpu.dot_dimension_numbers<[1], [1], [0], [0], [0, 0, 1, 0], [], []>} : vector<16x16xf32>, vector<16x16xf32>, vector<16x16xf32> -> vector<16x16xf32>
    %cst_305 = arith.constant 2.500000e-01 : f32
    %796 = vector.broadcast %cst_305 : f32 to vector<16x16xf32>
    %797 = arith.mulf %795, %796 : vector<16x16xf32>
    %cst_306 = arith.constant -3.40282347E+38 : f32
    %798 = vector.broadcast %cst_306 : f32 to vector<16x16xf32>
    %799 = arith.select %617, %797, %798 : vector<16x16xi1>, vector<16x16xf32>
    %cst_307 = arith.constant dense<0xFF800000> : vector<16xf32>
    %800 = vector.multi_reduction <maximumf>, %799, %cst_307 [1] : vector<16x16xf32> to vector<16xf32>
    %801 = vector.shape_cast %800 : vector<16xf32> to vector<16x1xf32>
    %802 = vector.broadcast %801 : vector<16x1xf32> to vector<16x16xf32>
    %803 = arith.subf %799, %802 : vector<16x16xf32>
    %804 = math.exp %803 : vector<16x16xf32>
    %cst_308 = arith.constant dense<0.000000e+00> : vector<16xf32>
    %805 = vector.multi_reduction <add>, %804, %cst_308 [1] : vector<16x16xf32> to vector<16xf32>
    %806 = vector.shape_cast %805 : vector<16xf32> to vector<16x1xf32>
    %807 = tpu.reciprocal %806 {approx = true} : vector<16x1xf32> -> vector<16x1xf32>
    %808 = vector.broadcast %807 : vector<16x1xf32> to vector<16x16xf32>
    %809 = arith.mulf %804, %808 : vector<16x16xf32>
    %810 = vector.extract_strided_slice %747 {offsets = [0, 32], sizes = [16, 16], strides = [1, 1]} : vector<16x64xf32> to vector<16x16xf32>
    %cst_309 = arith.constant dense<0.000000e+00> : vector<16x16xf32>
    %811 = tpu.matmul %809, %810, %cst_309 {dimension_numbers = #tpu.dot_dimension_numbers<[1], [0], [0], [1], [0, 0, 1, 1], [], []>} : vector<16x16xf32>, vector<16x16xf32>, vector<16x16xf32> -> vector<16x16xf32>
    %812 = vector.extract_strided_slice %652 {offsets = [32, 0], sizes = [16, 64], strides = [1, 1]} : vector<64x64xf32> to vector<16x64xf32>
    %cst_310 = arith.constant dense<0.000000e+00> : vector<16x64xf32>
    %813 = tpu.matmul %811, %812, %cst_310 {dimension_numbers = #tpu.dot_dimension_numbers<[1], [0], [0], [1], [0, 0, 1, 1], [], []>} : vector<16x16xf32>, vector<16x64xf32>, vector<16x64xf32> -> vector<16x64xf32>
    %814 = arith.addf %792, %813 : vector<16x64xf32>
    %815 = vector.extract_strided_slice %745 {offsets = [0, 48], sizes = [16, 16], strides = [1, 1]} : vector<16x64xf32> to vector<16x16xf32>
    %816 = vector.extract_strided_slice %746 {offsets = [0, 48], sizes = [16, 16], strides = [1, 1]} : vector<16x64xf32> to vector<16x16xf32>
    %cst_311 = arith.constant dense<0.000000e+00> : vector<16x16xf32>
    %817 = tpu.matmul %815, %816, %cst_311 {dimension_numbers = #tpu.dot_dimension_numbers<[1], [1], [0], [0], [0, 0, 1, 0], [], []>} : vector<16x16xf32>, vector<16x16xf32>, vector<16x16xf32> -> vector<16x16xf32>
    %cst_312 = arith.constant 2.500000e-01 : f32
    %818 = vector.broadcast %cst_312 : f32 to vector<16x16xf32>
    %819 = arith.mulf %817, %818 : vector<16x16xf32>
    %cst_313 = arith.constant -3.40282347E+38 : f32
    %820 = vector.broadcast %cst_313 : f32 to vector<16x16xf32>
    %821 = arith.select %617, %819, %820 : vector<16x16xi1>, vector<16x16xf32>
    %cst_314 = arith.constant dense<0xFF800000> : vector<16xf32>
    %822 = vector.multi_reduction <maximumf>, %821, %cst_314 [1] : vector<16x16xf32> to vector<16xf32>
    %823 = vector.shape_cast %822 : vector<16xf32> to vector<16x1xf32>
    %824 = vector.broadcast %823 : vector<16x1xf32> to vector<16x16xf32>
    %825 = arith.subf %821, %824 : vector<16x16xf32>
    %826 = math.exp %825 : vector<16x16xf32>
    %cst_315 = arith.constant dense<0.000000e+00> : vector<16xf32>
    %827 = vector.multi_reduction <add>, %826, %cst_315 [1] : vector<16x16xf32> to vector<16xf32>
    %828 = vector.shape_cast %827 : vector<16xf32> to vector<16x1xf32>
    %829 = tpu.reciprocal %828 {approx = true} : vector<16x1xf32> -> vector<16x1xf32>
    %830 = vector.broadcast %829 : vector<16x1xf32> to vector<16x16xf32>
    %831 = arith.mulf %826, %830 : vector<16x16xf32>
    %832 = vector.extract_strided_slice %747 {offsets = [0, 48], sizes = [16, 16], strides = [1, 1]} : vector<16x64xf32> to vector<16x16xf32>
    %cst_316 = arith.constant dense<0.000000e+00> : vector<16x16xf32>
    %833 = tpu.matmul %831, %832, %cst_316 {dimension_numbers = #tpu.dot_dimension_numbers<[1], [0], [0], [1], [0, 0, 1, 1], [], []>} : vector<16x16xf32>, vector<16x16xf32>, vector<16x16xf32> -> vector<16x16xf32>
    %834 = vector.extract_strided_slice %652 {offsets = [48, 0], sizes = [16, 64], strides = [1, 1]} : vector<64x64xf32> to vector<16x64xf32>
    %cst_317 = arith.constant dense<0.000000e+00> : vector<16x64xf32>
    %835 = tpu.matmul %833, %834, %cst_317 {dimension_numbers = #tpu.dot_dimension_numbers<[1], [0], [0], [1], [0, 0, 1, 1], [], []>} : vector<16x16xf32>, vector<16x64xf32>, vector<16x64xf32> -> vector<16x64xf32>
    %836 = arith.addf %814, %835 : vector<16x64xf32>
    %837 = vector.extract_strided_slice %650 {offsets = [32, 0], sizes = [16, 64], strides = [1, 1]} : vector<48x192xf32> to vector<16x64xf32>
    %838 = vector.extract_strided_slice %650 {offsets = [32, 64], sizes = [16, 64], strides = [1, 1]} : vector<48x192xf32> to vector<16x64xf32>
    %839 = vector.extract_strided_slice %650 {offsets = [32, 128], sizes = [16, 64], strides = [1, 1]} : vector<48x192xf32> to vector<16x64xf32>
    %cst_318 = arith.constant 0.000000e+00 : f32
    %840 = vector.broadcast %cst_318 : f32 to vector<16x64xf32>
    %841 = vector.extract_strided_slice %837 {offsets = [0, 0], sizes = [16, 16], strides = [1, 1]} : vector<16x64xf32> to vector<16x16xf32>
    %842 = vector.extract_strided_slice %838 {offsets = [0, 0], sizes = [16, 16], strides = [1, 1]} : vector<16x64xf32> to vector<16x16xf32>
    %cst_319 = arith.constant dense<0.000000e+00> : vector<16x16xf32>
    %843 = tpu.matmul %841, %842, %cst_319 {dimension_numbers = #tpu.dot_dimension_numbers<[1], [1], [0], [0], [0, 0, 1, 0], [], []>} : vector<16x16xf32>, vector<16x16xf32>, vector<16x16xf32> -> vector<16x16xf32>
    %cst_320 = arith.constant 2.500000e-01 : f32
    %844 = vector.broadcast %cst_320 : f32 to vector<16x16xf32>
    %845 = arith.mulf %843, %844 : vector<16x16xf32>
    %cst_321 = arith.constant -3.40282347E+38 : f32
    %846 = vector.broadcast %cst_321 : f32 to vector<16x16xf32>
    %847 = arith.select %617, %845, %846 : vector<16x16xi1>, vector<16x16xf32>
    %cst_322 = arith.constant dense<0xFF800000> : vector<16xf32>
    %848 = vector.multi_reduction <maximumf>, %847, %cst_322 [1] : vector<16x16xf32> to vector<16xf32>
    %849 = vector.shape_cast %848 : vector<16xf32> to vector<16x1xf32>
    %850 = vector.broadcast %849 : vector<16x1xf32> to vector<16x16xf32>
    %851 = arith.subf %847, %850 : vector<16x16xf32>
    %852 = math.exp %851 : vector<16x16xf32>
    %cst_323 = arith.constant dense<0.000000e+00> : vector<16xf32>
    %853 = vector.multi_reduction <add>, %852, %cst_323 [1] : vector<16x16xf32> to vector<16xf32>
    %854 = vector.shape_cast %853 : vector<16xf32> to vector<16x1xf32>
    %855 = tpu.reciprocal %854 {approx = true} : vector<16x1xf32> -> vector<16x1xf32>
    %856 = vector.broadcast %855 : vector<16x1xf32> to vector<16x16xf32>
    %857 = arith.mulf %852, %856 : vector<16x16xf32>
    %858 = vector.extract_strided_slice %839 {offsets = [0, 0], sizes = [16, 16], strides = [1, 1]} : vector<16x64xf32> to vector<16x16xf32>
    %cst_324 = arith.constant dense<0.000000e+00> : vector<16x16xf32>
    %859 = tpu.matmul %857, %858, %cst_324 {dimension_numbers = #tpu.dot_dimension_numbers<[1], [0], [0], [1], [0, 0, 1, 1], [], []>} : vector<16x16xf32>, vector<16x16xf32>, vector<16x16xf32> -> vector<16x16xf32>
    %860 = vector.extract_strided_slice %652 {offsets = [0, 0], sizes = [16, 64], strides = [1, 1]} : vector<64x64xf32> to vector<16x64xf32>
    %cst_325 = arith.constant dense<0.000000e+00> : vector<16x64xf32>
    %861 = tpu.matmul %859, %860, %cst_325 {dimension_numbers = #tpu.dot_dimension_numbers<[1], [0], [0], [1], [0, 0, 1, 1], [], []>} : vector<16x16xf32>, vector<16x64xf32>, vector<16x64xf32> -> vector<16x64xf32>
    %862 = arith.addf %840, %861 : vector<16x64xf32>
    %863 = vector.extract_strided_slice %837 {offsets = [0, 16], sizes = [16, 16], strides = [1, 1]} : vector<16x64xf32> to vector<16x16xf32>
    %864 = vector.extract_strided_slice %838 {offsets = [0, 16], sizes = [16, 16], strides = [1, 1]} : vector<16x64xf32> to vector<16x16xf32>
    %cst_326 = arith.constant dense<0.000000e+00> : vector<16x16xf32>
    %865 = tpu.matmul %863, %864, %cst_326 {dimension_numbers = #tpu.dot_dimension_numbers<[1], [1], [0], [0], [0, 0, 1, 0], [], []>} : vector<16x16xf32>, vector<16x16xf32>, vector<16x16xf32> -> vector<16x16xf32>
    %cst_327 = arith.constant 2.500000e-01 : f32
    %866 = vector.broadcast %cst_327 : f32 to vector<16x16xf32>
    %867 = arith.mulf %865, %866 : vector<16x16xf32>
    %cst_328 = arith.constant -3.40282347E+38 : f32
    %868 = vector.broadcast %cst_328 : f32 to vector<16x16xf32>
    %869 = arith.select %617, %867, %868 : vector<16x16xi1>, vector<16x16xf32>
    %cst_329 = arith.constant dense<0xFF800000> : vector<16xf32>
    %870 = vector.multi_reduction <maximumf>, %869, %cst_329 [1] : vector<16x16xf32> to vector<16xf32>
    %871 = vector.shape_cast %870 : vector<16xf32> to vector<16x1xf32>
    %872 = vector.broadcast %871 : vector<16x1xf32> to vector<16x16xf32>
    %873 = arith.subf %869, %872 : vector<16x16xf32>
    %874 = math.exp %873 : vector<16x16xf32>
    %cst_330 = arith.constant dense<0.000000e+00> : vector<16xf32>
    %875 = vector.multi_reduction <add>, %874, %cst_330 [1] : vector<16x16xf32> to vector<16xf32>
    %876 = vector.shape_cast %875 : vector<16xf32> to vector<16x1xf32>
    %877 = tpu.reciprocal %876 {approx = true} : vector<16x1xf32> -> vector<16x1xf32>
    %878 = vector.broadcast %877 : vector<16x1xf32> to vector<16x16xf32>
    %879 = arith.mulf %874, %878 : vector<16x16xf32>
    %880 = vector.extract_strided_slice %839 {offsets = [0, 16], sizes = [16, 16], strides = [1, 1]} : vector<16x64xf32> to vector<16x16xf32>
    %cst_331 = arith.constant dense<0.000000e+00> : vector<16x16xf32>
    %881 = tpu.matmul %879, %880, %cst_331 {dimension_numbers = #tpu.dot_dimension_numbers<[1], [0], [0], [1], [0, 0, 1, 1], [], []>} : vector<16x16xf32>, vector<16x16xf32>, vector<16x16xf32> -> vector<16x16xf32>
    %882 = vector.extract_strided_slice %652 {offsets = [16, 0], sizes = [16, 64], strides = [1, 1]} : vector<64x64xf32> to vector<16x64xf32>
    %cst_332 = arith.constant dense<0.000000e+00> : vector<16x64xf32>
    %883 = tpu.matmul %881, %882, %cst_332 {dimension_numbers = #tpu.dot_dimension_numbers<[1], [0], [0], [1], [0, 0, 1, 1], [], []>} : vector<16x16xf32>, vector<16x64xf32>, vector<16x64xf32> -> vector<16x64xf32>
    %884 = arith.addf %862, %883 : vector<16x64xf32>
    %885 = vector.extract_strided_slice %837 {offsets = [0, 32], sizes = [16, 16], strides = [1, 1]} : vector<16x64xf32> to vector<16x16xf32>
    %886 = vector.extract_strided_slice %838 {offsets = [0, 32], sizes = [16, 16], strides = [1, 1]} : vector<16x64xf32> to vector<16x16xf32>
    %cst_333 = arith.constant dense<0.000000e+00> : vector<16x16xf32>
    %887 = tpu.matmul %885, %886, %cst_333 {dimension_numbers = #tpu.dot_dimension_numbers<[1], [1], [0], [0], [0, 0, 1, 0], [], []>} : vector<16x16xf32>, vector<16x16xf32>, vector<16x16xf32> -> vector<16x16xf32>
    %cst_334 = arith.constant 2.500000e-01 : f32
    %888 = vector.broadcast %cst_334 : f32 to vector<16x16xf32>
    %889 = arith.mulf %887, %888 : vector<16x16xf32>
    %cst_335 = arith.constant -3.40282347E+38 : f32
    %890 = vector.broadcast %cst_335 : f32 to vector<16x16xf32>
    %891 = arith.select %617, %889, %890 : vector<16x16xi1>, vector<16x16xf32>
    %cst_336 = arith.constant dense<0xFF800000> : vector<16xf32>
    %892 = vector.multi_reduction <maximumf>, %891, %cst_336 [1] : vector<16x16xf32> to vector<16xf32>
    %893 = vector.shape_cast %892 : vector<16xf32> to vector<16x1xf32>
    %894 = vector.broadcast %893 : vector<16x1xf32> to vector<16x16xf32>
    %895 = arith.subf %891, %894 : vector<16x16xf32>
    %896 = math.exp %895 : vector<16x16xf32>
    %cst_337 = arith.constant dense<0.000000e+00> : vector<16xf32>
    %897 = vector.multi_reduction <add>, %896, %cst_337 [1] : vector<16x16xf32> to vector<16xf32>
    %898 = vector.shape_cast %897 : vector<16xf32> to vector<16x1xf32>
    %899 = tpu.reciprocal %898 {approx = true} : vector<16x1xf32> -> vector<16x1xf32>
    %900 = vector.broadcast %899 : vector<16x1xf32> to vector<16x16xf32>
    %901 = arith.mulf %896, %900 : vector<16x16xf32>
    %902 = vector.extract_strided_slice %839 {offsets = [0, 32], sizes = [16, 16], strides = [1, 1]} : vector<16x64xf32> to vector<16x16xf32>
    %cst_338 = arith.constant dense<0.000000e+00> : vector<16x16xf32>
    %903 = tpu.matmul %901, %902, %cst_338 {dimension_numbers = #tpu.dot_dimension_numbers<[1], [0], [0], [1], [0, 0, 1, 1], [], []>} : vector<16x16xf32>, vector<16x16xf32>, vector<16x16xf32> -> vector<16x16xf32>
    %904 = vector.extract_strided_slice %652 {offsets = [32, 0], sizes = [16, 64], strides = [1, 1]} : vector<64x64xf32> to vector<16x64xf32>
    %cst_339 = arith.constant dense<0.000000e+00> : vector<16x64xf32>
    %905 = tpu.matmul %903, %904, %cst_339 {dimension_numbers = #tpu.dot_dimension_numbers<[1], [0], [0], [1], [0, 0, 1, 1], [], []>} : vector<16x16xf32>, vector<16x64xf32>, vector<16x64xf32> -> vector<16x64xf32>
    %906 = arith.addf %884, %905 : vector<16x64xf32>
    %907 = vector.extract_strided_slice %837 {offsets = [0, 48], sizes = [16, 16], strides = [1, 1]} : vector<16x64xf32> to vector<16x16xf32>
    %908 = vector.extract_strided_slice %838 {offsets = [0, 48], sizes = [16, 16], strides = [1, 1]} : vector<16x64xf32> to vector<16x16xf32>
    %cst_340 = arith.constant dense<0.000000e+00> : vector<16x16xf32>
    %909 = tpu.matmul %907, %908, %cst_340 {dimension_numbers = #tpu.dot_dimension_numbers<[1], [1], [0], [0], [0, 0, 1, 0], [], []>} : vector<16x16xf32>, vector<16x16xf32>, vector<16x16xf32> -> vector<16x16xf32>
    %cst_341 = arith.constant 2.500000e-01 : f32
    %910 = vector.broadcast %cst_341 : f32 to vector<16x16xf32>
    %911 = arith.mulf %909, %910 : vector<16x16xf32>
    %cst_342 = arith.constant -3.40282347E+38 : f32
    %912 = vector.broadcast %cst_342 : f32 to vector<16x16xf32>
    %913 = arith.select %617, %911, %912 : vector<16x16xi1>, vector<16x16xf32>
    %cst_343 = arith.constant dense<0xFF800000> : vector<16xf32>
    %914 = vector.multi_reduction <maximumf>, %913, %cst_343 [1] : vector<16x16xf32> to vector<16xf32>
    %915 = vector.shape_cast %914 : vector<16xf32> to vector<16x1xf32>
    %916 = vector.broadcast %915 : vector<16x1xf32> to vector<16x16xf32>
    %917 = arith.subf %913, %916 : vector<16x16xf32>
    %918 = math.exp %917 : vector<16x16xf32>
    %cst_344 = arith.constant dense<0.000000e+00> : vector<16xf32>
    %919 = vector.multi_reduction <add>, %918, %cst_344 [1] : vector<16x16xf32> to vector<16xf32>
    %920 = vector.shape_cast %919 : vector<16xf32> to vector<16x1xf32>
    %921 = tpu.reciprocal %920 {approx = true} : vector<16x1xf32> -> vector<16x1xf32>
    %922 = vector.broadcast %921 : vector<16x1xf32> to vector<16x16xf32>
    %923 = arith.mulf %918, %922 : vector<16x16xf32>
    %924 = vector.extract_strided_slice %839 {offsets = [0, 48], sizes = [16, 16], strides = [1, 1]} : vector<16x64xf32> to vector<16x16xf32>
    %cst_345 = arith.constant dense<0.000000e+00> : vector<16x16xf32>
    %925 = tpu.matmul %923, %924, %cst_345 {dimension_numbers = #tpu.dot_dimension_numbers<[1], [0], [0], [1], [0, 0, 1, 1], [], []>} : vector<16x16xf32>, vector<16x16xf32>, vector<16x16xf32> -> vector<16x16xf32>
    %926 = vector.extract_strided_slice %652 {offsets = [48, 0], sizes = [16, 64], strides = [1, 1]} : vector<64x64xf32> to vector<16x64xf32>
    %cst_346 = arith.constant dense<0.000000e+00> : vector<16x64xf32>
    %927 = tpu.matmul %925, %926, %cst_346 {dimension_numbers = #tpu.dot_dimension_numbers<[1], [0], [0], [1], [0, 0, 1, 1], [], []>} : vector<16x16xf32>, vector<16x64xf32>, vector<16x64xf32> -> vector<16x64xf32>
    %928 = arith.addf %906, %927 : vector<16x64xf32>
    %929 = tpu.concatenate %744, %836, %928 in 0 : vector<16x64xf32>, vector<16x64xf32>, vector<16x64xf32> -> vector<48x64xf32>
    %c0_347 = arith.constant 0 : index
    %c0_348 = arith.constant 0 : index
    %c0_349 = arith.constant 0 : index
    %930 = vector.load %arg31[%c0_347, %c0_348, %c0_349] : memref<2x1x64xf32, #tpu.memory_space<vmem>>, vector<1x1x64xf32>
    %931 = vector.shape_cast %930 : vector<1x1x64xf32> to vector<1x64xf32>
    %932 = vector.broadcast %931 : vector<1x64xf32> to vector<48x64xf32>
    %933 = arith.addf %929, %932 : vector<48x64xf32>
    %934 = arith.addf %614, %933 : vector<48x64xf32>
    %c0_350 = arith.constant 0 : index
    %c0_351 = arith.constant 0 : index
    %c0_352 = arith.constant 0 : index
    %935 = vector.load %arg32[%c0_350, %c0_351, %c0_352] : memref<2x1x64xf32, #tpu.memory_space<vmem>>, vector<1x1x64xf32>
    %936 = vector.shape_cast %935 : vector<1x1x64xf32> to vector<1x64xf32>
    %c0_353 = arith.constant 0 : index
    %c0_354 = arith.constant 0 : index
    %c0_355 = arith.constant 0 : index
    %937 = vector.load %arg33[%c0_353, %c0_354, %c0_355] : memref<2x1x64xf32, #tpu.memory_space<vmem>>, vector<1x1x64xf32>
    %938 = vector.shape_cast %937 : vector<1x1x64xf32> to vector<1x64xf32>
    %cst_356 = arith.constant dense<0.000000e+00> : vector<48xf32>
    %939 = vector.multi_reduction <add>, %934, %cst_356 [1] : vector<48x64xf32> to vector<48xf32>
    %940 = vector.shape_cast %939 : vector<48xf32> to vector<48x1xf32>
    %cst_357 = arith.constant 6.400000e+01 : f32
    %941 = vector.broadcast %cst_357 : f32 to vector<48x1xf32>
    %942 = arith.divf %940, %941 : vector<48x1xf32>
    %943 = vector.broadcast %942 : vector<48x1xf32> to vector<48x64xf32>
    %944 = arith.subf %934, %943 : vector<48x64xf32>
    %945 = arith.mulf %944, %944 : vector<48x64xf32>
    %cst_358 = arith.constant dense<0.000000e+00> : vector<48xf32>
    %946 = vector.multi_reduction <add>, %945, %cst_358 [1] : vector<48x64xf32> to vector<48xf32>
    %947 = vector.shape_cast %946 : vector<48xf32> to vector<48x1xf32>
    %cst_359 = arith.constant 6.400000e+01 : f32
    %948 = vector.broadcast %cst_359 : f32 to vector<48x1xf32>
    %949 = arith.divf %947, %948 : vector<48x1xf32>
    %950 = vector.broadcast %942 : vector<48x1xf32> to vector<48x64xf32>
    %951 = arith.subf %934, %950 : vector<48x64xf32>
    %cst_360 = arith.constant 9.99999974E-6 : f32
    %952 = vector.broadcast %cst_360 : f32 to vector<48x1xf32>
    %953 = arith.addf %949, %952 : vector<48x1xf32>
    %954 = math.rsqrt %953 : vector<48x1xf32>
    %955 = vector.broadcast %954 : vector<48x1xf32> to vector<48x64xf32>
    %956 = arith.mulf %951, %955 : vector<48x64xf32>
    %957 = vector.broadcast %936 : vector<1x64xf32> to vector<48x64xf32>
    %958 = arith.mulf %956, %957 : vector<48x64xf32>
    %959 = vector.broadcast %938 : vector<1x64xf32> to vector<48x64xf32>
    %960 = arith.addf %958, %959 : vector<48x64xf32>
    %c0_361 = arith.constant 0 : index
    %c0_362 = arith.constant 0 : index
    %c0_363 = arith.constant 0 : index
    %961 = vector.load %arg34[%c0_361, %c0_362, %c0_363] : memref<2x64x256xf32, #tpu.memory_space<vmem>>, vector<1x64x256xf32>
    %962 = vector.shape_cast %961 : vector<1x64x256xf32> to vector<64x256xf32>
    %cst_364 = arith.constant dense<0.000000e+00> : vector<48x256xf32>
    %963 = tpu.matmul %960, %962, %cst_364 {dimension_numbers = #tpu.dot_dimension_numbers<[1], [0], [0], [1], [0, 0, 1, 1], [], []>} : vector<48x64xf32>, vector<64x256xf32>, vector<48x256xf32> -> vector<48x256xf32>
    %c0_365 = arith.constant 0 : index
    %c0_366 = arith.constant 0 : index
    %c0_367 = arith.constant 0 : index
    %964 = vector.load %arg35[%c0_365, %c0_366, %c0_367] : memref<2x1x256xf32, #tpu.memory_space<vmem>>, vector<1x1x256xf32>
    %965 = vector.shape_cast %964 : vector<1x1x256xf32> to vector<1x256xf32>
    %966 = vector.broadcast %965 : vector<1x256xf32> to vector<48x256xf32>
    %967 = arith.addf %963, %966 : vector<48x256xf32>
    %cst_368 = arith.constant 1.702000e+00 : f32
    %968 = vector.broadcast %cst_368 : f32 to vector<48x256xf32>
    %969 = arith.mulf %968, %967 : vector<48x256xf32>
    %970 = arith.negf %969 : vector<48x256xf32>
    %971 = math.exp %970 : vector<48x256xf32>
    %cst_369 = arith.constant 1.000000e+00 : f32
    %972 = vector.broadcast %cst_369 : f32 to vector<48x256xf32>
    %973 = arith.addf %972, %971 : vector<48x256xf32>
    %974 = arith.divf %972, %973 : vector<48x256xf32>
    %975 = arith.mulf %967, %974 : vector<48x256xf32>
    %c0_370 = arith.constant 0 : index
    %c0_371 = arith.constant 0 : index
    %c0_372 = arith.constant 0 : index
    %976 = vector.load %arg36[%c0_370, %c0_371, %c0_372] : memref<2x256x64xf32, #tpu.memory_space<vmem>>, vector<1x256x64xf32>
    %977 = vector.shape_cast %976 : vector<1x256x64xf32> to vector<256x64xf32>
    %cst_373 = arith.constant dense<0.000000e+00> : vector<48x64xf32>
    %978 = tpu.matmul %975, %977, %cst_373 {dimension_numbers = #tpu.dot_dimension_numbers<[1], [0], [0], [1], [0, 0, 1, 1], [], []>} : vector<48x256xf32>, vector<256x64xf32>, vector<48x64xf32> -> vector<48x64xf32>
    %c0_374 = arith.constant 0 : index
    %c0_375 = arith.constant 0 : index
    %c0_376 = arith.constant 0 : index
    %979 = vector.load %arg37[%c0_374, %c0_375, %c0_376] : memref<2x1x64xf32, #tpu.memory_space<vmem>>, vector<1x1x64xf32>
    %980 = vector.shape_cast %979 : vector<1x1x64xf32> to vector<1x64xf32>
    %981 = vector.broadcast %980 : vector<1x64xf32> to vector<48x64xf32>
    %982 = arith.addf %978, %981 : vector<48x64xf32>
    %983 = arith.addf %934, %982 : vector<48x64xf32>
    %c1_377 = arith.constant 1 : index
    %c0_378 = arith.constant 0 : index
    %c0_379 = arith.constant 0 : index
    %984 = vector.load %arg26[%c1_377, %c0_378, %c0_379] : memref<2x1x64xf32, #tpu.memory_space<vmem>>, vector<1x1x64xf32>
    %985 = vector.shape_cast %984 : vector<1x1x64xf32> to vector<1x64xf32>
    %c1_380 = arith.constant 1 : index
    %c0_381 = arith.constant 0 : index
    %c0_382 = arith.constant 0 : index
    %986 = vector.load %arg27[%c1_380, %c0_381, %c0_382] : memref<2x1x64xf32, #tpu.memory_space<vmem>>, vector<1x1x64xf32>
    %987 = vector.shape_cast %986 : vector<1x1x64xf32> to vector<1x64xf32>
    %cst_383 = arith.constant dense<0.000000e+00> : vector<48xf32>
    %988 = vector.multi_reduction <add>, %983, %cst_383 [1] : vector<48x64xf32> to vector<48xf32>
    %989 = vector.shape_cast %988 : vector<48xf32> to vector<48x1xf32>
    %cst_384 = arith.constant 6.400000e+01 : f32
    %990 = vector.broadcast %cst_384 : f32 to vector<48x1xf32>
    %991 = arith.divf %989, %990 : vector<48x1xf32>
    %992 = vector.broadcast %991 : vector<48x1xf32> to vector<48x64xf32>
    %993 = arith.subf %983, %992 : vector<48x64xf32>
    %994 = arith.mulf %993, %993 : vector<48x64xf32>
    %cst_385 = arith.constant dense<0.000000e+00> : vector<48xf32>
    %995 = vector.multi_reduction <add>, %994, %cst_385 [1] : vector<48x64xf32> to vector<48xf32>
    %996 = vector.shape_cast %995 : vector<48xf32> to vector<48x1xf32>
    %cst_386 = arith.constant 6.400000e+01 : f32
    %997 = vector.broadcast %cst_386 : f32 to vector<48x1xf32>
    %998 = arith.divf %996, %997 : vector<48x1xf32>
    %999 = vector.broadcast %991 : vector<48x1xf32> to vector<48x64xf32>
    %1000 = arith.subf %983, %999 : vector<48x64xf32>
    %cst_387 = arith.constant 9.99999974E-6 : f32
    %1001 = vector.broadcast %cst_387 : f32 to vector<48x1xf32>
    %1002 = arith.addf %998, %1001 : vector<48x1xf32>
    %1003 = math.rsqrt %1002 : vector<48x1xf32>
    %1004 = vector.broadcast %1003 : vector<48x1xf32> to vector<48x64xf32>
    %1005 = arith.mulf %1000, %1004 : vector<48x64xf32>
    %1006 = vector.broadcast %985 : vector<1x64xf32> to vector<48x64xf32>
    %1007 = arith.mulf %1005, %1006 : vector<48x64xf32>
    %1008 = vector.broadcast %987 : vector<1x64xf32> to vector<48x64xf32>
    %1009 = arith.addf %1007, %1008 : vector<48x64xf32>
    %c1_388 = arith.constant 1 : index
    %c0_389 = arith.constant 0 : index
    %c0_390 = arith.constant 0 : index
    %1010 = vector.load %arg28[%c1_388, %c0_389, %c0_390] : memref<2x64x192xf32, #tpu.memory_space<vmem>>, vector<1x64x192xf32>
    %1011 = vector.shape_cast %1010 : vector<1x64x192xf32> to vector<64x192xf32>
    %cst_391 = arith.constant dense<0.000000e+00> : vector<48x192xf32>
    %1012 = tpu.matmul %1009, %1011, %cst_391 {dimension_numbers = #tpu.dot_dimension_numbers<[1], [0], [0], [1], [0, 0, 1, 1], [], []>} : vector<48x64xf32>, vector<64x192xf32>, vector<48x192xf32> -> vector<48x192xf32>
    %c1_392 = arith.constant 1 : index
    %c0_393 = arith.constant 0 : index
    %c0_394 = arith.constant 0 : index
    %1013 = vector.load %arg29[%c1_392, %c0_393, %c0_394] : memref<2x1x192xf32, #tpu.memory_space<vmem>>, vector<1x1x192xf32>
    %1014 = vector.shape_cast %1013 : vector<1x1x192xf32> to vector<1x192xf32>
    %1015 = vector.broadcast %1014 : vector<1x192xf32> to vector<48x192xf32>
    %1016 = arith.addf %1012, %1015 : vector<48x192xf32>
    %c1_395 = arith.constant 1 : index
    %c0_396 = arith.constant 0 : index
    %c0_397 = arith.constant 0 : index
    %1017 = vector.load %arg30[%c1_395, %c0_396, %c0_397] : memref<2x64x64xf32, #tpu.memory_space<vmem>>, vector<1x64x64xf32>
    %1018 = vector.shape_cast %1017 : vector<1x64x64xf32> to vector<64x64xf32>
    %1019 = vector.extract_strided_slice %1016 {offsets = [0, 0], sizes = [16, 64], strides = [1, 1]} : vector<48x192xf32> to vector<16x64xf32>
    %1020 = vector.extract_strided_slice %1016 {offsets = [0, 64], sizes = [16, 64], strides = [1, 1]} : vector<48x192xf32> to vector<16x64xf32>
    %1021 = vector.extract_strided_slice %1016 {offsets = [0, 128], sizes = [16, 64], strides = [1, 1]} : vector<48x192xf32> to vector<16x64xf32>
    %cst_398 = arith.constant 0.000000e+00 : f32
    %1022 = vector.broadcast %cst_398 : f32 to vector<16x64xf32>
    %1023 = vector.extract_strided_slice %1019 {offsets = [0, 0], sizes = [16, 16], strides = [1, 1]} : vector<16x64xf32> to vector<16x16xf32>
    %1024 = vector.extract_strided_slice %1020 {offsets = [0, 0], sizes = [16, 16], strides = [1, 1]} : vector<16x64xf32> to vector<16x16xf32>
    %cst_399 = arith.constant dense<0.000000e+00> : vector<16x16xf32>
    %1025 = tpu.matmul %1023, %1024, %cst_399 {dimension_numbers = #tpu.dot_dimension_numbers<[1], [1], [0], [0], [0, 0, 1, 0], [], []>} : vector<16x16xf32>, vector<16x16xf32>, vector<16x16xf32> -> vector<16x16xf32>
    %cst_400 = arith.constant 2.500000e-01 : f32
    %1026 = vector.broadcast %cst_400 : f32 to vector<16x16xf32>
    %1027 = arith.mulf %1025, %1026 : vector<16x16xf32>
    %cst_401 = arith.constant -3.40282347E+38 : f32
    %1028 = vector.broadcast %cst_401 : f32 to vector<16x16xf32>
    %1029 = arith.select %617, %1027, %1028 : vector<16x16xi1>, vector<16x16xf32>
    %cst_402 = arith.constant dense<0xFF800000> : vector<16xf32>
    %1030 = vector.multi_reduction <maximumf>, %1029, %cst_402 [1] : vector<16x16xf32> to vector<16xf32>
    %1031 = vector.shape_cast %1030 : vector<16xf32> to vector<16x1xf32>
    %1032 = vector.broadcast %1031 : vector<16x1xf32> to vector<16x16xf32>
    %1033 = arith.subf %1029, %1032 : vector<16x16xf32>
    %1034 = math.exp %1033 : vector<16x16xf32>
    %cst_403 = arith.constant dense<0.000000e+00> : vector<16xf32>
    %1035 = vector.multi_reduction <add>, %1034, %cst_403 [1] : vector<16x16xf32> to vector<16xf32>
    %1036 = vector.shape_cast %1035 : vector<16xf32> to vector<16x1xf32>
    %1037 = tpu.reciprocal %1036 {approx = true} : vector<16x1xf32> -> vector<16x1xf32>
    %1038 = vector.broadcast %1037 : vector<16x1xf32> to vector<16x16xf32>
    %1039 = arith.mulf %1034, %1038 : vector<16x16xf32>
    %1040 = vector.extract_strided_slice %1021 {offsets = [0, 0], sizes = [16, 16], strides = [1, 1]} : vector<16x64xf32> to vector<16x16xf32>
    %cst_404 = arith.constant dense<0.000000e+00> : vector<16x16xf32>
    %1041 = tpu.matmul %1039, %1040, %cst_404 {dimension_numbers = #tpu.dot_dimension_numbers<[1], [0], [0], [1], [0, 0, 1, 1], [], []>} : vector<16x16xf32>, vector<16x16xf32>, vector<16x16xf32> -> vector<16x16xf32>
    %1042 = vector.extract_strided_slice %1018 {offsets = [0, 0], sizes = [16, 64], strides = [1, 1]} : vector<64x64xf32> to vector<16x64xf32>
    %cst_405 = arith.constant dense<0.000000e+00> : vector<16x64xf32>
    %1043 = tpu.matmul %1041, %1042, %cst_405 {dimension_numbers = #tpu.dot_dimension_numbers<[1], [0], [0], [1], [0, 0, 1, 1], [], []>} : vector<16x16xf32>, vector<16x64xf32>, vector<16x64xf32> -> vector<16x64xf32>
    %1044 = arith.addf %1022, %1043 : vector<16x64xf32>
    %1045 = vector.extract_strided_slice %1019 {offsets = [0, 16], sizes = [16, 16], strides = [1, 1]} : vector<16x64xf32> to vector<16x16xf32>
    %1046 = vector.extract_strided_slice %1020 {offsets = [0, 16], sizes = [16, 16], strides = [1, 1]} : vector<16x64xf32> to vector<16x16xf32>
    %cst_406 = arith.constant dense<0.000000e+00> : vector<16x16xf32>
    %1047 = tpu.matmul %1045, %1046, %cst_406 {dimension_numbers = #tpu.dot_dimension_numbers<[1], [1], [0], [0], [0, 0, 1, 0], [], []>} : vector<16x16xf32>, vector<16x16xf32>, vector<16x16xf32> -> vector<16x16xf32>
    %cst_407 = arith.constant 2.500000e-01 : f32
    %1048 = vector.broadcast %cst_407 : f32 to vector<16x16xf32>
    %1049 = arith.mulf %1047, %1048 : vector<16x16xf32>
    %cst_408 = arith.constant -3.40282347E+38 : f32
    %1050 = vector.broadcast %cst_408 : f32 to vector<16x16xf32>
    %1051 = arith.select %617, %1049, %1050 : vector<16x16xi1>, vector<16x16xf32>
    %cst_409 = arith.constant dense<0xFF800000> : vector<16xf32>
    %1052 = vector.multi_reduction <maximumf>, %1051, %cst_409 [1] : vector<16x16xf32> to vector<16xf32>
    %1053 = vector.shape_cast %1052 : vector<16xf32> to vector<16x1xf32>
    %1054 = vector.broadcast %1053 : vector<16x1xf32> to vector<16x16xf32>
    %1055 = arith.subf %1051, %1054 : vector<16x16xf32>
    %1056 = math.exp %1055 : vector<16x16xf32>
    %cst_410 = arith.constant dense<0.000000e+00> : vector<16xf32>
    %1057 = vector.multi_reduction <add>, %1056, %cst_410 [1] : vector<16x16xf32> to vector<16xf32>
    %1058 = vector.shape_cast %1057 : vector<16xf32> to vector<16x1xf32>
    %1059 = tpu.reciprocal %1058 {approx = true} : vector<16x1xf32> -> vector<16x1xf32>
    %1060 = vector.broadcast %1059 : vector<16x1xf32> to vector<16x16xf32>
    %1061 = arith.mulf %1056, %1060 : vector<16x16xf32>
    %1062 = vector.extract_strided_slice %1021 {offsets = [0, 16], sizes = [16, 16], strides = [1, 1]} : vector<16x64xf32> to vector<16x16xf32>
    %cst_411 = arith.constant dense<0.000000e+00> : vector<16x16xf32>
    %1063 = tpu.matmul %1061, %1062, %cst_411 {dimension_numbers = #tpu.dot_dimension_numbers<[1], [0], [0], [1], [0, 0, 1, 1], [], []>} : vector<16x16xf32>, vector<16x16xf32>, vector<16x16xf32> -> vector<16x16xf32>
    %1064 = vector.extract_strided_slice %1018 {offsets = [16, 0], sizes = [16, 64], strides = [1, 1]} : vector<64x64xf32> to vector<16x64xf32>
    %cst_412 = arith.constant dense<0.000000e+00> : vector<16x64xf32>
    %1065 = tpu.matmul %1063, %1064, %cst_412 {dimension_numbers = #tpu.dot_dimension_numbers<[1], [0], [0], [1], [0, 0, 1, 1], [], []>} : vector<16x16xf32>, vector<16x64xf32>, vector<16x64xf32> -> vector<16x64xf32>
    %1066 = arith.addf %1044, %1065 : vector<16x64xf32>
    %1067 = vector.extract_strided_slice %1019 {offsets = [0, 32], sizes = [16, 16], strides = [1, 1]} : vector<16x64xf32> to vector<16x16xf32>
    %1068 = vector.extract_strided_slice %1020 {offsets = [0, 32], sizes = [16, 16], strides = [1, 1]} : vector<16x64xf32> to vector<16x16xf32>
    %cst_413 = arith.constant dense<0.000000e+00> : vector<16x16xf32>
    %1069 = tpu.matmul %1067, %1068, %cst_413 {dimension_numbers = #tpu.dot_dimension_numbers<[1], [1], [0], [0], [0, 0, 1, 0], [], []>} : vector<16x16xf32>, vector<16x16xf32>, vector<16x16xf32> -> vector<16x16xf32>
    %cst_414 = arith.constant 2.500000e-01 : f32
    %1070 = vector.broadcast %cst_414 : f32 to vector<16x16xf32>
    %1071 = arith.mulf %1069, %1070 : vector<16x16xf32>
    %cst_415 = arith.constant -3.40282347E+38 : f32
    %1072 = vector.broadcast %cst_415 : f32 to vector<16x16xf32>
    %1073 = arith.select %617, %1071, %1072 : vector<16x16xi1>, vector<16x16xf32>
    %cst_416 = arith.constant dense<0xFF800000> : vector<16xf32>
    %1074 = vector.multi_reduction <maximumf>, %1073, %cst_416 [1] : vector<16x16xf32> to vector<16xf32>
    %1075 = vector.shape_cast %1074 : vector<16xf32> to vector<16x1xf32>
    %1076 = vector.broadcast %1075 : vector<16x1xf32> to vector<16x16xf32>
    %1077 = arith.subf %1073, %1076 : vector<16x16xf32>
    %1078 = math.exp %1077 : vector<16x16xf32>
    %cst_417 = arith.constant dense<0.000000e+00> : vector<16xf32>
    %1079 = vector.multi_reduction <add>, %1078, %cst_417 [1] : vector<16x16xf32> to vector<16xf32>
    %1080 = vector.shape_cast %1079 : vector<16xf32> to vector<16x1xf32>
    %1081 = tpu.reciprocal %1080 {approx = true} : vector<16x1xf32> -> vector<16x1xf32>
    %1082 = vector.broadcast %1081 : vector<16x1xf32> to vector<16x16xf32>
    %1083 = arith.mulf %1078, %1082 : vector<16x16xf32>
    %1084 = vector.extract_strided_slice %1021 {offsets = [0, 32], sizes = [16, 16], strides = [1, 1]} : vector<16x64xf32> to vector<16x16xf32>
    %cst_418 = arith.constant dense<0.000000e+00> : vector<16x16xf32>
    %1085 = tpu.matmul %1083, %1084, %cst_418 {dimension_numbers = #tpu.dot_dimension_numbers<[1], [0], [0], [1], [0, 0, 1, 1], [], []>} : vector<16x16xf32>, vector<16x16xf32>, vector<16x16xf32> -> vector<16x16xf32>
    %1086 = vector.extract_strided_slice %1018 {offsets = [32, 0], sizes = [16, 64], strides = [1, 1]} : vector<64x64xf32> to vector<16x64xf32>
    %cst_419 = arith.constant dense<0.000000e+00> : vector<16x64xf32>
    %1087 = tpu.matmul %1085, %1086, %cst_419 {dimension_numbers = #tpu.dot_dimension_numbers<[1], [0], [0], [1], [0, 0, 1, 1], [], []>} : vector<16x16xf32>, vector<16x64xf32>, vector<16x64xf32> -> vector<16x64xf32>
    %1088 = arith.addf %1066, %1087 : vector<16x64xf32>
    %1089 = vector.extract_strided_slice %1019 {offsets = [0, 48], sizes = [16, 16], strides = [1, 1]} : vector<16x64xf32> to vector<16x16xf32>
    %1090 = vector.extract_strided_slice %1020 {offsets = [0, 48], sizes = [16, 16], strides = [1, 1]} : vector<16x64xf32> to vector<16x16xf32>
    %cst_420 = arith.constant dense<0.000000e+00> : vector<16x16xf32>
    %1091 = tpu.matmul %1089, %1090, %cst_420 {dimension_numbers = #tpu.dot_dimension_numbers<[1], [1], [0], [0], [0, 0, 1, 0], [], []>} : vector<16x16xf32>, vector<16x16xf32>, vector<16x16xf32> -> vector<16x16xf32>
    %cst_421 = arith.constant 2.500000e-01 : f32
    %1092 = vector.broadcast %cst_421 : f32 to vector<16x16xf32>
    %1093 = arith.mulf %1091, %1092 : vector<16x16xf32>
    %cst_422 = arith.constant -3.40282347E+38 : f32
    %1094 = vector.broadcast %cst_422 : f32 to vector<16x16xf32>
    %1095 = arith.select %617, %1093, %1094 : vector<16x16xi1>, vector<16x16xf32>
    %cst_423 = arith.constant dense<0xFF800000> : vector<16xf32>
    %1096 = vector.multi_reduction <maximumf>, %1095, %cst_423 [1] : vector<16x16xf32> to vector<16xf32>
    %1097 = vector.shape_cast %1096 : vector<16xf32> to vector<16x1xf32>
    %1098 = vector.broadcast %1097 : vector<16x1xf32> to vector<16x16xf32>
    %1099 = arith.subf %1095, %1098 : vector<16x16xf32>
    %1100 = math.exp %1099 : vector<16x16xf32>
    %cst_424 = arith.constant dense<0.000000e+00> : vector<16xf32>
    %1101 = vector.multi_reduction <add>, %1100, %cst_424 [1] : vector<16x16xf32> to vector<16xf32>
    %1102 = vector.shape_cast %1101 : vector<16xf32> to vector<16x1xf32>
    %1103 = tpu.reciprocal %1102 {approx = true} : vector<16x1xf32> -> vector<16x1xf32>
    %1104 = vector.broadcast %1103 : vector<16x1xf32> to vector<16x16xf32>
    %1105 = arith.mulf %1100, %1104 : vector<16x16xf32>
    %1106 = vector.extract_strided_slice %1021 {offsets = [0, 48], sizes = [16, 16], strides = [1, 1]} : vector<16x64xf32> to vector<16x16xf32>
    %cst_425 = arith.constant dense<0.000000e+00> : vector<16x16xf32>
    %1107 = tpu.matmul %1105, %1106, %cst_425 {dimension_numbers = #tpu.dot_dimension_numbers<[1], [0], [0], [1], [0, 0, 1, 1], [], []>} : vector<16x16xf32>, vector<16x16xf32>, vector<16x16xf32> -> vector<16x16xf32>
    %1108 = vector.extract_strided_slice %1018 {offsets = [48, 0], sizes = [16, 64], strides = [1, 1]} : vector<64x64xf32> to vector<16x64xf32>
    %cst_426 = arith.constant dense<0.000000e+00> : vector<16x64xf32>
    %1109 = tpu.matmul %1107, %1108, %cst_426 {dimension_numbers = #tpu.dot_dimension_numbers<[1], [0], [0], [1], [0, 0, 1, 1], [], []>} : vector<16x16xf32>, vector<16x64xf32>, vector<16x64xf32> -> vector<16x64xf32>
    %1110 = arith.addf %1088, %1109 : vector<16x64xf32>
    %1111 = vector.extract_strided_slice %1016 {offsets = [16, 0], sizes = [16, 64], strides = [1, 1]} : vector<48x192xf32> to vector<16x64xf32>
    %1112 = vector.extract_strided_slice %1016 {offsets = [16, 64], sizes = [16, 64], strides = [1, 1]} : vector<48x192xf32> to vector<16x64xf32>
    %1113 = vector.extract_strided_slice %1016 {offsets = [16, 128], sizes = [16, 64], strides = [1, 1]} : vector<48x192xf32> to vector<16x64xf32>
    %cst_427 = arith.constant 0.000000e+00 : f32
    %1114 = vector.broadcast %cst_427 : f32 to vector<16x64xf32>
    %1115 = vector.extract_strided_slice %1111 {offsets = [0, 0], sizes = [16, 16], strides = [1, 1]} : vector<16x64xf32> to vector<16x16xf32>
    %1116 = vector.extract_strided_slice %1112 {offsets = [0, 0], sizes = [16, 16], strides = [1, 1]} : vector<16x64xf32> to vector<16x16xf32>
    %cst_428 = arith.constant dense<0.000000e+00> : vector<16x16xf32>
    %1117 = tpu.matmul %1115, %1116, %cst_428 {dimension_numbers = #tpu.dot_dimension_numbers<[1], [1], [0], [0], [0, 0, 1, 0], [], []>} : vector<16x16xf32>, vector<16x16xf32>, vector<16x16xf32> -> vector<16x16xf32>
    %cst_429 = arith.constant 2.500000e-01 : f32
    %1118 = vector.broadcast %cst_429 : f32 to vector<16x16xf32>
    %1119 = arith.mulf %1117, %1118 : vector<16x16xf32>
    %cst_430 = arith.constant -3.40282347E+38 : f32
    %1120 = vector.broadcast %cst_430 : f32 to vector<16x16xf32>
    %1121 = arith.select %617, %1119, %1120 : vector<16x16xi1>, vector<16x16xf32>
    %cst_431 = arith.constant dense<0xFF800000> : vector<16xf32>
    %1122 = vector.multi_reduction <maximumf>, %1121, %cst_431 [1] : vector<16x16xf32> to vector<16xf32>
    %1123 = vector.shape_cast %1122 : vector<16xf32> to vector<16x1xf32>
    %1124 = vector.broadcast %1123 : vector<16x1xf32> to vector<16x16xf32>
    %1125 = arith.subf %1121, %1124 : vector<16x16xf32>
    %1126 = math.exp %1125 : vector<16x16xf32>
    %cst_432 = arith.constant dense<0.000000e+00> : vector<16xf32>
    %1127 = vector.multi_reduction <add>, %1126, %cst_432 [1] : vector<16x16xf32> to vector<16xf32>
    %1128 = vector.shape_cast %1127 : vector<16xf32> to vector<16x1xf32>
    %1129 = tpu.reciprocal %1128 {approx = true} : vector<16x1xf32> -> vector<16x1xf32>
    %1130 = vector.broadcast %1129 : vector<16x1xf32> to vector<16x16xf32>
    %1131 = arith.mulf %1126, %1130 : vector<16x16xf32>
    %1132 = vector.extract_strided_slice %1113 {offsets = [0, 0], sizes = [16, 16], strides = [1, 1]} : vector<16x64xf32> to vector<16x16xf32>
    %cst_433 = arith.constant dense<0.000000e+00> : vector<16x16xf32>
    %1133 = tpu.matmul %1131, %1132, %cst_433 {dimension_numbers = #tpu.dot_dimension_numbers<[1], [0], [0], [1], [0, 0, 1, 1], [], []>} : vector<16x16xf32>, vector<16x16xf32>, vector<16x16xf32> -> vector<16x16xf32>
    %1134 = vector.extract_strided_slice %1018 {offsets = [0, 0], sizes = [16, 64], strides = [1, 1]} : vector<64x64xf32> to vector<16x64xf32>
    %cst_434 = arith.constant dense<0.000000e+00> : vector<16x64xf32>
    %1135 = tpu.matmul %1133, %1134, %cst_434 {dimension_numbers = #tpu.dot_dimension_numbers<[1], [0], [0], [1], [0, 0, 1, 1], [], []>} : vector<16x16xf32>, vector<16x64xf32>, vector<16x64xf32> -> vector<16x64xf32>
    %1136 = arith.addf %1114, %1135 : vector<16x64xf32>
    %1137 = vector.extract_strided_slice %1111 {offsets = [0, 16], sizes = [16, 16], strides = [1, 1]} : vector<16x64xf32> to vector<16x16xf32>
    %1138 = vector.extract_strided_slice %1112 {offsets = [0, 16], sizes = [16, 16], strides = [1, 1]} : vector<16x64xf32> to vector<16x16xf32>
    %cst_435 = arith.constant dense<0.000000e+00> : vector<16x16xf32>
    %1139 = tpu.matmul %1137, %1138, %cst_435 {dimension_numbers = #tpu.dot_dimension_numbers<[1], [1], [0], [0], [0, 0, 1, 0], [], []>} : vector<16x16xf32>, vector<16x16xf32>, vector<16x16xf32> -> vector<16x16xf32>
    %cst_436 = arith.constant 2.500000e-01 : f32
    %1140 = vector.broadcast %cst_436 : f32 to vector<16x16xf32>
    %1141 = arith.mulf %1139, %1140 : vector<16x16xf32>
    %cst_437 = arith.constant -3.40282347E+38 : f32
    %1142 = vector.broadcast %cst_437 : f32 to vector<16x16xf32>
    %1143 = arith.select %617, %1141, %1142 : vector<16x16xi1>, vector<16x16xf32>
    %cst_438 = arith.constant dense<0xFF800000> : vector<16xf32>
    %1144 = vector.multi_reduction <maximumf>, %1143, %cst_438 [1] : vector<16x16xf32> to vector<16xf32>
    %1145 = vector.shape_cast %1144 : vector<16xf32> to vector<16x1xf32>
    %1146 = vector.broadcast %1145 : vector<16x1xf32> to vector<16x16xf32>
    %1147 = arith.subf %1143, %1146 : vector<16x16xf32>
    %1148 = math.exp %1147 : vector<16x16xf32>
    %cst_439 = arith.constant dense<0.000000e+00> : vector<16xf32>
    %1149 = vector.multi_reduction <add>, %1148, %cst_439 [1] : vector<16x16xf32> to vector<16xf32>
    %1150 = vector.shape_cast %1149 : vector<16xf32> to vector<16x1xf32>
    %1151 = tpu.reciprocal %1150 {approx = true} : vector<16x1xf32> -> vector<16x1xf32>
    %1152 = vector.broadcast %1151 : vector<16x1xf32> to vector<16x16xf32>
    %1153 = arith.mulf %1148, %1152 : vector<16x16xf32>
    %1154 = vector.extract_strided_slice %1113 {offsets = [0, 16], sizes = [16, 16], strides = [1, 1]} : vector<16x64xf32> to vector<16x16xf32>
    %cst_440 = arith.constant dense<0.000000e+00> : vector<16x16xf32>
    %1155 = tpu.matmul %1153, %1154, %cst_440 {dimension_numbers = #tpu.dot_dimension_numbers<[1], [0], [0], [1], [0, 0, 1, 1], [], []>} : vector<16x16xf32>, vector<16x16xf32>, vector<16x16xf32> -> vector<16x16xf32>
    %1156 = vector.extract_strided_slice %1018 {offsets = [16, 0], sizes = [16, 64], strides = [1, 1]} : vector<64x64xf32> to vector<16x64xf32>
    %cst_441 = arith.constant dense<0.000000e+00> : vector<16x64xf32>
    %1157 = tpu.matmul %1155, %1156, %cst_441 {dimension_numbers = #tpu.dot_dimension_numbers<[1], [0], [0], [1], [0, 0, 1, 1], [], []>} : vector<16x16xf32>, vector<16x64xf32>, vector<16x64xf32> -> vector<16x64xf32>
    %1158 = arith.addf %1136, %1157 : vector<16x64xf32>
    %1159 = vector.extract_strided_slice %1111 {offsets = [0, 32], sizes = [16, 16], strides = [1, 1]} : vector<16x64xf32> to vector<16x16xf32>
    %1160 = vector.extract_strided_slice %1112 {offsets = [0, 32], sizes = [16, 16], strides = [1, 1]} : vector<16x64xf32> to vector<16x16xf32>
    %cst_442 = arith.constant dense<0.000000e+00> : vector<16x16xf32>
    %1161 = tpu.matmul %1159, %1160, %cst_442 {dimension_numbers = #tpu.dot_dimension_numbers<[1], [1], [0], [0], [0, 0, 1, 0], [], []>} : vector<16x16xf32>, vector<16x16xf32>, vector<16x16xf32> -> vector<16x16xf32>
    %cst_443 = arith.constant 2.500000e-01 : f32
    %1162 = vector.broadcast %cst_443 : f32 to vector<16x16xf32>
    %1163 = arith.mulf %1161, %1162 : vector<16x16xf32>
    %cst_444 = arith.constant -3.40282347E+38 : f32
    %1164 = vector.broadcast %cst_444 : f32 to vector<16x16xf32>
    %1165 = arith.select %617, %1163, %1164 : vector<16x16xi1>, vector<16x16xf32>
    %cst_445 = arith.constant dense<0xFF800000> : vector<16xf32>
    %1166 = vector.multi_reduction <maximumf>, %1165, %cst_445 [1] : vector<16x16xf32> to vector<16xf32>
    %1167 = vector.shape_cast %1166 : vector<16xf32> to vector<16x1xf32>
    %1168 = vector.broadcast %1167 : vector<16x1xf32> to vector<16x16xf32>
    %1169 = arith.subf %1165, %1168 : vector<16x16xf32>
    %1170 = math.exp %1169 : vector<16x16xf32>
    %cst_446 = arith.constant dense<0.000000e+00> : vector<16xf32>
    %1171 = vector.multi_reduction <add>, %1170, %cst_446 [1] : vector<16x16xf32> to vector<16xf32>
    %1172 = vector.shape_cast %1171 : vector<16xf32> to vector<16x1xf32>
    %1173 = tpu.reciprocal %1172 {approx = true} : vector<16x1xf32> -> vector<16x1xf32>
    %1174 = vector.broadcast %1173 : vector<16x1xf32> to vector<16x16xf32>
    %1175 = arith.mulf %1170, %1174 : vector<16x16xf32>
    %1176 = vector.extract_strided_slice %1113 {offsets = [0, 32], sizes = [16, 16], strides = [1, 1]} : vector<16x64xf32> to vector<16x16xf32>
    %cst_447 = arith.constant dense<0.000000e+00> : vector<16x16xf32>
    %1177 = tpu.matmul %1175, %1176, %cst_447 {dimension_numbers = #tpu.dot_dimension_numbers<[1], [0], [0], [1], [0, 0, 1, 1], [], []>} : vector<16x16xf32>, vector<16x16xf32>, vector<16x16xf32> -> vector<16x16xf32>
    %1178 = vector.extract_strided_slice %1018 {offsets = [32, 0], sizes = [16, 64], strides = [1, 1]} : vector<64x64xf32> to vector<16x64xf32>
    %cst_448 = arith.constant dense<0.000000e+00> : vector<16x64xf32>
    %1179 = tpu.matmul %1177, %1178, %cst_448 {dimension_numbers = #tpu.dot_dimension_numbers<[1], [0], [0], [1], [0, 0, 1, 1], [], []>} : vector<16x16xf32>, vector<16x64xf32>, vector<16x64xf32> -> vector<16x64xf32>
    %1180 = arith.addf %1158, %1179 : vector<16x64xf32>
    %1181 = vector.extract_strided_slice %1111 {offsets = [0, 48], sizes = [16, 16], strides = [1, 1]} : vector<16x64xf32> to vector<16x16xf32>
    %1182 = vector.extract_strided_slice %1112 {offsets = [0, 48], sizes = [16, 16], strides = [1, 1]} : vector<16x64xf32> to vector<16x16xf32>
    %cst_449 = arith.constant dense<0.000000e+00> : vector<16x16xf32>
    %1183 = tpu.matmul %1181, %1182, %cst_449 {dimension_numbers = #tpu.dot_dimension_numbers<[1], [1], [0], [0], [0, 0, 1, 0], [], []>} : vector<16x16xf32>, vector<16x16xf32>, vector<16x16xf32> -> vector<16x16xf32>
    %cst_450 = arith.constant 2.500000e-01 : f32
    %1184 = vector.broadcast %cst_450 : f32 to vector<16x16xf32>
    %1185 = arith.mulf %1183, %1184 : vector<16x16xf32>
    %cst_451 = arith.constant -3.40282347E+38 : f32
    %1186 = vector.broadcast %cst_451 : f32 to vector<16x16xf32>
    %1187 = arith.select %617, %1185, %1186 : vector<16x16xi1>, vector<16x16xf32>
    %cst_452 = arith.constant dense<0xFF800000> : vector<16xf32>
    %1188 = vector.multi_reduction <maximumf>, %1187, %cst_452 [1] : vector<16x16xf32> to vector<16xf32>
    %1189 = vector.shape_cast %1188 : vector<16xf32> to vector<16x1xf32>
    %1190 = vector.broadcast %1189 : vector<16x1xf32> to vector<16x16xf32>
    %1191 = arith.subf %1187, %1190 : vector<16x16xf32>
    %1192 = math.exp %1191 : vector<16x16xf32>
    %cst_453 = arith.constant dense<0.000000e+00> : vector<16xf32>
    %1193 = vector.multi_reduction <add>, %1192, %cst_453 [1] : vector<16x16xf32> to vector<16xf32>
    %1194 = vector.shape_cast %1193 : vector<16xf32> to vector<16x1xf32>
    %1195 = tpu.reciprocal %1194 {approx = true} : vector<16x1xf32> -> vector<16x1xf32>
    %1196 = vector.broadcast %1195 : vector<16x1xf32> to vector<16x16xf32>
    %1197 = arith.mulf %1192, %1196 : vector<16x16xf32>
    %1198 = vector.extract_strided_slice %1113 {offsets = [0, 48], sizes = [16, 16], strides = [1, 1]} : vector<16x64xf32> to vector<16x16xf32>
    %cst_454 = arith.constant dense<0.000000e+00> : vector<16x16xf32>
    %1199 = tpu.matmul %1197, %1198, %cst_454 {dimension_numbers = #tpu.dot_dimension_numbers<[1], [0], [0], [1], [0, 0, 1, 1], [], []>} : vector<16x16xf32>, vector<16x16xf32>, vector<16x16xf32> -> vector<16x16xf32>
    %1200 = vector.extract_strided_slice %1018 {offsets = [48, 0], sizes = [16, 64], strides = [1, 1]} : vector<64x64xf32> to vector<16x64xf32>
    %cst_455 = arith.constant dense<0.000000e+00> : vector<16x64xf32>
    %1201 = tpu.matmul %1199, %1200, %cst_455 {dimension_numbers = #tpu.dot_dimension_numbers<[1], [0], [0], [1], [0, 0, 1, 1], [], []>} : vector<16x16xf32>, vector<16x64xf32>, vector<16x64xf32> -> vector<16x64xf32>
    %1202 = arith.addf %1180, %1201 : vector<16x64xf32>
    %1203 = vector.extract_strided_slice %1016 {offsets = [32, 0], sizes = [16, 64], strides = [1, 1]} : vector<48x192xf32> to vector<16x64xf32>
    %1204 = vector.extract_strided_slice %1016 {offsets = [32, 64], sizes = [16, 64], strides = [1, 1]} : vector<48x192xf32> to vector<16x64xf32>
    %1205 = vector.extract_strided_slice %1016 {offsets = [32, 128], sizes = [16, 64], strides = [1, 1]} : vector<48x192xf32> to vector<16x64xf32>
    %cst_456 = arith.constant 0.000000e+00 : f32
    %1206 = vector.broadcast %cst_456 : f32 to vector<16x64xf32>
    %1207 = vector.extract_strided_slice %1203 {offsets = [0, 0], sizes = [16, 16], strides = [1, 1]} : vector<16x64xf32> to vector<16x16xf32>
    %1208 = vector.extract_strided_slice %1204 {offsets = [0, 0], sizes = [16, 16], strides = [1, 1]} : vector<16x64xf32> to vector<16x16xf32>
    %cst_457 = arith.constant dense<0.000000e+00> : vector<16x16xf32>
    %1209 = tpu.matmul %1207, %1208, %cst_457 {dimension_numbers = #tpu.dot_dimension_numbers<[1], [1], [0], [0], [0, 0, 1, 0], [], []>} : vector<16x16xf32>, vector<16x16xf32>, vector<16x16xf32> -> vector<16x16xf32>
    %cst_458 = arith.constant 2.500000e-01 : f32
    %1210 = vector.broadcast %cst_458 : f32 to vector<16x16xf32>
    %1211 = arith.mulf %1209, %1210 : vector<16x16xf32>
    %cst_459 = arith.constant -3.40282347E+38 : f32
    %1212 = vector.broadcast %cst_459 : f32 to vector<16x16xf32>
    %1213 = arith.select %617, %1211, %1212 : vector<16x16xi1>, vector<16x16xf32>
    %cst_460 = arith.constant dense<0xFF800000> : vector<16xf32>
    %1214 = vector.multi_reduction <maximumf>, %1213, %cst_460 [1] : vector<16x16xf32> to vector<16xf32>
    %1215 = vector.shape_cast %1214 : vector<16xf32> to vector<16x1xf32>
    %1216 = vector.broadcast %1215 : vector<16x1xf32> to vector<16x16xf32>
    %1217 = arith.subf %1213, %1216 : vector<16x16xf32>
    %1218 = math.exp %1217 : vector<16x16xf32>
    %cst_461 = arith.constant dense<0.000000e+00> : vector<16xf32>
    %1219 = vector.multi_reduction <add>, %1218, %cst_461 [1] : vector<16x16xf32> to vector<16xf32>
    %1220 = vector.shape_cast %1219 : vector<16xf32> to vector<16x1xf32>
    %1221 = tpu.reciprocal %1220 {approx = true} : vector<16x1xf32> -> vector<16x1xf32>
    %1222 = vector.broadcast %1221 : vector<16x1xf32> to vector<16x16xf32>
    %1223 = arith.mulf %1218, %1222 : vector<16x16xf32>
    %1224 = vector.extract_strided_slice %1205 {offsets = [0, 0], sizes = [16, 16], strides = [1, 1]} : vector<16x64xf32> to vector<16x16xf32>
    %cst_462 = arith.constant dense<0.000000e+00> : vector<16x16xf32>
    %1225 = tpu.matmul %1223, %1224, %cst_462 {dimension_numbers = #tpu.dot_dimension_numbers<[1], [0], [0], [1], [0, 0, 1, 1], [], []>} : vector<16x16xf32>, vector<16x16xf32>, vector<16x16xf32> -> vector<16x16xf32>
    %1226 = vector.extract_strided_slice %1018 {offsets = [0, 0], sizes = [16, 64], strides = [1, 1]} : vector<64x64xf32> to vector<16x64xf32>
    %cst_463 = arith.constant dense<0.000000e+00> : vector<16x64xf32>
    %1227 = tpu.matmul %1225, %1226, %cst_463 {dimension_numbers = #tpu.dot_dimension_numbers<[1], [0], [0], [1], [0, 0, 1, 1], [], []>} : vector<16x16xf32>, vector<16x64xf32>, vector<16x64xf32> -> vector<16x64xf32>
    %1228 = arith.addf %1206, %1227 : vector<16x64xf32>
    %1229 = vector.extract_strided_slice %1203 {offsets = [0, 16], sizes = [16, 16], strides = [1, 1]} : vector<16x64xf32> to vector<16x16xf32>
    %1230 = vector.extract_strided_slice %1204 {offsets = [0, 16], sizes = [16, 16], strides = [1, 1]} : vector<16x64xf32> to vector<16x16xf32>
    %cst_464 = arith.constant dense<0.000000e+00> : vector<16x16xf32>
    %1231 = tpu.matmul %1229, %1230, %cst_464 {dimension_numbers = #tpu.dot_dimension_numbers<[1], [1], [0], [0], [0, 0, 1, 0], [], []>} : vector<16x16xf32>, vector<16x16xf32>, vector<16x16xf32> -> vector<16x16xf32>
    %cst_465 = arith.constant 2.500000e-01 : f32
    %1232 = vector.broadcast %cst_465 : f32 to vector<16x16xf32>
    %1233 = arith.mulf %1231, %1232 : vector<16x16xf32>
    %cst_466 = arith.constant -3.40282347E+38 : f32
    %1234 = vector.broadcast %cst_466 : f32 to vector<16x16xf32>
    %1235 = arith.select %617, %1233, %1234 : vector<16x16xi1>, vector<16x16xf32>
    %cst_467 = arith.constant dense<0xFF800000> : vector<16xf32>
    %1236 = vector.multi_reduction <maximumf>, %1235, %cst_467 [1] : vector<16x16xf32> to vector<16xf32>
    %1237 = vector.shape_cast %1236 : vector<16xf32> to vector<16x1xf32>
    %1238 = vector.broadcast %1237 : vector<16x1xf32> to vector<16x16xf32>
    %1239 = arith.subf %1235, %1238 : vector<16x16xf32>
    %1240 = math.exp %1239 : vector<16x16xf32>
    %cst_468 = arith.constant dense<0.000000e+00> : vector<16xf32>
    %1241 = vector.multi_reduction <add>, %1240, %cst_468 [1] : vector<16x16xf32> to vector<16xf32>
    %1242 = vector.shape_cast %1241 : vector<16xf32> to vector<16x1xf32>
    %1243 = tpu.reciprocal %1242 {approx = true} : vector<16x1xf32> -> vector<16x1xf32>
    %1244 = vector.broadcast %1243 : vector<16x1xf32> to vector<16x16xf32>
    %1245 = arith.mulf %1240, %1244 : vector<16x16xf32>
    %1246 = vector.extract_strided_slice %1205 {offsets = [0, 16], sizes = [16, 16], strides = [1, 1]} : vector<16x64xf32> to vector<16x16xf32>
    %cst_469 = arith.constant dense<0.000000e+00> : vector<16x16xf32>
    %1247 = tpu.matmul %1245, %1246, %cst_469 {dimension_numbers = #tpu.dot_dimension_numbers<[1], [0], [0], [1], [0, 0, 1, 1], [], []>} : vector<16x16xf32>, vector<16x16xf32>, vector<16x16xf32> -> vector<16x16xf32>
    %1248 = vector.extract_strided_slice %1018 {offsets = [16, 0], sizes = [16, 64], strides = [1, 1]} : vector<64x64xf32> to vector<16x64xf32>
    %cst_470 = arith.constant dense<0.000000e+00> : vector<16x64xf32>
    %1249 = tpu.matmul %1247, %1248, %cst_470 {dimension_numbers = #tpu.dot_dimension_numbers<[1], [0], [0], [1], [0, 0, 1, 1], [], []>} : vector<16x16xf32>, vector<16x64xf32>, vector<16x64xf32> -> vector<16x64xf32>
    %1250 = arith.addf %1228, %1249 : vector<16x64xf32>
    %1251 = vector.extract_strided_slice %1203 {offsets = [0, 32], sizes = [16, 16], strides = [1, 1]} : vector<16x64xf32> to vector<16x16xf32>
    %1252 = vector.extract_strided_slice %1204 {offsets = [0, 32], sizes = [16, 16], strides = [1, 1]} : vector<16x64xf32> to vector<16x16xf32>
    %cst_471 = arith.constant dense<0.000000e+00> : vector<16x16xf32>
    %1253 = tpu.matmul %1251, %1252, %cst_471 {dimension_numbers = #tpu.dot_dimension_numbers<[1], [1], [0], [0], [0, 0, 1, 0], [], []>} : vector<16x16xf32>, vector<16x16xf32>, vector<16x16xf32> -> vector<16x16xf32>
    %cst_472 = arith.constant 2.500000e-01 : f32
    %1254 = vector.broadcast %cst_472 : f32 to vector<16x16xf32>
    %1255 = arith.mulf %1253, %1254 : vector<16x16xf32>
    %cst_473 = arith.constant -3.40282347E+38 : f32
    %1256 = vector.broadcast %cst_473 : f32 to vector<16x16xf32>
    %1257 = arith.select %617, %1255, %1256 : vector<16x16xi1>, vector<16x16xf32>
    %cst_474 = arith.constant dense<0xFF800000> : vector<16xf32>
    %1258 = vector.multi_reduction <maximumf>, %1257, %cst_474 [1] : vector<16x16xf32> to vector<16xf32>
    %1259 = vector.shape_cast %1258 : vector<16xf32> to vector<16x1xf32>
    %1260 = vector.broadcast %1259 : vector<16x1xf32> to vector<16x16xf32>
    %1261 = arith.subf %1257, %1260 : vector<16x16xf32>
    %1262 = math.exp %1261 : vector<16x16xf32>
    %cst_475 = arith.constant dense<0.000000e+00> : vector<16xf32>
    %1263 = vector.multi_reduction <add>, %1262, %cst_475 [1] : vector<16x16xf32> to vector<16xf32>
    %1264 = vector.shape_cast %1263 : vector<16xf32> to vector<16x1xf32>
    %1265 = tpu.reciprocal %1264 {approx = true} : vector<16x1xf32> -> vector<16x1xf32>
    %1266 = vector.broadcast %1265 : vector<16x1xf32> to vector<16x16xf32>
    %1267 = arith.mulf %1262, %1266 : vector<16x16xf32>
    %1268 = vector.extract_strided_slice %1205 {offsets = [0, 32], sizes = [16, 16], strides = [1, 1]} : vector<16x64xf32> to vector<16x16xf32>
    %cst_476 = arith.constant dense<0.000000e+00> : vector<16x16xf32>
    %1269 = tpu.matmul %1267, %1268, %cst_476 {dimension_numbers = #tpu.dot_dimension_numbers<[1], [0], [0], [1], [0, 0, 1, 1], [], []>} : vector<16x16xf32>, vector<16x16xf32>, vector<16x16xf32> -> vector<16x16xf32>
    %1270 = vector.extract_strided_slice %1018 {offsets = [32, 0], sizes = [16, 64], strides = [1, 1]} : vector<64x64xf32> to vector<16x64xf32>
    %cst_477 = arith.constant dense<0.000000e+00> : vector<16x64xf32>
    %1271 = tpu.matmul %1269, %1270, %cst_477 {dimension_numbers = #tpu.dot_dimension_numbers<[1], [0], [0], [1], [0, 0, 1, 1], [], []>} : vector<16x16xf32>, vector<16x64xf32>, vector<16x64xf32> -> vector<16x64xf32>
    %1272 = arith.addf %1250, %1271 : vector<16x64xf32>
    %1273 = vector.extract_strided_slice %1203 {offsets = [0, 48], sizes = [16, 16], strides = [1, 1]} : vector<16x64xf32> to vector<16x16xf32>
    %1274 = vector.extract_strided_slice %1204 {offsets = [0, 48], sizes = [16, 16], strides = [1, 1]} : vector<16x64xf32> to vector<16x16xf32>
    %cst_478 = arith.constant dense<0.000000e+00> : vector<16x16xf32>
    %1275 = tpu.matmul %1273, %1274, %cst_478 {dimension_numbers = #tpu.dot_dimension_numbers<[1], [1], [0], [0], [0, 0, 1, 0], [], []>} : vector<16x16xf32>, vector<16x16xf32>, vector<16x16xf32> -> vector<16x16xf32>
    %cst_479 = arith.constant 2.500000e-01 : f32
    %1276 = vector.broadcast %cst_479 : f32 to vector<16x16xf32>
    %1277 = arith.mulf %1275, %1276 : vector<16x16xf32>
    %cst_480 = arith.constant -3.40282347E+38 : f32
    %1278 = vector.broadcast %cst_480 : f32 to vector<16x16xf32>
    %1279 = arith.select %617, %1277, %1278 : vector<16x16xi1>, vector<16x16xf32>
    %cst_481 = arith.constant dense<0xFF800000> : vector<16xf32>
    %1280 = vector.multi_reduction <maximumf>, %1279, %cst_481 [1] : vector<16x16xf32> to vector<16xf32>
    %1281 = vector.shape_cast %1280 : vector<16xf32> to vector<16x1xf32>
    %1282 = vector.broadcast %1281 : vector<16x1xf32> to vector<16x16xf32>
    %1283 = arith.subf %1279, %1282 : vector<16x16xf32>
    %1284 = math.exp %1283 : vector<16x16xf32>
    %cst_482 = arith.constant dense<0.000000e+00> : vector<16xf32>
    %1285 = vector.multi_reduction <add>, %1284, %cst_482 [1] : vector<16x16xf32> to vector<16xf32>
    %1286 = vector.shape_cast %1285 : vector<16xf32> to vector<16x1xf32>
    %1287 = tpu.reciprocal %1286 {approx = true} : vector<16x1xf32> -> vector<16x1xf32>
    %1288 = vector.broadcast %1287 : vector<16x1xf32> to vector<16x16xf32>
    %1289 = arith.mulf %1284, %1288 : vector<16x16xf32>
    %1290 = vector.extract_strided_slice %1205 {offsets = [0, 48], sizes = [16, 16], strides = [1, 1]} : vector<16x64xf32> to vector<16x16xf32>
    %cst_483 = arith.constant dense<0.000000e+00> : vector<16x16xf32>
    %1291 = tpu.matmul %1289, %1290, %cst_483 {dimension_numbers = #tpu.dot_dimension_numbers<[1], [0], [0], [1], [0, 0, 1, 1], [], []>} : vector<16x16xf32>, vector<16x16xf32>, vector<16x16xf32> -> vector<16x16xf32>
    %1292 = vector.extract_strided_slice %1018 {offsets = [48, 0], sizes = [16, 64], strides = [1, 1]} : vector<64x64xf32> to vector<16x64xf32>
    %cst_484 = arith.constant dense<0.000000e+00> : vector<16x64xf32>
    %1293 = tpu.matmul %1291, %1292, %cst_484 {dimension_numbers = #tpu.dot_dimension_numbers<[1], [0], [0], [1], [0, 0, 1, 1], [], []>} : vector<16x16xf32>, vector<16x64xf32>, vector<16x64xf32> -> vector<16x64xf32>
    %1294 = arith.addf %1272, %1293 : vector<16x64xf32>
    %1295 = tpu.concatenate %1110, %1202, %1294 in 0 : vector<16x64xf32>, vector<16x64xf32>, vector<16x64xf32> -> vector<48x64xf32>
    %c1_485 = arith.constant 1 : index
    %c0_486 = arith.constant 0 : index
    %c0_487 = arith.constant 0 : index
    %1296 = vector.load %arg31[%c1_485, %c0_486, %c0_487] : memref<2x1x64xf32, #tpu.memory_space<vmem>>, vector<1x1x64xf32>
    %1297 = vector.shape_cast %1296 : vector<1x1x64xf32> to vector<1x64xf32>
    %1298 = vector.broadcast %1297 : vector<1x64xf32> to vector<48x64xf32>
    %1299 = arith.addf %1295, %1298 : vector<48x64xf32>
    %1300 = arith.addf %983, %1299 : vector<48x64xf32>
    %c1_488 = arith.constant 1 : index
    %c0_489 = arith.constant 0 : index
    %c0_490 = arith.constant 0 : index
    %1301 = vector.load %arg32[%c1_488, %c0_489, %c0_490] : memref<2x1x64xf32, #tpu.memory_space<vmem>>, vector<1x1x64xf32>
    %1302 = vector.shape_cast %1301 : vector<1x1x64xf32> to vector<1x64xf32>
    %c1_491 = arith.constant 1 : index
    %c0_492 = arith.constant 0 : index
    %c0_493 = arith.constant 0 : index
    %1303 = vector.load %arg33[%c1_491, %c0_492, %c0_493] : memref<2x1x64xf32, #tpu.memory_space<vmem>>, vector<1x1x64xf32>
    %1304 = vector.shape_cast %1303 : vector<1x1x64xf32> to vector<1x64xf32>
    %cst_494 = arith.constant dense<0.000000e+00> : vector<48xf32>
    %1305 = vector.multi_reduction <add>, %1300, %cst_494 [1] : vector<48x64xf32> to vector<48xf32>
    %1306 = vector.shape_cast %1305 : vector<48xf32> to vector<48x1xf32>
    %cst_495 = arith.constant 6.400000e+01 : f32
    %1307 = vector.broadcast %cst_495 : f32 to vector<48x1xf32>
    %1308 = arith.divf %1306, %1307 : vector<48x1xf32>
    %1309 = vector.broadcast %1308 : vector<48x1xf32> to vector<48x64xf32>
    %1310 = arith.subf %1300, %1309 : vector<48x64xf32>
    %1311 = arith.mulf %1310, %1310 : vector<48x64xf32>
    %cst_496 = arith.constant dense<0.000000e+00> : vector<48xf32>
    %1312 = vector.multi_reduction <add>, %1311, %cst_496 [1] : vector<48x64xf32> to vector<48xf32>
    %1313 = vector.shape_cast %1312 : vector<48xf32> to vector<48x1xf32>
    %cst_497 = arith.constant 6.400000e+01 : f32
    %1314 = vector.broadcast %cst_497 : f32 to vector<48x1xf32>
    %1315 = arith.divf %1313, %1314 : vector<48x1xf32>
    %1316 = vector.broadcast %1308 : vector<48x1xf32> to vector<48x64xf32>
    %1317 = arith.subf %1300, %1316 : vector<48x64xf32>
    %cst_498 = arith.constant 9.99999974E-6 : f32
    %1318 = vector.broadcast %cst_498 : f32 to vector<48x1xf32>
    %1319 = arith.addf %1315, %1318 : vector<48x1xf32>
    %1320 = math.rsqrt %1319 : vector<48x1xf32>
    %1321 = vector.broadcast %1320 : vector<48x1xf32> to vector<48x64xf32>
    %1322 = arith.mulf %1317, %1321 : vector<48x64xf32>
    %1323 = vector.broadcast %1302 : vector<1x64xf32> to vector<48x64xf32>
    %1324 = arith.mulf %1322, %1323 : vector<48x64xf32>
    %1325 = vector.broadcast %1304 : vector<1x64xf32> to vector<48x64xf32>
    %1326 = arith.addf %1324, %1325 : vector<48x64xf32>
    %c1_499 = arith.constant 1 : index
    %c0_500 = arith.constant 0 : index
    %c0_501 = arith.constant 0 : index
    %1327 = vector.load %arg34[%c1_499, %c0_500, %c0_501] : memref<2x64x256xf32, #tpu.memory_space<vmem>>, vector<1x64x256xf32>
    %1328 = vector.shape_cast %1327 : vector<1x64x256xf32> to vector<64x256xf32>
    %cst_502 = arith.constant dense<0.000000e+00> : vector<48x256xf32>
    %1329 = tpu.matmul %1326, %1328, %cst_502 {dimension_numbers = #tpu.dot_dimension_numbers<[1], [0], [0], [1], [0, 0, 1, 1], [], []>} : vector<48x64xf32>, vector<64x256xf32>, vector<48x256xf32> -> vector<48x256xf32>
    %c1_503 = arith.constant 1 : index
    %c0_504 = arith.constant 0 : index
    %c0_505 = arith.constant 0 : index
    %1330 = vector.load %arg35[%c1_503, %c0_504, %c0_505] : memref<2x1x256xf32, #tpu.memory_space<vmem>>, vector<1x1x256xf32>
    %1331 = vector.shape_cast %1330 : vector<1x1x256xf32> to vector<1x256xf32>
    %1332 = vector.broadcast %1331 : vector<1x256xf32> to vector<48x256xf32>
    %1333 = arith.addf %1329, %1332 : vector<48x256xf32>
    %cst_506 = arith.constant 1.702000e+00 : f32
    %1334 = vector.broadcast %cst_506 : f32 to vector<48x256xf32>
    %1335 = arith.mulf %1334, %1333 : vector<48x256xf32>
    %1336 = arith.negf %1335 : vector<48x256xf32>
    %1337 = math.exp %1336 : vector<48x256xf32>
    %cst_507 = arith.constant 1.000000e+00 : f32
    %1338 = vector.broadcast %cst_507 : f32 to vector<48x256xf32>
    %1339 = arith.addf %1338, %1337 : vector<48x256xf32>
    %1340 = arith.divf %1338, %1339 : vector<48x256xf32>
    %1341 = arith.mulf %1333, %1340 : vector<48x256xf32>
    %c1_508 = arith.constant 1 : index
    %c0_509 = arith.constant 0 : index
    %c0_510 = arith.constant 0 : index
    %1342 = vector.load %arg36[%c1_508, %c0_509, %c0_510] : memref<2x256x64xf32, #tpu.memory_space<vmem>>, vector<1x256x64xf32>
    %1343 = vector.shape_cast %1342 : vector<1x256x64xf32> to vector<256x64xf32>
    %cst_511 = arith.constant dense<0.000000e+00> : vector<48x64xf32>
    %1344 = tpu.matmul %1341, %1343, %cst_511 {dimension_numbers = #tpu.dot_dimension_numbers<[1], [0], [0], [1], [0, 0, 1, 1], [], []>} : vector<48x256xf32>, vector<256x64xf32>, vector<48x64xf32> -> vector<48x64xf32>
    %c1_512 = arith.constant 1 : index
    %c0_513 = arith.constant 0 : index
    %c0_514 = arith.constant 0 : index
    %1345 = vector.load %arg37[%c1_512, %c0_513, %c0_514] : memref<2x1x64xf32, #tpu.memory_space<vmem>>, vector<1x1x64xf32>
    %1346 = vector.shape_cast %1345 : vector<1x1x64xf32> to vector<1x64xf32>
    %1347 = vector.broadcast %1346 : vector<1x64xf32> to vector<48x64xf32>
    %1348 = arith.addf %1344, %1347 : vector<48x64xf32>
    %1349 = arith.addf %1300, %1348 : vector<48x64xf32>
    %c0_515 = arith.constant 0 : index
    %c0_516 = arith.constant 0 : index
    %1350 = vector.load %arg41[%c0_515, %c0_516] : memref<3x48xf32, #tpu.memory_space<vmem>>, vector<3x48xf32>
    %cst_517 = arith.constant dense<0.000000e+00> : vector<3x64xf32>
    %1351 = tpu.matmul %1350, %1349, %cst_517 {dimension_numbers = #tpu.dot_dimension_numbers<[1], [0], [0], [1], [0, 0, 1, 1], [], []>} : vector<3x48xf32>, vector<48x64xf32>, vector<3x64xf32> -> vector<3x64xf32>
    %c0_518 = arith.constant 0 : index
    %c0_519 = arith.constant 0 : index
    %1352 = vector.load %arg38[%c0_518, %c0_519] : memref<1x64xf32, #tpu.memory_space<vmem>>, vector<1x64xf32>
    %c0_520 = arith.constant 0 : index
    %c0_521 = arith.constant 0 : index
    %1353 = vector.load %arg39[%c0_520, %c0_521] : memref<1x64xf32, #tpu.memory_space<vmem>>, vector<1x64xf32>
    %cst_522 = arith.constant dense<0.000000e+00> : vector<3xf32>
    %1354 = vector.multi_reduction <add>, %1351, %cst_522 [1] : vector<3x64xf32> to vector<3xf32>
    %1355 = vector.shape_cast %1354 : vector<3xf32> to vector<3x1xf32>
    %cst_523 = arith.constant 6.400000e+01 : f32
    %1356 = vector.broadcast %cst_523 : f32 to vector<3x1xf32>
    %1357 = arith.divf %1355, %1356 : vector<3x1xf32>
    %1358 = vector.broadcast %1357 : vector<3x1xf32> to vector<3x64xf32>
    %1359 = arith.subf %1351, %1358 : vector<3x64xf32>
    %1360 = arith.mulf %1359, %1359 : vector<3x64xf32>
    %cst_524 = arith.constant dense<0.000000e+00> : vector<3xf32>
    %1361 = vector.multi_reduction <add>, %1360, %cst_524 [1] : vector<3x64xf32> to vector<3xf32>
    %1362 = vector.shape_cast %1361 : vector<3xf32> to vector<3x1xf32>
    %cst_525 = arith.constant 6.400000e+01 : f32
    %1363 = vector.broadcast %cst_525 : f32 to vector<3x1xf32>
    %1364 = arith.divf %1362, %1363 : vector<3x1xf32>
    %1365 = vector.broadcast %1357 : vector<3x1xf32> to vector<3x64xf32>
    %1366 = arith.subf %1351, %1365 : vector<3x64xf32>
    %cst_526 = arith.constant 9.99999974E-6 : f32
    %1367 = vector.broadcast %cst_526 : f32 to vector<3x1xf32>
    %1368 = arith.addf %1364, %1367 : vector<3x1xf32>
    %1369 = math.rsqrt %1368 : vector<3x1xf32>
    %1370 = vector.broadcast %1369 : vector<3x1xf32> to vector<3x64xf32>
    %1371 = arith.mulf %1366, %1370 : vector<3x64xf32>
    %1372 = vector.broadcast %1352 : vector<1x64xf32> to vector<3x64xf32>
    %1373 = arith.mulf %1371, %1372 : vector<3x64xf32>
    %1374 = vector.broadcast %1353 : vector<1x64xf32> to vector<3x64xf32>
    %1375 = arith.addf %1373, %1374 : vector<3x64xf32>
    %c0_527 = arith.constant 0 : index
    %c0_528 = arith.constant 0 : index
    %1376 = vector.load %arg40[%c0_527, %c0_528] : memref<64x32xf32, #tpu.memory_space<vmem>>, vector<64x32xf32>
    %cst_529 = arith.constant dense<0.000000e+00> : vector<3x32xf32>
    %1377 = tpu.matmul %1375, %1376, %cst_529 {dimension_numbers = #tpu.dot_dimension_numbers<[1], [0], [0], [1], [0, 0, 1, 1], [], []>} : vector<3x64xf32>, vector<64x32xf32>, vector<3x32xf32> -> vector<3x32xf32>
    %1378 = arith.mulf %579, %579 : vector<10x32xf32>
    %cst_530 = arith.constant dense<0.000000e+00> : vector<10xf32>
    %1379 = vector.multi_reduction <add>, %1378, %cst_530 [1] : vector<10x32xf32> to vector<10xf32>
    %1380 = vector.shape_cast %1379 : vector<10xf32> to vector<10x1xf32>
    %1381 = math.rsqrt %1380 : vector<10x1xf32>
    %1382 = vector.broadcast %1381 : vector<10x1xf32> to vector<10x32xf32>
    %1383 = arith.mulf %579, %1382 : vector<10x32xf32>
    %1384 = arith.mulf %1377, %1377 : vector<3x32xf32>
    %cst_531 = arith.constant dense<0.000000e+00> : vector<3xf32>
    %1385 = vector.multi_reduction <add>, %1384, %cst_531 [1] : vector<3x32xf32> to vector<3xf32>
    %1386 = vector.shape_cast %1385 : vector<3xf32> to vector<3x1xf32>
    %1387 = math.rsqrt %1386 : vector<3x1xf32>
    %1388 = vector.broadcast %1387 : vector<3x1xf32> to vector<3x32xf32>
    %1389 = arith.mulf %1377, %1388 : vector<3x32xf32>
    %cst_532 = arith.constant dense<0.000000e+00> : vector<10x3xf32>
    %1390 = tpu.matmul %1383, %1389, %cst_532 {dimension_numbers = #tpu.dot_dimension_numbers<[1], [1], [0], [0], [0, 0, 1, 0], [], []>} : vector<10x32xf32>, vector<3x32xf32>, vector<10x3xf32> -> vector<10x3xf32>
    %c0_533 = arith.constant 0 : index
    %c0_534 = arith.constant 0 : index
    %1391 = memref.load %arg0[%c0_533, %c0_534] : memref<1x1xf32, #tpu.memory_space<smem>>
    %1392 = math.exp %1391 : f32
    %1393 = vector.broadcast %1392 : f32 to vector<10x3xf32>
    %1394 = arith.mulf %1393, %1390 : vector<10x3xf32>
    %c0_535 = arith.constant 0 : index
    %c0_536 = arith.constant 0 : index
    %1395 = vector.load %arg42[%c0_535, %c0_536] : memref<10x3xf32, #tpu.memory_space<vmem>>, vector<10x3xf32>
    tpu.vector_store %arg42[%c0_535, %c0_536], %1394 {strides = array<i32>} : memref<10x3xf32, #tpu.memory_space<vmem>>, vector<10x3xf32>,
    return
  }
}

</mosaic_0001>

<bundles_post_ra>
// kernel: locoop_forward.1
= control target key start
LH: loop header
LB: loop body
LE: loop exit
PB: predicated region body
PF: predicated region fallthrough
CT: control target
= control target key end

     0   :  { %s17950_s3 = smov 2   ;;  %s17951_s7 = smov 1   ;;  %vm509_vm0 = vcmask 1040384   ;;  %vm511_vm1 = vcmask 1044480   ;;  %vm513_vm2 = vcmask 1045504   ;;  %vm517_vm3 = vcmask 523264   ;;  %s20612_s0 = inlined_call_operand.smem [shape: u32[43], index: -1, kind: input, shape index: {}] }
   0x1   :  { %s18008_s6 = sld [smem:[%s20612_s0 + %s17950_s3]]   ;;  %s17952_s11 = smov 4   ;;  %vm521_vm4 = vcmask 517120   ;;  %vm17961_vm5 = vmmov 0   ;;  %vm728_vm6 = vcmask 130048   ;;  %vm804_vm7 = vcmask 36864  }
   0x2   :  { %s18052_s10 = sld [smem:[%s20612_s0 + %s17951_s7]]   ;;  %s17953_s15 = smov 3   ;;  %vm816_vm8 = vcmask 39936   ;;  %vm1689_vm9 = vcmask 1042432   ;;  %vm19113_vm10 = vmpackc.low %vm728_vm6, %vm728_vm6  ;;  %vm13964_vm13 = vcmask 392192   ;;  %vm14040_vm14 = vcmask 518144  }
   0x3   :  { %s14273_s14 = sld [smem:[%s20612_s0 + %s17952_s11]]   ;;  %s17954_s19 = smov 5   ;;  %vm14151_vm15 = vcmask 261120  }
   0x4   :  { %s14272_s18 = sld [smem:[%s20612_s0 + %s17953_s15]]   ;;  %s17955_s23 = smov 6  }
   0x5   :  { %s14274_s22 = sld [smem:[%s20612_s0 + %s17954_s19]]   ;;  %s17956_s27 = smov 9  }
   0x6   :  { %s14275_s26 = sld [smem:[%s20612_s0 + %s17955_s23]]   ;;  %s17958_s1 = smov 7  }
   0x7   :  { %v197_v0 = vld [vmem:[%s18008_s6 + $0x80] sm:$0xff]  ;;  %v198_v1 = vld [vmem:[%s18008_s6 + $0x88] sm:$0xff]  ;;  %v199_v11 = vld [vmem:[%s18008_s6 + $0x90] sm:$0xff]  ;;  %s18161_s30 = sld [smem:[%s20612_s0 + %s17956_s27]]   ;;  %s17959_s5 = smov 8  }
   0x8   :  { %v229_v2 = vld [vmem:[%s18008_s6 + $0x180] sm:$0xff]  ;;  %v16389_v3 = vpack.c.bf16 %v198_v1, %v197_v0  ;;  %v230_v4 = vld [vmem:[%s18008_s6 + $0x188] sm:$0xff]  ;;  %v200_v13 = vld [vmem:[%s18008_s6 + $0x98] sm:$0xff]  ;;  %s18185_s4 = sld [smem:[%s20612_s0 + %s17958_s1]]   ;;  %s17960_s9 = smov 10  }
   0x9   :  { %v181_v5 = vld [vmem:[%s18008_s6] sm:$0xff]  ;;  %v182_v6 = vld [vmem:[%s18008_s6 + $0x8] sm:$0xff]  ;;  %v16421_v7 = vpack.c.bf16 %v230_v4, %v229_v2  ;;  %v231_v14 = vld [vmem:[%s18008_s6 + $0x190] sm:$0xff]  ;;  %v16393_v16 = vpack.c.bf16 %v200_v13, %v199_v11  ;;  %s18190_s8 = sld [smem:[%s20612_s0 + %s17959_s5]]   ;;  %s17962_s13 = smov 64  }
   0xa   :  { %v16391_v8 = vpack.c.bf16 %v182_v6, %v181_v5  ;;  %v213_v9 = vld [vmem:[%s18008_s6 + $0x100] sm:$0xff]  ;;  %v214_v10 = vld [vmem:[%s18008_s6 + $0x108] sm:$0xff]  ;;  %16390 = vmatprep.subr.bf16.mxu0 %v16389_v3  ;;  %v232_v15 = vld [vmem:[%s18008_s6 + $0x198] sm:$0xff]  ;;  %s18208_s12 = sld [smem:[%s20612_s0 + %s17960_s9]]   ;;  %s17964_s15 = smov 48  }
   0xb   :  { %v16423_v12 = vpack.c.bf16 %v214_v10, %v213_v9  ;;  %16422 = vmatprep.subr.bf16.mxu1 %v16421_v7  ;;  %v16425_v17 = vpack.c.bf16 %v232_v15, %v231_v14  ;;  %v183_v18 = vld [vmem:[%s18008_s6 + $0x10] sm:$0xff]  ;;  %v184_v19 = vld [vmem:[%s18008_s6 + $0x18] sm:$0xff]  ;;  %v201_v23 = vld [vmem:[%s18008_s6 + $0xa0] sm:$0xff]  ;;  %s17965_s16 = smov 32   ;;  %s17966_s17 = smov 96  }
   0xc   :  { %16392 = vmatpush3.bf16.msra.mxu0 %v16391_v8  ;;  %v215_v20 = vld [vmem:[%s18008_s6 + $0x110] sm:$0xff]  ;;  %v16395_v21 = vpack.c.bf16 %v184_v19, %v183_v18  ;;  %v216_v22 = vld [vmem:[%s18008_s6 + $0x118] sm:$0xff]  ;;  %v202_v24 = vld [vmem:[%s18008_s6 + $0xa8] sm:$0xff]  ;;  %s17970_s23 = smov 16   ;;  %s17971_s24 = smov 12  }
   0xd   :  { %16424 = vmatpush3.bf16.msra.mxu1 %v16423_v12  ;;  %16394 = vmatprep.subr.bf16.mxu0 %v16393_v16  ;;  %v16427_v25 = vpack.c.bf16 %v216_v22, %v215_v20  ;;  %v16397_v26 = vpack.c.bf16 %v202_v24, %v201_v23  ;;  %v233_v27 = vld [vmem:[%s18008_s6 + $0x1a0] sm:$0xff]  ;;  %v234_v28 = vld [vmem:[%s18008_s6 + $0x1a8] sm:$0xff]  ;;  %v203_v35 = vld [vmem:[%s18008_s6 + $0xb0] sm:$0xff]  ;;  %s18448_s27 = sld [smem:[%s20612_s0 + %s17971_s24]]   ;;  %s17972_s28 = smov 15  }
   0xe   :  { %16426 = vmatprep.subr.bf16.mxu1 %v16425_v17  ;;  %v185_v29 = vld [vmem:[%s18008_s6 + $0x20] sm:$0xff]  ;;  %v16429_v30 = vpack.c.bf16 %v234_v28, %v233_v27  ;;  %v186_v31 = vld [vmem:[%s18008_s6 + $0x28] sm:$0xff]  ;;  %v204_v36 = vld [vmem:[%s18008_s6 + $0xb8] sm:$0xff]  ;;  %s18468_s2 = sld [smem:[%s20612_s0 + %s17972_s28]]   ;;  %s17973_s3 = smov 13  }
   0xf   :  { %v217_v32 = vld [vmem:[%s18008_s6 + $0x120] sm:$0xff]  ;;  %v218_v33 = vld [vmem:[%s18008_s6 + $0x128] sm:$0xff]  ;;  %v16399_v34 = vpack.c.bf16 %v186_v31, %v185_v29  ;;  %v235_v37 = vld [vmem:[%s18008_s6 + $0x1b0] sm:$0xff]  ;;  %v16401_v39 = vpack.c.bf16 %v204_v36, %v203_v35  ;;  %s18492_s7 = sld [smem:[%s20612_s0 + %s17973_s3]]   ;;  %s17974_s9 = smov 14  }
  0x10   :  { %16396 = vmatpush3.bf16.msra.mxu0 %v16395_v21  ;;  %v16431_v38 = vpack.c.bf16 %v218_v33, %v217_v32  ;;  %v236_v40 = vld [vmem:[%s18008_s6 + $0x1b8] sm:$0xff]  ;;  %v187_v41 = vld [vmem:[%s18008_s6 + $0x30] sm:$0xff]  ;;  %v205_v46 = vld [vmem:[%s18008_s6 + $0xc0] sm:$0xff]  ;;  %s17975_s19 = smov 17   ;;  %s18559_s29 = sld [smem:[%s20612_s0 + %s17970_s23]]  }
  0x11   :  { %16428 = vmatpush3.bf16.msra.mxu1 %v16427_v25  ;;  %16398 = vmatprep.subr.bf16.mxu0 %v16397_v26  ;;  %v188_v42 = vld [vmem:[%s18008_s6 + $0x38] sm:$0xff]  ;;  %v16433_v43 = vpack.c.bf16 %v236_v40, %v235_v37  ;;  %v219_v44 = vld [vmem:[%s18008_s6 + $0x130] sm:$0xff]  ;;  %v206_v47 = vld [vmem:[%s18008_s6 + $0xc8] sm:$0xff]  ;;  %s18515_s25 = sld [smem:[%s20612_s0 + %s17975_s19]]   ;;  %s17976_s1 = smov 18  }
  0x12   :  { %16430 = vmatprep.subr.bf16.mxu1 %v16429_v30  ;;  %v220_v45 = vld [vmem:[%s18008_s6 + $0x138] sm:$0xff]  ;;  %v237_v48 = vld [vmem:[%s18008_s6 + $0x1c0] sm:$0xff]  ;;  %v238_v49 = vld [vmem:[%s18008_s6 + $0x1c8] sm:$0xff]  ;;  %v16403_v50 = vpack.c.bf16 %v188_v42, %v187_v41  ;;  %v16405_v52 = vpack.c.bf16 %v206_v47, %v205_v46  ;;  %s17980_s19 = smov 23   ;;  %s17982_s3 = smov 28  }
  0x13   :  { %v16435_v51 = vpack.c.bf16 %v220_v45, %v219_v44  ;;  %v189_v53 = vld [vmem:[%s18008_s6 + $0x40] sm:$0xff]  ;;  %v190_v54 = vld [vmem:[%s18008_s6 + $0x48] sm:$0xff]  ;;  %v16437_v56 = vpack.c.bf16 %v238_v49, %v237_v48  ;;  %v207_v58 = vld [vmem:[%s18008_s6 + $0xd0] sm:$0xff]  ;;  %s17986_s24 = smov 27   ;;  %s17991_s28 = smov 33  }
  0x14   :  { %16400 = vmatpush3.bf16.msra.mxu0 %v16399_v34  ;;  %v221_v55 = vld [vmem:[%s18008_s6 + $0x140] sm:$0xff]  ;;  %v222_v57 = vld [vmem:[%s18008_s6 + $0x148] sm:$0xff]  ;;  %v208_v59 = vld [vmem:[%s18008_s6 + $0xd8] sm:$0xff]  ;;  %v16407_v62 = vpack.c.bf16 %v190_v54, %v189_v53  ;;  %s19670_s5 = sld [smem:[%s20612_s0 + %s17991_s28]]  }
  0x15   :  { %16432 = vmatpush3.bf16.msra.mxu1 %v16431_v38  ;;  %16402 = vmatprep.subr.bf16.mxu0 %v16401_v39  ;;  %v239_v60 = vld [vmem:[%s18008_s6 + $0x1d0] sm:$0xff]  ;;  %v240_v61 = vld [vmem:[%s18008_s6 + $0x1d8] sm:$0xff]  ;;  %v16439_v63 = vpack.c.bf16 %v222_v57, %v221_v55  ;;  %v16409_v0 = vpack.c.bf16 %v208_v59, %v207_v58  ;;  %v209_v6 = vld [vmem:[%s18008_s6 + $0xe0] sm:$0xff] }
  0x16   :  { %16434 = vmatprep.subr.bf16.mxu1 %v16433_v43  ;;  %v191_v1 = vld [vmem:[%s18008_s6 + $0x50] sm:$0xff]  ;;  %v192_v2 = vld [vmem:[%s18008_s6 + $0x58] sm:$0xff]  ;;  %v16441_v4 = vpack.c.bf16 %v240_v61, %v239_v60  ;;  %v210_v7 = vld [vmem:[%s18008_s6 + $0xe8] sm:$0xff] }
  0x17   :  { %v223_v3 = vld [vmem:[%s18008_s6 + $0x150] sm:$0xff]  ;;  %v224_v5 = vld [vmem:[%s18008_s6 + $0x158] sm:$0xff]  ;;  %v241_v8 = vld [vmem:[%s18008_s6 + $0x1e0] sm:$0xff]  ;;  %v16411_v10 = vpack.c.bf16 %v192_v2, %v191_v1  ;;  %v16413_v14 = vpack.c.bf16 %v210_v7, %v209_v6 }
  0x18   :  { %16404 = vmatpush3.bf16.msra.mxu0 %v16403_v50  ;;  %v242_v9 = vld [vmem:[%s18008_s6 + $0x1e8] sm:$0xff]  ;;  %v193_v11 = vld [vmem:[%s18008_s6 + $0x60] sm:$0xff]  ;;  %v16443_v13 = vpack.c.bf16 %v224_v5, %v223_v3  ;;  %v178_v17 = vld [vmem:[%s18052_s10 + $0x18] sm:$0xff] }
  0x19   :  { %16436 = vmatpush3.bf16.msra.mxu1 %v16435_v51  ;;  %16406 = vmatprep.subr.bf16.mxu0 %v16405_v52  ;;  %v194_v12 = vld [vmem:[%s18008_s6 + $0x68] sm:$0xff]  ;;  %v225_v15 = vld [vmem:[%s18008_s6 + $0x160] sm:$0xff]  ;;  %v16445_v18 = vpack.c.bf16 %v242_v9, %v241_v8  ;;  %v211_v20 = vld [vmem:[%s18008_s6 + $0xf0] sm:$0xff] }
  0x1a   :  { %16438 = vmatprep.subr.bf16.mxu1 %v16437_v56  ;;  %v176_v16 = vld [vmem:[%s18052_s10 + $0x8] sm:$0xff]  ;;  %v212_v21 = vld [vmem:[%s18008_s6 + $0xf8] sm:$0xff]  ;;  %v243_v22 = vld [vmem:[%s18008_s6 + $0x1f0] sm:$0xff]  ;;  %411 = vmatprep.mubr.f32.mxu1 %v178_v17  ;;  %v16415_v24 = vpack.c.bf16 %v194_v12, %v193_v11 }
  0x1b   :  { %v226_v19 = vld [vmem:[%s18008_s6 + $0x168] sm:$0xff]  ;;  %341 = vmatprep.mubr.f32.mxu0 %v176_v16  ;;  %v244_v23 = vld [vmem:[%s18008_s6 + $0x1f8] sm:$0xff]  ;;  %v16417_v26 = vpack.c.bf16 %v212_v21, %v211_v20  ;;  %v195_v27 = vld [vmem:[%s18008_s6 + $0x70] sm:$0xff] }
  0x1c   :  { %16408 = vmatpush3.bf16.msra.mxu0 %v16407_v62  ;;  %v16447_v25 = vpack.c.bf16 %v226_v19, %v225_v15  ;;  %v196_v28 = vld [vmem:[%s18008_s6 + $0x78] sm:$0xff]  ;;  %v227_v29 = vld [vmem:[%s18008_s6 + $0x170] sm:$0xff]  ;;  %v16449_v30 = vpack.c.bf16 %v244_v23, %v243_v22  ;;  %v261_v32 = vld [vmem:[%s18008_s6 + $0x280] sm:$0xff] }
  0x1d   :  { %16440 = vmatpush3.bf16.msra.mxu1 %v16439_v63  ;;  %16410 = vmatprep.subr.bf16.mxu0 %v16409_v0  ;;  %v228_v31 = vld [vmem:[%s18008_s6 + $0x178] sm:$0xff]  ;;  %v262_v33 = vld [vmem:[%s18008_s6 + $0x288] sm:$0xff]  ;;  %v16419_v34 = vpack.c.bf16 %v196_v28, %v195_v27  ;;  %v245_v37 = vld [vmem:[%s18008_s6 + $0x200] sm:$0xff] }
  0x1e   :  { %16442 = vmatprep.subr.bf16.mxu1 %v16441_v4  ;;  %v16451_v35 = vpack.c.bf16 %v228_v31, %v227_v29  ;;  %v16453_v36 = vpack.c.bf16 %v262_v33, %v261_v32  ;;  %v246_v38 = vld [vmem:[%s18008_s6 + $0x208] sm:$0xff]  ;;  %v263_v39 = vld [vmem:[%s18008_s6 + $0x290] sm:$0xff]  ;;  %v264_v40 = vld [vmem:[%s18008_s6 + $0x298] sm:$0xff]  ;;  %v501_v29 = vlaneseq }
  0x1f   :  { %v175_v41 = vld [vmem:[%s18052_s10] sm:$0xff]  ;;  %v16455_v42 = vpack.c.bf16 %v246_v38, %v245_v37  ;;  %v177_v43 = vld [vmem:[%s18052_s10 + $0x10] sm:$0xff]  ;;  %v16457_v44 = vpack.c.bf16 %v264_v40, %v263_v39  ;;  %v248_v46 = vld [vmem:[%s18008_s6 + $0x218] sm:$0xff] }
  0x20   :  { %16412 = vmatpush3.bf16.msra.mxu0 %v16411_v10  ;;  %v247_v45 = vld [vmem:[%s18008_s6 + $0x210] sm:$0xff]  ;;  %v265_v47 = vld [vmem:[%s18008_s6 + $0x2a0] sm:$0xff]  ;;  %v266_v48 = vld [vmem:[%s18008_s6 + $0x2a8] sm:$0xff]  ;;  %v18124_v31 = vshrl.u32 %v501_v29, 7 }
  0x21   :  { %16444 = vmatpush3.bf16.msra.mxu1 %v16443_v13  ;;  %16414 = vmatprep.subr.bf16.mxu0 %v16413_v14  ;;  %v180_v49 = vld [vmem:[%s18052_s10 + $0x28] sm:$0xff]  ;;  %v16459_v50 = vpack.c.bf16 %v248_v46, %v247_v45  ;;  %v16461_v51 = vpack.c.bf16 %v266_v48, %v265_v47  ;;  %v249_v52 = vld [vmem:[%s18008_s6 + $0x220] sm:$0xff]  ;;  %v267_v54 = vld [vmem:[%s18008_s6 + $0x2b0] sm:$0xff] }
  0x22   :  { %16446 = vmatprep.subr.bf16.mxu1 %v16445_v18  ;;  %v250_v53 = vld [vmem:[%s18008_s6 + $0x228] sm:$0xff]  ;;  %v268_v55 = vld [vmem:[%s18008_s6 + $0x2b8] sm:$0xff]  ;;  %v251_v58 = vld [vmem:[%s18008_s6 + $0x230] sm:$0xff]  ;;  %v18127_v39 = vsub.s32 0, %v18124_v31 }
  0x23   :  { %v16463_v56 = vpack.c.bf16 %v250_v53, %v249_v52  ;;  %v16465_v57 = vpack.c.bf16 %v268_v55, %v267_v54  ;;  %v252_v59 = vld [vmem:[%s18008_s6 + $0x238] sm:$0xff]  ;;  %v269_v60 = vld [vmem:[%s18008_s6 + $0x2c0] sm:$0xff]  ;;  %v270_v61 = vld [vmem:[%s18008_s6 + $0x2c8] sm:$0xff] }
  0x24   :  { %16416 = vmatpush3.bf16.msra.mxu0 %v16415_v24  ;;  %v16467_v62 = vpack.c.bf16 %v252_v59, %v251_v58  ;;  %v16469_v63 = vpack.c.bf16 %v270_v61, %v269_v60  ;;  %v253_v0 = vld [vmem:[%s18008_s6 + $0x240] sm:$0xff]  ;;  %v254_v1 = vld [vmem:[%s18008_s6 + $0x248] sm:$0xff]  ;;  %v271_v2 = vld [vmem:[%s18008_s6 + $0x2d0] sm:$0xff] }
  0x25   :  { %16448 = vmatpush3.bf16.msra.mxu1 %v16447_v25  ;;  %16418 = vmatprep.subr.bf16.mxu0 %v16417_v26  ;;  %v272_v3 = vld [vmem:[%s18008_s6 + $0x2d8] sm:$0xff]  ;;  %v16471_v4 = vpack.c.bf16 %v254_v1, %v253_v0  ;;  %v255_v6 = vld [vmem:[%s18008_s6 + $0x250] sm:$0xff]  ;;  %v273_v8 = vld [vmem:[%s18008_s6 + $0x2e0] sm:$0xff] }
  0x26   :  { %16450 = vmatprep.subr.bf16.mxu1 %v16449_v30  ;;  %v16473_v5 = vpack.c.bf16 %v272_v3, %v271_v2  ;;  %v256_v7 = vld [vmem:[%s18008_s6 + $0x258] sm:$0xff]  ;;  %v274_v9 = vld [vmem:[%s18008_s6 + $0x2e8] sm:$0xff]  ;;  %v257_v12 = vld [vmem:[%s18008_s6 + $0x260] sm:$0xff] }
  0x27   :  { %v16475_v10 = vpack.c.bf16 %v256_v7, %v255_v6  ;;  %v16477_v11 = vpack.c.bf16 %v274_v9, %v273_v8  ;;  %v258_v13 = vld [vmem:[%s18008_s6 + $0x268] sm:$0xff]  ;;  %v275_v14 = vld [vmem:[%s18008_s6 + $0x2f0] sm:$0xff]  ;;  %v276_v15 = vld [vmem:[%s18008_s6 + $0x2f8] sm:$0xff] }
  0x28   :  { %16420 = vmatpush3.bf16.msra.mxu0 %v16419_v34  ;;  %v16479_v16 = vpack.c.bf16 %v258_v13, %v257_v12  ;;  %v16481_v17 = vpack.c.bf16 %v276_v15, %v275_v14  ;;  %v259_v18 = vld [vmem:[%s18008_s6 + $0x270] sm:$0xff]  ;;  %v260_v19 = vld [vmem:[%s18008_s6 + $0x278] sm:$0xff]  ;;  %v179_v21 = vld [vmem:[%s18052_s10 + $0x20] sm:$0xff]  ;;  %s18569_s6 = sld [smem:[%s20612_s0 + %s17976_s1]]   ;;  %s17985_s10 = smov 26  }
  0x29   :  { %16452 = vmatpush3.bf16.msra.mxu1 %v16451_v35  ;;  %16454 = vmatprep.subr.bf16.mxu0 %v16453_v36  ;;  %v16483_v20 = vpack.c.bf16 %v260_v19, %v259_v18  ;;  %v487_v30 = vld [vmem:[%s14273_s14] sm:$0x1f]  ;;  %v607_v12 = vld [vmem:[%s18161_s30 + $0x8] sm:$0xff]  ;;  %v609_v13 = vld [vmem:[%s18161_s30 + $0x18] sm:$0xff]  ;;  %s17963_s14 = smov 112   ;;  %s19008_s20 = sld [smem:[%s20612_s0 + %s17985_s10]]  }
  0x2a   :  { %v488_v33 = vld [vmem:[%s14272_s18] sm:$0x1]  ;;  %v491_v36 = vrot.slane %v487_v30, 1  ;;  %v494_v37 = vrot.slane %v487_v30, 5  ;;  %v16485_v14 = vpack.c.bf16 %v609_v13, %v607_v12  ;;  %v611_v18 = vld [vmem:[%s18161_s30 + $0x28] sm:$0xff]  ;;  %v613_v19 = vld [vmem:[%s18161_s30 + $0x38] sm:$0xff] }
  0x2b   :  { %342 = vmatmul.mubr.f32.vlgmr.msra.gmra.mrb[0].mxu0 %v175_v41  ;;  %v489_v38 = vadd.f32 %v488_v33, %v487_v30  ;;  %v18141_v60 = vld [vmem:[%s14274_s22] ss:$0 sm:$0xff]  ;;  %v621_v33 = vld [vmem:[%s18161_s30 + $0x78] sm:$0xff]  ;;  %s17968_s18 = smov 11   ;;  %s17969_s22 = smov 80  }
  0x2c   :  { %412 = vmatmul.mubr.f32.vlgmr.msra.gmra.mrb[0].mxu1 %v177_v43  ;;  %16456 = vmatpush3.bf16.msra.mxu0 %v16455_v42  ;;  %v606_v15 = vld [vmem:[%s18161_s30] sm:$0xff]  ;;  %s18271_s21 = sld [smem:[%s20612_s0 + %s17968_s18]]   ;;  %s17994_s10 = smov 37  }
  0x2d   :  { %16458 = vmatprep.subr.bf16.mxu0 %v16457_v44  ;;  %481 = vmatprep.mubr.f32.mxu0 %v180_v49  ;;  %v504_v43 = vrot.slane %v489_v38, %v18127_v39  ;;  %s18499_s18 = sld [smem:[%s20612_s0 + %s17974_s9]]   ;;  %s17979_s9 = smov 24  }
  0x2e   :  { %16486 = vmatprep.subr.bf16.mxu1 %v16485_v14  ;;  %s19769_s28 = sld [smem:[%s20612_s0 + %s17994_s10]]  }
  0x30   :  { %16460 = vmatpush3.bf16.msra.mxu0 %v16459_v50 }
  0x31   :  { %16462 = vmatprep.subr.bf16.mxu0 %v16461_v51 }
  0x34   :  { %16464 = vmatpush3.bf16.msra.mxu0 %v16463_v56 }
  0x35   :  { %16466 = vmatprep.subr.bf16.mxu0 %v16465_v57 }
  0x38   :  { %16468 = vmatpush3.bf16.msra.mxu0 %v16467_v62  ;;  %v18143_v62 = vld [vmem:[%s14275_s26] ss:$0 sm:$0xff]  ;;  %s17981_s26 = smov 21  }
  0x39   :  { %16470 = vmatprep.subr.bf16.mxu0 %v16469_v63  ;;  %s14290_s1 = sld [smem:[%s20612_s0 + %s17981_s26]]  }
  0x3a   :  { %s19664_s26 = sld [smem:[%s20612_s0 + %s17965_s16]]  }
  0x3c   :  { %16472 = vmatpush3.bf16.msra.mxu0 %v16471_v4 }
  0x3d   :  { %16474 = vmatprep.subr.bf16.mxu0 %v16473_v5 }
  0x40   :  { %16476 = vmatpush3.bf16.msra.mxu0 %v16475_v10 }
  0x41   :  { %16478 = vmatprep.subr.bf16.mxu0 %v16477_v11 }
  0x44   :  { %16480 = vmatpush3.bf16.msra.mxu0 %v16479_v16  ;;  %v608_v16 = vld [vmem:[%s18161_s30 + $0x10] sm:$0xff] }
  0x45   :  { %16482 = vmatprep.subr.bf16.mxu0 %v16481_v17  ;;  %v16487_v17 = vpack.c.bf16 %v608_v16, %v606_v15 }
  0x47   :  { %16488 = vmatpush1.bf16.msra.mxu1 %v16487_v17 }
  0x48   :  { %16484 = vmatpush3.bf16.msra.mxu0 %v16483_v20  ;;  %v16489_v20 = vpack.c.bf16 %v613_v19, %v611_v18 }
  0x4a   :  { %16490 = vmatprep.subr.bf16.mxu1 %v16489_v20 }
  0x4b   :  { %482 = vmatmul.mubr.f32.vlgmr.msra.gmra.mrb[2].mxu0 %v179_v21  ;;  %v610_v21 = vld [vmem:[%s18161_s30 + $0x20] sm:$0xff] }
  0xfe   :  { %v14877_v22 = vpop.f32.mrb[0].mxu0 }
  0xff   :  { %v14912_v23 = vpop.f32.mrb[0].mxu1  ;;  %v14878_v24 = vpop.f32.mrb[1].mxu0 }
 0x100   :  { %v14879_v25 = vadd.f32 %v14878_v24, %v14877_v22  ;;  %v14913_v26 = vpop.f32.mrb[1].mxu1  ;;  %v612_v22 = vld [vmem:[%s18161_s30 + $0x30] sm:$0xff]  ;;  %v615_v24 = vld [vmem:[%s18161_s30 + $0x48] sm:$0xff] }
 0x101   :  { %v14914_v27 = vadd.f32 %v14913_v26, %v14912_v23  ;;  %v16491_v23 = vpack.c.bf16 %v612_v22, %v610_v21 }
 0x103   :  { %v414_v28 = vadd.f32 %v14914_v27, %v14879_v25  ;;  %16492 = vmatpush1.bf16.msra.mxu1 %v16491_v23  ;;  %v617_v25 = vld [vmem:[%s18161_s30 + $0x58] sm:$0xff]  ;;  %v614_v27 = vld [vmem:[%s18161_s30 + $0x40] sm:$0xff] }
 0x104   :  { %v16493_v26 = vpack.c.bf16 %v617_v25, %v615_v24 }
 0x106   :  { %16494 = vmatprep.subr.bf16.mxu1 %v16493_v26 }
 0x11e   :  { %v14947_v32 = vpop.f32.mrb[2].mxu0 }
 0x11f   :  { %v14948_v34 = vpop.f32.mrb[3].mxu0 }
 0x120   :  { %v14949_v35 = vadd.f32 %v14948_v34, %v14947_v32  ;;  %v619_v32 = vld [vmem:[%s18161_s30 + $0x68] sm:$0xff]  ;;  %v618_v34 = vld [vmem:[%s18161_s30 + $0x60] sm:$0xff] }
 0x122   :  { %v484_v40 = vadd.f32 %v14949_v35, %v414_v28  ;;  %v616_v28 = vld [vmem:[%s18161_s30 + $0x50] sm:$0xff]  ;;  %v16497_v35 = vpack.c.bf16 %v621_v33, %v619_v32 }
 0x123   :  { %v16495_v30 = vpack.c.bf16 %v616_v28, %v614_v27 }
 0x124   :  { %v493_v41 = vadd.f32 %v491_v36, %v484_v40  ;;  %v496_v42 = vadd.f32 %v494_v37, %v484_v40  ;;  %v620_v36 = vld [vmem:[%s18161_s30 + $0x70] sm:$0xff]  ;;  %v17957_v37 = vmov 0.0  }
 0x125   :  { %16496 = vmatpush1.bf16.msra.mxu1 %v16495_v30  ;;  %704 = vmatprep.mubr.f32.mxu1 %v17957_v37 }
 0x126   :  { %v498_v44 = vrot.slane %v493_v41, 7  ;;  %v507_v45 = vrot.slane %v496_v42, 6  ;;  %15570 = vmatprep.subr.mxu0 %v17957_v37  ;;  %16498 = vmatprep.subr.bf16.mxu1 %v16497_v35 }
 0x127   :  { %15572 = vmatprep.mubr.msk.f32.mxu0 %vm17961_vm5, %v17957_v37 }
 0x128   :  { %v510_v46 = vsel %vm509_vm0, %v489_v38, %v498_v44  ;;  %v522_v55 = vsel %vm521_vm4, %v507_v45, 0.0  ;;  %v16499_v38 = vpack.c.bf16 %v620_v36, %v618_v34 }
 0x129   :  { %v512_v47 = vsel %vm511_vm1, %v510_v46, %v504_v43 }
 0x12a   :  { %v514_v48 = vsel %vm513_vm2, %v512_v47, %v507_v45  ;;  %16500 = vmatpush1.bf16.msra.mxu1 %v16499_v38  ;;  %v14314_v47 = vld [vmem:[%s18185_s4] ss:$0 sm:$0xff]  ;;  %vm14264_vm2 = vcmask 17408  }
 0x12b   :  { %v518_v49 = vsel %vm517_vm3, %v514_v48, 0.0  ;;  %15555 = vmatprep.subr.mxu1 %v17957_v37 }
 0x12c   :  { %519 = vadd.xlane.f32.xlu0 %v518_v49  ;;  %v14315_v49 = vld [vmem:[%s18190_s8] ss:$0 sm:$0xff] }
 0x1b9   :  { %v520_v50 = vpop.xlane.xlu0 %519 }
 0x1ba   :  { %v526_v51 = vmul.f32 0.015625, %v520_v50 }
 0x1bc   :  { %v528_v52 = vsub.f32 %v514_v48, %v526_v51 }
 0x1be   :  { %v530_v53 = vmul.f32 %v528_v52, %v528_v52 }
 0x1c0   :  { %v532_v54 = vsel %vm517_vm3, %v530_v53, 0.0 }
 0x1c1   :  { %533 = vadd.xlane.f32.xlu0 %v532_v54 }
 0x1c5   :  { %523 = vadd.xlane.f32.xlu0 %v522_v55 }
 0x24e   :  { %v534_v56 = vpop.xlane.xlu0 %533 }
 0x24f   :  { %v538_v57 = vmul.f32 0.015625, %v534_v56 }
 0x251   :  { %v540_v58 = vadd.f32 1e-05, %v538_v57 }
 0x252   :  { %v524_v2 = vpop.xlane.xlu0 %523 }
 0x253   :  { %17484 = vrsqrt.f32 %v540_v58  ;;  %v527_v3 = vmul.f32 0.015625, %v524_v2 }
 0x255   :  { %v18151_v6 = vsub.f32 %v507_v45, %v527_v3 }
 0x257   :  { %v531_v10 = vmul.f32 %v18151_v6, %v18151_v6 }
 0x259   :  { %v535_v11 = vsel %vm521_vm4, %v531_v10, 0.0 }
 0x25d   :  { %v17485_v59 = vpop.eup %17484 }
 0x25e   :  { %v544_v61 = vmul.f32 %v17485_v59, %v528_v52 }
 0x260   :  { %v552_v63 = vmul.f32 %v18141_v60, %v544_v61 }
 0x262   :  { %v18147_v0 = vadd.f32 %v18143_v62, %v552_v63 }
 0x264   :  { %v564_v1 = vsel %vm517_vm3, %v18147_v0, 0.0 }
 0x265   :  { %565 = vadd.xlane.f32.xlu1 %v564_v1 }
 0x2f2   :  { %v566_v4 = vpop.xlane.xlu1 %565 }
 0x2f3   :  { %v570_v5 = vmul.f32 0.015625, %v566_v4 }
 0x2f5   :  { %v572_v7 = vsub.f32 %v18147_v0, %v570_v5 }
 0x2f7   :  { %v574_v8 = vmul.f32 %v572_v7, %v572_v7 }
 0x2f9   :  { %v576_v9 = vsel %vm517_vm3, %v574_v8, 0.0 }
 0x2fa   :  { %577 = vadd.xlane.f32.xlu1 %v576_v9 }
 0x2fe   :  { %536 = vadd.xlane.f32.xlu1 %v535_v11  ;;  %v18227_v11 = vsub.s32 1, %v18124_v31 }
 0x387   :  { %v578_v40 = vpop.xlane.xlu1 %577 }
 0x388   :  { %v582_v41 = vmul.f32 0.015625, %v578_v40 }
 0x38a   :  { %v584_v42 = vadd.f32 1e-05, %v582_v41 }
 0x38b   :  { %v537_v43 = vpop.xlane.xlu1 %536 }
 0x38c   :  { %17486 = vrsqrt.f32 %v584_v42  ;;  %v539_v44 = vmul.f32 0.015625, %v537_v43 }
 0x38e   :  { %v541_v45 = vadd.f32 1e-05, %v539_v44 }
 0x390   :  { %17488 = vrsqrt.f32 %v541_v45 }
 0x396   :  { %v17487_v46 = vpop.eup %17486 }
 0x397   :  { %v588_v48 = vmul.f32 %v17487_v46, %v572_v7  ;;  %v17967_v46 = vmov 0.0|0.0  }
 0x399   :  { %v596_v50 = vmul.f32 %v14314_v47, %v588_v48  ;;  %v720_v48 = vld [vmem:[%s18271_s21 + $0x18] sm:$0xff] }
 0x39a   :  { %v17489_v51 = vpop.eup %17488 }
 0x39b   :  { %v604_v52 = vadd.f32 %v14315_v49, %v596_v50  ;;  %v545_v53 = vmul.f32 %v17489_v51, %v18151_v6 }
 0x39d   :  { %14316 = vmatmul.mubr.msk.f32.vlgmr.msra.gmra.mrb[2].mxu1 %vm517_vm3, %v604_v52  ;;  %v553_v54 = vmul.f32 %v18141_v60, %v545_v53  ;;  %v622_v60 = vld [vmem:[%s18208_s12] sm:$0x3] }
 0x39e   :  { %710 = vmatprep.mubr.f32.mxu1 %v17957_v37  ;;  %v18230_v12 = vrot.slane %v622_v60, %v18227_v11 }
 0x39f   :  { %v18199_v55 = vadd.f32 %v18143_v62, %v553_v54  ;;  %v18214_v62 = vrot.slane %v622_v60, %v18127_v39 }
 0x3a1   :  { %v567_v56 = vsel %vm521_vm4, %v18199_v55, 0.0 }
 0x3a2   :  { %568 = vadd.xlane.f32.xlu0 %v567_v56 }
 0x42f   :  { %v569_v57 = vpop.xlane.xlu0 %568 }
 0x430   :  { %v571_v58 = vmul.f32 0.015625, %v569_v57  ;;  %v717_v57 = vld [vmem:[%s18271_s21] sm:$0xff] }
 0x432   :  { %v573_v59 = vsub.f32 %v18199_v55, %v571_v58  ;;  %v718_v58 = vld [vmem:[%s18271_s21 + $0x8] sm:$0xff] }
 0x434   :  { %v575_v61 = vmul.f32 %v573_v59, %v573_v59 }
 0x436   :  { %v579_v63 = vsel %vm521_vm4, %v575_v61, 0.0 }
 0x437   :  { %580 = vadd.xlane.f32.xlu1 %v579_v63 }
 0x470   :  { %v706_v1 = vpop.f32.mrb[2].mxu1 }
 0x471   :  { %v18217_v2 = vadd.f32 %v706_v1, %v18214_v62  ;;  %v708_v3 = vpop.f32.mrb[3].mxu1 }
 0x472   :  { %v18235_v14 = vadd.f32 %v708_v3, %v18230_v12 }
 0x473   :  { %726 = vrot.lane.b32.xlu0 %v18217_v2, %s17962_s13 }
 0x477   :  { %893 = vrot.lane.b32.xlu0 %v18217_v2, %s17963_s14 }
 0x4c4   :  { %v581_v4 = vpop.xlane.xlu1 %580 }
 0x4c5   :  { %v583_v5 = vmul.f32 0.015625, %v581_v4 }
 0x4c7   :  { %v585_v6 = vadd.f32 1e-05, %v583_v5 }
 0x4c9   :  { %17490 = vrsqrt.f32 %v585_v6 }
 0x4d3   :  { %v17491_v7 = vpop.eup %17490 }
 0x4d4   :  { %v589_v8 = vmul.f32 %v17491_v7, %v573_v59  ;;  %v18291_v59 = vpack.c.bf16 %v718_v58, %v717_v57 }
 0x4d6   :  { %v597_v9 = vmul.f32 %v14314_v47, %v589_v8  ;;  %v719_v47 = vld [vmem:[%s18271_s21 + $0x10] sm:$0xff] }
 0x4d8   :  { %v605_v10 = vadd.f32 %v14315_v49, %v597_v9  ;;  %v18275_v49 = vpack.c.bf16 %v720_v48, %v719_v47 }
 0x4da   :  { %14317 = vmatmul.mubr.msk.f32.gmra.mrb[4].mxu1 %vm517_vm3, %v605_v10 }
 0x4db   :  { %15557 = vmatprep.mubr.msk.f32.mxu1 %vm17961_vm5, %v17957_v37 }
 0x4e5   :  { %v727_v13 = vpop.permute.xlu0 %726 }
 0x4e6   :  { %15556 = vmatpush3.xpose.msk.msra.mxu1 %vm728_vm6, %v727_v13  ;;  %v721_v13 = vld [vmem:[%s18271_s21 + $0x20] sm:$0xff] }
 0x4e7   :  { %15560 = vmatprep.subr.mxu1 %v17957_v37 }
 0x4e9   :  { %15558 = vmatmul.mubr.msk.f32.vlgmr.msra.gmra.mrb[6].mxu1 %vm728_vm6, %v18217_v2  ;;  %v894_v32 = vpop.permute.xlu0 %893 }
 0x4ea   :  { %15561 = vmatpush3.msk.msra.mxu1 %vm511_vm1, %v18235_v14  ;;  %15562 = vmatprep.mubr.msk.f32.mxu1 %vm17961_vm5, %v17957_v37 }
 0x4eb   :  { %15565 = vmatprep.subr.mxu1 %v17957_v37 }
 0x5ad   :  { %v18244_v15 = vpop.f32.mrb[4].mxu1 }
 0x5ae   :  { %v18246_v16 = vpop.f32.mrb[5].mxu1 }
 0x5bc   :  { %v799_v17 = vpop.f32.mrb[6].mxu1 }
 0x5bd   :  { %v803_v18 = vmul.f32 0.25, %v799_v17  ;;  %v15559_v19 = vpop.f32.mrb[7].mxu1  ;;  %v722_v17 = vld [vmem:[%s18271_s21 + $0x28] sm:$0xff] }
 0x5bf   :  { %v805_v20 = vsel %vm804_vm7, %v803_v18, -inf }
 0x5c0   :  { %806 = vmax.xlane.f32.xlu1 %v805_v20 }
 0x64d   :  { %v807_v21 = vpop.xlane.xlu1 %806 }
 0x64e   :  { %v808_v22 = vsub.f32 %v803_v18, %v807_v21  ;;  %v18313_v18 = vpack.c.bf16 %v722_v17, %v721_v13 }
 0x650   :  { %v809_v23 = vmul.f32 1.442695, %v808_v22 }
 0x652   :  { %17492 = vpow2.f32 %v809_v23 }
 0x65c   :  { %v17493_v24 = vpop.eup %17492 }
 0x65d   :  { %v811_v25 = vsel %vm804_vm7, %v17493_v24, 0.0 }
 0x65e   :  { %812 = vadd.xlane.f32.xlu1 %v811_v25 }
 0x66f   :  { %895 = vrot.lane.b32.xlu1 %v18217_v2, %s17964_s15 }
 0x6eb   :  { %v813_v26 = vpop.xlane.xlu1 %812 }
 0x6ec   :  { %17494 = vrcp.f32 %v813_v26 }
 0x6ef   :  { %v896_v30 = vpop.permute.xlu1 %895 }
 0x6f6   :  { %v17495_v27 = vpop.eup %17494 }
 0x6f7   :  { %v815_v28 = vmul.f32 %v17495_v27, %v17493_v24 }
 0x6f9   :  { %15563 = vmatmul.mubr.msk.f32.vlgmr.msra.gmra.mrb[8].mxu1 %vm816_vm8, %v815_v28 }
 0x6fa   :  { %15566 = vmatpush3.xpose.msk.msra.mxu1 %vm728_vm6, %v896_v30  ;;  %15567 = vmatprep.mubr.msk.f32.mxu1 %vm17961_vm5, %v17957_v37 }
 0x6fb   :  { %16501 = vmatprep.subr.bf16.mxu1 %v17967_v46 }
 0x6fd   :  { %15568 = vmatmul.mubr.msk.f32.vlgmr.msra.gmra.mrb[10].mxu1 %vm728_vm6, %v894_v32  ;;  %v713_v32 = vadd.f32 %v18244_v15, %v18214_v62 }
 0x6fe   :  { %15579 = vmatprep.mubr.msk.f32.mxu1 %vm17961_vm5, %v17957_v37  ;;  %16503 = vmatpush3.bf16.msra.mxu1 %v18275_v49 }
 0x6ff   :  { %16504 = vmatprep.subr.bf16.mxu1 %v17967_v46 }
 0x7cc   :  { %v889_v33 = vpop.f32.mrb[8].mxu1 }
 0x7cd   :  { %v15564_v34 = vpop.f32.mrb[9].mxu1 }
 0x7ce   :  { %v1690_v34 = vrot.slane %v18217_v2, 5 }
 0x7d0   :  { %v967_v35 = vpop.f32.mrb[10].mxu1 }
 0x7d1   :  { %v971_v36 = vmul.f32 0.25, %v967_v35  ;;  %v15569_v38 = vpop.f32.mrb[11].mxu1 }
 0x7d3   :  { %v972_v40 = vsel %vm804_vm7, %v971_v36, -inf }
 0x7d4   :  { %973 = vmax.xlane.f32.xlu1 %v972_v40 }
 0x7e5   :  { %1208 = vrot.lane.b32.xlu1 %v18217_v2, %s17965_s16 }
 0x7e9   :  { %1206 = vrot.lane.b32.xlu1 %v18217_v2, %s17966_s17 }
 0x861   :  { %v974_v41 = vpop.xlane.xlu1 %973 }
 0x862   :  { %v975_v42 = vsub.f32 %v971_v36, %v974_v41  ;;  %v715_v36 = vadd.f32 %v18246_v16, %v18230_v12 }
 0x864   :  { %v976_v43 = vmul.f32 1.442695, %v975_v42  ;;  %v1783_v62 = vrot.slane %v715_v36, 5 }
 0x865   :  { %v1209_v53 = vpop.permute.xlu1 %1208 }
 0x866   :  { %17496 = vpow2.f32 %v976_v43 }
 0x869   :  { %v1207_v56 = vpop.permute.xlu1 %1206 }
 0x870   :  { %v17497_v44 = vpop.eup %17496 }
 0x871   :  { %v978_v45 = vsel %vm804_vm7, %v17497_v44, 0.0 }
 0x872   :  { %979 = vadd.xlane.f32.xlu0 %v978_v45 }
 0x888   :  { %983 = vrot.lane.b32.xlu0 %v18235_v14, %s17963_s14 }
 0x8ff   :  { %v980_v50 = vpop.xlane.xlu0 %979 }
 0x900   :  { %17498 = vrcp.f32 %v980_v50 }
 0x903   :  { %v984_v51 = vpop.permute.xlu0 %983 }
 0x904   :  { %15571 = vmatpush3.msk.msra.mxu0 %vm511_vm1, %v984_v51 }
 0x905   :  { %15589 = vmatprep.subr.mxu0 %v17957_v37 }
 0x90a   :  { %v17499_v52 = vpop.eup %17498 }
 0x90b   :  { %v982_v54 = vmul.f32 %v17499_v52, %v17497_v44  ;;  %v723_v52 = vld [vmem:[%s18271_s21 + $0x30] sm:$0xff] }
 0x90d   :  { %15573 = vmatmul.mubr.msk.f32.vlgmr.msra.gmra.mrb[4].mxu0 %vm816_vm8, %v982_v54 }
 0x90e   :  { %15590 = vmatpush3.xpose.msk.msra.mxu0 %vm728_vm6, %v1209_v53  ;;  %15591 = vmatprep.mubr.msk.f32.mxu0 %vm17961_vm5, %v17957_v37  ;;  %v724_v53 = vld [vmem:[%s18271_s21 + $0x38] sm:$0xff] }
 0x90f   :  { %15594 = vmatprep.subr.mxu0 %v17957_v37  ;;  %v18371_v54 = vpack.c.bf16 %v724_v53, %v723_v52 }
 0x911   :  { %15592 = vmatmul.mubr.msk.f32.vlgmr.msra.gmra.mrb[6].mxu0 %vm728_vm6, %v1207_v56 }
 0x912   :  { %15596 = vmatprep.mubr.msk.f32.mxu0 %vm17961_vm5, %v17957_v37 }
 0x9e0   :  { %v1056_v61 = vpop.f32.mrb[4].mxu0 }
 0x9e1   :  { %v15574_v63 = vpop.f32.mrb[5].mxu0  ;;  %15580 = vmatmul.mubr.msk.f32.vlgmr.msra.gmra.mrb[12].mxu1 %vm728_vm6, %v1056_v61 }
 0x9e2   :  { %16506 = vmatpush3.bf16.msra.mxu1 %v18291_v59  ;;  %15586 = vmatprep.mubr.msk.f32.mxu1 %vm17961_vm5, %v17957_v37 }
 0x9e3   :  { %16507 = vmatprep.subr.bf16.mxu1 %v17967_v46 }
 0x9e4   :  { %v1280_v60 = vpop.f32.mrb[6].mxu0 }
 0x9e5   :  { %v1284_v1 = vmul.f32 0.25, %v1280_v60  ;;  %v15593_v3 = vpop.f32.mrb[7].mxu0 }
 0x9e7   :  { %v1285_v4 = vsel %vm804_vm7, %v1284_v1, -inf }
 0x9e8   :  { %1286 = vmax.xlane.f32.xlu0 %v1285_v4 }
 0x9e9   :  { %15587 = vmatmul.mubr.msk.f32.vlgmr.msra.gmra.mrb[12].mxu1 %vm728_vm6, %v889_v33  ;;  %v1691_v33 = vrot.slane %v713_v32, 5 }
 0x9ea   :  { %15603 = vmatprep.mubr.msk.f32.mxu1 %vm17961_vm5, %v17957_v37  ;;  %16509 = vmatpush3.bf16.msra.mxu1 %v18313_v18 }
 0x9eb   :  { %15611 = vmatprep.subr.mxu1 %v17957_v37  ;;  %v18333_v35 = vsel %vm1689_vm9, %v1690_v34, %v1691_v33 }
 0x9fe   :  { %1296 = vrot.lane.b32.xlu0 %v18235_v14, %s17966_s17 }
 0xa02   :  { %1447 = vrot.lane.b32.xlu0 %v18217_v2, %s17969_s22 }
 0xa75   :  { %v1287_v5 = vpop.xlane.xlu0 %1286 }
 0xa76   :  { %v1288_v6 = vsub.f32 %v1284_v1, %v1287_v5 }
 0xa78   :  { %v1289_v7 = vmul.f32 1.442695, %v1288_v6 }
 0xa79   :  { %v1297_v8 = vpop.permute.xlu0 %1296 }
 0xa7a   :  { %17500 = vpow2.f32 %v1289_v7  ;;  %15595 = vmatpush3.msk.msra.mxu0 %vm511_vm1, %v1297_v8 }
 0xa7b   :  { %15606 = vmatprep.subr.mxu0 %v17957_v37 }
 0xa7d   :  { %v1448_v23 = vpop.permute.xlu0 %1447 }
 0xa84   :  { %v17501_v9 = vpop.eup %17500 }
 0xa85   :  { %v1291_v10 = vsel %vm804_vm7, %v17501_v9, 0.0 }
 0xa86   :  { %1292 = vadd.xlane.f32.xlu1 %v1291_v10 }
 0xa97   :  { %1449 = vrot.lane.b32.xlu1 %v18217_v2, %s17970_s23  ;;  %v1782_v2 = vrot.slane %v18235_v14, 5 }
 0xa99   :  { %v18345_v42 = vsel %vm1689_vm9, %v1782_v2, %v1783_v62 }
 0xb13   :  { %v1293_v19 = vpop.xlane.xlu1 %1292 }
 0xb14   :  { %17502 = vrcp.f32 %v1293_v19 }
 0xb17   :  { %v1450_v22 = vpop.permute.xlu1 %1449 }
 0xb1e   :  { %v17503_v20 = vpop.eup %17502 }
 0xb1f   :  { %v1295_v21 = vmul.f32 %v17503_v20, %v17501_v9 }
 0xb21   :  { %15597 = vmatmul.mubr.msk.f32.vlgmr.msra.gmra.mrb[8].mxu0 %vm816_vm8, %v1295_v21 }
 0xb22   :  { %15607 = vmatpush3.xpose.msk.msra.mxu0 %vm728_vm6, %v1450_v22  ;;  %15608 = vmatprep.mubr.msk.f32.mxu0 %vm17961_vm5, %v17957_v37 }
 0xb23   :  { %15623 = vmatprep.subr.mxu0 %v17957_v37 }
 0xb25   :  { %15609 = vmatmul.mubr.msk.f32.vlgmr.msra.gmra.mrb[10].mxu0 %vm728_vm6, %v1448_v23 }
 0xb26   :  { %15625 = vmatprep.mubr.msk.f32.mxu0 %vm17961_vm5, %v17957_v37 }
 0xbf4   :  { %v1369_v24 = vpop.f32.mrb[8].mxu0 }
 0xbf5   :  { %v15598_v25 = vpop.f32.mrb[9].mxu0  ;;  %15604 = vmatmul.mubr.msk.f32.vlgmr.msra.gmra.mrb[12].mxu1 %vm728_vm6, %v1369_v24 }
 0xbf6   :  { %15613 = vmatprep.mubr.msk.f32.mxu1 %vm17961_vm5, %v17957_v37 }
 0xbf8   :  { %v1521_v26 = vpop.f32.mrb[10].mxu0 }
 0xbf9   :  { %v1525_v27 = vmul.f32 0.25, %v1521_v26  ;;  %v15610_v28 = vpop.f32.mrb[11].mxu0 }
 0xbfb   :  { %v1526_v30 = vsel %vm804_vm7, %v1525_v27, -inf }
 0xbfc   :  { %1527 = vmax.xlane.f32.xlu1 %v1526_v30 }
 0xc0d   :  { %1693 = vrot.lane.b32.xlu1 %v18333_v35, %s17962_s13 }
 0xc11   :  { %1862 = vrot.lane.b32.xlu1 %v18333_v35, %s17964_s15 }
 0xc89   :  { %v1528_v38 = vpop.xlane.xlu1 %1527 }
 0xc8a   :  { %v1529_v40 = vsub.f32 %v1525_v27, %v1528_v38 }
 0xc8c   :  { %v1530_v41 = vmul.f32 1.442695, %v1529_v40 }
 0xc8d   :  { %v1694_v15 = vpop.permute.xlu1 %1693 }
 0xc8e   :  { %17504 = vpow2.f32 %v1530_v41  ;;  %15624 = vmatpush3.xpose.msk.msra.mxu0 %vm728_vm6, %v1694_v15 }
 0xc8f   :  { %15628 = vmatprep.subr.mxu0 %v17957_v37 }
 0xc91   :  { %15626 = vmatmul.mubr.msk.f32.vlgmr.msra.gmra.mrb[12].mxu0 %vm728_vm6, %v18333_v35  ;;  %v1863_v57 = vpop.permute.xlu1 %1862 }
 0xc92   :  { %15629 = vmatpush3.msk.msra.mxu0 %vm511_vm1, %v18345_v42  ;;  %15630 = vmatprep.mubr.msk.f32.mxu0 %vm17961_vm5, %v17957_v37 }
 0xc93   :  { %15638 = vmatprep.subr.mxu0 %v17957_v37 }
 0xc98   :  { %v17505_v12 = vpop.eup %17504 }
 0xc99   :  { %v1532_v16 = vsel %vm804_vm7, %v17505_v12, 0.0 }
 0xc9a   :  { %1533 = vadd.xlane.f32.xlu0 %v1532_v16 }
 0xcb0   :  { %1537 = vrot.lane.b32.xlu0 %v18235_v14, %s17969_s22 }
 0xcb4   :  { %1860 = vrot.lane.b32.xlu0 %v18333_v35, %s17963_s14 }
 0xd27   :  { %v1534_v43 = vpop.xlane.xlu0 %1533 }
 0xd28   :  { %17506 = vrcp.f32 %v1534_v43 }
 0xd2b   :  { %v1538_v44 = vpop.permute.xlu0 %1537 }
 0xd2c   :  { %15612 = vmatpush3.msk.msra.mxu1 %vm511_vm1, %v1538_v44 }
 0xd2d   :  { %16510 = vmatprep.subr.bf16.mxu1 %v17967_v46 }
 0xd2f   :  { %v1861_v61 = vpop.permute.xlu0 %1860 }
 0xd32   :  { %v17507_v45 = vpop.eup %17506 }
 0xd33   :  { %v1536_v47 = vmul.f32 %v17507_v45, %v17505_v12 }
 0xd35   :  { %15614 = vmatmul.mubr.msk.f32.vlgmr.msra.gmra.mrb[14].mxu1 %vm816_vm8, %v1536_v47 }
 0xd36   :  { %15620 = vmatprep.mubr.msk.f32.mxu1 %vm17961_vm5, %v17957_v37  ;;  %16512 = vmatpush3.bf16.msra.mxu1 %v18371_v54 }
 0xd37   :  { %15633 = vmatprep.subr.mxu1 %v17957_v37 }
 0xd64   :  { %v1765_v14 = vpop.f32.mrb[12].mxu0 }
 0xd65   :  { %v1769_v48 = vmul.f32 0.25, %v1765_v14  ;;  %v15627_v50 = vpop.f32.mrb[13].mxu0 }
 0xd67   :  { %v1770_v51 = vsel %vm804_vm7, %v1769_v48, -inf }
 0xd68   :  { %1771 = vmax.xlane.f32.xlu1 %v1770_v51 }
 0xd79   :  { %1950 = vrot.lane.b32.xlu1 %v18345_v42, %s17963_s14 }
 0xd7d   :  { %2173 = vrot.lane.b32.xlu1 %v18333_v35, %s17966_s17 }
 0xdf5   :  { %v1772_v63 = vpop.xlane.xlu1 %1771 }
 0xdf6   :  { %v1773_v60 = vsub.f32 %v1769_v48, %v1772_v63 }
 0xdf8   :  { %v1774_v1 = vmul.f32 1.442695, %v1773_v60 }
 0xdf9   :  { %v1951_v24 = vpop.permute.xlu1 %1950 }
 0xdfa   :  { %17508 = vpow2.f32 %v1774_v1 }
 0xdfd   :  { %v2174_v30 = vpop.permute.xlu1 %2173 }
 0xe04   :  { %v17509_v9 = vpop.eup %17508 }
 0xe08   :  { %v1610_v56 = vpop.f32.mrb[14].mxu1 }
 0xe09   :  { %v15615_v58 = vpop.f32.mrb[15].mxu1  ;;  %15621 = vmatmul.mubr.msk.f32.vlgmr.msra.gmra.mrb[12].mxu1 %vm728_vm6, %v1610_v56 }
 0xe0a   :  { %15634 = vmatpush3.xpose.msk.msra.mxu1 %vm728_vm6, %v1863_v57  ;;  %15635 = vmatprep.mubr.msk.f32.mxu1 %vm17961_vm5, %v17957_v37 }
 0xe0b   :  { %16513 = vmatprep.subr.bf16.mxu1 %v17967_v46 }
 0xe0d   :  { %15636 = vmatmul.mubr.msk.f32.vlgmr.msra.gmra.mrb[16].mxu1 %vm728_vm6, %v1861_v61 }
 0xe0e   :  { %16515 = vmatpush3.bf16.msra.mxu1 %v18275_v49  ;;  %15647 = vmatprep.mubr.msk.f32.mxu1 %vm17961_vm5, %v17957_v37  ;;  %v1776_v49 = vsel %vm804_vm7, %v17509_v9, 0.0 }
 0xe0f   :  { %16516 = vmatprep.subr.bf16.mxu1 %v17967_v46 }
 0xedc   :  { %v18385_v3 = vpop.f32.mrb[12].mxu1 }
 0xedd   :  { %v15622_v4 = vpop.f32.mrb[13].mxu1 }
 0xee0   :  { %v1934_v5 = vpop.f32.mrb[16].mxu1 }
 0xee1   :  { %v1938_v6 = vmul.f32 0.25, %v1934_v5  ;;  %v15637_v7 = vpop.f32.mrb[17].mxu1 }
 0xee3   :  { %v1939_v8 = vsel %vm804_vm7, %v1938_v6, -inf }
 0xee4   :  { %1940 = vmax.xlane.f32.xlu0 %v1939_v8  ;;  %v14358_v8 = vld [vmem:[%s18448_s27] ss:$0 sm:$0xff] }
 0xee8   :  { %1777 = vadd.xlane.f32.xlu0 %v1776_v49 }
 0xf71   :  { %v1941_v10 = vpop.xlane.xlu0 %1940 }
 0xf72   :  { %v1942_v13 = vsub.f32 %v1938_v6, %v1941_v10 }
 0xf74   :  { %v1943_v17 = vmul.f32 1.442695, %v1942_v13 }
 0xf75   :  { %v1778_v19 = vpop.xlane.xlu0 %1777 }
 0xf76   :  { %17510 = vpow2.f32 %v1943_v17 }
 0xf77   :  { %17512 = vrcp.f32 %v1778_v19 }
 0xf80   :  { %v17511_v20 = vpop.eup %17510 }
 0xf81   :  { %v17513_v21 = vpop.eup %17512  ;;  %v1945_v22 = vsel %vm804_vm7, %v17511_v20, 0.0 }
 0xf82   :  { %1946 = vadd.xlane.f32.xlu0 %v1945_v22  ;;  %v1780_v23 = vmul.f32 %v17513_v21, %v17509_v9 }
 0xf84   :  { %15631 = vmatmul.mubr.msk.f32.vlgmr.msra.gmra.mrb[14].mxu0 %vm816_vm8, %v1780_v23 }
 0xf85   :  { %15639 = vmatpush3.msk.msra.mxu0 %vm511_vm1, %v1951_v24  ;;  %15640 = vmatprep.mubr.msk.f32.mxu0 %vm17961_vm5, %v17957_v37 }
 0xf86   :  { %15657 = vmatprep.subr.mxu0 %v17957_v37 }
 0xf98   :  { %2175 = vrot.lane.b32.xlu0 %v18333_v35, %s17965_s16 }
0x100f   :  { %v1947_v25 = vpop.xlane.xlu0 %1946 }
0x1010   :  { %17514 = vrcp.f32 %v1947_v25 }
0x1013   :  { %v2176_v28 = vpop.permute.xlu0 %2175 }
0x101a   :  { %v17515_v26 = vpop.eup %17514 }
0x101b   :  { %v1949_v27 = vmul.f32 %v17515_v26, %v17511_v20 }
0x101d   :  { %15641 = vmatmul.mubr.msk.f32.vlgmr.msra.gmra.mrb[16].mxu0 %vm816_vm8, %v1949_v27  ;;  %v2714_v27 = vld [vmem:[%s18468_s2] sm:$0xff] }
0x101e   :  { %15658 = vmatpush3.xpose.msk.msra.mxu0 %vm728_vm6, %v2176_v28  ;;  %15659 = vmatprep.mubr.msk.f32.mxu0 %vm17961_vm5, %v17957_v37  ;;  %v2716_v28 = vld [vmem:[%s18468_s2 + $0x10] sm:$0xff] }
0x101f   :  { %15662 = vmatprep.subr.mxu0 %v17957_v37 }
0x1021   :  { %15660 = vmatmul.mubr.msk.f32.vlgmr.msra.gmra.mrb[18].mxu0 %vm728_vm6, %v2174_v30  ;;  %v16527_v30 = vpack.c.bf16 %v2716_v28, %v2714_v27  ;;  %v2863_v27 = vld [vmem:[%s18515_s25 + $0x30] sm:$0xff]  ;;  %v2864_v28 = vld [vmem:[%s18515_s25 + $0x38] sm:$0xff] }
0x1022   :  { %15664 = vmatprep.mubr.msk.f32.mxu0 %vm17961_vm5, %v17957_v37 }
0x1057   :  { %v1856_v32 = vpop.f32.mrb[14].mxu0 }
0x1058   :  { %v15632_v33 = vpop.f32.mrb[15].mxu0 }
0x1059   :  { %v2721_v33 = vld [vmem:[%s18468_s2 + $0x38] sm:$0xff] }
0x10f0   :  { %v2023_v34 = vpop.f32.mrb[16].mxu0 }
0x10f1   :  { %v15642_v36 = vpop.f32.mrb[17].mxu0  ;;  %15648 = vmatmul.mubr.msk.f32.vlgmr.msra.gmra.mrb[18].mxu1 %vm728_vm6, %v2023_v34 }
0x10f2   :  { %16518 = vmatpush3.bf16.msra.mxu1 %v18291_v59  ;;  %15654 = vmatprep.mubr.msk.f32.mxu1 %vm17961_vm5, %v17957_v37  ;;  %v2718_v36 = vld [vmem:[%s18468_s2 + $0x20] sm:$0xff] }
0x10f3   :  { %16519 = vmatprep.subr.bf16.mxu1 %v17967_v46 }
0x10f4   :  { %v2247_v38 = vpop.f32.mrb[18].mxu0 }
0x10f5   :  { %v2251_v40 = vmul.f32 0.25, %v2247_v38  ;;  %v15661_v41 = vpop.f32.mrb[19].mxu0  ;;  %v2720_v38 = vld [vmem:[%s18468_s2 + $0x30] sm:$0xff] }
0x10f6   :  { %v2723_v41 = vld [vmem:[%s18468_s2 + $0x48] sm:$0xff] }
0x10f7   :  { %v2252_v62 = vsel %vm804_vm7, %v2251_v40, -inf }
0x10f8   :  { %2253 = vmax.xlane.f32.xlu1 %v2252_v62  ;;  %v2725_v62 = vld [vmem:[%s18468_s2 + $0x58] sm:$0xff] }
0x10f9   :  { %15655 = vmatmul.mubr.msk.f32.vlgmr.msra.gmra.mrb[18].mxu1 %vm728_vm6, %v1856_v32  ;;  %v2719_v32 = vld [vmem:[%s18468_s2 + $0x28] sm:$0xff] }
0x10fa   :  { %16521 = vmatpush3.bf16.msra.mxu1 %v18313_v18  ;;  %15671 = vmatprep.mubr.msk.f32.mxu1 %vm17961_vm5, %v17957_v37  ;;  %v16529_v34 = vpack.c.bf16 %v2721_v33, %v2719_v32  ;;  %v2881_v32 = vld [vmem:[%s18515_s25 + $0xc0] sm:$0xff]  ;;  %v2882_v33 = vld [vmem:[%s18515_s25 + $0xc8] sm:$0xff] }
0x10fb   :  { %15679 = vmatprep.subr.mxu1 %v17957_v37 }
0x1109   :  { %2416 = vrot.lane.b32.xlu1 %v18333_v35, %s17970_s23 }
0x110d   :  { %2414 = vrot.lane.b32.xlu1 %v18333_v35, %s17969_s22 }
0x1185   :  { %v2254_v59 = vpop.xlane.xlu1 %2253 }
0x1186   :  { %v2255_v15 = vsub.f32 %v2251_v40, %v2254_v59  ;;  %v16531_v40 = vpack.c.bf16 %v2720_v38, %v2718_v36  ;;  %v16533_v59 = vpack.c.bf16 %v2725_v62, %v2723_v41  ;;  %v2865_v36 = vld [vmem:[%s18515_s25 + $0x40] sm:$0xff]  ;;  %v2866_v38 = vld [vmem:[%s18515_s25 + $0x48] sm:$0xff]  ;;  %v2883_v41 = vld [vmem:[%s18515_s25 + $0xd0] sm:$0xff] }
0x1187   :  { %v2884_v62 = vld [vmem:[%s18515_s25 + $0xd8] sm:$0xff] }
0x1188   :  { %v2256_v2 = vmul.f32 1.442695, %v2255_v15  ;;  %v2722_v15 = vld [vmem:[%s18468_s2 + $0x40] sm:$0xff] }
0x1189   :  { %v2417_v35 = vpop.permute.xlu1 %2416 }
0x118a   :  { %17516 = vpow2.f32 %v2256_v2  ;;  %v2724_v2 = vld [vmem:[%s18468_s2 + $0x50] sm:$0xff] }
0x118d   :  { %v2415_v47 = vpop.permute.xlu1 %2414 }
0x1194   :  { %v17517_v12 = vpop.eup %17516 }
0x1195   :  { %v2258_v16 = vsel %vm804_vm7, %v17517_v12, 0.0 }
0x1196   :  { %2259 = vadd.xlane.f32.xlu0 %v2258_v16  ;;  %v2727_v16 = vld [vmem:[%s18468_s2 + $0x68] sm:$0xff] }
0x11ac   :  { %2263 = vrot.lane.b32.xlu0 %v18345_v42, %s17966_s17 }
0x1223   :  { %v2260_v18 = vpop.xlane.xlu0 %2259 }
0x1224   :  { %17518 = vrcp.f32 %v2260_v18  ;;  %v2729_v18 = vld [vmem:[%s18468_s2 + $0x78] sm:$0xff] }
0x1227   :  { %v2264_v43 = vpop.permute.xlu0 %2263 }
0x1228   :  { %15663 = vmatpush3.msk.msra.mxu0 %vm511_vm1, %v2264_v43  ;;  %v2726_v43 = vld [vmem:[%s18468_s2 + $0x60] sm:$0xff] }
0x1229   :  { %15674 = vmatprep.subr.mxu0 %v17957_v37 }
0x122e   :  { %v17519_v44 = vpop.eup %17518 }
0x122f   :  { %v2262_v45 = vmul.f32 %v17519_v44, %v17517_v12  ;;  %v16535_v12 = vpack.c.bf16 %v2724_v2, %v2722_v15  ;;  %v16537_v44 = vpack.c.bf16 %v2729_v18, %v2727_v16  ;;  %v2867_v15 = vld [vmem:[%s18515_s25 + $0x50] sm:$0xff]  ;;  %v2868_v2 = vld [vmem:[%s18515_s25 + $0x58] sm:$0xff]  ;;  %v2885_v16 = vld [vmem:[%s18515_s25 + $0xe0] sm:$0xff] }
0x1230   :  { %v2886_v18 = vld [vmem:[%s18515_s25 + $0xe8] sm:$0xff] }
0x1231   :  { %15665 = vmatmul.mubr.msk.f32.vlgmr.msra.gmra.mrb[20].mxu0 %vm816_vm8, %v2262_v45 }
0x1232   :  { %15675 = vmatpush3.xpose.msk.msra.mxu0 %vm728_vm6, %v2417_v35  ;;  %15676 = vmatprep.mubr.msk.f32.mxu0 %vm17961_vm5, %v17957_v37  ;;  %v2728_v35 = vld [vmem:[%s18468_s2 + $0x70] sm:$0xff] }
0x1233   :  { %v16539_v45 = vpack.c.bf16 %v2728_v35, %v2726_v43  ;;  %v16565_v43 = vpack.c.bf16 %v2886_v18, %v2885_v16  ;;  %v2870_v35 = vld [vmem:[%s18515_s25 + $0x68] sm:$0xff] }
0x1235   :  { %15677 = vmatmul.mubr.msk.f32.vlgmr.msra.gmra.mrb[22].mxu0 %vm728_vm6, %v2415_v47 }
0x1236   :  { %2812 = vmatprep.mubr.f32.mxu0 %v17957_v37 }
0x1304   :  { %v2336_v14 = vpop.f32.mrb[20].mxu0 }
0x1305   :  { %v15666_v48 = vpop.f32.mrb[21].mxu0  ;;  %15672 = vmatmul.mubr.msk.f32.vlgmr.msra.gmra.mrb[18].mxu1 %vm728_vm6, %v2336_v14 }
0x1306   :  { %15681 = vmatprep.mubr.msk.f32.mxu1 %vm17961_vm5, %v17957_v37 }
0x1308   :  { %v2488_v50 = vpop.f32.mrb[22].mxu0 }
0x1309   :  { %v2492_v51 = vmul.f32 0.25, %v2488_v50  ;;  %v15678_v52 = vpop.f32.mrb[23].mxu0 }
0x130b   :  { %v2493_v53 = vsel %vm804_vm7, %v2492_v51, -inf }
0x130c   :  { %2494 = vmax.xlane.f32.xlu1 %v2493_v53 }
0x1399   :  { %v2495_v56 = vpop.xlane.xlu1 %2494 }
0x139a   :  { %v2496_v57 = vsub.f32 %v2492_v51, %v2495_v56 }
0x139c   :  { %v2497_v58 = vmul.f32 1.442695, %v2496_v57 }
0x139e   :  { %17520 = vpow2.f32 %v2497_v58  ;;  %v18503_v58 = vld [vmem:[%s18492_s7] ss:$0 sm:$0xff] }
0x13a8   :  { %v17521_v61 = vpop.eup %17520 }
0x13a9   :  { %v2499_v63 = vsel %vm804_vm7, %v17521_v61, 0.0 }
0x13aa   :  { %2500 = vadd.xlane.f32.xlu0 %v2499_v63  ;;  %v18506_v63 = vld [vmem:[%s18499_s18] ss:$0 sm:$0xff] }
0x13c0   :  { %2504 = vrot.lane.b32.xlu0 %v18345_v42, %s17969_s22 }
0x1437   :  { %v2501_v60 = vpop.xlane.xlu0 %2500 }
0x1438   :  { %17522 = vrcp.f32 %v2501_v60 }
0x143b   :  { %v2505_v1 = vpop.permute.xlu0 %2504 }
0x143c   :  { %15680 = vmatpush3.msk.msra.mxu1 %vm511_vm1, %v2505_v1 }
0x143d   :  { %16522 = vmatprep.subr.bf16.mxu1 %v17967_v46 }
0x1442   :  { %v17523_v4 = vpop.eup %17522 }
0x1443   :  { %v2503_v5 = vmul.f32 %v17523_v4, %v17521_v61  ;;  %v2873_v4 = vld [vmem:[%s18515_s25 + $0x80] sm:$0xff] }
0x1445   :  { %15682 = vmatmul.mubr.msk.f32.vlgmr.msra.gmra.mrb[20].mxu1 %vm816_vm8, %v2503_v5  ;;  %v2874_v5 = vld [vmem:[%s18515_s25 + $0x88] sm:$0xff] }
0x1446   :  { %16524 = vmatpush3.bf16.msra.mxu1 %v18371_v54  ;;  %15688 = vmatprep.mubr.msk.f32.mxu1 %vm17961_vm5, %v17957_v37 }
0x1518   :  { %v2577_v6 = vpop.f32.mrb[20].mxu1 }
0x1519   :  { %v15683_v7 = vpop.f32.mrb[21].mxu1  ;;  %15689 = vmatmul.mubr.msk.f32.vlgmr.msra.gmra.mrb[18].mxu1 %vm728_vm6, %v2577_v6  ;;  %v16541_v6 = vpack.c.bf16 %v2874_v5, %v2873_v4 }
0x151a   :  { %v2857_v7 = vld [vmem:[%s18515_s25] sm:$0xff] }
0x151b   :  { %16542 = vmatprep.subr.bf16.mxu1 %v16541_v6  ;;  %v2730_v6 = vld [vmem:[%s18559_s29] sm:$0x3] }
0x15ec   :  { %v2650_v42 = vpop.f32.mrb[18].mxu1 }
0x15ed   :  { %v2656_v9 = vrot.slane %v2650_v42, 3  ;;  %v15690_v49 = vpop.f32.mrb[19].mxu1  ;;  %v2858_v42 = vld [vmem:[%s18515_s25 + $0x8] sm:$0xff] }
0x15ee   :  { %v2876_v49 = vld [vmem:[%s18515_s25 + $0x98] sm:$0xff] }
0x15ef   :  { %v2658_v54 = vsel %vm511_vm1, %v18385_v3, %v2656_v9  ;;  %v2667_v10 = vadd.f32 %v14358_v8, %v2656_v9  ;;  %v2875_v9 = vld [vmem:[%s18515_s25 + $0x90] sm:$0xff] }
0x15f0   :  { %v2666_v13 = vadd.f32 %v14358_v8, %v2658_v54  ;;  %v16543_v8 = vpack.c.bf16 %v2858_v42, %v2857_v7  ;;  %v16545_v54 = vpack.c.bf16 %v2876_v49, %v2875_v9  ;;  %v2735_v7 = vrot.slane %v2730_v6, %v18127_v39 }
0x15f1   :  { %v18460_v24 = vadd.f32 %v2667_v10, %v18199_v55  ;;  %v2717_v55 = vld [vmem:[%s18468_s2 + $0x18] sm:$0xff]  ;;  %v2859_v10 = vld [vmem:[%s18515_s25 + $0x10] sm:$0xff] }
0x15f2   :  { %v18454_v17 = vadd.f32 %v2666_v13, %v18147_v0  ;;  %v2715_v0 = vld [vmem:[%s18468_s2 + $0x8] sm:$0xff]  ;;  %16544 = vmatpush3.bf16.msra.mxu1 %v16543_v8  ;;  %v2860_v13 = vld [vmem:[%s18515_s25 + $0x18] sm:$0xff] }
0x15f3   :  { %v2675_v3 = vsel %vm521_vm4, %v18460_v24, 0.0  ;;  %v16525_v26 = vpack.c.bf16 %v2717_v55, %v2715_v0  ;;  %16546 = vmatprep.subr.bf16.mxu1 %v16545_v54  ;;  %v2879_v0 = vld [vmem:[%s18515_s25 + $0xb0] sm:$0xff]  ;;  %v2880_v55 = vld [vmem:[%s18515_s25 + $0xb8] sm:$0xff] }
0x15f4   :  { %v2672_v19 = vsel %vm517_vm3, %v18454_v17, 0.0 }
0x15f5   :  { %2673 = vadd.xlane.f32.xlu1 %v2672_v19  ;;  %16526 = vmatprep.subr.bf16.mxu0 %v16525_v26  ;;  %v16547_v19 = vpack.c.bf16 %v2860_v13, %v2859_v10  ;;  %v16553_v26 = vpack.c.bf16 %v2880_v55, %v2879_v0 }
0x15f6   :  { %16528 = vmatpush1.bf16.msra.mxu0 %v16527_v30  ;;  %v16555_v30 = vpack.c.bf16 %v2864_v28, %v2863_v27 }
0x15f7   :  { %16530 = vmatprep.subr.bf16.mxu0 %v16529_v34  ;;  %16548 = vmatpush3.bf16.msra.mxu1 %v16547_v19  ;;  %v16557_v34 = vpack.c.bf16 %v2882_v33, %v2881_v32 }
0x15fa   :  { %16532 = vmatpush1.bf16.msra.mxu0 %v16531_v40  ;;  %v16559_v40 = vpack.c.bf16 %v2866_v38, %v2865_v36 }
0x15fb   :  { %16534 = vmatprep.subr.bf16.mxu0 %v16533_v59  ;;  %v16561_v59 = vpack.c.bf16 %v2884_v62, %v2883_v41 }
0x15fe   :  { %16536 = vmatpush1.bf16.msra.mxu0 %v16535_v12  ;;  %v16563_v12 = vpack.c.bf16 %v2868_v2, %v2867_v15 }
0x15ff   :  { %16538 = vmatprep.subr.bf16.mxu0 %v16537_v44  ;;  %v2869_v44 = vld [vmem:[%s18515_s25 + $0x60] sm:$0xff] }
0x1602   :  { %16540 = vmatpush1.bf16.msra.mxu0 %v16539_v45  ;;  %v16567_v45 = vpack.c.bf16 %v2870_v35, %v2869_v44 }
0x1682   :  { %v2674_v20 = vpop.xlane.xlu1 %2673 }
0x1683   :  { %v2678_v21 = vmul.f32 0.015625, %v2674_v20  ;;  %v2877_v20 = vld [vmem:[%s18515_s25 + $0xa0] sm:$0xff] }
0x1685   :  { %v2680_v22 = vsub.f32 %v18454_v17, %v2678_v21  ;;  %v2878_v21 = vld [vmem:[%s18515_s25 + $0xa8] sm:$0xff] }
0x1687   :  { %v2682_v23 = vmul.f32 %v2680_v22, %v2680_v22 }
0x1689   :  { %v2684_v25 = vsel %vm517_vm3, %v2682_v23, 0.0  ;;  %v2861_v23 = vld [vmem:[%s18515_s25 + $0x20] sm:$0xff] }
0x168a   :  { %2685 = vadd.xlane.f32.xlu1 %v2684_v25  ;;  %v2862_v25 = vld [vmem:[%s18515_s25 + $0x28] sm:$0xff] }
0x168e   :  { %2676 = vadd.xlane.f32.xlu1 %v2675_v3  ;;  %v16551_v3 = vpack.c.bf16 %v2862_v25, %v2861_v23 }
0x1717   :  { %v2686_v47 = vpop.xlane.xlu1 %2685 }
0x1718   :  { %v2690_v14 = vmul.f32 0.015625, %v2686_v47  ;;  %v2887_v47 = vld [vmem:[%s18515_s25 + $0xf0] sm:$0xff] }
0x171a   :  { %v2692_v48 = vadd.f32 1e-05, %v2690_v14  ;;  %v2888_v14 = vld [vmem:[%s18515_s25 + $0xf8] sm:$0xff] }
0x171b   :  { %v2677_v50 = vpop.xlane.xlu1 %2676 }
0x171c   :  { %17524 = vrsqrt.f32 %v2692_v48  ;;  %v2679_v51 = vmul.f32 0.015625, %v2677_v50  ;;  %v16569_v48 = vpack.c.bf16 %v2888_v14, %v2887_v47  ;;  %v2871_v50 = vld [vmem:[%s18515_s25 + $0x70] sm:$0xff] }
0x171e   :  { %v18487_v52 = vsub.f32 %v18460_v24, %v2679_v51  ;;  %v2872_v51 = vld [vmem:[%s18515_s25 + $0x78] sm:$0xff] }
0x1720   :  { %v2683_v53 = vmul.f32 %v18487_v52, %v18487_v52 }
0x1722   :  { %v2687_v56 = vsel %vm521_vm4, %v2683_v53, 0.0  ;;  %v16571_v53 = vpack.c.bf16 %v2872_v51, %v2871_v50 }
0x1723   :  { %2688 = vadd.xlane.f32.xlu1 %v2687_v56 }
0x1726   :  { %v17525_v57 = vpop.eup %17524 }
0x1727   :  { %v2696_v61 = vmul.f32 %v17525_v57, %v2680_v22  ;;  %v16549_v22 = vpack.c.bf16 %v2878_v21, %v2877_v20 }
0x1729   :  { %v2704_v60 = vmul.f32 %v18503_v58, %v2696_v61  ;;  %16550 = vmatprep.subr.bf16.mxu1 %v16549_v22 }
0x172a   :  { %16552 = vmatpush3.bf16.msra.mxu1 %v16551_v3 }
0x172b   :  { %v2712_v1 = vadd.f32 %v18506_v63, %v2704_v60  ;;  %16554 = vmatprep.subr.bf16.mxu1 %v16553_v26 }
0x172d   :  { %14361 = vmatmul.mubr.msk.f32.vlgmr.msra.gmra.mrb[24].mxu0 %vm517_vm3, %v2712_v1 }
0x172e   :  { %2818 = vmatprep.mubr.f32.mxu0 %v17957_v37  ;;  %16556 = vmatpush3.bf16.msra.mxu1 %v16555_v30 }
0x172f   :  { %16558 = vmatprep.subr.bf16.mxu1 %v16557_v34 }
0x1732   :  { %16560 = vmatpush3.bf16.msra.mxu1 %v16559_v40 }
0x1733   :  { %16562 = vmatprep.subr.bf16.mxu1 %v16561_v59 }
0x1736   :  { %16564 = vmatpush3.bf16.msra.mxu1 %v16563_v12  ;;  %v14367_v12 = vld [vmem:[%s18569_s6] ss:$0 sm:$0xff] }
0x1737   :  { %16566 = vmatprep.subr.bf16.mxu1 %v16565_v43 }
0x173a   :  { %16568 = vmatpush3.bf16.msra.mxu1 %v16567_v45 }
0x173b   :  { %16570 = vmatprep.subr.bf16.mxu1 %v16569_v48 }
0x173e   :  { %16572 = vmatpush3.bf16.msra.mxu1 %v16571_v53 }
0x173f   :  { %15701 = vmatprep.subr.mxu1 %v17957_v37 }
0x17b0   :  { %v2689_v56 = vpop.xlane.xlu1 %2688 }
0x17b1   :  { %v2691_v57 = vmul.f32 0.015625, %v2689_v56 }
0x17b3   :  { %v2693_v61 = vadd.f32 1e-05, %v2691_v57 }
0x17b5   :  { %17526 = vrsqrt.f32 %v2693_v61 }
0x17bf   :  { %v17527_v60 = vpop.eup %17526 }
0x17c0   :  { %v2697_v1 = vmul.f32 %v17527_v60, %v18487_v52  ;;  %v2739_v52 = vrot.slane %v2730_v6, %v18227_v11  ;;  %v14373_v60 = vld [vmem:[%s18161_s30 + $0x88] sm:$0xff]  ;;  %v14374_v6 = vld [vmem:[%s18161_s30 + $0x90] sm:$0xff] }
0x17c2   :  { %v2705_v4 = vmul.f32 %v18503_v58, %v2697_v1  ;;  %v14375_v1 = vld [vmem:[%s18161_s30 + $0x98] sm:$0xff] }
0x17c4   :  { %v2713_v5 = vadd.f32 %v18506_v63, %v2705_v4  ;;  %v16573_v4 = vpack.c.bf16 %v14375_v1, %v14373_v60 }
0x17c6   :  { %14362 = vmatmul.mubr.msk.f32.gmra.mrb[26].mxu0 %vm517_vm3, %v2713_v5  ;;  %v14372_v5 = vld [vmem:[%s18161_s30 + $0x80] sm:$0xff]  ;;  %16574 = vmatprep.subr.bf16.mxu0 %v16573_v4 }
0x17c7   :  { %3119 = vmatprep.mubr.f32.mxu0 %v17957_v37 }
0x1800   :  { %v2814_v42 = vpop.f32.mrb[24].mxu0 }
0x1801   :  { %v2815_v58 = vadd.f32 %v2814_v42, %v2735_v7  ;;  %v2816_v8 = vpop.f32.mrb[25].mxu0 }
0x1802   :  { %v2817_v63 = vadd.f32 %v2816_v8, %v2739_v52  ;;  %v14378_v8 = vld [vmem:[%s18161_s30 + $0xb0] sm:$0xff] }
0x1803   :  { %v14363_v9 = vmul.f32 -1.702, %v2815_v58 }
0x1804   :  { %v14364_v49 = vmul.f32 -1.702, %v2817_v63 }
0x1805   :  { %v2833_v54 = vmul.f32 1.442695, %v14363_v9  ;;  %v14381_v9 = vld [vmem:[%s18161_s30 + $0xc8] sm:$0xff] }
0x1806   :  { %v2835_v10 = vmul.f32 1.442695, %v14364_v49  ;;  %v14383_v49 = vld [vmem:[%s18161_s30 + $0xd8] sm:$0xff] }
0x1807   :  { %17528 = vpow2.f32 %v2833_v54  ;;  %v16581_v54 = vpack.c.bf16 %v14383_v49, %v14381_v9 }
0x1808   :  { %17530 = vpow2.f32 %v2835_v10  ;;  %v14380_v10 = vld [vmem:[%s18161_s30 + $0xc0] sm:$0xff] }
0x1811   :  { %v17529_v13 = vpop.eup %17528 }
0x1812   :  { %v17531_v19 = vpop.eup %17530  ;;  %v2841_v20 = vadd.f32 1.0, %v17529_v13  ;;  %v14382_v13 = vld [vmem:[%s18161_s30 + $0xd0] sm:$0xff] }
0x1813   :  { %v2842_v21 = vadd.f32 1.0, %v17531_v19  ;;  %v16583_v19 = vpack.c.bf16 %v14382_v13, %v14380_v10 }
0x1814   :  { %17532 = vrcp.f32 %v2841_v20  ;;  %v14385_v20 = vld [vmem:[%s18161_s30 + $0xe8] sm:$0xff] }
0x1815   :  { %17534 = vrcp.f32 %v2842_v21  ;;  %v14387_v21 = vld [vmem:[%s18161_s30 + $0xf8] sm:$0xff] }
0x181e   :  { %v17533_v22 = vpop.eup %17532 }
0x181f   :  { %v17535_v23 = vpop.eup %17534  ;;  %v2853_v3 = vmul.f32 %v17533_v22, %v2815_v58  ;;  %v14376_v58 = vld [vmem:[%s18161_s30 + $0xa0] sm:$0xff]  ;;  %v16585_v22 = vpack.c.bf16 %v14387_v21, %v14385_v20 }
0x1820   :  { %v2854_v25 = vmul.f32 %v17535_v23, %v2817_v63  ;;  %v16579_v63 = vpack.c.bf16 %v14378_v8, %v14376_v58  ;;  %v14384_v23 = vld [vmem:[%s18161_s30 + $0xe0] sm:$0xff] }
0x1822   :  { %2960 = vmatprep.mubr.f32.mxu1 %v2854_v25  ;;  %v14386_v25 = vld [vmem:[%s18161_s30 + $0xf0] sm:$0xff] }
0x1823   :  { %2961 = vmatmul.mubr.f32.vlgmr.msra.gmra.mrb[22].mxu1 %v2853_v3  ;;  %v16587_v3 = vpack.c.bf16 %v14386_v25, %v14384_v23 }
0x1899   :  { %v2820_v0 = vpop.f32.mrb[26].mxu0 }
0x189a   :  { %v2821_v55 = vadd.f32 %v2820_v0, %v2735_v7  ;;  %v2822_v26 = vpop.f32.mrb[27].mxu0  ;;  %v16575_v7 = vpack.c.bf16 %v14374_v6, %v14372_v5 }
0x189b   :  { %v2823_v27 = vadd.f32 %v2822_v26, %v2739_v52  ;;  %v14377_v52 = vld [vmem:[%s18161_s30 + $0xa8] sm:$0xff] }
0x189c   :  { %v14365_v28 = vmul.f32 -1.702, %v2821_v55  ;;  %16576 = vmatpush1.bf16.msra.mxu0 %v16575_v7 }
0x189d   :  { %v14366_v30 = vmul.f32 -1.702, %v2823_v27 }
0x189e   :  { %v2837_v32 = vmul.f32 1.442695, %v14365_v28 }
0x189f   :  { %v2839_v33 = vmul.f32 1.442695, %v14366_v30 }
0x18a0   :  { %17536 = vpow2.f32 %v2837_v32 }
0x18a1   :  { %17538 = vpow2.f32 %v2839_v33 }
0x18aa   :  { %v17537_v34 = vpop.eup %17536 }
0x18ab   :  { %v17539_v36 = vpop.eup %17538  ;;  %v2843_v38 = vadd.f32 1.0, %v17537_v34 }
0x18ac   :  { %v2844_v40 = vadd.f32 1.0, %v17539_v36  ;;  %v14370_v36 = vld [vmem:[%s18185_s4 + $0x1] ss:$0 sm:$0xff]  ;;  %s17983_s4 = smov 19  }
0x18ad   :  { %17540 = vrcp.f32 %v2843_v38 }
0x18ae   :  { %17542 = vrcp.f32 %v2844_v40  ;;  %v14371_v40 = vld [vmem:[%s18190_s8 + $0x1] ss:$0 sm:$0xff] }
0x18b7   :  { %v17541_v41 = vpop.eup %17540 }
0x18b8   :  { %v17543_v62 = vpop.eup %17542  ;;  %v2855_v15 = vmul.f32 %v17541_v41, %v2821_v55 }
0x18b9   :  { %v2856_v59 = vmul.f32 %v17543_v62, %v2823_v27 }
0x18bb   :  { %2965 = vmatprep.mubr.f32.mxu1 %v2856_v59 }
0x18bc   :  { %2966 = vmatmul.mubr.f32.gmra.mrb[24].mxu1 %v2855_v15 }
0x18bd   :  { %15703 = vmatprep.mubr.msk.f32.mxu1 %vm17961_vm5, %v17957_v37 }
0x18f6   :  { %v15038_v2 = vpop.f32.mrb[22].mxu1 }
0x18f7   :  { %v15039_v16 = vpop.f32.mrb[23].mxu1 }
0x18f8   :  { %v15040_v18 = vadd.f32 %v15039_v16, %v15038_v2 }
0x18fa   :  { %v2963_v43 = vadd.f32 %v15040_v18, %v14367_v12 }
0x18fc   :  { %v18573_v44 = vadd.f32 %v2963_v43, %v18454_v17 }
0x18fe   :  { %v2977_v35 = vsel %vm517_vm3, %v18573_v44, 0.0 }
0x18ff   :  { %2978 = vadd.xlane.f32.xlu1 %v2977_v35  ;;  %v14388_v35 = vld [vmem:[%s18208_s12 + $0x2] sm:$0x3] }
0x198c   :  { %v2979_v45 = vpop.xlane.xlu1 %2978 }
0x198d   :  { %v2983_v47 = vmul.f32 0.015625, %v2979_v45  ;;  %v18612_v45 = vrot.slane %v14388_v35, %v18127_v39 }
0x198f   :  { %v2985_v14 = vsub.f32 %v18573_v44, %v2983_v47  ;;  %v15041_v48 = vpop.f32.mrb[24].mxu1 }
0x1990   :  { %v15042_v50 = vpop.f32.mrb[25].mxu1 }
0x1991   :  { %v15043_v51 = vadd.f32 %v15042_v50, %v15041_v48  ;;  %v2987_v53 = vmul.f32 %v2985_v14, %v2985_v14  ;;  %v18624_v50 = vrot.slane %v14388_v35, %v18227_v11 }
0x1993   :  { %v2968_v17 = vadd.f32 %v15043_v51, %v14367_v12  ;;  %v2989_v56 = vsel %vm517_vm3, %v2987_v53, 0.0 }
0x1994   :  { %2990 = vadd.xlane.f32.xlu0 %v2989_v56 }
0x1995   :  { %v18580_v57 = vadd.f32 %v2968_v17, %v18460_v24  ;;  %v14379_v24 = vld [vmem:[%s18161_s30 + $0xb8] sm:$0xff]  ;;  %s17977_s30 = smov 25  }
0x1996   :  { %v16577_v42 = vpack.c.bf16 %v14379_v24, %v14377_v52  ;;  %s14294_s12 = sld [smem:[%s20612_s0 + %s17977_s30]]  }
0x1997   :  { %v2980_v61 = vsel %vm521_vm4, %v18580_v57, 0.0  ;;  %s18984_s30 = sld [smem:[%s20612_s0 + %s17982_s3]]  }
0x1998   :  { %2981 = vadd.xlane.f32.xlu1 %v2980_v61  ;;  %16578 = vmatprep.subr.bf16.mxu0 %v16577_v42 }
0x1999   :  { %16580 = vmatpush1.bf16.msra.mxu0 %v16579_v63 }
0x199a   :  { %16582 = vmatprep.subr.bf16.mxu0 %v16581_v54 }
0x199d   :  { %16584 = vmatpush1.bf16.msra.mxu0 %v16583_v19 }
0x199e   :  { %16586 = vmatprep.subr.bf16.mxu0 %v16585_v22 }
0x19a1   :  { %16588 = vmatpush1.bf16.msra.mxu0 %v16587_v3 }
0x19a2   :  { %15691 = vmatprep.subr.mxu0 %v17957_v37 }
0x1a21   :  { %v2991_v0 = vpop.xlane.xlu0 %2990 }
0x1a22   :  { %v2995_v55 = vmul.f32 0.015625, %v2991_v0 }
0x1a24   :  { %v2997_v26 = vadd.f32 1e-05, %v2995_v55 }
0x1a25   :  { %v2982_v27 = vpop.xlane.xlu1 %2981 }
0x1a26   :  { %17544 = vrsqrt.f32 %v2997_v26  ;;  %v2984_v28 = vmul.f32 0.015625, %v2982_v27 }
0x1a28   :  { %v2986_v30 = vsub.f32 %v18580_v57, %v2984_v28  ;;  %v14393_v28 = vld [vmem:[%s18271_s21 + $0x50] sm:$0xff] }
0x1a2a   :  { %v2988_v32 = vmul.f32 %v2986_v30, %v2986_v30 }
0x1a2c   :  { %v2992_v33 = vsel %vm521_vm4, %v2988_v32, 0.0 }
0x1a2d   :  { %2993 = vadd.xlane.f32.xlu1 %v2992_v33  ;;  %v14391_v33 = vld [vmem:[%s18271_s21 + $0x40] sm:$0xff] }
0x1a30   :  { %v17545_v34 = vpop.eup %17544 }
0x1a31   :  { %v3001_v38 = vmul.f32 %v17545_v34, %v2985_v14  ;;  %v14392_v34 = vld [vmem:[%s18271_s21 + $0x48] sm:$0xff] }
0x1a33   :  { %v3009_v41 = vmul.f32 %v14370_v36, %v3001_v38 }
0x1a35   :  { %v3017_v62 = vadd.f32 %v14371_v40, %v3009_v41 }
0x1a37   :  { %14389 = vmatmul.mubr.msk.f32.vlgmr.msra.gmra.mrb[28].mxu0 %vm517_vm3, %v3017_v62 }
0x1a38   :  { %3125 = vmatprep.mubr.f32.mxu0 %v17957_v37 }
0x1aba   :  { %v2994_v59 = vpop.xlane.xlu1 %2993 }
0x1abb   :  { %v2996_v15 = vmul.f32 0.015625, %v2994_v59 }
0x1abd   :  { %v2998_v2 = vadd.f32 1e-05, %v2996_v15 }
0x1abf   :  { %17546 = vrsqrt.f32 %v2998_v2 }
0x1ac9   :  { %v17547_v12 = vpop.eup %17546 }
0x1aca   :  { %v3002_v16 = vmul.f32 %v17547_v12, %v2986_v30  ;;  %v14394_v30 = vld [vmem:[%s18271_s21 + $0x58] sm:$0xff] }
0x1acb   :  { %v18672_v32 = vpack.c.bf16 %v14394_v30, %v14393_v28 }
0x1acc   :  { %v3010_v18 = vmul.f32 %v14370_v36, %v3002_v16 }
0x1ace   :  { %v3018_v43 = vadd.f32 %v14371_v40, %v3010_v18  ;;  %v18678_v40 = vpack.c.bf16 %v14392_v34, %v14391_v33 }
0x1ad0   :  { %14390 = vmatmul.mubr.msk.f32.gmra.mrb[30].mxu0 %vm517_vm3, %v3018_v43 }
0x1ad1   :  { %15693 = vmatprep.mubr.msk.f32.mxu0 %vm17961_vm5, %v17957_v37 }
0x1b0a   :  { %v3121_v47 = vpop.f32.mrb[28].mxu0 }
0x1b0b   :  { %v18615_v14 = vadd.f32 %v3121_v47, %v18612_v45  ;;  %v3123_v48 = vpop.f32.mrb[29].mxu0 }
0x1b0c   :  { %v18629_v53 = vadd.f32 %v3123_v48, %v18624_v50 }
0x1b0d   :  { %3306 = vrot.lane.b32.xlu0 %v18615_v14, %s17963_s14  ;;  %3142 = vrot.lane.b32.xlu1 %v18615_v14, %s17962_s13 }
0x1b11   :  { %3308 = vrot.lane.b32.xlu1 %v18615_v14, %s17964_s15 }
0x1b7f   :  { %v3143_v51 = vpop.permute.xlu1 %3142  ;;  %v3307_v56 = vpop.permute.xlu0 %3306 }
0x1b80   :  { %15692 = vmatpush3.xpose.msk.msra.mxu0 %vm728_vm6, %v3143_v51  ;;  %v14395_v51 = vld [vmem:[%s18271_s21 + $0x60] sm:$0xff] }
0x1b81   :  { %15696 = vmatprep.subr.mxu0 %v17957_v37 }
0x1b83   :  { %15694 = vmatmul.mubr.msk.f32.vlgmr.msra.gmra.mrb[32].mxu0 %vm728_vm6, %v18615_v14  ;;  %v3309_v17 = vpop.permute.xlu1 %3308 }
0x1b84   :  { %15697 = vmatpush3.msk.msra.mxu0 %vm511_vm1, %v18629_v53  ;;  %15702 = vmatpush3.xpose.msk.msra.mxu1 %vm728_vm6, %v3309_v17  ;;  %v14396_v17 = vld [vmem:[%s18271_s21 + $0x68] sm:$0xff] }
0x1b85   :  { %15698 = vmatprep.mubr.msk.f32.mxu0 %vm17961_vm5, %v17957_v37  ;;  %15706 = vmatprep.subr.mxu0 %v17957_v37 }
0x1b86   :  { %16589 = vmatprep.subr.bf16.mxu1 %v17967_v46 }
0x1b87   :  { %15704 = vmatmul.mubr.msk.f32.vlgmr.msra.gmra.mrb[26].mxu1 %vm728_vm6, %v3307_v56  ;;  %v18700_v56 = vpack.c.bf16 %v14396_v17, %v14395_v51 }
0x1b88   :  { %15715 = vmatprep.mubr.msk.f32.mxu1 %vm17961_vm5, %v17957_v37  ;;  %16591 = vmatpush3.bf16.msra.mxu1 %v18672_v32 }
0x1b89   :  { %16592 = vmatprep.subr.bf16.mxu1 %v17967_v46 }
0x1ba3   :  { %v18643_v61 = vpop.f32.mrb[30].mxu0 }
0x1ba4   :  { %v18645_v60 = vpop.f32.mrb[31].mxu0 }
0x1c56   :  { %v3214_v1 = vpop.f32.mrb[32].mxu0 }
0x1c57   :  { %v3218_v4 = vmul.f32 0.25, %v3214_v1  ;;  %v15695_v5 = vpop.f32.mrb[33].mxu0 }
0x1c59   :  { %v3219_v6 = vsel %vm804_vm7, %v3218_v4, -inf }
0x1c5a   :  { %3220 = vmax.xlane.f32.xlu1 %v3219_v6  ;;  %v3380_v7 = vpop.f32.mrb[26].mxu1 }
0x1c5b   :  { %v3384_v52 = vmul.f32 0.25, %v3380_v7  ;;  %v15705_v24 = vpop.f32.mrb[27].mxu1 }
0x1c5d   :  { %v3385_v42 = vsel %vm804_vm7, %v3384_v52, -inf }
0x1c5e   :  { %3386 = vmax.xlane.f32.xlu0 %v3385_v42 }
0x1c6b   :  { %3396 = vrot.lane.b32.xlu1 %v18629_v53, %s17963_s14 }
0x1c74   :  { %3621 = vrot.lane.b32.xlu0 %v18615_v14, %s17965_s16 }
0x1ce7   :  { %v3221_v58 = vpop.xlane.xlu1 %3220 }
0x1ce8   :  { %v3222_v8 = vsub.f32 %v3218_v4, %v3221_v58 }
0x1cea   :  { %v3223_v63 = vmul.f32 1.442695, %v3222_v8 }
0x1ceb   :  { %v3387_v9 = vpop.xlane.xlu0 %3386  ;;  %v3397_v21 = vpop.permute.xlu1 %3396 }
0x1cec   :  { %17548 = vpow2.f32 %v3223_v63  ;;  %v3388_v49 = vsub.f32 %v3384_v52, %v3387_v9  ;;  %v3128_v9 = vadd.f32 %v18643_v61, %v18612_v45  ;;  %v3130_v61 = vadd.f32 %v18645_v60, %v18624_v50 }
0x1cee   :  { %v3389_v54 = vmul.f32 1.442695, %v3388_v49  ;;  %v4103_v49 = vrot.slane %v3128_v9, 5 }
0x1cef   :  { %v3622_v26 = vpop.permute.xlu0 %3621 }
0x1cf0   :  { %17550 = vpow2.f32 %v3389_v54  ;;  %v4102_v54 = vrot.slane %v18615_v14, 5 }
0x1cf6   :  { %v17549_v10 = vpop.eup %17548 }
0x1cf7   :  { %v3225_v13 = vsel %vm804_vm7, %v17549_v10, 0.0 }
0x1cf8   :  { %3226 = vadd.xlane.f32.xlu1 %v3225_v13 }
0x1cfa   :  { %v17551_v19 = vpop.eup %17550 }
0x1cfb   :  { %v3391_v20 = vsel %vm804_vm7, %v17551_v19, 0.0 }
0x1cfc   :  { %3392 = vadd.xlane.f32.xlu1 %v3391_v20 }
0x1d0d   :  { %3619 = vrot.lane.b32.xlu1 %v18615_v14, %s17966_s17 }
0x1d85   :  { %v3227_v22 = vpop.xlane.xlu1 %3226 }
0x1d86   :  { %17552 = vrcp.f32 %v3227_v22 }
0x1d89   :  { %v3393_v23 = vpop.xlane.xlu1 %3392 }
0x1d8a   :  { %17554 = vrcp.f32 %v3393_v23  ;;  %v4195_v23 = vrot.slane %v3130_v61, 5 }
0x1d8d   :  { %v3620_v27 = vpop.permute.xlu1 %3619 }
0x1d90   :  { %v17553_v25 = vpop.eup %17552 }
0x1d91   :  { %v3229_v3 = vmul.f32 %v17553_v25, %v17549_v10  ;;  %v18722_v10 = vsel %vm1689_vm9, %v4102_v54, %v4103_v49 }
0x1d93   :  { %15699 = vmatmul.mubr.msk.f32.vlgmr.msra.gmra.mrb[34].mxu0 %vm816_vm8, %v3229_v3  ;;  %v4194_v3 = vrot.slane %v18629_v53, 5 }
0x1d94   :  { %v17555_v0 = vpop.eup %17554  ;;  %15707 = vmatpush3.msk.msra.mxu0 %vm511_vm1, %v3397_v21  ;;  %15708 = vmatprep.mubr.msk.f32.mxu0 %vm17961_vm5, %v17957_v37 }
0x1d95   :  { %v3395_v55 = vmul.f32 %v17555_v0, %v17551_v19  ;;  %15725 = vmatprep.subr.mxu0 %v17957_v37  ;;  %v18739_v0 = vsel %vm1689_vm9, %v4194_v3, %v4195_v23 }
0x1d97   :  { %15709 = vmatmul.mubr.msk.f32.vlgmr.msra.gmra.mrb[36].mxu0 %vm816_vm8, %v3395_v55  ;;  %v14397_v55 = vld [vmem:[%s18271_s21 + $0x70] sm:$0xff] }
0x1d98   :  { %15727 = vmatprep.mubr.msk.f32.mxu0 %vm17961_vm5, %v17957_v37 }
0x1d9b   :  { %15726 = vmatpush3.xpose.msk.msra.mxu0 %vm728_vm6, %v3622_v26  ;;  %v14398_v26 = vld [vmem:[%s18271_s21 + $0x78] sm:$0xff]  ;;  %s17978_s21 = smov 22  }
0x1d9c   :  { %15730 = vmatprep.subr.mxu0 %v17957_v37 }
0x1d9e   :  { %15728 = vmatmul.mubr.msk.f32.vlgmr.msra.gmra.mrb[38].mxu0 %vm728_vm6, %v3620_v27 }
0x1d9f   :  { %15732 = vmatprep.mubr.msk.f32.mxu0 %vm17961_vm5, %v17957_v37 }
0x1e66   :  { %v3302_v36 = vpop.f32.mrb[34].mxu0 }
0x1e67   :  { %v15700_v38 = vpop.f32.mrb[35].mxu0 }
0x1e6a   :  { %v3469_v41 = vpop.f32.mrb[36].mxu0 }
0x1e6b   :  { %v15710_v62 = vpop.f32.mrb[37].mxu0  ;;  %15716 = vmatmul.mubr.msk.f32.vlgmr.msra.gmra.mrb[28].mxu1 %vm728_vm6, %v3469_v41 }
0x1e6c   :  { %16594 = vmatpush3.bf16.msra.mxu1 %v18678_v40  ;;  %15722 = vmatprep.mubr.msk.f32.mxu1 %vm17961_vm5, %v17957_v37 }
0x1e6d   :  { %16595 = vmatprep.subr.bf16.mxu1 %v17967_v46 }
0x1e71   :  { %v3693_v59 = vpop.f32.mrb[38].mxu0 }
0x1e72   :  { %v3697_v15 = vmul.f32 0.25, %v3693_v59  ;;  %v15729_v2 = vpop.f32.mrb[39].mxu0 }
0x1e73   :  { %15723 = vmatmul.mubr.msk.f32.vlgmr.msra.gmra.mrb[28].mxu1 %vm728_vm6, %v3302_v36 }
0x1e74   :  { %v3698_v12 = vsel %vm804_vm7, %v3697_v15, -inf  ;;  %15739 = vmatprep.mubr.msk.f32.mxu1 %vm17961_vm5, %v17957_v37  ;;  %16597 = vmatpush3.bf16.msra.mxu1 %v18700_v56 }
0x1e75   :  { %3699 = vmax.xlane.f32.xlu1 %v3698_v12  ;;  %15747 = vmatprep.subr.mxu1 %v17957_v37 }
0x1e86   :  { %3709 = vrot.lane.b32.xlu1 %v18629_v53, %s17966_s17 }
0x1e8a   :  { %3860 = vrot.lane.b32.xlu1 %v18615_v14, %s17969_s22 }
0x1f02   :  { %v3700_v16 = vpop.xlane.xlu1 %3699 }
0x1f03   :  { %v3701_v18 = vsub.f32 %v3697_v15, %v3700_v16 }
0x1f05   :  { %v3702_v43 = vmul.f32 1.442695, %v3701_v18 }
0x1f06   :  { %v3710_v35 = vpop.permute.xlu1 %3709 }
0x1f07   :  { %17556 = vpow2.f32 %v3702_v43  ;;  %15731 = vmatpush3.msk.msra.mxu0 %vm511_vm1, %v3710_v35 }
0x1f08   :  { %15742 = vmatprep.subr.mxu0 %v17957_v37 }
0x1f0a   :  { %v3861_v7 = vpop.permute.xlu1 %3860 }
0x1f11   :  { %v17557_v47 = vpop.eup %17556 }
0x1f12   :  { %v3704_v48 = vsel %vm804_vm7, %v17557_v47, 0.0 }
0x1f13   :  { %3705 = vadd.xlane.f32.xlu0 %v3704_v48 }
0x1f29   :  { %3862 = vrot.lane.b32.xlu0 %v18615_v14, %s17970_s23 }
0x1fa0   :  { %v3706_v1 = vpop.xlane.xlu0 %3705 }
0x1fa1   :  { %17558 = vrcp.f32 %v3706_v1 }
0x1fa4   :  { %v3863_v6 = vpop.permute.xlu0 %3862 }
0x1fab   :  { %v17559_v4 = vpop.eup %17558 }
0x1fac   :  { %v3708_v5 = vmul.f32 %v17559_v4, %v17557_v47 }
0x1fae   :  { %15733 = vmatmul.mubr.msk.f32.vlgmr.msra.gmra.mrb[40].mxu0 %vm816_vm8, %v3708_v5 }
0x1faf   :  { %15743 = vmatpush3.xpose.msk.msra.mxu0 %vm728_vm6, %v3863_v6  ;;  %15744 = vmatprep.mubr.msk.f32.mxu0 %vm17961_vm5, %v17957_v37 }
0x1fb0   :  { %15759 = vmatprep.subr.mxu0 %v17957_v37 }
0x1fb2   :  { %15745 = vmatmul.mubr.msk.f32.vlgmr.msra.gmra.mrb[42].mxu0 %vm728_vm6, %v3861_v7 }
0x1fb3   :  { %15761 = vmatprep.mubr.msk.f32.mxu0 %vm17961_vm5, %v17957_v37 }
0x2081   :  { %v3782_v52 = vpop.f32.mrb[40].mxu0 }
0x2082   :  { %v15734_v24 = vpop.f32.mrb[41].mxu0  ;;  %15740 = vmatmul.mubr.msk.f32.vlgmr.msra.gmra.mrb[28].mxu1 %vm728_vm6, %v3782_v52 }
0x2083   :  { %15749 = vmatprep.mubr.msk.f32.mxu1 %vm17961_vm5, %v17957_v37 }
0x2085   :  { %v3934_v42 = vpop.f32.mrb[42].mxu0 }
0x2086   :  { %v3938_v58 = vmul.f32 0.25, %v3934_v42  ;;  %v15746_v8 = vpop.f32.mrb[43].mxu0 }
0x2088   :  { %v3939_v63 = vsel %vm804_vm7, %v3938_v58, -inf }
0x2089   :  { %3940 = vmax.xlane.f32.xlu1 %v3939_v63 }
0x209a   :  { %3950 = vrot.lane.b32.xlu1 %v18629_v53, %s17969_s22  ;;  %v18750_v53 = vpack.c.bf16 %v14398_v26, %v14397_v55 }
0x209e   :  { %4274 = vrot.lane.b32.xlu1 %v18722_v10, %s17964_s15 }
0x20a2   :  { %4272 = vrot.lane.b32.xlu1 %v18722_v10, %s17963_s14 }
0x2116   :  { %v3941_v13 = vpop.xlane.xlu1 %3940 }
0x2117   :  { %v3942_v19 = vsub.f32 %v3938_v58, %v3941_v13 }
0x2119   :  { %v3943_v20 = vmul.f32 1.442695, %v3942_v19 }
0x211a   :  { %v3951_v21 = vpop.permute.xlu1 %3950 }
0x211b   :  { %17560 = vpow2.f32 %v3943_v20  ;;  %15748 = vmatpush3.msk.msra.mxu1 %vm511_vm1, %v3951_v21 }
0x211c   :  { %16598 = vmatprep.subr.bf16.mxu1 %v17967_v46 }
0x211e   :  { %v4275_v34 = vpop.permute.xlu1 %4274 }
0x2122   :  { %v4273_v41 = vpop.permute.xlu1 %4272 }
0x2125   :  { %v17561_v45 = vpop.eup %17560 }
0x2126   :  { %v3945_v14 = vsel %vm804_vm7, %v17561_v45, 0.0 }
0x2127   :  { %3946 = vadd.xlane.f32.xlu0 %v3945_v14 }
0x213d   :  { %4105 = vrot.lane.b32.xlu0 %v18722_v10, %s17962_s13 }
0x21b4   :  { %v3947_v22 = vpop.xlane.xlu0 %3946 }
0x21b5   :  { %17562 = vrcp.f32 %v3947_v22 }
0x21b8   :  { %v4106_v25 = vpop.permute.xlu0 %4105 }
0x21b9   :  { %15760 = vmatpush3.xpose.msk.msra.mxu0 %vm728_vm6, %v4106_v25 }
0x21ba   :  { %15764 = vmatprep.subr.mxu0 %v17957_v37 }
0x21bc   :  { %15762 = vmatmul.mubr.msk.f32.vlgmr.msra.gmra.mrb[44].mxu0 %vm728_vm6, %v18722_v10 }
0x21bd   :  { %15765 = vmatpush3.msk.msra.mxu0 %vm511_vm1, %v18739_v0  ;;  %15766 = vmatprep.mubr.msk.f32.mxu0 %vm17961_vm5, %v17957_v37 }
0x21be   :  { %15774 = vmatprep.subr.mxu0 %v17957_v37 }
0x21bf   :  { %v17563_v50 = vpop.eup %17562 }
0x21c0   :  { %v3949_v60 = vmul.f32 %v17563_v50, %v17561_v45 }
0x21c2   :  { %15750 = vmatmul.mubr.msk.f32.vlgmr.msra.gmra.mrb[30].mxu1 %vm816_vm8, %v3949_v60 }
0x21c3   :  { %16600 = vmatpush3.bf16.msra.mxu1 %v18750_v53  ;;  %15756 = vmatprep.mubr.msk.f32.mxu1 %vm17961_vm5, %v17957_v37 }
0x21c4   :  { %15769 = vmatprep.subr.mxu1 %v17957_v37 }
0x228f   :  { %v4177_v27 = vpop.f32.mrb[44].mxu0 }
0x2290   :  { %v4181_v28 = vmul.f32 0.25, %v4177_v27  ;;  %v15763_v30 = vpop.f32.mrb[45].mxu0 }
0x2292   :  { %v4182_v33 = vsel %vm804_vm7, %v4181_v28, -inf }
0x2293   :  { %4183 = vmax.xlane.f32.xlu0 %v4182_v33 }
0x2295   :  { %v4023_v36 = vpop.f32.mrb[30].mxu1 }
0x2296   :  { %v15751_v38 = vpop.f32.mrb[31].mxu1  ;;  %15757 = vmatmul.mubr.msk.f32.vlgmr.msra.gmra.mrb[28].mxu1 %vm728_vm6, %v4023_v36 }
0x2297   :  { %15770 = vmatpush3.xpose.msk.msra.mxu1 %vm728_vm6, %v4275_v34  ;;  %15771 = vmatprep.mubr.msk.f32.mxu1 %vm17961_vm5, %v17957_v37 }
0x2298   :  { %16601 = vmatprep.subr.bf16.mxu1 %v17967_v46 }
0x229a   :  { %15772 = vmatmul.mubr.msk.f32.vlgmr.msra.gmra.mrb[32].mxu1 %vm728_vm6, %v4273_v41 }
0x229b   :  { %16603 = vmatpush3.bf16.msra.mxu1 %v18672_v32  ;;  %15783 = vmatprep.mubr.msk.f32.mxu1 %vm17961_vm5, %v17957_v37 }
0x229c   :  { %16604 = vmatprep.subr.bf16.mxu1 %v17967_v46 }
0x2320   :  { %v4184_v62 = vpop.xlane.xlu0 %4183 }
0x2321   :  { %v4185_v59 = vsub.f32 %v4181_v28, %v4184_v62 }
0x2323   :  { %v4186_v15 = vmul.f32 1.442695, %v4185_v59 }
0x2325   :  { %17564 = vpow2.f32 %v4186_v15 }
0x232f   :  { %v17565_v2 = vpop.eup %17564 }
0x2330   :  { %v4188_v12 = vsel %vm804_vm7, %v17565_v2, 0.0 }
0x2331   :  { %4189 = vadd.xlane.f32.xlu0 %v4188_v12 }
0x2369   :  { %v18769_v16 = vpop.f32.mrb[28].mxu1 }
0x236a   :  { %v15758_v18 = vpop.f32.mrb[29].mxu1 }
0x236d   :  { %v4346_v43 = vpop.f32.mrb[32].mxu1 }
0x236e   :  { %v4350_v35 = vmul.f32 0.25, %v4346_v43  ;;  %v15773_v47 = vpop.f32.mrb[33].mxu1 }
0x236f   :  { %v14440_v47 = vld [vmem:[%s18448_s27 + $0x1] ss:$0 sm:$0xff]  ;;  %s17984_s27 = smov 20  }
0x2370   :  { %v4351_v32 = vsel %vm804_vm7, %v4350_v35, -inf }
0x2371   :  { %4352 = vmax.xlane.f32.xlu1 %v4351_v32 }
0x2382   :  { %4362 = vrot.lane.b32.xlu1 %v18739_v0, %s17963_s14 }
0x2386   :  { %4585 = vrot.lane.b32.xlu1 %v18722_v10, %s17966_s17 }
0x23be   :  { %v4190_v48 = vpop.xlane.xlu0 %4189 }
0x23bf   :  { %17566 = vrcp.f32 %v4190_v48 }
0x23c9   :  { %v17567_v51 = vpop.eup %17566 }
0x23ca   :  { %v4192_v17 = vmul.f32 %v17567_v51, %v17565_v2 }
0x23cc   :  { %15767 = vmatmul.mubr.msk.f32.vlgmr.msra.gmra.mrb[46].mxu0 %vm816_vm8, %v4192_v17 }
0x23cd   :  { %15776 = vmatprep.mubr.msk.f32.mxu0 %vm17961_vm5, %v17957_v37 }
0x23fe   :  { %v4353_v1 = vpop.xlane.xlu1 %4352 }
0x23ff   :  { %v4354_v4 = vsub.f32 %v4350_v35, %v4353_v1 }
0x2401   :  { %v4355_v5 = vmul.f32 1.442695, %v4354_v4 }
0x2402   :  { %v4363_v6 = vpop.permute.xlu1 %4362 }
0x2403   :  { %17568 = vpow2.f32 %v4355_v5  ;;  %15775 = vmatpush3.msk.msra.mxu0 %vm511_vm1, %v4363_v6 }
0x2404   :  { %15793 = vmatprep.subr.mxu0 %v17957_v37 }
0x2406   :  { %v4586_v49 = vpop.permute.xlu1 %4585 }
0x240d   :  { %v17569_v7 = vpop.eup %17568 }
0x240e   :  { %v4357_v52 = vsel %vm804_vm7, %v17569_v7, 0.0 }
0x240f   :  { %4358 = vadd.xlane.f32.xlu0 %v4357_v52 }
0x2425   :  { %4587 = vrot.lane.b32.xlu0 %v18722_v10, %s17965_s16 }
0x249c   :  { %v4359_v24 = vpop.xlane.xlu0 %4358 }
0x249d   :  { %17570 = vrcp.f32 %v4359_v24 }
0x249f   :  { %v4268_v42 = vpop.f32.mrb[46].mxu0 }
0x24a0   :  { %v15768_v58 = vpop.f32.mrb[47].mxu0  ;;  %v4588_v9 = vpop.permute.xlu0 %4587 }
0x24a7   :  { %v17571_v8 = vpop.eup %17570 }
0x24a8   :  { %v4361_v63 = vmul.f32 %v17571_v8, %v17569_v7 }
0x24aa   :  { %15777 = vmatmul.mubr.msk.f32.vlgmr.msra.gmra.mrb[48].mxu0 %vm816_vm8, %v4361_v63  ;;  %v14446_v63 = vld [vmem:[%s18468_s2 + $0x88] sm:$0xff] }
0x24ab   :  { %15794 = vmatpush3.xpose.msk.msra.mxu0 %vm728_vm6, %v4588_v9  ;;  %15795 = vmatprep.mubr.msk.f32.mxu0 %vm17961_vm5, %v17957_v37  ;;  %v14448_v9 = vld [vmem:[%s18468_s2 + $0x98] sm:$0xff] }
0x24ac   :  { %15798 = vmatprep.subr.mxu0 %v17957_v37 }
0x24ae   :  { %15796 = vmatmul.mubr.msk.f32.vlgmr.msra.gmra.mrb[50].mxu0 %vm728_vm6, %v4586_v49  ;;  %v16613_v49 = vpack.c.bf16 %v14448_v9, %v14446_v63  ;;  %v14473_v63 = vld [vmem:[%s18515_s25 + $0x128] sm:$0xff] }
0x24af   :  { %15800 = vmatprep.mubr.msk.f32.mxu0 %vm17961_vm5, %v17957_v37 }
0x257d   :  { %v4435_v54 = vpop.f32.mrb[48].mxu0 }
0x257e   :  { %v15778_v13 = vpop.f32.mrb[49].mxu0  ;;  %15784 = vmatmul.mubr.msk.f32.vlgmr.msra.gmra.mrb[34].mxu1 %vm728_vm6, %v4435_v54  ;;  %v14445_v54 = vld [vmem:[%s18468_s2 + $0x80] sm:$0xff] }
0x257f   :  { %16606 = vmatpush3.bf16.msra.mxu1 %v18678_v40  ;;  %15790 = vmatprep.mubr.msk.f32.mxu1 %vm17961_vm5, %v17957_v37  ;;  %v14447_v13 = vld [vmem:[%s18468_s2 + $0x90] sm:$0xff] }
0x2580   :  { %16607 = vmatprep.subr.bf16.mxu1 %v17967_v46 }
0x2581   :  { %v4659_v19 = vpop.f32.mrb[50].mxu0 }
0x2582   :  { %v4663_v20 = vmul.f32 0.25, %v4659_v19  ;;  %v15797_v21 = vpop.f32.mrb[51].mxu0  ;;  %v16615_v19 = vpack.c.bf16 %v14447_v13, %v14445_v54  ;;  %v14491_v54 = vld [vmem:[%s18515_s25 + $0x1b8] sm:$0xff] }
0x2583   :  { %v14452_v21 = vld [vmem:[%s18468_s2 + $0xb8] sm:$0xff] }
0x2584   :  { %v4664_v45 = vsel %vm804_vm7, %v4663_v20, -inf }
0x2585   :  { %4665 = vmax.xlane.f32.xlu1 %v4664_v45 }
0x2586   :  { %15791 = vmatmul.mubr.msk.f32.vlgmr.msra.gmra.mrb[34].mxu1 %vm728_vm6, %v4268_v42 }
0x2587   :  { %16609 = vmatpush3.bf16.msra.mxu1 %v18700_v56  ;;  %15807 = vmatprep.mubr.msk.f32.mxu1 %vm17961_vm5, %v17957_v37 }
0x2588   :  { %15815 = vmatprep.subr.mxu1 %v17957_v37 }
0x2596   :  { %4828 = vrot.lane.b32.xlu1 %v18722_v10, %s17970_s23 }
0x259a   :  { %4826 = vrot.lane.b32.xlu1 %v18722_v10, %s17969_s22 }
0x2612   :  { %v4666_v40 = vpop.xlane.xlu1 %4665 }
0x2613   :  { %v4667_v14 = vsub.f32 %v4663_v20, %v4666_v40  ;;  %v14450_v20 = vld [vmem:[%s18468_s2 + $0xa8] sm:$0xff]  ;;  %v14449_v40 = vld [vmem:[%s18468_s2 + $0xa0] sm:$0xff] }
0x2614   :  { %v16617_v45 = vpack.c.bf16 %v14452_v21, %v14450_v20  ;;  %v14475_v20 = vld [vmem:[%s18515_s25 + $0x138] sm:$0xff] }
0x2615   :  { %v4668_v61 = vmul.f32 1.442695, %v4667_v14  ;;  %v14451_v14 = vld [vmem:[%s18468_s2 + $0xb0] sm:$0xff] }
0x2616   :  { %v4829_v10 = vpop.permute.xlu1 %4828 }
0x2617   :  { %17572 = vpow2.f32 %v4668_v61  ;;  %v16619_v61 = vpack.c.bf16 %v14451_v14, %v14449_v40  ;;  %v14493_v40 = vld [vmem:[%s18515_s25 + $0x1c8] sm:$0xff] }
0x261a   :  { %v4827_v26 = vpop.permute.xlu1 %4826 }
0x2621   :  { %v17573_v22 = vpop.eup %17572 }
0x2622   :  { %v4670_v23 = vsel %vm804_vm7, %v17573_v22, 0.0 }
0x2623   :  { %4671 = vadd.xlane.f32.xlu0 %v4670_v23  ;;  %v14456_v23 = vld [vmem:[%s18468_s2 + $0xd8] sm:$0xff] }
0x2639   :  { %4675 = vrot.lane.b32.xlu0 %v18739_v0, %s17966_s17 }
0x26b0   :  { %v4672_v56 = vpop.xlane.xlu0 %4671 }
0x26b1   :  { %17574 = vrcp.f32 %v4672_v56 }
0x26b4   :  { %v4676_v25 = vpop.permute.xlu0 %4675 }
0x26b5   :  { %15799 = vmatpush3.msk.msra.mxu0 %vm511_vm1, %v4676_v25  ;;  %v14453_v25 = vld [vmem:[%s18468_s2 + $0xc0] sm:$0xff] }
0x26b6   :  { %15810 = vmatprep.subr.mxu0 %v17957_v37 }
0x26bb   :  { %v17575_v3 = vpop.eup %17574 }
0x26bc   :  { %v4674_v55 = vmul.f32 %v17575_v3, %v17573_v22  ;;  %v14454_v22 = vld [vmem:[%s18468_s2 + $0xc8] sm:$0xff]  ;;  %v14455_v3 = vld [vmem:[%s18468_s2 + $0xd0] sm:$0xff] }
0x26bd   :  { %v16621_v56 = vpack.c.bf16 %v14456_v23, %v14454_v22  ;;  %v14477_v22 = vld [vmem:[%s18515_s25 + $0x148] sm:$0xff] }
0x26be   :  { %15801 = vmatmul.mubr.msk.f32.vlgmr.msra.gmra.mrb[52].mxu0 %vm816_vm8, %v4674_v55  ;;  %v14458_v55 = vld [vmem:[%s18468_s2 + $0xe8] sm:$0xff] }
0x26bf   :  { %15811 = vmatpush3.xpose.msk.msra.mxu0 %vm728_vm6, %v4829_v10  ;;  %15812 = vmatprep.mubr.msk.f32.mxu0 %vm17961_vm5, %v17957_v37  ;;  %v16623_v10 = vpack.c.bf16 %v14455_v3, %v14453_v25  ;;  %v14495_v25 = vld [vmem:[%s18515_s25 + $0x1d8] sm:$0xff] }
0x26c0   :  { %16614 = vmatprep.subr.bf16.mxu0 %v16613_v49  ;;  %v14490_v49 = vld [vmem:[%s18515_s25 + $0x1b0] sm:$0xff] }
0x26c1   :  { %v16641_v13 = vpack.c.bf16 %v14491_v54, %v14490_v49 }
0x26c2   :  { %15813 = vmatmul.mubr.msk.f32.vlgmr.msra.gmra.mrb[54].mxu0 %vm728_vm6, %v4827_v26  ;;  %v14460_v26 = vld [vmem:[%s18468_s2 + $0xf8] sm:$0xff] }
0x26c3   :  { %5229 = vmatprep.mubr.f32.mxu0 %v17957_v37  ;;  %16616 = vmatpush1.bf16.msra.mxu0 %v16615_v19  ;;  %v14474_v19 = vld [vmem:[%s18515_s25 + $0x130] sm:$0xff] }
0x26c4   :  { %16618 = vmatprep.subr.bf16.mxu0 %v16617_v45  ;;  %v16643_v21 = vpack.c.bf16 %v14475_v20, %v14474_v19  ;;  %v14492_v45 = vld [vmem:[%s18515_s25 + $0x1c0] sm:$0xff] }
0x26c5   :  { %v16645_v14 = vpack.c.bf16 %v14493_v40, %v14492_v45 }
0x26c7   :  { %16620 = vmatpush1.bf16.msra.mxu0 %v16619_v61  ;;  %v14476_v61 = vld [vmem:[%s18515_s25 + $0x140] sm:$0xff] }
0x26c8   :  { %16622 = vmatprep.subr.bf16.mxu0 %v16621_v56  ;;  %v16647_v23 = vpack.c.bf16 %v14477_v22, %v14476_v61  ;;  %v14494_v56 = vld [vmem:[%s18515_s25 + $0x1d0] sm:$0xff]  ;;  %v18921_v61 = vld [vmem:[%s14294_s12] sm:$0xff]  ;;  %v5526_v22 = vld [vmem:[%s14294_s12 + $0x8] sm:$0xff]  ;;  %s17989_s12 = smov 31  }
0x26c9   :  { %v16649_v3 = vpack.c.bf16 %v14495_v25, %v14494_v56  ;;  %v5543_v56 = vrot.slane %v18921_v61, 5  ;;  %v18925_v25 = vrot.slane %v5526_v22, 5  ;;  %v5438_v22 = vld [vmem:[%s14290_s1 + $0x10] sm:$0xff] }
0x26cb   :  { %16624 = vmatpush1.bf16.msra.mxu0 %v16623_v10  ;;  %v14478_v10 = vld [vmem:[%s18515_s25 + $0x150] sm:$0xff] }
0x2791   :  { %v4748_v50 = vpop.f32.mrb[52].mxu0 }
0x2792   :  { %v15802_v60 = vpop.f32.mrb[53].mxu0  ;;  %15808 = vmatmul.mubr.msk.f32.vlgmr.msra.gmra.mrb[34].mxu1 %vm728_vm6, %v4748_v50  ;;  %v14457_v50 = vld [vmem:[%s18468_s2 + $0xe0] sm:$0xff] }
0x2793   :  { %15817 = vmatprep.mubr.msk.f32.mxu1 %vm17961_vm5, %v17957_v37  ;;  %v16625_v60 = vpack.c.bf16 %v14460_v26, %v14458_v55  ;;  %v14479_v55 = vld [vmem:[%s18515_s25 + $0x158] sm:$0xff] }
0x2794   :  { %v16651_v26 = vpack.c.bf16 %v14479_v55, %v14478_v10 }
0x2795   :  { %v4900_v27 = vpop.f32.mrb[54].mxu0  ;;  %16626 = vmatprep.subr.bf16.mxu0 %v16625_v60  ;;  %v14497_v60 = vld [vmem:[%s18515_s25 + $0x1e8] sm:$0xff] }
0x2796   :  { %v4904_v28 = vmul.f32 0.25, %v4900_v27  ;;  %v15814_v30 = vpop.f32.mrb[55].mxu0  ;;  %v14459_v27 = vld [vmem:[%s18468_s2 + $0xf0] sm:$0xff]  ;;  %s19565_s2 = sld [smem:[%s20612_s0 + %s17989_s12]]  }
0x2798   :  { %v4905_v33 = vsel %vm804_vm7, %v4904_v28, -inf }
0x2799   :  { %4906 = vmax.xlane.f32.xlu0 %v4905_v33 }
0x27af   :  { %4916 = vrot.lane.b32.xlu0 %v18739_v0, %s17969_s22 }
0x2826   :  { %v4907_v34 = vpop.xlane.xlu0 %4906 }
0x2827   :  { %v4908_v36 = vsub.f32 %v4904_v28, %v4907_v34  ;;  %v16627_v28 = vpack.c.bf16 %v14459_v27, %v14457_v50  ;;  %v14496_v50 = vld [vmem:[%s18515_s25 + $0x1e0] sm:$0xff] }
0x2828   :  { %v16653_v27 = vpack.c.bf16 %v14497_v60, %v14496_v50  ;;  %v18930_v50 = vsel %vm1689_vm9, %v5543_v56, %v18925_v25  ;;  %v14501_v60 = vld [vmem:[%s18569_s6 + $0x1] ss:$0 sm:$0xff] }
0x2829   :  { %v4909_v38 = vmul.f32 1.442695, %v4908_v36  ;;  %16628 = vmatpush1.bf16.msra.mxu0 %v16627_v28  ;;  %v14480_v28 = vld [vmem:[%s18515_s25 + $0x160] sm:$0xff] }
0x282a   :  { %v4917_v41 = vpop.permute.xlu0 %4916 }
0x282b   :  { %17576 = vpow2.f32 %v4909_v38  ;;  %15816 = vmatpush3.msk.msra.mxu1 %vm511_vm1, %v4917_v41 }
0x282c   :  { %16610 = vmatprep.subr.bf16.mxu1 %v17967_v46 }
0x2835   :  { %v17577_v62 = vpop.eup %17576 }
0x2836   :  { %v4911_v59 = vsel %vm804_vm7, %v17577_v62, 0.0 }
0x2837   :  { %4912 = vadd.xlane.f32.xlu1 %v4911_v59  ;;  %v14443_v59 = vld [vmem:[%s18492_s7 + $0x1] ss:$0 sm:$0xff]  ;;  %s14291_s7 = sld [smem:[%s20612_s0 + %s17978_s21]]  }
0x2838   :  { %s14288_s21 = sld [smem:[%s20612_s0 + %s17983_s4]]   ;;  %s17999_s4 = smov 42  }
0x28c4   :  { %v4913_v15 = vpop.xlane.xlu1 %4912 }
0x28c5   :  { %17578 = vrcp.f32 %v4913_v15 }
0x28cf   :  { %v17579_v2 = vpop.eup %17578 }
0x28d0   :  { %v4915_v12 = vmul.f32 %v17579_v2, %v17577_v62  ;;  %v14444_v2 = vld [vmem:[%s18499_s18 + $0x1] ss:$0 sm:$0xff]  ;;  %s18914_s18 = sld [smem:[%s20612_s0 + %s17979_s9]]  }
0x28d1   :  { %s14289_s9 = sld [smem:[%s20612_s0 + %s17984_s27]]  }
0x28d2   :  { %15818 = vmatmul.mubr.msk.f32.vlgmr.msra.gmra.mrb[36].mxu1 %vm816_vm8, %v4915_v12  ;;  %s14311_s27 = sld [smem:[%s20612_s0 + %s17999_s4]]  }
0x28d3   :  { %16612 = vmatpush3.bf16.msra.mxu1 %v18750_v53  ;;  %15824 = vmatprep.mubr.msk.f32.mxu1 %vm17961_vm5, %v17957_v37 }
0x28d6   :  { %v5531_v55 = vld [vmem:[%s18914_s18] sm:$0xff] }
0x29a5   :  { %v4989_v0 = vpop.f32.mrb[36].mxu1 }
0x29a6   :  { %v15819_v18 = vpop.f32.mrb[37].mxu1  ;;  %15825 = vmatmul.mubr.msk.f32.vlgmr.msra.gmra.mrb[34].mxu1 %vm728_vm6, %v4989_v0 }
0x2a79   :  { %v5062_v43 = vpop.f32.mrb[34].mxu1 }
0x2a7a   :  { %v5068_v35 = vrot.slane %v5062_v43, 3  ;;  %v15826_v32 = vpop.f32.mrb[35].mxu1 }
0x2a7b   :  { %v14484_v32 = vld [vmem:[%s18515_s25 + $0x180] sm:$0xff] }
0x2a7c   :  { %v5070_v48 = vsel %vm511_vm1, %v18769_v16, %v5068_v35  ;;  %v5080_v17 = vadd.f32 %v14440_v47, %v5068_v35 }
0x2a7d   :  { %v5079_v51 = vadd.f32 %v14440_v47, %v5070_v48  ;;  %v14485_v48 = vld [vmem:[%s18515_s25 + $0x188] sm:$0xff] }
0x2a7e   :  { %v18839_v53 = vadd.f32 %v5080_v17, %v18580_v57  ;;  %v14468_v17 = vld [vmem:[%s18515_s25 + $0x100] sm:$0xff] }
0x2a7f   :  { %v18836_v1 = vadd.f32 %v5079_v51, %v18573_v44  ;;  %v16629_v51 = vpack.c.bf16 %v14485_v48, %v14484_v32 }
0x2a80   :  { %v5090_v5 = vsel %vm521_vm4, %v18839_v53, 0.0 }
0x2a81   :  { %v5087_v4 = vsel %vm517_vm3, %v18836_v1, 0.0  ;;  %16630 = vmatprep.subr.bf16.mxu1 %v16629_v51 }
0x2a82   :  { %5088 = vadd.xlane.f32.xlu1 %v5087_v4  ;;  %v14469_v4 = vld [vmem:[%s18515_s25 + $0x108] sm:$0xff] }
0x2a86   :  { %5091 = vadd.xlane.f32.xlu1 %v5090_v5  ;;  %v16631_v5 = vpack.c.bf16 %v14469_v4, %v14468_v17 }
0x2a88   :  { %16632 = vmatpush3.bf16.msra.mxu1 %v16631_v5 }
0x2b0f   :  { %v5089_v16 = vpop.xlane.xlu1 %5088 }
0x2b10   :  { %v5093_v6 = vmul.f32 0.015625, %v5089_v16  ;;  %v14486_v16 = vld [vmem:[%s18515_s25 + $0x190] sm:$0xff] }
0x2b12   :  { %v5095_v44 = vsub.f32 %v18836_v1, %v5093_v6  ;;  %v14487_v6 = vld [vmem:[%s18515_s25 + $0x198] sm:$0xff] }
0x2b13   :  { %v5092_v7 = vpop.xlane.xlu1 %5091 }
0x2b14   :  { %v5094_v52 = vmul.f32 0.015625, %v5092_v7  ;;  %v5097_v57 = vmul.f32 %v5095_v44, %v5095_v44  ;;  %v14470_v7 = vld [vmem:[%s18515_s25 + $0x110] sm:$0xff] }
0x2b16   :  { %v5096_v24 = vsub.f32 %v18839_v53, %v5094_v52  ;;  %v5099_v42 = vsel %vm517_vm3, %v5097_v57, 0.0  ;;  %v14471_v52 = vld [vmem:[%s18515_s25 + $0x118] sm:$0xff] }
0x2b17   :  { %5100 = vadd.xlane.f32.xlu1 %v5099_v42  ;;  %v16635_v57 = vpack.c.bf16 %v14471_v52, %v14470_v7  ;;  %v14489_v42 = vld [vmem:[%s18515_s25 + $0x1a8] sm:$0xff] }
0x2b18   :  { %v5098_v58 = vmul.f32 %v5096_v24, %v5096_v24 }
0x2b1a   :  { %v5102_v8 = vsel %vm521_vm4, %v5098_v58, 0.0 }
0x2b1b   :  { %5103 = vadd.xlane.f32.xlu1 %v5102_v8  ;;  %v14472_v8 = vld [vmem:[%s18515_s25 + $0x120] sm:$0xff] }
0x2b1c   :  { %v16639_v9 = vpack.c.bf16 %v14473_v63, %v14472_v8 }
0x2ba4   :  { %v5101_v30 = vpop.xlane.xlu1 %5100 }
0x2ba5   :  { %v5105_v33 = vmul.f32 0.015625, %v5101_v30  ;;  %v14481_v30 = vld [vmem:[%s18515_s25 + $0x168] sm:$0xff] }
0x2ba7   :  { %v5107_v34 = vadd.f32 1e-05, %v5105_v33  ;;  %v16655_v33 = vpack.c.bf16 %v14481_v30, %v14480_v28 }
0x2ba8   :  { %v5104_v36 = vpop.xlane.xlu1 %5103 }
0x2ba9   :  { %17580 = vrsqrt.f32 %v5107_v34  ;;  %v5106_v38 = vmul.f32 0.015625, %v5104_v36  ;;  %v14498_v34 = vld [vmem:[%s18515_s25 + $0x1f0] sm:$0xff]  ;;  %v14499_v36 = vld [vmem:[%s18515_s25 + $0x1f8] sm:$0xff] }
0x2bab   :  { %v5108_v41 = vadd.f32 1e-05, %v5106_v38  ;;  %v16657_v38 = vpack.c.bf16 %v14499_v36, %v14498_v34 }
0x2bad   :  { %17582 = vrsqrt.f32 %v5108_v41  ;;  %v14482_v41 = vld [vmem:[%s18515_s25 + $0x170] sm:$0xff] }
0x2bb3   :  { %v17581_v62 = vpop.eup %17580 }
0x2bb4   :  { %v5111_v15 = vmul.f32 %v17581_v62, %v5095_v44  ;;  %v16633_v44 = vpack.c.bf16 %v14487_v6, %v14486_v16  ;;  %v14483_v62 = vld [vmem:[%s18515_s25 + $0x178] sm:$0xff] }
0x2bb6   :  { %v5119_v12 = vmul.f32 %v14443_v59, %v5111_v15  ;;  %16634 = vmatprep.subr.bf16.mxu1 %v16633_v44  ;;  %v14461_v15 = vld [vmem:[%s18559_s29 + $0x2] sm:$0x3]  ;;  %s19019_s29 = sld [smem:[%s20612_s0 + %s17986_s24]]  }
0x2bb7   :  { %v17583_v0 = vpop.eup %17582  ;;  %16636 = vmatpush3.bf16.msra.mxu1 %v16635_v57 }
0x2bb8   :  { %v5127_v18 = vadd.f32 %v14444_v2, %v5119_v12  ;;  %v5112_v43 = vmul.f32 %v17583_v0, %v5096_v24  ;;  %v14488_v24 = vld [vmem:[%s18515_s25 + $0x1a0] sm:$0xff]  ;;  %v5156_v12 = vrot.slane %v14461_v15, %v18227_v11  ;;  %s18919_s25 = sld [smem:[%s20612_s0 + %s17980_s19]]  }
0x2bb9   :  { %v16637_v58 = vpack.c.bf16 %v14489_v42, %v14488_v24 }
0x2bba   :  { %14462 = vmatmul.mubr.msk.f32.vlgmr.msra.gmra.mrb[56].mxu0 %vm517_vm3, %v5127_v18  ;;  %v5120_v35 = vmul.f32 %v14443_v59, %v5112_v43  ;;  %v16659_v59 = vpack.c.bf16 %v14483_v62, %v14482_v41  ;;  %v5532_v62 = vld [vmem:[%s18914_s18 + $0x8] sm:$0x7] }
0x2bbb   :  { %5235 = vmatprep.mubr.f32.mxu0 %v17957_v37  ;;  %16638 = vmatprep.subr.bf16.mxu1 %v16637_v58 }
0x2bbc   :  { %v5128_v47 = vadd.f32 %v14444_v2, %v5120_v35  ;;  %16640 = vmatpush3.bf16.msra.mxu1 %v16639_v9  ;;  %v5152_v2 = vrot.slane %v14461_v15, %v18127_v39 }
0x2bbd   :  { %16642 = vmatprep.subr.bf16.mxu1 %v16641_v13 }
0x2bbe   :  { %14463 = vmatmul.mubr.msk.f32.gmra.mrb[58].mxu0 %vm517_vm3, %v5128_v47  ;;  %v5528_v28 = vld [vmem:[%s18919_s25] sm:$0x1] }
0x2bc0   :  { %16644 = vmatpush3.bf16.msra.mxu1 %v16643_v21 }
0x2bc1   :  { %16646 = vmatprep.subr.bf16.mxu1 %v16645_v14 }
0x2bc4   :  { %16648 = vmatpush3.bf16.msra.mxu1 %v16647_v23  ;;  %v5539_v23 = vrot.slane %v18921_v61, 1 }
0x2bc5   :  { %16650 = vmatprep.subr.bf16.mxu1 %v16649_v3  ;;  %v5527_v3 = vld [vmem:[%s14291_s7] sm:$0xf]  ;;  %s17990_s7 = smov 34  }
0x2bc6   :  { %s19629_s11 = sld [smem:[%s20612_s0 + %s17990_s7]]  }
0x2bc8   :  { %16652 = vmatpush3.bf16.msra.mxu1 %v16651_v26  ;;  %v5541_v26 = vadd.f32 %v5539_v23, %v5527_v3  ;;  %v5439_v23 = vld [vmem:[%s14290_s1 + $0x18] sm:$0xff]  ;;  %v5440_v3 = vld [vmem:[%s14290_s1 + $0x20] sm:$0xff] }
0x2bc9   :  { %16654 = vmatprep.subr.bf16.mxu1 %v16653_v27  ;;  %v16665_v56 = vpack.c.bf16 %v5439_v23, %v5438_v22  ;;  %v5712_v22 = vld [vmem:[%s18984_s30 + $0x78] sm:$0xff] }
0x2bca   :  { %v18936_v41 = vrot.slane %v5541_v26, 7  ;;  %v5442_v26 = vld [vmem:[%s14290_s1 + $0x30] sm:$0xff] }
0x2bcc   :  { %16656 = vmatpush3.bf16.msra.mxu1 %v16655_v33  ;;  %v5548_v33 = vadd.f32 %v18930_v50, %v5531_v55 }
0x2bcd   :  { %16658 = vmatprep.subr.bf16.mxu1 %v16657_v38  ;;  %v5537_v38 = vadd.f32 %v5528_v28, %v18921_v61  ;;  %v5698_v28 = vld [vmem:[%s18984_s30 + $0x8] sm:$0xff] }
0x2bd0   :  { %16660 = vmatpush3.bf16.msra.mxu1 %v16659_v59 }
0x2c8d   :  { %v5231_v0 = vpop.f32.mrb[56].mxu0 }
0x2c8e   :  { %v5232_v18 = vadd.f32 %v5231_v0, %v5152_v2  ;;  %v5233_v43 = vpop.f32.mrb[57].mxu0  ;;  %v5549_v0 = vadd.f32 %v18925_v25, %v5532_v62 }
0x2c8f   :  { %v5234_v35 = vadd.f32 %v5233_v43, %v5156_v12 }
0x2c90   :  { %v14464_v47 = vmul.f32 -1.702, %v5232_v18 }
0x2c91   :  { %v14465_v32 = vmul.f32 -1.702, %v5234_v35  ;;  %v5237_v48 = vpop.f32.mrb[58].mxu0 }
0x2c92   :  { %v5250_v51 = vmul.f32 1.442695, %v14464_v47  ;;  %v5238_v17 = vadd.f32 %v5237_v48, %v5152_v2  ;;  %v5239_v4 = vpop.f32.mrb[59].mxu0  ;;  %v5562_v48 = vrot.slane %v5549_v0, 3 }
0x2c93   :  { %v5252_v5 = vmul.f32 1.442695, %v14465_v32  ;;  %v5240_v16 = vadd.f32 %v5239_v4, %v5156_v12  ;;  %v5561_v12 = vrot.slane %v5548_v33, 3 }
0x2c94   :  { %17584 = vpow2.f32 %v5250_v51  ;;  %v14466_v6 = vmul.f32 -1.702, %v5238_v17 }
0x2c95   :  { %17586 = vpow2.f32 %v5252_v5  ;;  %v14467_v44 = vmul.f32 -1.702, %v5240_v16 }
0x2c96   :  { %v5254_v7 = vmul.f32 1.442695, %v14466_v6 }
0x2c97   :  { %v5256_v52 = vmul.f32 1.442695, %v14467_v44 }
0x2c98   :  { %17588 = vpow2.f32 %v5254_v7 }
0x2c99   :  { %17590 = vpow2.f32 %v5256_v52 }
0x2c9e   :  { %v17585_v57 = vpop.eup %17584 }
0x2c9f   :  { %v17587_v24 = vpop.eup %17586  ;;  %v5258_v42 = vadd.f32 1.0, %v17585_v57 }
0x2ca0   :  { %v5259_v58 = vadd.f32 1.0, %v17587_v24 }
0x2ca1   :  { %17592 = vrcp.f32 %v5258_v42 }
0x2ca2   :  { %v17589_v8 = vpop.eup %17588  ;;  %17594 = vrcp.f32 %v5259_v58 }
0x2ca3   :  { %v17591_v63 = vpop.eup %17590  ;;  %v5260_v9 = vadd.f32 1.0, %v17589_v8 }
0x2ca4   :  { %v5261_v49 = vadd.f32 1.0, %v17591_v63 }
0x2ca5   :  { %17596 = vrcp.f32 %v5260_v9 }
0x2ca6   :  { %17598 = vrcp.f32 %v5261_v49 }
0x2cab   :  { %v17593_v54 = vpop.eup %17592 }
0x2cac   :  { %v17595_v13 = vpop.eup %17594  ;;  %v5270_v20 = vmul.f32 %v17593_v54, %v5232_v18 }
0x2cad   :  { %v5271_v19 = vmul.f32 %v17595_v13, %v5234_v35  ;;  %v5580_v35 = vsel %vm509_vm0, %v5537_v38, %v18936_v41 }
0x2cae   :  { %v18946_v32 = vsel %vm511_vm1, %v5580_v35, %v5561_v12 }
0x2caf   :  { %v17597_v21 = vpop.eup %17596  ;;  %5379 = vmatprep.mubr.f32.mxu1 %v5271_v19 }
0x2cb0   :  { %v17599_v45 = vpop.eup %17598  ;;  %5380 = vmatmul.mubr.f32.vlgmr.msra.gmra.mrb[38].mxu1 %v5270_v20  ;;  %v5272_v14 = vmul.f32 %v17597_v21, %v5238_v17  ;;  %v18952_v17 = vsel %vm511_vm1, %v5561_v12, %v5562_v48 }
0x2cb1   :  { %v5273_v40 = vmul.f32 %v17599_v45, %v5240_v16  ;;  %v5598_v4 = vsel %vm517_vm3, %v18952_v17, 0.0  ;;  %v5436_v45 = vld [vmem:[%s14290_s1] sm:$0xff] }
0x2cb3   :  { %5384 = vmatprep.mubr.f32.mxu1 %v5273_v40  ;;  %v5437_v40 = vld [vmem:[%s14290_s1 + $0x8] sm:$0xff] }
0x2cb4   :  { %5385 = vmatmul.mubr.f32.gmra.mrb[40].mxu1 %v5272_v14  ;;  %v16661_v14 = vpack.c.bf16 %v5437_v40, %v5436_v45  ;;  %v5707_v45 = vld [vmem:[%s18984_s30 + $0x50] sm:$0xff] }
0x2cb6   :  { %16662 = vmatprep.subr.bf16.mxu0 %v16661_v14 }
0x2cb7   :  { %16664 = vmatpush3.bf16.msra.mxu0 %v16661_v14  ;;  %v5710_v14 = vld [vmem:[%s18984_s30 + $0x68] sm:$0xff] }
0x2cb8   :  { %16666 = vmatprep.subr.bf16.mxu0 %v16665_v56 }
0x2cbb   :  { %16668 = vmatpush3.bf16.msra.mxu0 %v16665_v56 }
0x2d83   :  { %v15132_v10 = vpop.f32.mrb[38].mxu1 }
0x2d84   :  { %v15133_v27 = vpop.f32.mrb[39].mxu1 }
0x2d85   :  { %v15134_v30 = vadd.f32 %v15133_v27, %v15132_v10  ;;  %v5441_v10 = vld [vmem:[%s14290_s1 + $0x28] sm:$0xff] }
0x2d86   :  { %v16669_v55 = vpack.c.bf16 %v5441_v10, %v5440_v3  ;;  %v16689_v3 = vpack.c.bf16 %v5712_v22, %v5710_v14  ;;  %v5709_v10 = vld [vmem:[%s18984_s30 + $0x60] sm:$0xff] }
0x2d87   :  { %v5382_v34 = vadd.f32 %v15134_v30, %v14501_v60  ;;  %v15135_v36 = vpop.f32.mrb[40].mxu1  ;;  %v5700_v30 = vld [vmem:[%s18984_s30 + $0x18] sm:$0xff] }
0x2d88   :  { %v15136_v59 = vpop.f32.mrb[41].mxu1  ;;  %16670 = vmatprep.subr.bf16.mxu0 %v16669_v55  ;;  %v16677_v33 = vpack.c.bf16 %v5700_v30, %v5698_v28 }
0x2d89   :  { %v15137_v15 = vadd.f32 %v15136_v59, %v15135_v36  ;;  %v5390_v2 = vadd.f32 %v5382_v34, %v18836_v1  ;;  %v5595_v1 = vsel %vm517_vm3, %v18946_v32, 0.0  ;;  %16672 = vmatpush3.bf16.msra.mxu0 %v16669_v55  ;;  %v5711_v55 = vld [vmem:[%s18984_s30 + $0x70] sm:$0xff] }
0x2d8b   :  { %v5387_v18 = vadd.f32 %v15137_v15, %v14501_v60  ;;  %v5394_v43 = vsel %vm517_vm3, %v5390_v2, 0.0  ;;  %v5443_v60 = vld [vmem:[%s14290_s1 + $0x38] sm:$0xff]  ;;  %s17987_s1 = smov 29  }
0x2d8c   :  { %5395 = vadd.xlane.f32.xlu0 %v5394_v43  ;;  %v16673_v27 = vpack.c.bf16 %v5443_v60, %v5442_v26  ;;  %v19025_v60 = vld [vmem:[%s19008_s20] ss:$0 sm:$0xff]  ;;  %s19046_s6 = sld [smem:[%s20612_s0 + %s17987_s1]]  }
0x2d8d   :  { %v5391_v47 = vadd.f32 %v5387_v18, %v18839_v53 }
0x2d8e   :  { %16674 = vmatprep.subr.bf16.mxu0 %v16673_v27 }
0x2d8f   :  { %v5397_v51 = vsel %vm521_vm4, %v5391_v47, 0.0  ;;  %16676 = vmatpush3.bf16.msra.mxu0 %v16673_v27  ;;  %v16691_v27 = vpack.c.bf16 %v5711_v55, %v5709_v10 }
0x2d90   :  { %5398 = vadd.xlane.f32.xlu1 %v5397_v51  ;;  %16678 = vmatprep.subr.bf16.mxu0 %v16677_v33  ;;  %v14503_v51 = vld [vmem:[%s14289_s9] ss:$0 sm:$0xff] }
0x2d91   :  { %v19030_v33 = vld [vmem:[%s19019_s29] ss:$0 sm:$0xff] }
0x2d94   :  { %5596 = vadd.xlane.f32.xlu1 %v5595_v1 }
0x2d98   :  { %5599 = vadd.xlane.f32.xlu1 %v5598_v4 }
0x2e19   :  { %v5396_v5 = vpop.xlane.xlu0 %5395 }
0x2e1a   :  { %v5400_v53 = vmul.f32 0.015625, %v5396_v5 }
0x2e1c   :  { %v18956_v16 = vsub.f32 %v5390_v2, %v5400_v53 }
0x2e1d   :  { %v5399_v6 = vpop.xlane.xlu1 %5398 }
0x2e1e   :  { %v5401_v44 = vmul.f32 0.015625, %v5399_v6  ;;  %v5404_v7 = vmul.f32 %v18956_v16, %v18956_v16 }
0x2e20   :  { %v18960_v52 = vsub.f32 %v5391_v47, %v5401_v44  ;;  %v5406_v57 = vsel %vm517_vm3, %v5404_v7, 0.0  ;;  %v14502_v47 = vld [vmem:[%s14288_s21] ss:$0 sm:$0xff]  ;;  %v5699_v7 = vld [vmem:[%s18984_s30 + $0x10] sm:$0xff]  ;;  %s17993_s21 = smov 35  }
0x2e21   :  { %v5597_v24 = vpop.xlane.xlu1 %5596  ;;  %5407 = vadd.xlane.f32.xlu1 %v5406_v57  ;;  %v5697_v44 = vld [vmem:[%s18984_s30] sm:$0xff]  ;;  %v5702_v57 = vld [vmem:[%s18984_s30 + $0x28] sm:$0xff]  ;;  %s19701_s9 = sld [smem:[%s20612_s0 + %s17993_s21]]  }
0x2e22   :  { %v5613_v42 = vmul.f32 0.015625, %v5597_v24  ;;  %v5405_v58 = vmul.f32 %v18960_v52, %v18960_v52  ;;  %v5704_v24 = vld [vmem:[%s18984_s30 + $0x38] sm:$0xff] }
0x2e24   :  { %v18966_v8 = vsub.f32 %v18946_v32, %v5613_v42  ;;  %v5409_v63 = vsel %vm521_vm4, %v5405_v58, 0.0 }
0x2e25   :  { %v5600_v9 = vpop.xlane.xlu1 %5599  ;;  %5410 = vadd.xlane.f32.xlu1 %v5409_v63  ;;  %v16681_v63 = vpack.c.bf16 %v5704_v24, %v5702_v57  ;;  %v5530_v57 = vld [vmem:[%s18919_s25 + $0x2] sm:$0x1] }
0x2e26   :  { %v5614_v49 = vmul.f32 0.015625, %v5600_v9  ;;  %v5625_v54 = vmul.f32 %v18966_v8, %v18966_v8  ;;  %v5701_v9 = vld [vmem:[%s18984_s30 + $0x20] sm:$0xff] }
0x2e28   :  { %v18972_v13 = vsub.f32 %v18952_v17, %v5614_v49  ;;  %v5631_v19 = vsel %vm517_vm3, %v5625_v54, 0.0  ;;  %v5703_v49 = vld [vmem:[%s18984_s30 + $0x30] sm:$0xff]  ;;  %v5706_v54 = vld [vmem:[%s18984_s30 + $0x48] sm:$0xff] }
0x2e29   :  { %5632 = vadd.xlane.f32.xlu1 %v5631_v19  ;;  %v16683_v19 = vpack.c.bf16 %v5703_v49, %v5701_v9 }
0x2e2a   :  { %v5626_v20 = vmul.f32 %v18972_v13, %v18972_v13 }
0x2e2c   :  { %v5634_v21 = vsel %vm517_vm3, %v5626_v20, 0.0 }
0x2e2d   :  { %5635 = vadd.xlane.f32.xlu1 %v5634_v21  ;;  %v5705_v21 = vld [vmem:[%s18984_s30 + $0x40] sm:$0xff] }
0x2e2e   :  { %v16687_v23 = vpack.c.bf16 %v5707_v45, %v5705_v21 }
0x2eae   :  { %v5408_v34 = vpop.xlane.xlu1 %5407 }
0x2eaf   :  { %v5412_v36 = vmul.f32 0.015625, %v5408_v34 }
0x2eb1   :  { %v5414_v38 = vadd.f32 1e-05, %v5412_v36 }
0x2eb2   :  { %v5411_v62 = vpop.xlane.xlu1 %5410 }
0x2eb3   :  { %17600 = vrsqrt.f32 %v5414_v38  ;;  %v5413_v59 = vmul.f32 0.015625, %v5411_v62  ;;  %v5713_v62 = vld [vmem:[%s19046_s6] sm:$0x3] }
0x2eb5   :  { %v5415_v15 = vadd.f32 1e-05, %v5413_v59  ;;  %v19050_v59 = vrot.slane %v5713_v62, %v18127_v39 }
0x2eb6   :  { %v5633_v2 = vpop.xlane.xlu1 %5632 }
0x2eb7   :  { %17602 = vrsqrt.f32 %v5415_v15  ;;  %v5649_v12 = vmul.f32 0.015625, %v5633_v2 }
0x2eb9   :  { %v5655_v43 = vadd.f32 1e-05, %v5649_v12 }
0x2eba   :  { %v5636_v0 = vpop.xlane.xlu1 %5635 }
0x2ebb   :  { %v5650_v35 = vmul.f32 0.015625, %v5636_v0  ;;  %17604 = vrsqrt.f32 %v5655_v43  ;;  %v19056_v0 = vrot.slane %v5713_v62, %v18227_v11 }
0x2ebd   :  { %v17601_v18 = vpop.eup %17600  ;;  %v5656_v5 = vadd.f32 1e-05, %v5650_v35 }
0x2ebe   :  { %v5418_v48 = vmul.f32 %v17601_v18, %v18956_v16  ;;  %v16679_v16 = vpack.c.bf16 %v5699_v7, %v5697_v44  ;;  %v5535_v7 = vld [vmem:[%s18914_s18 + $0x20] sm:$0xff] }
0x2ebf   :  { %17606 = vrsqrt.f32 %v5656_v5  ;;  %v5533_v5 = vld [vmem:[%s18914_s18 + $0x10] sm:$0xff] }
0x2ec0   :  { %v5426_v1 = vmul.f32 %v14502_v47, %v5418_v48 }
0x2ec1   :  { %v17603_v4 = vpop.eup %17602 }
0x2ec2   :  { %v5419_v53 = vmul.f32 %v17603_v4, %v18960_v52  ;;  %v5434_v6 = vadd.f32 %v14503_v51, %v5426_v1  ;;  %v5708_v52 = vld [vmem:[%s18984_s30 + $0x58] sm:$0xff] }
0x2ec3   :  { %v16685_v20 = vpack.c.bf16 %v5708_v52, %v5706_v54 }
0x2ec4   :  { %v5427_v42 = vmul.f32 %v14502_v47, %v5419_v53  ;;  %15843 = vmatprep.mubr.msk.f32.mxu0 %vm517_vm3, %v5434_v6  ;;  %v5529_v53 = vld [vmem:[%s18919_s25 + $0x1] sm:$0x1]  ;;  %v19080_v6 = vadd.f32 %v18930_v50, %v5533_v5 }
0x2ec5   :  { %v17605_v40 = vpop.eup %17604  ;;  %v5550_v44 = vadd.f32 %v5529_v53, %v18921_v61 }
0x2ec6   :  { %v5435_v58 = vadd.f32 %v14503_v51, %v5427_v42  ;;  %v5667_v56 = vmul.f32 %v17605_v40, %v18966_v8  ;;  %v5568_v24 = vrot.slane %v19080_v6, 3  ;;  %v5554_v42 = vadd.f32 %v18930_v50, %v5535_v7 }
0x2ec8   :  { %15844 = vmatmul.mubr.msk.f32.vlgmr.msra.gmra.mrb[60].mxu0 %vm517_vm3, %v5435_v58  ;;  %v5679_v28 = vmul.f32 %v19025_v60, %v5667_v56  ;;  %v5553_v58 = vadd.f32 %v5530_v57, %v18921_v61  ;;  %v5575_v9 = vrot.slane %v5554_v42, 3  ;;  %v5536_v61 = vld [vmem:[%s18914_s18 + $0x28] sm:$0x7] }
0x2ec9   :  { %16680 = vmatpush1.bf16.msra.mxu0 %v16679_v16  ;;  %5807 = vmatprep.mubr.f32.mxu0 %v17957_v37  ;;  %v17607_v26 = vpop.eup %17606  ;;  %v5582_v16 = vsel %vm509_vm0, %v5550_v44, %v18936_v41 }
0x2eca   :  { %16682 = vmatprep.subr.bf16.mxu0 %v16681_v63  ;;  %v5668_v30 = vmul.f32 %v17607_v26, %v18972_v13  ;;  %v5691_v34 = vadd.f32 %v19030_v33, %v5679_v28  ;;  %v19093_v63 = vsel %vm511_vm1, %v5582_v16, %v5568_v24  ;;  %v5584_v49 = vsel %vm509_vm0, %v5553_v58, %v18936_v41 }
0x2ecb   :  { %v5601_v54 = vsel %vm517_vm3, %v19093_v63, 0.0  ;;  %v19100_v52 = vsel %vm511_vm1, %v5584_v49, %v5575_v9  ;;  %vm14164_vm0 = vcmask 256000  }
0x2ecc   :  { %v5680_v8 = vmul.f32 %v19025_v60, %v5668_v30  ;;  %v5607_v50 = vsel %vm517_vm3, %v19100_v52, 0.0 }
0x2ecd   :  { %16684 = vmatpush1.bf16.msra.mxu0 %v16683_v19  ;;  %v5555_v19 = vadd.f32 %v18925_v25, %v5536_v61 }
0x2ece   :  { %16686 = vmatprep.subr.bf16.mxu0 %v16685_v20  ;;  %v5692_v36 = vadd.f32 %v19030_v33, %v5680_v8 }
0x2ecf   :  { %v5576_v20 = vrot.slane %v5555_v19, 3 }
0x2ed1   :  { %16688 = vmatpush1.bf16.msra.mxu0 %v16687_v23  ;;  %v19107_v21 = vsel %vm511_vm1, %v5575_v9, %v5576_v20 }
0x2ed2   :  { %16690 = vmatprep.subr.bf16.mxu0 %v16689_v3  ;;  %v5610_v41 = vsel %vm517_vm3, %v19107_v21, 0.0 }
0x2ed5   :  { %16692 = vmatpush1.bf16.msra.mxu0 %v16691_v27 }
0x2ed8   :  { %14508 = vmatmul.mubr.msk.f32.vlgmr.msra.gmra.mrb[62].mxu0 %vm517_vm3, %v5691_v34 }
0x2ed9   :  { %5813 = vmatprep.mubr.f32.mxu0 %v17957_v37 }
0x2edc   :  { %14509 = vmatmul.mubr.msk.f32.gmra.mrb[64].mxu0 %vm517_vm3, %v5692_v36 }
0x2edd   :  { %5819 = vmatprep.mubr.f32.mxu0 %v17957_v37 }
0x2f9b   :  { %v19039_v38 = vpop.f32.mrb[60].mxu0 }
0x2f9c   :  { %v19041_v13 = vpop.f32.mrb[61].mxu0 }
0x2fab   :  { %v5809_v15 = vpop.f32.mrb[62].mxu0 }
0x2fac   :  { %v19053_v2 = vadd.f32 %v5809_v15, %v19050_v59  ;;  %v5811_v12 = vpop.f32.mrb[63].mxu0 }
0x2fad   :  { %v5812_v47 = vadd.f32 %v5811_v12, %v19056_v0 }
0x2fae   :  { %15850 = vmatprep.mubr.msk.f32.mxu1 %vm728_vm6, %v19053_v2 }
0x2faf   :  { %v5815_v18 = vpop.f32.mrb[64].mxu0 }
0x2fb0   :  { %v19061_v43 = vadd.f32 %v5815_v18, %v19050_v59  ;;  %v5817_v35 = vpop.f32.mrb[65].mxu0 }
0x2fb1   :  { %v5818_v48 = vadd.f32 %v5817_v35, %v19056_v0 }
0x2fb2   :  { %v19067_v51 = vpack.i.bf16 %v19061_v43, %v19053_v2 }
0x2fb3   :  { %v16699_v1 = vpack.c.bf16 %v5818_v48, %v5812_v47  ;;  %v19069_v4 = vpack.i.bf16 %v5818_v48, %v5812_v47  ;;  %v5590_v48 = vand.u32 127, %v501_v29 }
0x2fb4   :  { %17275 = vrot.lane.b32.xlu1 %v19067_v51, %s17962_s13 }
0x2fb5   :  { %vm19149_vm11 = vcmp.le.s32.totalorder %v5590_v48, %v18124_v31 }
0x2fb8   :  { %17280 = vrot.lane.b32.xlu1 %v19067_v51, %s17964_s15 }
0x2fbc   :  { %6050 = vrot.lane.b32.xlu1 %v19061_v43, %s17963_s14 }
0x2fe0   :  { %5602 = vadd.xlane.f32.xlu1 %v5601_v54 }
0x2fe4   :  { %5608 = vadd.xlane.f32.xlu1 %v5607_v50 }
0x2fe8   :  { %5611 = vadd.xlane.f32.xlu1 %v5610_v41 }
0x3026   :  { %v17276_v45 = vpop.permute.xlu1 %17275 }
0x3027   :  { %v17278_v40 = vunpack.i.h.bf16 %v17276_v45  ;;  %v17277_v14 = vunpack.i.l.bf16 %v17276_v45 }
0x3029   :  { %v16693_v23 = vpack.c.bf16 %v17278_v40, %v17277_v14 }
0x302a   :  { %v17281_v56 = vpop.permute.xlu1 %17280 }
0x302b   :  { %16695 = vmatprep.subr.msk.bf16.mxu1 %vm19113_vm10, %v16693_v23  ;;  %v17283_v3 = vunpack.i.h.bf16 %v17281_v56  ;;  %v17282_v10 = vunpack.i.l.bf16 %v17281_v56 }
0x302c   :  { %16698 = vmatpush3.bf16.xpose.msk.msra.mxu1 %vm19113_vm10, %v16693_v23 }
0x302d   :  { %16700 = vmatprep.subr.bf16.mxu1 %v16699_v1  ;;  %v19121_v55 = vpack.c.bf16 %v17283_v3, %v17282_v10 }
0x302e   :  { %v19128_v26 = vpop.permute.xlu1 %6050 }
0x3033   :  { %15851 = vmatmul.mubr.msk.f32.vlgmr.msra.gmra.mrb[42].mxu1 %vm728_vm6, %v19061_v43 }
0x3034   :  { %16702 = vmatpush3.bf16.msra.mxu1 %v16699_v1  ;;  %v5588_v1 = vadd.s32 8, %v18124_v31 }
0x3035   :  { %16705 = vmatprep.subr.msk.bf16.mxu1 %vm19113_vm10, %v19121_v55 }
0x3036   :  { %vm19153_vm12 = vcmp.le.s32.totalorder %v5590_v48, %v5588_v1 }
0x306d   :  { %v5603_v27 = vpop.xlane.xlu1 %5602 }
0x306e   :  { %v5615_v28 = vmul.f32 0.015625, %v5603_v27  ;;  %v5534_v27 = vld [vmem:[%s18914_s18 + $0x18] sm:$0x7]  ;;  %s17988_s18 = smov 30  }
0x306f   :  { %s19292_s8 = sld [smem:[%s20612_s0 + %s17988_s18]]   ;;  %s17992_s18 = smov 36  }
0x3070   :  { %v5621_v30 = vsub.f32 %v19093_v63, %v5615_v28  ;;  %v5552_v28 = vadd.f32 %v18925_v25, %v5534_v27  ;;  %s19694_s12 = sld [smem:[%s20612_s0 + %s17992_s18]]  }
0x3071   :  { %v5609_v34 = vpop.xlane.xlu1 %5608  ;;  %s1_s18 = sld [smem:[%s20612_s0]]  }
0x3072   :  { %v5617_v8 = vmul.f32 0.015625, %v5609_v34  ;;  %v5627_v36 = vmul.f32 %v5621_v30, %v5621_v30  ;;  %v5569_v34 = vrot.slane %v5552_v28, 3 }
0x3074   :  { %v19132_v62 = vsub.f32 %v19100_v52, %v5617_v8  ;;  %v5637_v15 = vsel %vm517_vm3, %v5627_v36, 0.0  ;;  %v19176_v8 = vsel %vm511_vm1, %v5568_v24, %v5569_v34  ;;  %vm14155_vm1 = vcmask 254976  }
0x3075   :  { %5638 = vadd.xlane.f32.xlu1 %v5637_v15  ;;  %v19142_v35 = vpop.xlane.xlu1 %5611  ;;  %v5604_v36 = vsel %vm517_vm3, %v19176_v8, 0.0 }
0x3076   :  { %v5629_v12 = vmul.f32 %v19132_v62, %v19132_v62 }
0x3078   :  { %v5643_v18 = vsel %vm517_vm3, %v5629_v12, 0.0 }
0x3079   :  { %5644 = vadd.xlane.f32.xlu1 %v5643_v18 }
0x308a   :  { %17285 = vrot.lane.b32.xlu1 %v19067_v51, %s17965_s16 }
0x308e   :  { %6418 = vrot.lane.b32.xlu1 %v19061_v43, %s17966_s17 }
0x3102   :  { %v5639_v47 = vpop.xlane.xlu1 %5638 }
0x3103   :  { %v5651_v15 = vmul.f32 0.015625, %v5639_v47 }
0x3105   :  { %v5657_v12 = vadd.f32 1e-05, %v5651_v15 }
0x3106   :  { %v19146_v5 = vpop.xlane.xlu1 %5644  ;;  %v15852_v53 = vpop.f32.mrb[42].mxu1 }
0x3107   :  { %v5932_v7 = vpop.f32.mrb[43].mxu1  ;;  %v5942_v57 = vmul.f32 0.25, %v15852_v53 }
0x3108   :  { %v5941_v42 = vmul.f32 0.25, %v5932_v7 }
0x3109   :  { %v5944_v31 = vsel %vm19153_vm12, %v5942_v57, -3.4028235e+38 }
0x310a   :  { %v17286_v58 = vpop.permute.xlu1 %17285  ;;  %v5943_v29 = vsel %vm19149_vm11, %v5941_v42, -3.4028235e+38  ;;  %v5948_v61 = vsel %vm728_vm6, %v5944_v31, -inf }
0x310b   :  { %v17288_v9 = vunpack.i.h.bf16 %v17286_v58  ;;  %v17287_v49 = vunpack.i.l.bf16 %v17286_v58  ;;  %v5945_v54 = vsel %vm728_vm6, %v5943_v29, -inf }
0x310c   :  { %5946 = vmax.xlane.f32.xlu0 %v5945_v54 }
0x310d   :  { %v16721_v50 = vpack.c.bf16 %v17288_v9, %v17287_v49 }
0x310f   :  { %16723 = vmatprep.subr.msk.bf16.mxu0 %vm19113_vm10, %v16721_v50 }
0x3110   :  { %16726 = vmatpush3.bf16.xpose.msk.msra.mxu0 %vm19113_vm10, %v16721_v50  ;;  %5949 = vmax.xlane.f32.xlu0 %v5948_v61  ;;  %v5653_v61 = vmul.f32 0.015625, %v19146_v5 }
0x3199   :  { %v5947_v19 = vpop.xlane.xlu0 %5946 }
0x319a   :  { %v5951_v20 = vsub.f32 %v5943_v29, %v5947_v19  ;;  %v5659_v19 = vadd.f32 1e-05, %v5653_v61 }
0x319c   :  { %v5953_v41 = vmul.f32 1.442695, %v5951_v20 }
0x319d   :  { %v5950_v45 = vpop.xlane.xlu0 %5949 }
0x319e   :  { %17608 = vpow2.f32 %v5953_v41  ;;  %v5952_v40 = vsub.f32 %v5944_v31, %v5950_v45 }
0x31a0   :  { %v5955_v14 = vmul.f32 1.442695, %v5952_v40 }
0x31a2   :  { %17610 = vpow2.f32 %v5955_v14 }
0x31a3   :  { %17612 = vrsqrt.f32 %v5657_v12 }
0x31a8   :  { %v17609_v23 = vpop.eup %17608 }
0x31a9   :  { %v5957_v56 = vsel %vm728_vm6, %v17609_v23, 0.0 }
0x31aa   :  { %5958 = vadd.xlane.f32.xlu0 %v5957_v56 }
0x31ac   :  { %v17611_v3 = vpop.eup %17610 }
0x31ad   :  { %v5960_v10 = vsel %vm728_vm6, %v17611_v3, 0.0  ;;  %v17613_v18 = vpop.eup %17612 }
0x31ae   :  { %5961 = vadd.xlane.f32.xlu0 %v5960_v10  ;;  %v5669_v48 = vmul.f32 %v17613_v18, %v5621_v30  ;;  %v5618_v30 = vmul.f32 0.015625, %v19142_v35 }
0x31b0   :  { %v5681_v1 = vmul.f32 %v19025_v60, %v5669_v48  ;;  %v5624_v29 = vsub.f32 %v19107_v21, %v5618_v30 }
0x31b2   :  { %v5693_v53 = vadd.f32 %v19030_v33, %v5681_v1  ;;  %v5630_v31 = vmul.f32 %v5624_v29, %v5624_v29 }
0x31b4   :  { %14510 = vmatmul.mubr.msk.f32.gmra.mrb[66].mxu0 %vm517_vm3, %v5693_v53 }
0x31b5   :  { %5825 = vmatprep.mubr.f32.mxu0 %v17957_v37 }
0x31c4   :  { %6048 = vrot.lane.b32.xlu0 %v19053_v2, %s17963_s14 }
0x31e3   :  { %5605 = vadd.xlane.f32.xlu0 %v5604_v36 }
0x3237   :  { %v5959_v25 = vpop.xlane.xlu0 %5958 }
0x3238   :  { %17614 = vrcp.f32 %v5959_v25 }
0x323b   :  { %v5962_v6 = vpop.xlane.xlu0 %5961 }
0x323c   :  { %17616 = vrcp.f32 %v5962_v6 }
0x323d   :  { %17618 = vrsqrt.f32 %v5659_v19 }
0x323f   :  { %v6049_v42 = vpop.permute.xlu0 %6048 }
0x3242   :  { %v17615_v24 = vpop.eup %17614 }
0x3243   :  { %v5965_v7 = vmul.f32 %v17615_v24, %v17609_v23 }
0x3245   :  { %15857 = vmatprep.mubr.msk.f32.mxu1 %vm728_vm6, %v5965_v7  ;;  %v6419_v7 = vpop.permute.xlu1 %6418 }
0x3246   :  { %v17617_v47 = vpop.eup %17616 }
0x3247   :  { %v5966_v57 = vmul.f32 %v17617_v47, %v17611_v3  ;;  %v17619_v56 = vpop.eup %17618 }
0x3248   :  { %v5671_v27 = vmul.f32 %v17619_v56, %v19132_v62 }
0x3249   :  { %15858 = vmatmul.mubr.msk.f32.vlgmr.msra.gmra.mrb[44].mxu1 %vm728_vm6, %v5966_v57 }
0x324a   :  { %16708 = vmatpush3.bf16.xpose.msk.msra.mxu1 %vm19113_vm10, %v19121_v55  ;;  %15864 = vmatprep.mubr.msk.f32.mxu1 %vm728_vm6, %v6049_v42  ;;  %v5646_v55 = vsel %vm517_vm3, %v5630_v31, 0.0  ;;  %v5683_v36 = vmul.f32 %v19025_v60, %v5671_v27 }
0x324c   :  { %v5695_v48 = vadd.f32 %v19030_v33, %v5683_v36 }
0x3251   :  { %15865 = vmatmul.mubr.msk.f32.vlgmr.msra.gmra.mrb[46].mxu1 %vm728_vm6, %v19128_v26 }
0x3270   :  { %v5606_v58 = vpop.xlane.xlu0 %5605 }
0x3271   :  { %v5616_v9 = vmul.f32 0.015625, %v5606_v58 }
0x3273   :  { %v5622_v49 = vsub.f32 %v19176_v8, %v5616_v9 }
0x3275   :  { %v5628_v54 = vmul.f32 %v5622_v49, %v5622_v49 }
0x3277   :  { %v5640_v50 = vsel %vm517_vm3, %v5628_v54, 0.0 }
0x3278   :  { %5641 = vadd.xlane.f32.xlu0 %v5640_v50 }
0x327c   :  { %5647 = vadd.xlane.f32.xlu0 %v5646_v55 }
0x3287   :  { %v19199_v26 = vpop.f32.mrb[66].mxu0 }
0x3288   :  { %v19201_v35 = vpop.f32.mrb[67].mxu0 }
0x3292   :  { %6416 = vrot.lane.b32.xlu0 %v19053_v2, %s17966_s17 }
0x3305   :  { %v5642_v20 = vpop.xlane.xlu0 %5641 }
0x3306   :  { %v5652_v41 = vmul.f32 0.015625, %v5642_v20 }
0x3308   :  { %v5658_v45 = vadd.f32 1e-05, %v5652_v41  ;;  %v5824_v41 = vadd.f32 %v19201_v35, %v19056_v0 }
0x3309   :  { %v5648_v40 = vpop.xlane.xlu0 %5647 }
0x330a   :  { %17620 = vrsqrt.f32 %v5658_v45  ;;  %v5654_v14 = vmul.f32 0.015625, %v5648_v40 }
0x330c   :  { %v5660_v23 = vadd.f32 1e-05, %v5654_v14 }
0x330d   :  { %v6417_v53 = vpop.permute.xlu0 %6416 }
0x330e   :  { %17622 = vrsqrt.f32 %v5660_v23 }
0x3314   :  { %v17621_v3 = vpop.eup %17620 }
0x3315   :  { %v5670_v10 = vmul.f32 %v17621_v3, %v5622_v49 }
0x3317   :  { %v5682_v28 = vmul.f32 %v19025_v60, %v5670_v10 }
0x3318   :  { %v17623_v34 = vpop.eup %17622 }
0x3319   :  { %v5694_v5 = vadd.f32 %v19030_v33, %v5682_v28  ;;  %v5672_v15 = vmul.f32 %v17623_v34, %v5624_v29 }
0x331b   :  { %14511 = vmatmul.mubr.msk.f32.gmra.mrb[68].mxu0 %vm517_vm3, %v5694_v5  ;;  %v5684_v62 = vmul.f32 %v19025_v60, %v5672_v15 }
0x331c   :  { %v19209_v12 = vpop.f32.mrb[44].mxu1  ;;  %5831 = vmatprep.mubr.f32.mxu0 %v17957_v37 }
0x331d   :  { %v19212_v18 = vpop.f32.mrb[45].mxu1  ;;  %v5696_v1 = vadd.f32 %v19030_v33, %v5684_v62 }
0x331f   :  { %14512 = vmatmul.mubr.msk.f32.gmra.mrb[70].mxu0 %vm517_vm3, %v5695_v48 }
0x3320   :  { %5837 = vmatprep.mubr.f32.mxu0 %v17957_v37 }
0x3323   :  { %14513 = vmatmul.mubr.msk.f32.gmra.mrb[72].mxu0 %vm517_vm3, %v5696_v1 }
0x3324   :  { %v15866_v25 = vpop.f32.mrb[46].mxu1  ;;  %15892 = vmatprep.mubr.msk.f32.mxu0 %vm728_vm6, %v6417_v53 }
0x3325   :  { %v6140_v6 = vmul.f32 0.25, %v15866_v25  ;;  %v6130_v24 = vpop.f32.mrb[47].mxu1 }
0x3326   :  { %v6139_v47 = vmul.f32 0.25, %v6130_v24 }
0x3327   :  { %15893 = vmatmul.mubr.msk.f32.vlgmr.msra.gmra.mrb[74].mxu0 %vm728_vm6, %v6419_v7  ;;  %v6142_v60 = vsel %vm19153_vm12, %v6140_v6, -3.4028235e+38 }
0x3328   :  { %v6141_v57 = vsel %vm19149_vm11, %v6139_v47, -3.4028235e+38  ;;  %v6146_v33 = vsel %vm728_vm6, %v6142_v60, -inf }
0x3329   :  { %6147 = vmax.xlane.f32.xlu0 %v6146_v33  ;;  %v6143_v42 = vsel %vm728_vm6, %v6141_v57, -inf }
0x332a   :  { %6144 = vmax.xlane.f32.xlu1 %v6143_v42 }
0x33b6   :  { %v6148_v30 = vpop.xlane.xlu0 %6147 }
0x33b7   :  { %v6150_v58 = vsub.f32 %v6142_v60, %v6148_v30  ;;  %v6145_v29 = vpop.xlane.xlu1 %6144 }
0x33b8   :  { %v6149_v9 = vsub.f32 %v6141_v57, %v6145_v29 }
0x33b9   :  { %v6153_v49 = vmul.f32 1.442695, %v6150_v58 }
0x33ba   :  { %v6151_v54 = vmul.f32 1.442695, %v6149_v9  ;;  %v19271_v9 = vadd.f32 %v19199_v26, %v19050_v59 }
0x33bb   :  { %17624 = vpow2.f32 %v6153_v49 }
0x33bc   :  { %17626 = vpow2.f32 %v6151_v54 }
0x33c5   :  { %v17625_v31 = vpop.eup %17624 }
0x33c6   :  { %v17627_v50 = vpop.eup %17626  ;;  %v6158_v55 = vsel %vm728_vm6, %v17625_v31, 0.0 }
0x33c7   :  { %6159 = vadd.xlane.f32.xlu1 %v6158_v55  ;;  %v6155_v61 = vsel %vm728_vm6, %v17627_v50, 0.0 }
0x33c8   :  { %6156 = vadd.xlane.f32.xlu0 %v6155_v61 }
0x33d8   :  { %17295 = vrot.lane.b32.xlu1 %v19067_v51, %s17970_s23 }
0x33dc   :  { %6703 = vrot.lane.b32.xlu1 %v19053_v2, %s17969_s22 }
0x33de   :  { %17290 = vrot.lane.b32.xlu0 %v19069_v4, %s17963_s14 }
0x33e2   :  { %6705 = vrot.lane.b32.xlu0 %v19061_v43, %s17969_s22 }
0x33ee   :  { %v19238_v19 = vpop.f32.mrb[68].mxu0 }
0x33ef   :  { %v5829_v20 = vpop.f32.mrb[69].mxu0 }
0x33f0   :  { %v5830_v45 = vadd.f32 %v5829_v20, %v19056_v0 }
0x33f2   :  { %v19243_v40 = vpop.f32.mrb[70].mxu0  ;;  %v19245_v51 = vpack.c.bf16 %v5830_v45, %v5824_v41  ;;  %v19247_v14 = vpack.i.bf16 %v5830_v45, %v5824_v41 }
0x33f3   :  { %v5835_v2 = vpop.f32.mrb[71].mxu0 }
0x33f4   :  { %v5836_v43 = vadd.f32 %v5835_v2, %v19056_v0 }
0x33f6   :  { %v19249_v23 = vpop.f32.mrb[72].mxu0 }
0x33f7   :  { %v5841_v56 = vpop.f32.mrb[73].mxu0 }
0x33f8   :  { %v5842_v3 = vadd.f32 %v5841_v56, %v19056_v0  ;;  %v19287_v56 = vadd.f32 %v19238_v19, %v19050_v59  ;;  %v5847_v19 = vld [vmem:[%s19292_s8 + $0x18] sm:$0xff] }
0x33fa   :  { %v15894_v10 = vpop.f32.mrb[74].mxu0  ;;  %v19253_v27 = vpack.c.bf16 %v5842_v3, %v5836_v43  ;;  %v19255_v35 = vpack.i.bf16 %v5842_v3, %v5836_v43  ;;  %v19296_v43 = vpack.i.bf16 %v19287_v56, %v19271_v9  ;;  %v5846_v3 = vld [vmem:[%s19292_s8 + $0x10] sm:$0xff] }
0x33fb   :  { %v6508_v28 = vmul.f32 0.25, %v15894_v10  ;;  %v6498_v34 = vpop.f32.mrb[75].mxu0  ;;  %v19302_v10 = vpack.c.bf16 %v5847_v19, %v5846_v3  ;;  %v5848_v19 = vld [vmem:[%s19292_s8 + $0x20] sm:$0xff] }
0x33fc   :  { %v6507_v5 = vmul.f32 0.25, %v6498_v34  ;;  %v5845_v34 = vld [vmem:[%s19292_s8 + $0x8] sm:$0xff] }
0x33fd   :  { %v6510_v36 = vsel %vm19153_vm12, %v6508_v28, -3.4028235e+38  ;;  %v5844_v28 = vld [vmem:[%s19292_s8] sm:$0xff] }
0x33fe   :  { %v6509_v15 = vsel %vm19149_vm11, %v6507_v5, -3.4028235e+38  ;;  %v6514_v48 = vsel %vm728_vm6, %v6510_v36, -inf  ;;  %v19316_v5 = vpack.c.bf16 %v5845_v34, %v5844_v28  ;;  %v5849_v28 = vld [vmem:[%s19292_s8 + $0x28] sm:$0xff] }
0x33ff   :  { %v6511_v62 = vsel %vm728_vm6, %v6509_v15, -inf  ;;  %v19352_v34 = vpack.c.bf16 %v5849_v28, %v5848_v19 }
0x3400   :  { %6512 = vmax.xlane.f32.xlu1 %v6511_v62 }
0x3401   :  { %6515 = vmax.xlane.f32.xlu0 %v6514_v48 }
0x3454   :  { %v6160_v0 = vpop.xlane.xlu1 %6159 }
0x3455   :  { %17628 = vrcp.f32 %v6160_v0  ;;  %v6157_v1 = vpop.xlane.xlu0 %6156 }
0x3456   :  { %17630 = vrcp.f32 %v6157_v1 }
0x3458   :  { %v17296_v53 = vpop.permute.xlu1 %17295 }
0x3459   :  { %v17298_v25 = vunpack.i.h.bf16 %v17296_v53  ;;  %v17297_v6 = vunpack.i.l.bf16 %v17296_v53  ;;  %v17291_v24 = vpop.permute.xlu0 %17290 }
0x345a   :  { %v17293_v7 = vunpack.i.h.bf16 %v17291_v24  ;;  %v17292_v47 = vunpack.i.l.bf16 %v17291_v24 }
0x345b   :  { %v16735_v60 = vpack.c.bf16 %v17298_v25, %v17297_v6 }
0x345c   :  { %v6704_v57 = vpop.permute.xlu1 %6703  ;;  %v16709_v33 = vpack.c.bf16 %v17293_v7, %v17292_v47 }
0x345d   :  { %16737 = vmatprep.subr.msk.bf16.mxu0 %vm19113_vm10, %v16735_v60  ;;  %15913 = vmatprep.mubr.msk.f32.mxu0 %vm728_vm6, %v6704_v57  ;;  %v6706_v49 = vpop.permute.xlu0 %6705 }
0x345e   :  { %16710 = vmatprep.subr.bf16.mxu1 %v16709_v33  ;;  %16740 = vmatpush3.bf16.xpose.msk.msra.mxu0 %vm19113_vm10, %v16735_v60 }
0x345f   :  { %v17629_v42 = vpop.eup %17628  ;;  %16712 = vmatpush3.bf16.msra.mxu1 %v16709_v33 }
0x3460   :  { %v17631_v30 = vpop.eup %17630  ;;  %v6164_v29 = vmul.f32 %v17629_v42, %v17625_v31  ;;  %16714 = vmatprep.subr.bf16.mxu1 %v19302_v10 }
0x3461   :  { %v6163_v58 = vmul.f32 %v17631_v30, %v17627_v50 }
0x3463   :  { %15871 = vmatprep.mubr.msk.f32.mxu1 %vm728_vm6, %v6163_v58 }
0x3464   :  { %15872 = vmatmul.mubr.msk.f32.vlgmr.msra.gmra.mrb[48].mxu1 %vm728_vm6, %v6164_v29 }
0x3465   :  { %15914 = vmatmul.mubr.msk.f32.vlgmr.msra.gmra.mrb[76].mxu0 %vm728_vm6, %v6706_v49  ;;  %16716 = vmatpush3.bf16.msra.mxu1 %v19302_v10 }
0x3466   :  { %15934 = vmatprep.mubr.msk.f32.mxu0 %vm728_vm6, %v19271_v9  ;;  %16718 = vmatprep.subr.bf16.mxu1 %v19316_v5 }
0x348d   :  { %v6513_v54 = vpop.xlane.xlu1 %6512 }
0x348e   :  { %v6517_v55 = vsub.f32 %v6509_v15, %v6513_v54  ;;  %v6516_v61 = vpop.xlane.xlu0 %6515 }
0x348f   :  { %v6518_v20 = vsub.f32 %v6510_v36, %v6516_v61 }
0x3490   :  { %v6519_v50 = vmul.f32 1.442695, %v6517_v55 }
0x3491   :  { %v6521_v31 = vmul.f32 1.442695, %v6518_v20 }
0x3492   :  { %17632 = vpow2.f32 %v6519_v50 }
0x3493   :  { %17634 = vpow2.f32 %v6521_v31 }
0x349c   :  { %v19277_v41 = vpop.eup %17632 }
0x349d   :  { %v19279_v26 = vpop.eup %17634  ;;  %v6523_v45 = vsel %vm728_vm6, %v19277_v41, 0.0 }
0x349e   :  { %6524 = vadd.xlane.f32.xlu0 %v6523_v45  ;;  %v6526_v2 = vsel %vm728_vm6, %v19279_v26, 0.0 }
0x349f   :  { %6527 = vadd.xlane.f32.xlu1 %v6526_v2 }
0x34b0   :  { %17305 = vrot.lane.b32.xlu1 %v19296_v43, %s17962_s13 }
0x34b4   :  { %17310 = vrot.lane.b32.xlu1 %v19296_v43, %s17964_s15  ;;  %17300 = vrot.lane.b32.xlu0 %v19069_v4, %s17966_s17 }
0x34b8   :  { %7188 = vrot.lane.b32.xlu1 %v19287_v56, %s17963_s14  ;;  %7186 = vrot.lane.b32.xlu0 %v19271_v9, %s17963_s14 }
0x352b   :  { %v6525_v15 = vpop.xlane.xlu0 %6524 }
0x352c   :  { %v6528_v36 = vpop.xlane.xlu1 %6527  ;;  %17636 = vrcp.f32 %v6525_v15 }
0x352d   :  { %17638 = vrcp.f32 %v6528_v36 }
0x352f   :  { %v17301_v53 = vpop.permute.xlu0 %17300 }
0x3530   :  { %v17306_v48 = vpop.permute.xlu1 %17305  ;;  %v17303_v7 = vunpack.i.h.bf16 %v17301_v53  ;;  %v17302_v47 = vunpack.i.l.bf16 %v17301_v53 }
0x3531   :  { %v17308_v62 = vunpack.i.h.bf16 %v17306_v48  ;;  %v17307_v0 = vunpack.i.l.bf16 %v17306_v48 }
0x3532   :  { %v16727_v54 = vpack.c.bf16 %v17303_v7, %v17302_v47 }
0x3533   :  { %v16749_v1 = vpack.c.bf16 %v17308_v62, %v17307_v0  ;;  %v7187_v50 = vpop.permute.xlu0 %7186 }
0x3534   :  { %v17311_v25 = vpop.permute.xlu1 %17310 }
0x3535   :  { %v17313_v6 = vunpack.i.h.bf16 %v17311_v25  ;;  %v17312_v24 = vunpack.i.l.bf16 %v17311_v25  ;;  %16751 = vmatprep.subr.msk.bf16.mxu0 %vm19113_vm10, %v16749_v1 }
0x3536   :  { %16754 = vmatpush3.bf16.xpose.msk.msra.mxu0 %vm19113_vm10, %v16749_v1  ;;  %v17637_v31 = vpop.eup %17636 }
0x3537   :  { %v16759_v60 = vpack.c.bf16 %v17313_v6, %v17312_v24  ;;  %v15873_v57 = vpop.f32.mrb[48].mxu1  ;;  %v6531_v45 = vmul.f32 %v17637_v31, %v19277_v41 }
0x3538   :  { %v15915_v33 = vpop.f32.mrb[76].mxu0  ;;  %v6245_v30 = vpop.f32.mrb[49].mxu1 }
0x3539   :  { %v6795_v42 = vmul.f32 0.25, %v15915_v33  ;;  %v6785_v58 = vpop.f32.mrb[77].mxu0  ;;  %16761 = vmatprep.subr.msk.bf16.mxu0 %vm19113_vm10, %v16759_v60  ;;  %15878 = vmatprep.mubr.msk.f32.mxu1 %vm728_vm6, %v6245_v30  ;;  %v7189_v2 = vpop.permute.xlu1 %7188 }
0x353a   :  { %v6794_v29 = vmul.f32 0.25, %v6785_v58  ;;  %15879 = vmatmul.mubr.msk.f32.vlgmr.msra.gmra.mrb[50].mxu1 %vm728_vm6, %v15873_v57 }
0x353b   :  { %v6797_v49 = vsel %vm19153_vm12, %v6795_v42, -3.4028235e+38  ;;  %16720 = vmatpush3.bf16.msra.mxu1 %v19316_v5  ;;  %15885 = vmatprep.mubr.msk.f32.mxu1 %vm728_vm6, %v19212_v18  ;;  %v17639_v18 = vpop.eup %17638 }
0x353c   :  { %v6796_v55 = vsel %vm19149_vm11, %v6794_v29, -3.4028235e+38  ;;  %v6801_v61 = vsel %vm728_vm6, %v6797_v49, -inf  ;;  %16728 = vmatprep.subr.bf16.mxu1 %v16727_v54  ;;  %v6532_v3 = vmul.f32 %v17639_v18, %v19279_v26 }
0x353d   :  { %6802 = vmax.xlane.f32.xlu1 %v6801_v61  ;;  %v6798_v20 = vsel %vm728_vm6, %v6796_v55, -inf  ;;  %15935 = vmatmul.mubr.msk.f32.vlgmr.msra.gmra.mrb[78].mxu0 %vm728_vm6, %v19287_v56 }
0x353e   :  { %6799 = vmax.xlane.f32.xlu0 %v6798_v20  ;;  %16764 = vmatpush3.bf16.xpose.msk.msra.mxu0 %vm19113_vm10, %v16759_v60 }
0x353f   :  { %15948 = vmatprep.mubr.msk.f32.mxu0 %vm728_vm6, %v7187_v50 }
0x3542   :  { %15886 = vmatmul.mubr.msk.f32.vlgmr.msra.gmra.mrb[50].mxu1 %vm728_vm6, %v19209_v12 }
0x3543   :  { %16730 = vmatpush3.bf16.msra.mxu1 %v16727_v54  ;;  %15899 = vmatprep.mubr.msk.f32.mxu1 %vm728_vm6, %v6531_v45  ;;  %v5851_v54 = vld [vmem:[%s19292_s8 + $0x38] sm:$0xff] }
0x3544   :  { %16732 = vmatprep.subr.bf16.mxu1 %v19352_v34 }
0x3545   :  { %15949 = vmatmul.mubr.msk.f32.vlgmr.msra.gmra.mrb[80].mxu0 %vm728_vm6, %v7189_v2 }
0x3546   :  { %15900 = vmatmul.mubr.msk.f32.vlgmr.msra.gmra.mrb[52].mxu1 %vm728_vm6, %v6532_v3 }
0x3547   :  { %16734 = vmatpush3.bf16.msra.mxu1 %v19352_v34 }
0x354e   :  { %17315 = vrot.lane.b32.xlu1 %v19069_v4, %s17969_s22 }
0x3552   :  { %7554 = vrot.lane.b32.xlu1 %v19271_v9, %s17966_s17 }
0x3556   :  { %7556 = vrot.lane.b32.xlu1 %v19287_v56, %s17966_s17 }
0x35ca   :  { %v6803_v12 = vpop.xlane.xlu1 %6802 }
0x35cb   :  { %v6805_v41 = vsub.f32 %v6797_v49, %v6803_v12  ;;  %v6800_v26 = vpop.xlane.xlu0 %6799  ;;  %v5850_v49 = vld [vmem:[%s19292_s8 + $0x30] sm:$0xff] }
0x35cc   :  { %v6804_v36 = vsub.f32 %v6796_v55, %v6800_v26  ;;  %v19373_v45 = vpack.c.bf16 %v5851_v54, %v5850_v49 }
0x35cd   :  { %v6808_v15 = vmul.f32 1.442695, %v6805_v41 }
0x35ce   :  { %v6806_v4 = vmul.f32 1.442695, %v6804_v36  ;;  %v17316_v48 = vpop.permute.xlu1 %17315 }
0x35cf   :  { %v17318_v62 = vunpack.i.h.bf16 %v17316_v48  ;;  %v17317_v0 = vunpack.i.l.bf16 %v17316_v48 }
0x35d0   :  { %17640 = vpow2.f32 %v6806_v4 }
0x35d1   :  { %v16741_v1 = vpack.c.bf16 %v17318_v62, %v17317_v0  ;;  %17642 = vpow2.f32 %v6808_v15 }
0x35d2   :  { %v7555_v53 = vpop.permute.xlu1 %7554 }
0x35d3   :  { %16742 = vmatprep.subr.bf16.mxu1 %v16741_v1  ;;  %15976 = vmatprep.mubr.msk.f32.mxu0 %vm728_vm6, %v7555_v53 }
0x35d6   :  { %v7557_v53 = vpop.permute.xlu1 %7556 }
0x35da   :  { %v17641_v25 = vpop.eup %17640 }
0x35db   :  { %v6810_v6 = vsel %vm728_vm6, %v17641_v25, 0.0  ;;  %v17643_v24 = vpop.eup %17642 }
0x35dc   :  { %6811 = vadd.xlane.f32.xlu0 %v6810_v6  ;;  %v6813_v7 = vsel %vm728_vm6, %v17643_v24, 0.0 }
0x35e0   :  { %6814 = vadd.xlane.f32.xlu0 %v6813_v7 }
0x35f6   :  { %17320 = vrot.lane.b32.xlu0 %v19296_v43, %s17965_s16 }
0x3610   :  { %v15936_v47 = vpop.f32.mrb[78].mxu0 }
0x3611   :  { %v7080_v60 = vmul.f32 0.25, %v15936_v47  ;;  %v7070_v57 = vpop.f32.mrb[79].mxu0 }
0x3612   :  { %v7079_v33 = vmul.f32 0.25, %v7070_v57 }
0x3613   :  { %v7082_v42 = vsel %vm19153_vm12, %v7080_v60, -3.4028235e+38 }
0x3614   :  { %v7081_v30 = vsel %vm19149_vm11, %v7079_v33, -3.4028235e+38  ;;  %v7086_v58 = vsel %vm728_vm6, %v7082_v42, -inf }
0x3615   :  { %7087 = vmax.xlane.f32.xlu1 %v7086_v58  ;;  %v7083_v29 = vsel %vm728_vm6, %v7081_v30, -inf }
0x3616   :  { %7084 = vmax.xlane.f32.xlu0 %v7083_v29 }
0x3618   :  { %v15950_v55 = vpop.f32.mrb[80].mxu0 }
0x3619   :  { %v15901_v61 = vpop.f32.mrb[52].mxu1  ;;  %v7268_v20 = vpop.f32.mrb[81].mxu0  ;;  %v7278_v50 = vmul.f32 0.25, %v15950_v55 }
0x361a   :  { %v7277_v31 = vmul.f32 0.25, %v7268_v20  ;;  %v6611_v18 = vpop.f32.mrb[53].mxu1 }
0x361b   :  { %15906 = vmatprep.mubr.msk.f32.mxu1 %vm728_vm6, %v6611_v18  ;;  %v7280_v19 = vsel %vm19153_vm12, %v7278_v50, -3.4028235e+38 }
0x361c   :  { %v7279_v2 = vsel %vm19149_vm11, %v7277_v31, -3.4028235e+38  ;;  %15907 = vmatmul.mubr.msk.f32.vlgmr.msra.gmra.mrb[50].mxu1 %vm728_vm6, %v15901_v61  ;;  %v7284_v28 = vsel %vm728_vm6, %v7280_v19, -inf }
0x361d   :  { %16744 = vmatpush3.bf16.msra.mxu1 %v16741_v1  ;;  %v7281_v3 = vsel %vm728_vm6, %v7279_v2, -inf }
0x361e   :  { %7282 = vmax.xlane.f32.xlu0 %v7281_v3  ;;  %16746 = vmatprep.subr.bf16.mxu1 %v19373_v45 }
0x3622   :  { %7285 = vmax.xlane.f32.xlu0 %v7284_v28 }
0x3669   :  { %v6812_v12 = vpop.xlane.xlu0 %6811 }
0x366a   :  { %17644 = vrcp.f32 %v6812_v12 }
0x366d   :  { %v6815_v41 = vpop.xlane.xlu0 %6814 }
0x366e   :  { %17646 = vrcp.f32 %v6815_v41 }
0x3671   :  { %v17321_v26 = vpop.permute.xlu0 %17320 }
0x3672   :  { %v17323_v36 = vunpack.i.h.bf16 %v17321_v26  ;;  %v17322_v15 = vunpack.i.l.bf16 %v17321_v26 }
0x3674   :  { %v17645_v4 = vpop.eup %17644  ;;  %v16777_v48 = vpack.c.bf16 %v17323_v36, %v17322_v15 }
0x3675   :  { %v6818_v62 = vmul.f32 %v17645_v4, %v17641_v25 }
0x3676   :  { %16779 = vmatprep.subr.msk.bf16.mxu0 %vm19113_vm10, %v16777_v48 }
0x3677   :  { %15920 = vmatprep.mubr.msk.f32.mxu1 %vm728_vm6, %v6818_v62  ;;  %16782 = vmatpush3.bf16.xpose.msk.msra.mxu0 %vm19113_vm10, %v16777_v48 }
0x3678   :  { %v17647_v0 = vpop.eup %17646 }
0x3679   :  { %v6819_v1 = vmul.f32 %v17647_v0, %v17643_v24 }
0x367b   :  { %15921 = vmatmul.mubr.msk.f32.vlgmr.msra.gmra.mrb[54].mxu1 %vm728_vm6, %v6819_v1 }
0x367c   :  { %16748 = vmatpush3.bf16.msra.mxu1 %v19373_v45 }
0x367d   :  { %16756 = vmatprep.subr.bf16.mxu1 %v19245_v51 }
0x367e   :  { %15977 = vmatmul.mubr.msk.f32.vlgmr.msra.gmra.mrb[82].mxu0 %vm728_vm6, %v7557_v53 }
0x36a2   :  { %v7088_v25 = vpop.xlane.xlu1 %7087 }
0x36a3   :  { %v7090_v6 = vsub.f32 %v7082_v42, %v7088_v25  ;;  %v7085_v7 = vpop.xlane.xlu0 %7084 }
0x36a4   :  { %v7089_v47 = vsub.f32 %v7081_v30, %v7085_v7 }
0x36a5   :  { %v7093_v60 = vmul.f32 1.442695, %v7090_v6 }
0x36a6   :  { %v7091_v57 = vmul.f32 1.442695, %v7089_v47 }
0x36a7   :  { %17648 = vpow2.f32 %v7093_v60 }
0x36a8   :  { %17650 = vpow2.f32 %v7091_v57 }
0x36ab   :  { %v7283_v33 = vpop.xlane.xlu0 %7282 }
0x36ac   :  { %v7287_v58 = vsub.f32 %v7279_v2, %v7283_v33 }
0x36ae   :  { %v7289_v24 = vmul.f32 1.442695, %v7287_v58 }
0x36af   :  { %v7286_v29 = vpop.xlane.xlu0 %7285 }
0x36b0   :  { %17652 = vpow2.f32 %v7289_v24  ;;  %v7288_v49 = vsub.f32 %v7280_v19, %v7286_v29 }
0x36b1   :  { %v17649_v54 = vpop.eup %17648 }
0x36b2   :  { %v17651_v55 = vpop.eup %17650  ;;  %v7291_v61 = vmul.f32 1.442695, %v7288_v49  ;;  %v7098_v20 = vsel %vm728_vm6, %v17649_v54, 0.0 }
0x36b3   :  { %7099 = vadd.xlane.f32.xlu0 %v7098_v20  ;;  %v7095_v42 = vsel %vm728_vm6, %v17651_v55, 0.0  ;;  %v19435_v20 = vadd.f32 %v19249_v23, %v19050_v59 }
0x36b4   :  { %17654 = vpow2.f32 %v7291_v61  ;;  %7096 = vadd.xlane.f32.xlu1 %v7095_v42 }
0x36ba   :  { %v17653_v30 = vpop.eup %17652 }
0x36bb   :  { %v7293_v50 = vsel %vm728_vm6, %v17653_v30, 0.0 }
0x36bc   :  { %7294 = vadd.xlane.f32.xlu1 %v7293_v50 }
0x36be   :  { %v17655_v31 = vpop.eup %17654 }
0x36bf   :  { %v7296_v18 = vsel %vm728_vm6, %v17655_v31, 0.0 }
0x36c0   :  { %7297 = vadd.xlane.f32.xlu0 %v7296_v18 }
0x36cd   :  { %17325 = vrot.lane.b32.xlu1 %v19247_v14, %s17963_s14 }
0x36d1   :  { %7841 = vrot.lane.b32.xlu1 %v19271_v9, %s17969_s22 }
0x36d5   :  { %7843 = vrot.lane.b32.xlu1 %v19287_v56, %s17969_s22 }
0x36d6   :  { %17330 = vrot.lane.b32.xlu0 %v19296_v43, %s17970_s23 }
0x3740   :  { %v7100_v3 = vpop.xlane.xlu0 %7099 }
0x3741   :  { %v7097_v2 = vpop.xlane.xlu1 %7096 }
0x3742   :  { %17656 = vrcp.f32 %v7097_v2 }
0x3743   :  { %17658 = vrcp.f32 %v7100_v3 }
0x3749   :  { %v7295_v19 = vpop.xlane.xlu1 %7294 }
0x374a   :  { %17660 = vrcp.f32 %v7295_v19 }
0x374c   :  { %v17657_v28 = vpop.eup %17656 }
0x374d   :  { %v17326_v12 = vpop.permute.xlu1 %17325  ;;  %v7298_v41 = vpop.xlane.xlu0 %7297  ;;  %v7103_v48 = vmul.f32 %v17657_v28, %v17651_v55  ;;  %v19427_v55 = vadd.f32 %v19243_v40, %v19050_v59 }
0x374e   :  { %v17328_v26 = vunpack.i.h.bf16 %v17326_v12  ;;  %v17327_v36 = vunpack.i.l.bf16 %v17326_v12  ;;  %17662 = vrcp.f32 %v7298_v41  ;;  %v15922_v15 = vpop.f32.mrb[54].mxu1  ;;  %v17659_v4 = vpop.eup %17658 }
0x374f   :  { %v6898_v9 = vpop.f32.mrb[55].mxu1  ;;  %v7104_v60 = vmul.f32 %v17659_v4, %v17649_v54  ;;  %v19441_v42 = vpack.i.bf16 %v19435_v20, %v19427_v55 }
0x3750   :  { %15927 = vmatprep.mubr.msk.f32.mxu1 %vm728_vm6, %v6898_v9  ;;  %v16765_v43 = vpack.c.bf16 %v17328_v26, %v17327_v36 }
0x3751   :  { %v15978_v56 = vpop.f32.mrb[82].mxu0  ;;  %v7842_v62 = vpop.permute.xlu1 %7841  ;;  %15928 = vmatmul.mubr.msk.f32.vlgmr.msra.gmra.mrb[50].mxu1 %vm728_vm6, %v15922_v15 }
0x3752   :  { %v17331_v0 = vpop.permute.xlu0 %17330  ;;  %v7646_v1 = vmul.f32 0.25, %v15978_v56  ;;  %16758 = vmatpush3.bf16.msra.mxu1 %v19245_v51  ;;  %15941 = vmatprep.mubr.msk.f32.mxu1 %vm728_vm6, %v7103_v48  ;;  %v7636_v6 = vpop.f32.mrb[83].mxu0 }
0x3753   :  { %v17333_v53 = vunpack.i.h.bf16 %v17331_v0  ;;  %v17332_v25 = vunpack.i.l.bf16 %v17331_v0  ;;  %16766 = vmatprep.subr.bf16.mxu1 %v16765_v43  ;;  %v7645_v47 = vmul.f32 0.25, %v7636_v6  ;;  %15997 = vmatprep.mubr.msk.f32.mxu0 %vm728_vm6, %v7842_v62 }
0x3754   :  { %v7648_v7 = vsel %vm19153_vm12, %v7646_v1, -3.4028235e+38  ;;  %v17661_v57 = vpop.eup %17660 }
0x3755   :  { %v16791_v33 = vpack.c.bf16 %v17333_v53, %v17332_v25  ;;  %v7652_v58 = vsel %vm728_vm6, %v7648_v7, -inf  ;;  %v7647_v24 = vsel %vm19149_vm11, %v7645_v47, -3.4028235e+38  ;;  %15942 = vmatmul.mubr.msk.f32.vlgmr.msra.gmra.mrb[56].mxu1 %vm728_vm6, %v7104_v60  ;;  %v7301_v51 = vmul.f32 %v17661_v57, %v17653_v30  ;;  %v7844_v61 = vpop.permute.xlu1 %7843 }
0x3756   :  { %7653 = vmax.xlane.f32.xlu1 %v7652_v58  ;;  %16768 = vmatpush3.bf16.msra.mxu1 %v16765_v43  ;;  %v7649_v29 = vsel %vm728_vm6, %v7647_v24, -inf }
0x3757   :  { %16793 = vmatprep.subr.msk.bf16.mxu0 %vm19113_vm10, %v16791_v33  ;;  %7650 = vmax.xlane.f32.xlu0 %v7649_v29 }
0x3758   :  { %16796 = vmatpush3.bf16.xpose.msk.msra.mxu0 %vm19113_vm10, %v16791_v33  ;;  %v17663_v49 = vpop.eup %17662  ;;  %15955 = vmatprep.mubr.msk.f32.mxu1 %vm728_vm6, %v7301_v51 }
0x3759   :  { %16770 = vmatprep.subr.bf16.mxu1 %v19302_v10  ;;  %v7302_v54 = vmul.f32 %v17663_v49, %v17655_v31 }
0x375b   :  { %15956 = vmatmul.mubr.msk.f32.vlgmr.msra.gmra.mrb[58].mxu1 %vm728_vm6, %v7302_v54 }
0x375c   :  { %16772 = vmatpush3.bf16.msra.mxu1 %v19302_v10 }
0x375d   :  { %16774 = vmatprep.subr.bf16.mxu1 %v19316_v5 }
0x375f   :  { %15998 = vmatmul.mubr.msk.f32.vlgmr.msra.gmra.mrb[84].mxu0 %vm728_vm6, %v7844_v61 }
0x3760   :  { %16018 = vmatprep.mubr.msk.f32.mxu0 %vm728_vm6, %v19427_v55 }
0x3767   :  { %17335 = vrot.lane.b32.xlu1 %v19247_v14, %s17966_s17 }
0x376b   :  { %17345 = vrot.lane.b32.xlu1 %v19441_v42, %s17964_s15 }
0x376f   :  { %8324 = vrot.lane.b32.xlu1 %v19427_v55, %s17963_s14 }
0x37e3   :  { %v7654_v40 = vpop.xlane.xlu1 %7653 }
0x37e4   :  { %v7656_v30 = vsub.f32 %v7648_v7, %v7654_v40  ;;  %v7651_v50 = vpop.xlane.xlu0 %7650 }
0x37e5   :  { %v7655_v31 = vsub.f32 %v7647_v24, %v7651_v50 }
0x37e6   :  { %v7659_v18 = vmul.f32 1.442695, %v7656_v30 }
0x37e7   :  { %v7657_v59 = vmul.f32 1.442695, %v7655_v31  ;;  %v17336_v36 = vpop.permute.xlu1 %17335 }
0x37e8   :  { %v17338_v15 = vunpack.i.h.bf16 %v17336_v36  ;;  %v17337_v9 = vunpack.i.l.bf16 %v17336_v36 }
0x37e9   :  { %17664 = vpow2.f32 %v7657_v59 }
0x37ea   :  { %17666 = vpow2.f32 %v7659_v18  ;;  %v16783_v43 = vpack.c.bf16 %v17338_v15, %v17337_v9 }
0x37eb   :  { %v17346_v57 = vpop.permute.xlu1 %17345 }
0x37ec   :  { %v17348_v58 = vunpack.i.h.bf16 %v17346_v57  ;;  %v17347_v24 = vunpack.i.l.bf16 %v17346_v57 }
0x37ee   :  { %v16815_v40 = vpack.c.bf16 %v17348_v58, %v17347_v24 }
0x37ef   :  { %v8325_v31 = vpop.permute.xlu1 %8324 }
0x37f3   :  { %v17665_v23 = vpop.eup %17664 }
0x37f4   :  { %v7661_v2 = vsel %vm728_vm6, %v17665_v23, 0.0  ;;  %v17667_v3 = vpop.eup %17666 }
0x37f5   :  { %7662 = vadd.xlane.f32.xlu0 %v7661_v2  ;;  %v7664_v19 = vsel %vm728_vm6, %v17667_v3, 0.0 }
0x37f9   :  { %7665 = vadd.xlane.f32.xlu0 %v7664_v19 }
0x380f   :  { %17340 = vrot.lane.b32.xlu0 %v19441_v42, %s17962_s13 }
0x3813   :  { %8326 = vrot.lane.b32.xlu0 %v19435_v20, %s17963_s14 }
0x3824   :  { %v19453_v28 = vpop.f32.mrb[50].mxu1 }
0x3825   :  { %v19455_v12 = vpop.f32.mrb[51].mxu1 }
0x3828   :  { %v15943_v41 = vpop.f32.mrb[56].mxu1 }
0x3829   :  { %v7177_v26 = vpop.f32.mrb[57].mxu1 }
0x382e   :  { %v15957_v4 = vpop.f32.mrb[58].mxu1 }
0x382f   :  { %v7383_v56 = vpop.f32.mrb[59].mxu1 }
0x3830   :  { %15962 = vmatprep.mubr.msk.f32.mxu1 %vm728_vm6, %v7383_v56 }
0x3831   :  { %15963 = vmatmul.mubr.msk.f32.vlgmr.msra.gmra.mrb[60].mxu1 %vm728_vm6, %v15957_v4 }
0x3832   :  { %v15999_v48 = vpop.f32.mrb[84].mxu0  ;;  %16776 = vmatpush3.bf16.msra.mxu1 %v19316_v5  ;;  %15969 = vmatprep.mubr.msk.f32.mxu1 %vm728_vm6, %v7177_v26 }
0x3833   :  { %v7933_v62 = vmul.f32 0.25, %v15999_v48  ;;  %v7923_v0 = vpop.f32.mrb[85].mxu0  ;;  %16784 = vmatprep.subr.bf16.mxu1 %v16783_v43 }
0x3834   :  { %v7932_v1 = vmul.f32 0.25, %v7923_v0 }
0x3835   :  { %v7935_v53 = vsel %vm19153_vm12, %v7933_v62, -3.4028235e+38 }
0x3836   :  { %v7934_v25 = vsel %vm19149_vm11, %v7932_v1, -3.4028235e+38  ;;  %v7939_v6 = vsel %vm728_vm6, %v7935_v53, -inf }
0x3837   :  { %7940 = vmax.xlane.f32.xlu0 %v7939_v6  ;;  %v7936_v7 = vsel %vm728_vm6, %v7934_v25, -inf }
0x3838   :  { %7937 = vmax.xlane.f32.xlu1 %v7936_v7 }
0x3839   :  { %15970 = vmatmul.mubr.msk.f32.vlgmr.msra.gmra.mrb[60].mxu1 %vm728_vm6, %v15943_v41 }
0x383a   :  { %16786 = vmatpush3.bf16.msra.mxu1 %v16783_v43 }
0x383b   :  { %16788 = vmatprep.subr.bf16.mxu1 %v19352_v34 }
0x3882   :  { %v7663_v47 = vpop.xlane.xlu0 %7662 }
0x3883   :  { %17668 = vrcp.f32 %v7663_v47 }
0x3886   :  { %v7666_v60 = vpop.xlane.xlu0 %7665 }
0x3887   :  { %17670 = vrcp.f32 %v7666_v60 }
0x388a   :  { %v17341_v33 = vpop.permute.xlu0 %17340 }
0x388b   :  { %v17343_v51 = vunpack.i.h.bf16 %v17341_v33  ;;  %v17342_v29 = vunpack.i.l.bf16 %v17341_v33 }
0x388d   :  { %v17669_v49 = vpop.eup %17668  ;;  %v16805_v54 = vpack.c.bf16 %v17343_v51, %v17342_v29 }
0x388e   :  { %v7669_v61 = vmul.f32 %v17669_v49, %v17665_v23  ;;  %v8327_v18 = vpop.permute.xlu0 %8326 }
0x388f   :  { %16807 = vmatprep.subr.msk.bf16.mxu0 %vm19113_vm10, %v16805_v54 }
0x3890   :  { %15983 = vmatprep.mubr.msk.f32.mxu1 %vm728_vm6, %v7669_v61  ;;  %16810 = vmatpush3.bf16.xpose.msk.msra.mxu0 %vm19113_vm10, %v16805_v54 }
0x3891   :  { %v17671_v30 = vpop.eup %17670  ;;  %16817 = vmatprep.subr.msk.bf16.mxu0 %vm19113_vm10, %v16815_v40 }
0x3892   :  { %v7670_v50 = vmul.f32 %v17671_v30, %v17667_v3 }
0x3894   :  { %15984 = vmatmul.mubr.msk.f32.vlgmr.msra.gmra.mrb[62].mxu1 %vm728_vm6, %v7670_v50 }
0x3895   :  { %16790 = vmatpush3.bf16.msra.mxu1 %v19352_v34 }
0x3897   :  { %16019 = vmatmul.mubr.msk.f32.vlgmr.msra.gmra.mrb[86].mxu0 %vm728_vm6, %v19435_v20 }
0x3898   :  { %16820 = vmatpush3.bf16.xpose.msk.msra.mxu0 %vm19113_vm10, %v16815_v40  ;;  %16032 = vmatprep.mubr.msk.f32.mxu0 %vm728_vm6, %v8325_v31 }
0x389f   :  { %16033 = vmatmul.mubr.msk.f32.vlgmr.msra.gmra.mrb[88].mxu0 %vm728_vm6, %v8327_v18 }
0x38c4   :  { %v7941_v59 = vpop.xlane.xlu0 %7940 }
0x38c5   :  { %v7943_v23 = vsub.f32 %v7935_v53, %v7941_v59  ;;  %v7938_v2 = vpop.xlane.xlu1 %7937 }
0x38c6   :  { %v7942_v3 = vsub.f32 %v7934_v25, %v7938_v2 }
0x38c7   :  { %v7946_v19 = vmul.f32 1.442695, %v7943_v23 }
0x38c8   :  { %v7944_v41 = vmul.f32 1.442695, %v7942_v3 }
0x38c9   :  { %17672 = vpow2.f32 %v7946_v19 }
0x38ca   :  { %17674 = vpow2.f32 %v7944_v41 }
0x38d3   :  { %v17673_v26 = vpop.eup %17672 }
0x38d4   :  { %v17675_v36 = vpop.eup %17674  ;;  %v7951_v15 = vsel %vm728_vm6, %v17673_v26, 0.0 }
0x38d5   :  { %7952 = vadd.xlane.f32.xlu1 %v7951_v15  ;;  %v7948_v9 = vsel %vm728_vm6, %v17675_v36, 0.0 }
0x38d6   :  { %7949 = vadd.xlane.f32.xlu0 %v7948_v9 }
0x38e6   :  { %17355 = vrot.lane.b32.xlu1 %v19441_v42, %s17965_s16 }
0x38ea   :  { %8692 = vrot.lane.b32.xlu1 %v19427_v55, %s17966_s17 }
0x38ec   :  { %17350 = vrot.lane.b32.xlu0 %v19247_v14, %s17969_s22 }
0x38f0   :  { %8694 = vrot.lane.b32.xlu0 %v19435_v20, %s17966_s17 }
0x3962   :  { %v7953_v4 = vpop.xlane.xlu1 %7952 }
0x3963   :  { %17676 = vrcp.f32 %v7953_v4  ;;  %v7950_v56 = vpop.xlane.xlu0 %7949 }
0x3964   :  { %17678 = vrcp.f32 %v7950_v56 }
0x3966   :  { %v17356_v48 = vpop.permute.xlu1 %17355 }
0x3967   :  { %v17358_v43 = vunpack.i.h.bf16 %v17356_v48  ;;  %v17357_v62 = vunpack.i.l.bf16 %v17356_v48  ;;  %v17351_v0 = vpop.permute.xlu0 %17350  ;;  %v15985_v25 = vpop.f32.mrb[62].mxu1 }
0x3968   :  { %v17353_v1 = vunpack.i.h.bf16 %v17351_v0  ;;  %v17352_v53 = vunpack.i.l.bf16 %v17351_v0  ;;  %v7749_v7 = vpop.f32.mrb[63].mxu1 }
0x3969   :  { %v16833_v6 = vpack.c.bf16 %v17358_v43, %v17357_v62  ;;  %15990 = vmatprep.mubr.msk.f32.mxu1 %vm728_vm6, %v7749_v7 }
0x396a   :  { %v8693_v47 = vpop.permute.xlu1 %8692  ;;  %v16797_v14 = vpack.c.bf16 %v17353_v1, %v17352_v53  ;;  %15991 = vmatmul.mubr.msk.f32.vlgmr.msra.gmra.mrb[60].mxu1 %vm728_vm6, %v15985_v25  ;;  %v16020_v60 = vpop.f32.mrb[86].mxu0 }
0x396b   :  { %16835 = vmatprep.subr.msk.bf16.mxu0 %vm19113_vm10, %v16833_v6  ;;  %v8218_v57 = vmul.f32 0.25, %v16020_v60  ;;  %16060 = vmatprep.mubr.msk.f32.mxu0 %vm728_vm6, %v8693_v47  ;;  %v8208_v33 = vpop.f32.mrb[87].mxu0  ;;  %v8695_v50 = vpop.permute.xlu0 %8694 }
0x396c   :  { %16798 = vmatprep.subr.bf16.mxu1 %v16797_v14  ;;  %v8217_v24 = vmul.f32 0.25, %v8208_v33  ;;  %16838 = vmatpush3.bf16.xpose.msk.msra.mxu0 %vm19113_vm10, %v16833_v6 }
0x396d   :  { %v17677_v58 = vpop.eup %17676  ;;  %16800 = vmatpush3.bf16.msra.mxu1 %v16797_v14  ;;  %v8220_v29 = vsel %vm19153_vm12, %v8218_v57, -3.4028235e+38 }
0x396e   :  { %v17679_v51 = vpop.eup %17678  ;;  %16802 = vmatprep.subr.bf16.mxu1 %v19373_v45  ;;  %v8219_v49 = vsel %vm19149_vm11, %v8217_v24, -3.4028235e+38  ;;  %v8224_v54 = vsel %vm728_vm6, %v8220_v29, -inf  ;;  %v7957_v30 = vmul.f32 %v17677_v58, %v17673_v26 }
0x396f   :  { %v7956_v61 = vmul.f32 %v17679_v51, %v17675_v36  ;;  %8225 = vmax.xlane.f32.xlu0 %v8224_v54  ;;  %v8221_v40 = vsel %vm728_vm6, %v8219_v49, -inf }
0x3970   :  { %8222 = vmax.xlane.f32.xlu1 %v8221_v40 }
0x3971   :  { %16004 = vmatprep.mubr.msk.f32.mxu1 %vm728_vm6, %v7956_v61 }
0x3972   :  { %16005 = vmatmul.mubr.msk.f32.vlgmr.msra.gmra.mrb[64].mxu1 %vm728_vm6, %v7957_v30  ;;  %v16034_v31 = vpop.f32.mrb[88].mxu0 }
0x3973   :  { %16804 = vmatpush3.bf16.msra.mxu1 %v19373_v45  ;;  %v8416_v18 = vmul.f32 0.25, %v16034_v31  ;;  %16061 = vmatmul.mubr.msk.f32.vlgmr.msra.gmra.mrb[90].mxu0 %vm728_vm6, %v8695_v50  ;;  %v8406_v59 = vpop.f32.mrb[89].mxu0 }
0x3974   :  { %16812 = vmatprep.subr.bf16.mxu1 %v19253_v27  ;;  %v8415_v23 = vmul.f32 0.25, %v8406_v59 }
0x3975   :  { %v8418_v2 = vsel %vm19153_vm12, %v8416_v18, -3.4028235e+38 }
0x3976   :  { %v8417_v3 = vsel %vm19149_vm11, %v8415_v23, -3.4028235e+38  ;;  %v8422_v19 = vsel %vm728_vm6, %v8418_v2, -inf }
0x3977   :  { %8423 = vmax.xlane.f32.xlu1 %v8422_v19  ;;  %v8419_v41 = vsel %vm728_vm6, %v8417_v3, -inf }
0x3978   :  { %8420 = vmax.xlane.f32.xlu0 %v8419_v41 }
0x39fc   :  { %v8226_v26 = vpop.xlane.xlu0 %8225 }
0x39fd   :  { %v8228_v36 = vsub.f32 %v8220_v29, %v8226_v26  ;;  %v8223_v15 = vpop.xlane.xlu1 %8222 }
0x39fe   :  { %v8227_v9 = vsub.f32 %v8219_v49, %v8223_v15 }
0x39ff   :  { %v8231_v4 = vmul.f32 1.442695, %v8228_v36 }
0x3a00   :  { %v8229_v56 = vmul.f32 1.442695, %v8227_v9 }
0x3a01   :  { %17680 = vpow2.f32 %v8231_v4 }
0x3a02   :  { %17682 = vpow2.f32 %v8229_v56 }
0x3a04   :  { %v8424_v48 = vpop.xlane.xlu1 %8423 }
0x3a05   :  { %v8426_v43 = vsub.f32 %v8418_v2, %v8424_v48  ;;  %v8421_v62 = vpop.xlane.xlu0 %8420 }
0x3a06   :  { %v8425_v0 = vsub.f32 %v8417_v3, %v8421_v62 }
0x3a07   :  { %v8429_v1 = vmul.f32 1.442695, %v8426_v43 }
0x3a08   :  { %v8427_v53 = vmul.f32 1.442695, %v8425_v0 }
0x3a09   :  { %17684 = vpow2.f32 %v8429_v1 }
0x3a0a   :  { %17686 = vpow2.f32 %v8427_v53 }
0x3a0b   :  { %v17681_v25 = vpop.eup %17680 }
0x3a0c   :  { %v17683_v6 = vpop.eup %17682  ;;  %v8236_v7 = vsel %vm728_vm6, %v17681_v25, 0.0 }
0x3a0d   :  { %8237 = vadd.xlane.f32.xlu1 %v8236_v7  ;;  %v8233_v47 = vsel %vm728_vm6, %v17683_v6, 0.0 }
0x3a0e   :  { %8234 = vadd.xlane.f32.xlu0 %v8233_v47 }
0x3a13   :  { %v17685_v14 = vpop.eup %17684 }
0x3a14   :  { %v17687_v60 = vpop.eup %17686  ;;  %v8434_v57 = vsel %vm728_vm6, %v17685_v14, 0.0 }
0x3a15   :  { %8435 = vadd.xlane.f32.xlu1 %v8434_v57  ;;  %v8431_v33 = vsel %vm728_vm6, %v17687_v60, 0.0 }
0x3a16   :  { %8432 = vadd.xlane.f32.xlu0 %v8431_v33 }
0x3a26   :  { %17365 = vrot.lane.b32.xlu1 %v19441_v42, %s17970_s23 }
0x3a2a   :  { %8979 = vrot.lane.b32.xlu1 %v19427_v55, %s17969_s22 }
0x3a2c   :  { %17360 = vrot.lane.b32.xlu0 %v19255_v35, %s17963_s14 }
0x3a30   :  { %8981 = vrot.lane.b32.xlu0 %v19435_v20, %s17969_s22 }
0x3a45   :  { %v16006_v58 = vpop.f32.mrb[64].mxu1 }
0x3a46   :  { %v8036_v24 = vpop.f32.mrb[65].mxu1  ;;  %v16062_v51 = vpop.f32.mrb[90].mxu0 }
0x3a47   :  { %16011 = vmatprep.mubr.msk.f32.mxu1 %vm728_vm6, %v8036_v24  ;;  %v8784_v29 = vmul.f32 0.25, %v16062_v51  ;;  %v8774_v49 = vpop.f32.mrb[91].mxu0 }
0x3a48   :  { %16012 = vmatmul.mubr.msk.f32.vlgmr.msra.gmra.mrb[60].mxu1 %vm728_vm6, %v16006_v58  ;;  %v8783_v54 = vmul.f32 0.25, %v8774_v49 }
0x3a49   :  { %16814 = vmatpush3.bf16.msra.mxu1 %v19253_v27  ;;  %v8786_v42 = vsel %vm19153_vm12, %v8784_v29, -3.4028235e+38 }
0x3a4a   :  { %v8785_v55 = vsel %vm19149_vm11, %v8783_v54, -3.4028235e+38  ;;  %v8790_v61 = vsel %vm728_vm6, %v8786_v42, -inf }
0x3a4b   :  { %v8787_v20 = vsel %vm728_vm6, %v8785_v55, -inf }
0x3a4e   :  { %8788 = vmax.xlane.f32.xlu1 %v8787_v20 }
0x3a4f   :  { %8791 = vmax.xlane.f32.xlu0 %v8790_v61 }
0x3a9a   :  { %v8238_v40 = vpop.xlane.xlu1 %8237 }
0x3a9b   :  { %17688 = vrcp.f32 %v8238_v40  ;;  %v8235_v30 = vpop.xlane.xlu0 %8234 }
0x3a9c   :  { %17690 = vrcp.f32 %v8235_v30 }
0x3aa2   :  { %v8436_v50 = vpop.xlane.xlu1 %8435 }
0x3aa3   :  { %17692 = vrcp.f32 %v8436_v50  ;;  %v8433_v31 = vpop.xlane.xlu0 %8432  ;;  %v19569_v50 = vld [vmem:[%s19565_s2] ss:$0 sm:$0xff] }
0x3aa4   :  { %17694 = vrcp.f32 %v8433_v31 }
0x3aa5   :  { %v17689_v27 = vpop.eup %17688 }
0x3aa6   :  { %v17691_v18 = vpop.eup %17690  ;;  %v17366_v59 = vpop.permute.xlu1 %17365  ;;  %v8242_v36 = vmul.f32 %v17689_v27, %v17681_v25 }
0x3aa7   :  { %v17368_v23 = vunpack.i.h.bf16 %v17366_v59  ;;  %v17367_v2 = vunpack.i.l.bf16 %v17366_v59  ;;  %v17361_v3 = vpop.permute.xlu0 %17360  ;;  %v8241_v19 = vmul.f32 %v17691_v18, %v17683_v6 }
0x3aa8   :  { %v17363_v41 = vunpack.i.h.bf16 %v17361_v3  ;;  %v17362_v26 = vunpack.i.l.bf16 %v17361_v3 }
0x3aa9   :  { %v16847_v15 = vpack.c.bf16 %v17368_v23, %v17367_v2  ;;  %16025 = vmatprep.mubr.msk.f32.mxu1 %vm728_vm6, %v8241_v19  ;;  %v9273_v23 = vadd.f32 %v19569_v50, %v19455_v12 }
0x3aaa   :  { %v8980_v9 = vpop.permute.xlu1 %8979  ;;  %16026 = vmatmul.mubr.msk.f32.vlgmr.msra.gmra.mrb[66].mxu1 %vm728_vm6, %v8242_v36  ;;  %v16821_v4 = vpack.c.bf16 %v17363_v41, %v17362_v26 }
0x3aab   :  { %16849 = vmatprep.subr.msk.bf16.mxu0 %vm19113_vm10, %v16847_v15  ;;  %16081 = vmatprep.mubr.msk.f32.mxu0 %vm728_vm6, %v8980_v9  ;;  %v8982_v0 = vpop.permute.xlu0 %8981  ;;  %v19584_v26 = vadd.f32 %v9273_v23, %v18946_v32  ;;  %v9400_v23 = vld [vmem:[%s19629_s11 + $0x58] sm:$0xff] }
0x3aac   :  { %16822 = vmatprep.subr.bf16.mxu1 %v16821_v4  ;;  %16852 = vmatpush3.bf16.xpose.msk.msra.mxu0 %vm19113_vm10, %v16847_v15 }
0x3aad   :  { %v17693_v56 = vpop.eup %17692  ;;  %16824 = vmatpush3.bf16.msra.mxu1 %v16821_v4 }
0x3aae   :  { %v17695_v48 = vpop.eup %17694  ;;  %16826 = vmatprep.subr.bf16.mxu1 %v19302_v10  ;;  %v8440_v62 = vmul.f32 %v17693_v56, %v17685_v14 }
0x3aaf   :  { %v8439_v43 = vmul.f32 %v17695_v48, %v17687_v60 }
0x3ab1   :  { %16039 = vmatprep.mubr.msk.f32.mxu1 %vm728_vm6, %v8439_v43 }
0x3ab2   :  { %16040 = vmatmul.mubr.msk.f32.vlgmr.msra.gmra.mrb[68].mxu1 %vm728_vm6, %v8440_v62 }
0x3ab3   :  { %16082 = vmatmul.mubr.msk.f32.vlgmr.msra.gmra.mrb[92].mxu0 %vm728_vm6, %v8982_v0  ;;  %16828 = vmatpush3.bf16.msra.mxu1 %v19302_v10 }
0x3ab4   :  { %16830 = vmatprep.subr.bf16.mxu1 %v19316_v5  ;;  %9499 = vmatprep.mubr.f32.mxu0 %v17957_v37 }
0x3adb   :  { %v8789_v1 = vpop.xlane.xlu1 %8788 }
0x3adc   :  { %v8793_v53 = vsub.f32 %v8785_v55, %v8789_v1  ;;  %v8792_v25 = vpop.xlane.xlu0 %8791 }
0x3add   :  { %v8794_v6 = vsub.f32 %v8786_v42, %v8792_v25 }
0x3ade   :  { %v8795_v7 = vmul.f32 1.442695, %v8793_v53 }
0x3adf   :  { %v8797_v47 = vmul.f32 1.442695, %v8794_v6 }
0x3ae0   :  { %17696 = vpow2.f32 %v8795_v7 }
0x3ae1   :  { %17698 = vpow2.f32 %v8797_v47 }
0x3aea   :  { %v17697_v14 = vpop.eup %17696 }
0x3aeb   :  { %v17699_v60 = vpop.eup %17698  ;;  %v8799_v57 = vsel %vm728_vm6, %v17697_v14, 0.0 }
0x3aec   :  { %8800 = vadd.xlane.f32.xlu0 %v8799_v57  ;;  %v8802_v33 = vsel %vm728_vm6, %v17699_v60, 0.0 }
0x3aed   :  { %8803 = vadd.xlane.f32.xlu1 %v8802_v33 }
0x3b02   :  { %17370 = vrot.lane.b32.xlu0 %v19255_v35, %s17966_s17 }
0x3b1b   :  { %v19558_v10 = vpop.f32.mrb[60].mxu1 }
0x3b1c   :  { %v19560_v58 = vpop.f32.mrb[61].mxu1 }
0x3b79   :  { %v8801_v24 = vpop.xlane.xlu0 %8800 }
0x3b7a   :  { %17700 = vrcp.f32 %v8801_v24  ;;  %v8804_v54 = vpop.xlane.xlu1 %8803 }
0x3b7b   :  { %17702 = vrcp.f32 %v8804_v54  ;;  %v9392_v54 = vld [vmem:[%s19629_s11 + $0x18] sm:$0xff] }
0x3b7d   :  { %v16027_v51 = vpop.f32.mrb[66].mxu1  ;;  %v17371_v49 = vpop.permute.xlu0 %17370 }
0x3b7e   :  { %v8315_v29 = vpop.f32.mrb[67].mxu1  ;;  %v17373_v55 = vunpack.i.h.bf16 %v17371_v49  ;;  %v17372_v42 = vunpack.i.l.bf16 %v17371_v49 }
0x3b80   :  { %v16839_v18 = vpack.c.bf16 %v17373_v55, %v17372_v42  ;;  %v9389_v42 = vld [vmem:[%s19629_s11] sm:$0xff] }
0x3b84   :  { %v17701_v3 = vpop.eup %17700 }
0x3b85   :  { %v16041_v20 = vpop.f32.mrb[68].mxu1  ;;  %v17703_v41 = vpop.eup %17702  ;;  %v8807_v15 = vmul.f32 %v17701_v3, %v17697_v14  ;;  %v9397_v3 = vld [vmem:[%s19629_s11 + $0x40] sm:$0xff] }
0x3b86   :  { %v8521_v61 = vpop.f32.mrb[69].mxu1  ;;  %v16083_v40 = vpop.f32.mrb[92].mxu0  ;;  %v8808_v12 = vmul.f32 %v17703_v41, %v17699_v60 }
0x3b87   :  { %16046 = vmatprep.mubr.msk.f32.mxu1 %vm728_vm6, %v8521_v61  ;;  %v9061_v30 = vpop.f32.mrb[93].mxu0  ;;  %v9071_v31 = vmul.f32 0.25, %v16083_v40  ;;  %v9394_v40 = vld [vmem:[%s19629_s11 + $0x28] sm:$0xff] }
0x3b88   :  { %v9070_v27 = vmul.f32 0.25, %v9061_v30  ;;  %16047 = vmatmul.mubr.msk.f32.vlgmr.msra.gmra.mrb[70].mxu1 %vm728_vm6, %v16041_v20  ;;  %v9391_v20 = vld [vmem:[%s19629_s11 + $0x10] sm:$0xff]  ;;  %v9396_v30 = vld [vmem:[%s19629_s11 + $0x38] sm:$0xff] }
0x3b89   :  { %16832 = vmatpush3.bf16.msra.mxu1 %v19316_v5  ;;  %16053 = vmatprep.mubr.msk.f32.mxu1 %vm728_vm6, %v8315_v29  ;;  %v9073_v19 = vsel %vm19153_vm12, %v9071_v31, -3.4028235e+38  ;;  %v9274_v5 = vadd.f32 %v19453_v28, %v19569_v50  ;;  %v9287_v28 = vsel %vm517_vm3, %v19584_v26, 0.0  ;;  %v16863_v61 = vpack.c.bf16 %v9391_v20, %v9389_v42 }
0x3b8a   :  { %v9072_v59 = vsel %vm19149_vm11, %v9070_v27, -3.4028235e+38  ;;  %16840 = vmatprep.subr.bf16.mxu1 %v16839_v18  ;;  %v9077_v36 = vsel %vm728_vm6, %v9073_v19, -inf  ;;  %v16865_v31 = vpack.c.bf16 %v9396_v30, %v9394_v40  ;;  %v9393_v27 = vld [vmem:[%s19629_s11 + $0x20] sm:$0xff] }
0x3b8b   :  { %v9074_v2 = vsel %vm728_vm6, %v9072_v59, -inf  ;;  %v19591_v9 = vadd.f32 %v9274_v5, %v18952_v17  ;;  %v9402_v5 = vld [vmem:[%s19629_s11 + $0x68] sm:$0xff] }
0x3b8c   :  { %9075 = vmax.xlane.f32.xlu1 %v9074_v2 }
0x3b8d   :  { %v9290_v32 = vsel %vm517_vm3, %v19591_v9, 0.0 }
0x3b90   :  { %9078 = vmax.xlane.f32.xlu1 %v9077_v36  ;;  %16054 = vmatmul.mubr.msk.f32.vlgmr.msra.gmra.mrb[70].mxu1 %vm728_vm6, %v16027_v51  ;;  %v9404_v36 = vld [vmem:[%s19629_s11 + $0x78] sm:$0xff] }
0x3b91   :  { %16842 = vmatpush3.bf16.msra.mxu1 %v16839_v18  ;;  %16067 = vmatprep.mubr.msk.f32.mxu1 %vm728_vm6, %v8807_v15  ;;  %v9401_v15 = vld [vmem:[%s19629_s11 + $0x60] sm:$0xff] }
0x3b92   :  { %16844 = vmatprep.subr.bf16.mxu1 %v19352_v34 }
0x3b94   :  { %9288 = vadd.xlane.f32.xlu1 %v9287_v28  ;;  %16068 = vmatmul.mubr.msk.f32.vlgmr.msra.gmra.mrb[72].mxu1 %vm728_vm6, %v8808_v12  ;;  %v16873_v12 = vpack.c.bf16 %v9404_v36, %v9402_v5  ;;  %v9403_v28 = vld [vmem:[%s19629_s11 + $0x70] sm:$0xff]  ;;  %v9635_v5 = vld [vmem:[%s19694_s12 + $0x18] sm:$0xff]  ;;  %v9652_v36 = vld [vmem:[%s19694_s12 + $0xa0] sm:$0xff] }
0x3b95   :  { %16846 = vmatpush3.bf16.msra.mxu1 %v19352_v34  ;;  %v9276_v34 = vadd.f32 %v19558_v10, %v19569_v50 }
0x3b97   :  { %v19616_v33 = vadd.f32 %v9276_v34, %v19176_v8  ;;  %v9390_v8 = vld [vmem:[%s19629_s11 + $0x8] sm:$0xff] }
0x3b98   :  { %9291 = vadd.xlane.f32.xlu1 %v9290_v32  ;;  %v16861_v55 = vpack.c.bf16 %v9392_v54, %v9390_v8  ;;  %v16875_v32 = vpack.c.bf16 %v9403_v28, %v9401_v15  ;;  %v9653_v15 = vld [vmem:[%s19694_s12 + $0xa8] sm:$0xff] }
0x3b99   :  { %v9296_v29 = vsel %vm517_vm3, %v19616_v33, 0.0 }
0x3b9a   :  { %16862 = vmatprep.subr.bf16.mxu0 %v16861_v55 }
0x3b9b   :  { %16864 = vmatpush1.bf16.msra.mxu0 %v16863_v61  ;;  %v19682_v61 = vld [vmem:[%s19670_s5] ss:$0 sm:$0xff] }
0x3b9c   :  { %16866 = vmatprep.subr.bf16.mxu0 %v16865_v31 }
0x3c19   :  { %v9076_v4 = vpop.xlane.xlu1 %9075 }
0x3c1a   :  { %v9080_v56 = vsub.f32 %v9072_v59, %v9076_v4  ;;  %v9398_v59 = vld [vmem:[%s19629_s11 + $0x48] sm:$0xff]  ;;  %v9275_v4 = vadd.f32 %v19569_v50, %v19560_v58 }
0x3c1b   :  { %v16869_v2 = vpack.c.bf16 %v9400_v23, %v9398_v59  ;;  %v9651_v59 = vld [vmem:[%s19694_s12 + $0x98] sm:$0xff] }
0x3c1c   :  { %v9082_v48 = vmul.f32 1.442695, %v9080_v56  ;;  %v19652_v56 = vadd.f32 %v9275_v4, %v19093_v63  ;;  %v9636_v4 = vld [vmem:[%s19694_s12 + $0x20] sm:$0xff] }
0x3c1d   :  { %v9079_v43 = vpop.xlane.xlu1 %9078 }
0x3c1e   :  { %17704 = vpow2.f32 %v9082_v48  ;;  %v9081_v62 = vsub.f32 %v9073_v19, %v9079_v43  ;;  %v9399_v19 = vld [vmem:[%s19629_s11 + $0x50] sm:$0xff]  ;;  %v9293_v48 = vsel %vm517_vm3, %v19652_v56, 0.0 }
0x3c1f   :  { %v16871_v41 = vpack.c.bf16 %v9399_v19, %v9397_v3 }
0x3c20   :  { %v9084_v17 = vmul.f32 1.442695, %v9081_v62 }
0x3c21   :  { %v9289_v0 = vpop.xlane.xlu1 %9288 }
0x3c22   :  { %17706 = vpow2.f32 %v9084_v17  ;;  %v9305_v1 = vmul.f32 0.015625, %v9289_v0 }
0x3c24   :  { %v19607_v47 = vsub.f32 %v19584_v26, %v9305_v1 }
0x3c25   :  { %v9292_v53 = vpop.xlane.xlu1 %9291 }
0x3c26   :  { %v9306_v25 = vmul.f32 0.015625, %v9292_v53  ;;  %v9317_v51 = vmul.f32 %v19607_v47, %v19607_v47 }
0x3c28   :  { %v19599_v6 = vpop.eup %17704  ;;  %v19604_v7 = vsub.f32 %v19591_v9, %v9306_v25  ;;  %v9323_v49 = vsel %vm517_vm3, %v9317_v51, 0.0 }
0x3c29   :  { %v9086_v14 = vsel %vm728_vm6, %v19599_v6, 0.0 }
0x3c2a   :  { %9087 = vadd.xlane.f32.xlu1 %v9086_v14  ;;  %v9318_v60 = vmul.f32 %v19604_v7, %v19604_v7 }
0x3c2c   :  { %v19613_v57 = vpop.eup %17706  ;;  %v9326_v10 = vsel %vm517_vm3, %v9318_v60, 0.0 }
0x3c2d   :  { %9327 = vadd.xlane.f32.xlu0 %v9326_v10  ;;  %v9089_v24 = vsel %vm728_vm6, %v19613_v57, 0.0 }
0x3c2e   :  { %9090 = vadd.xlane.f32.xlu1 %v9089_v24 }
0x3c31   :  { %9297 = vadd.xlane.f32.xlu0 %v9296_v29 }
0x3c32   :  { %9324 = vadd.xlane.f32.xlu1 %v9323_v49 }
0x3c43   :  { %17375 = vrot.lane.b32.xlu1 %v19255_v35, %s17969_s22  ;;  %v9395_v35 = vld [vmem:[%s19629_s11 + $0x30] sm:$0xff] }
0x3c44   :  { %v16867_v18 = vpack.c.bf16 %v9395_v35, %v9393_v27  ;;  %v9632_v27 = vld [vmem:[%s19694_s12] sm:$0xff]  ;;  %v9633_v35 = vld [vmem:[%s19694_s12 + $0x8] sm:$0xff] }
0x3c46   :  { %16868 = vmatpush1.bf16.msra.mxu0 %v16867_v18  ;;  %v9650_v18 = vld [vmem:[%s19694_s12 + $0x90] sm:$0xff] }
0x3c47   :  { %16870 = vmatprep.subr.bf16.mxu0 %v16869_v2  ;;  %v16879_v2 = vpack.c.bf16 %v9633_v35, %v9632_v27  ;;  %v16881_v19 = vpack.c.bf16 %v9651_v59, %v9650_v18  ;;  %v9642_v59 = vld [vmem:[%s19694_s12 + $0x50] sm:$0xff] }
0x3c4a   :  { %16872 = vmatpush1.bf16.msra.mxu0 %v16871_v41  ;;  %v9634_v41 = vld [vmem:[%s19694_s12 + $0x10] sm:$0xff] }
0x3c4b   :  { %16874 = vmatprep.subr.bf16.mxu0 %v16873_v12  ;;  %v9405_v12 = vld [vmem:[%s19701_s9] sm:$0x3]  ;;  %v16883_v28 = vpack.c.bf16 %v9635_v5, %v9634_v41 }
0x3c4e   :  { %16876 = vmatpush1.bf16.msra.mxu0 %v16875_v32  ;;  %v16885_v32 = vpack.c.bf16 %v9653_v15, %v9652_v36  ;;  %v9644_v15 = vld [vmem:[%s19694_s12 + $0x60] sm:$0xff] }
0x3c67   :  { %9294 = vadd.xlane.f32.xlu1 %v9293_v48  ;;  %v16069_v43 = vpop.f32.mrb[72].mxu1  ;;  %v9637_v48 = vld [vmem:[%s19694_s12 + $0x28] sm:$0xff] }
0x3c68   :  { %v8887_v62 = vpop.f32.mrb[73].mxu1 }
0x3c69   :  { %16074 = vmatprep.mubr.msk.f32.mxu1 %vm728_vm6, %v8887_v62  ;;  %v9654_v62 = vld [vmem:[%s19694_s12 + $0xb0] sm:$0xff] }
0x3c6a   :  { %16075 = vmatmul.mubr.msk.f32.vlgmr.msra.gmra.mrb[70].mxu1 %vm728_vm6, %v16069_v43  ;;  %v19717_v43 = vrot.slane %v9405_v12, %v18127_v39 }
0x3cb7   :  { %v9088_v17 = vpop.xlane.xlu1 %9087 }
0x3cb8   :  { %17708 = vrcp.f32 %v9088_v17  ;;  %v9655_v17 = vld [vmem:[%s19694_s12 + $0xb8] sm:$0xff] }
0x3cba   :  { %v9328_v0 = vpop.xlane.xlu0 %9327 }
0x3cbb   :  { %v9342_v1 = vmul.f32 0.015625, %v9328_v0  ;;  %v9091_v53 = vpop.xlane.xlu1 %9090  ;;  %v19722_v0 = vrot.slane %v9405_v12, %v18227_v11  ;;  %v9645_v12 = vld [vmem:[%s19694_s12 + $0x68] sm:$0xff] }
0x3cbc   :  { %17710 = vrcp.f32 %v9091_v53 }
0x3cbd   :  { %v9348_v58 = vadd.f32 1e-05, %v9342_v1  ;;  %v16887_v1 = vpack.c.bf16 %v9637_v48, %v9636_v4  ;;  %v16903_v4 = vpack.c.bf16 %v9645_v12, %v9644_v15 }
0x3cbf   :  { %v9325_v25 = vpop.xlane.xlu1 %9324  ;;  %17712 = vrsqrt.f32 %v9348_v58  ;;  %v16889_v58 = vpack.c.bf16 %v9655_v17, %v9654_v62  ;;  %v9646_v62 = vld [vmem:[%s19694_s12 + $0x70] sm:$0xff]  ;;  %v9647_v17 = vld [vmem:[%s19694_s12 + $0x78] sm:$0xff] }
0x3cc0   :  { %v9341_v63 = vmul.f32 0.015625, %v9325_v25  ;;  %v9638_v25 = vld [vmem:[%s19694_s12 + $0x30] sm:$0xff] }
0x3cc2   :  { %v17709_v34 = vpop.eup %17708  ;;  %v9347_v14 = vadd.f32 1e-05, %v9341_v63  ;;  %v9639_v63 = vld [vmem:[%s19694_s12 + $0x38] sm:$0xff] }
0x3cc3   :  { %v17376_v60 = vpop.permute.xlu1 %17375  ;;  %v9094_v10 = vmul.f32 %v17709_v34, %v19599_v6 }
0x3cc4   :  { %17714 = vrsqrt.f32 %v9347_v14  ;;  %v17378_v24 = vunpack.i.h.bf16 %v17376_v60  ;;  %v17377_v51 = vunpack.i.l.bf16 %v17376_v60  ;;  %v9656_v60 = vld [vmem:[%s19694_s12 + $0xc0] sm:$0xff] }
0x3cc5   :  { %16088 = vmatprep.mubr.msk.f32.mxu1 %vm728_vm6, %v9094_v10  ;;  %v9657_v10 = vld [vmem:[%s19694_s12 + $0xc8] sm:$0xff] }
0x3cc6   :  { %v16853_v29 = vpack.c.bf16 %v17378_v24, %v17377_v51  ;;  %v17711_v49 = vpop.eup %17710 }
0x3cc7   :  { %v9095_v8 = vmul.f32 %v17711_v49, %v19613_v57  ;;  %v19678_v57 = vld [vmem:[%s19664_s26] ss:$0 sm:$0xff] }
0x3cc8   :  { %16854 = vmatprep.subr.bf16.mxu1 %v16853_v29 }
0x3cc9   :  { %16856 = vmatpush3.bf16.msra.mxu1 %v16853_v29  ;;  %v17713_v6 = vpop.eup %17712  ;;  %v16891_v29 = vpack.c.bf16 %v9639_v63, %v9638_v25  ;;  %v16907_v63 = vpack.c.bf16 %v9647_v17, %v9646_v62 }
0x3cca   :  { %16858 = vmatprep.subr.bf16.mxu1 %v19373_v45  ;;  %v9360_v42 = vmul.f32 %v17713_v6, %v19604_v7  ;;  %v9648_v7 = vld [vmem:[%s19694_s12 + $0x80] sm:$0xff]  ;;  %v16893_v6 = vpack.c.bf16 %v9657_v10, %v9656_v60 }
0x3ccc   :  { %16089 = vmatmul.mubr.msk.f32.vlgmr.msra.gmra.mrb[74].mxu1 %vm728_vm6, %v9095_v8  ;;  %v9372_v30 = vmul.f32 %v19678_v57, %v9360_v42 }
0x3ccd   :  { %16860 = vmatpush3.bf16.msra.mxu1 %v19373_v45 }
0x3cce   :  { %v17715_v54 = vpop.eup %17714  ;;  %v9384_v45 = vadd.f32 %v19682_v61, %v9372_v30  ;;  %v9658_v30 = vld [vmem:[%s19694_s12 + $0xd0] sm:$0xff] }
0x3ccf   :  { %v9359_v55 = vmul.f32 %v17715_v54, %v19607_v47  ;;  %v9649_v47 = vld [vmem:[%s19694_s12 + $0x88] sm:$0xff]  ;;  %v9640_v54 = vld [vmem:[%s19694_s12 + $0x40] sm:$0xff] }
0x3cd0   :  { %v16877_v31 = vpack.c.bf16 %v9649_v47, %v9648_v7 }
0x3cd1   :  { %v9371_v20 = vmul.f32 %v19678_v57, %v9359_v55  ;;  %v9641_v55 = vld [vmem:[%s19694_s12 + $0x48] sm:$0xff] }
0x3cd2   :  { %16878 = vmatprep.subr.bf16.mxu1 %v16877_v31  ;;  %v16895_v27 = vpack.c.bf16 %v9641_v55, %v9640_v54 }
0x3cd3   :  { %v9383_v40 = vadd.f32 %v19682_v61, %v9371_v20 }
0x3cd5   :  { %14613 = vmatmul.mubr.msk.f32.vlgmr.msra.gmra.mrb[94].mxu0 %vm517_vm3, %v9383_v40 }
0x3cd6   :  { %9505 = vmatprep.mubr.f32.mxu0 %v17957_v37 }
0x3cd9   :  { %14614 = vmatmul.mubr.msk.f32.gmra.mrb[96].mxu0 %vm517_vm3, %v9384_v45  ;;  %v9659_v45 = vld [vmem:[%s19694_s12 + $0xd8] sm:$0xff] }
0x3cda   :  { %9511 = vmatprep.mubr.f32.mxu0 %v17957_v37  ;;  %v16897_v18 = vpack.c.bf16 %v9659_v45, %v9658_v30 }
0x3d9f   :  { %v16090_v23 = vpop.f32.mrb[74].mxu1 }
0x3da0   :  { %v9174_v3 = vpop.f32.mrb[75].mxu1 }
0x3da1   :  { %16095 = vmatprep.mubr.msk.f32.mxu1 %vm728_vm6, %v9174_v3  ;;  %v9660_v3 = vld [vmem:[%s19694_s12 + $0xe0] sm:$0xff] }
0x3da2   :  { %16096 = vmatmul.mubr.msk.f32.vlgmr.msra.gmra.mrb[70].mxu1 %vm728_vm6, %v16090_v23  ;;  %v9643_v23 = vld [vmem:[%s19694_s12 + $0x58] sm:$0xff] }
0x3da3   :  { %16880 = vmatpush3.bf16.msra.mxu1 %v16879_v2  ;;  %v16899_v5 = vpack.c.bf16 %v9643_v23, %v9642_v59 }
0x3da4   :  { %16882 = vmatprep.subr.bf16.mxu1 %v16881_v19  ;;  %v9661_v19 = vld [vmem:[%s19694_s12 + $0xe8] sm:$0xff] }
0x3da5   :  { %v16901_v36 = vpack.c.bf16 %v9661_v19, %v9660_v3 }
0x3da7   :  { %16884 = vmatpush3.bf16.msra.mxu1 %v16883_v28  ;;  %v9662_v28 = vld [vmem:[%s19694_s12 + $0xf0] sm:$0xff] }
0x3da8   :  { %v9501_v53 = vpop.f32.mrb[94].mxu0  ;;  %16886 = vmatprep.subr.bf16.mxu1 %v16885_v32  ;;  %v9663_v32 = vld [vmem:[%s19694_s12 + $0xf8] sm:$0xff] }
0x3da9   :  { %v19727_v34 = vadd.f32 %v9501_v53, %v19717_v43  ;;  %v9503_v14 = vpop.f32.mrb[95].mxu0  ;;  %v16905_v48 = vpack.c.bf16 %v9663_v32, %v9662_v28 }
0x3daa   :  { %v19732_v24 = vadd.f32 %v9503_v14, %v19722_v0 }
0x3dab   :  { %v14619_v51 = vmul.f32 -1.702, %v19727_v34  ;;  %16888 = vmatpush3.bf16.msra.mxu1 %v16887_v1 }
0x3dac   :  { %v14620_v49 = vmul.f32 -1.702, %v19732_v24  ;;  %v9507_v8 = vpop.f32.mrb[96].mxu0  ;;  %16890 = vmatprep.subr.bf16.mxu1 %v16889_v58 }
0x3dad   :  { %v9560_v42 = vmul.f32 1.442695, %v14619_v51  ;;  %v9508_v20 = vadd.f32 %v9507_v8, %v19717_v43  ;;  %v9509_v40 = vpop.f32.mrb[97].mxu0 }
0x3dae   :  { %v9562_v7 = vmul.f32 1.442695, %v14620_v49  ;;  %v9510_v47 = vadd.f32 %v9509_v40, %v19722_v0 }
0x3daf   :  { %17716 = vpow2.f32 %v9560_v42  ;;  %v14621_v31 = vmul.f32 -1.702, %v9508_v20  ;;  %16892 = vmatpush3.bf16.msra.mxu1 %v16891_v29 }
0x3db0   :  { %17718 = vpow2.f32 %v9562_v7  ;;  %v14622_v35 = vmul.f32 -1.702, %v9510_v47  ;;  %16894 = vmatprep.subr.bf16.mxu1 %v16893_v6 }
0x3db1   :  { %v9564_v2 = vmul.f32 1.442695, %v14621_v31 }
0x3db2   :  { %v9566_v41 = vmul.f32 1.442695, %v14622_v35 }
0x3db3   :  { %17720 = vpow2.f32 %v9564_v2  ;;  %16896 = vmatpush3.bf16.msra.mxu1 %v16895_v27  ;;  %v9298_v2 = vpop.xlane.xlu0 %9297 }
0x3db4   :  { %17722 = vpow2.f32 %v9566_v41  ;;  %16898 = vmatprep.subr.bf16.mxu1 %v16897_v18 }
0x3db7   :  { %16900 = vmatpush3.bf16.msra.mxu1 %v16899_v5  ;;  %v9308_v5 = vmul.f32 0.015625, %v9298_v2 }
0x3db8   :  { %16902 = vmatprep.subr.bf16.mxu1 %v16901_v36 }
0x3db9   :  { %v17717_v1 = vpop.eup %17716  ;;  %v9314_v32 = vsub.f32 %v19616_v33, %v9308_v5 }
0x3dba   :  { %v17719_v53 = vpop.eup %17718  ;;  %v9584_v58 = vadd.f32 1.0, %v17717_v1 }
0x3dbb   :  { %v9585_v25 = vadd.f32 1.0, %v17719_v53  ;;  %16904 = vmatpush3.bf16.msra.mxu1 %v16903_v4  ;;  %v9320_v62 = vmul.f32 %v9314_v32, %v9314_v32 }
0x3dbc   :  { %17724 = vrcp.f32 %v9584_v58  ;;  %16906 = vmatprep.subr.bf16.mxu1 %v16905_v48 }
0x3dbd   :  { %v17721_v14 = vpop.eup %17720  ;;  %17726 = vrcp.f32 %v9585_v25  ;;  %v9332_v17 = vsel %vm517_vm3, %v9320_v62, 0.0 }
0x3dbe   :  { %v17723_v60 = vpop.eup %17722  ;;  %v9586_v10 = vadd.f32 1.0, %v17721_v14 }
0x3dbf   :  { %v9587_v51 = vadd.f32 1.0, %v17723_v60  ;;  %16908 = vmatpush3.bf16.msra.mxu1 %v16907_v63 }
0x3dc0   :  { %17728 = vrcp.f32 %v9586_v10 }
0x3dc1   :  { %17730 = vrcp.f32 %v9587_v51 }
0x3dc6   :  { %v17725_v29 = vpop.eup %17724 }
0x3dc7   :  { %v17727_v49 = vpop.eup %17726  ;;  %v9620_v6 = vmul.f32 %v17725_v29, %v19727_v34 }
0x3dc8   :  { %v9621_v8 = vmul.f32 %v17727_v49, %v19732_v24 }
0x3dca   :  { %v17729_v54 = vpop.eup %17728  ;;  %9735 = vmatprep.mubr.f32.mxu1 %v9621_v8 }
0x3dcb   :  { %v17731_v55 = vpop.eup %17730  ;;  %9736 = vmatmul.mubr.f32.vlgmr.msra.gmra.mrb[76].mxu1 %v9620_v6  ;;  %v9622_v40 = vmul.f32 %v17729_v54, %v9508_v20 }
0x3dcc   :  { %v9623_v42 = vmul.f32 %v17731_v55, %v9510_v47  ;;  %v19772_v47 = vld [vmem:[%s19769_s28] ss:$0 sm:$0xff] }
0x3dce   :  { %9740 = vmatprep.mubr.f32.mxu1 %v9623_v42 }
0x3dcf   :  { %9741 = vmatmul.mubr.f32.gmra.mrb[78].mxu1 %v9622_v40 }
0x3e75   :  { %v16097_v30 = vpop.f32.mrb[70].mxu1 }
0x3e76   :  { %v9255_v45 = vpop.f32.mrb[71].mxu1  ;;  %v9278_v7 = vadd.f32 %v16097_v30, %v19569_v50 }
0x3e77   :  { %v9277_v31 = vadd.f32 %v19569_v50, %v9255_v45  ;;  %v9295_v50 = vpop.xlane.xlu1 %9294 }
0x3e78   :  { %v19760_v24 = vadd.f32 %v9278_v7, %v19107_v21  ;;  %v9307_v18 = vmul.f32 0.015625, %v9295_v50 }
0x3e79   :  { %v19757_v27 = vadd.f32 %v9277_v31, %v19100_v52 }
0x3e7a   :  { %v9302_v20 = vsel %vm517_vm3, %v19760_v24, 0.0  ;;  %v9313_v36 = vsub.f32 %v19652_v56, %v9307_v18  ;;  %v14637_v18 = vld [vmem:[%s18984_s30 + $0x88] sm:$0xff] }
0x3e7b   :  { %v9299_v34 = vsel %vm517_vm3, %v19757_v27, 0.0 }
0x3e7c   :  { %9300 = vadd.xlane.f32.xlu0 %v9299_v34 }
0x3e80   :  { %9303 = vadd.xlane.f32.xlu0 %v9302_v20 }
0x3e9e   :  { %v15324_v52 = vpop.f32.mrb[76].mxu1 }
0x3e9f   :  { %v15325_v21 = vpop.f32.mrb[77].mxu1 }
0x3ea0   :  { %v15326_v35 = vadd.f32 %v15325_v21, %v15324_v52 }
0x3ea2   :  { %v9738_v59 = vadd.f32 %v15326_v35, %v19772_v47  ;;  %v15327_v23 = vpop.f32.mrb[78].mxu1 }
0x3ea3   :  { %v15328_v3 = vpop.f32.mrb[79].mxu1 }
0x3ea4   :  { %v19776_v19 = vadd.f32 %v9738_v59, %v19584_v26  ;;  %v15329_v41 = vadd.f32 %v15328_v3, %v15327_v23  ;;  %v9319_v26 = vmul.f32 %v9313_v36, %v9313_v36  ;;  %v14639_v59 = vld [vmem:[%s18984_s30 + $0x98] sm:$0xff]  ;;  %v14636_v3 = vld [vmem:[%s18984_s30 + $0x80] sm:$0xff] }
0x3ea5   :  { %v16909_v2 = vpack.c.bf16 %v14639_v59, %v14637_v18 }
0x3ea6   :  { %v9743_v15 = vadd.f32 %v15329_v41, %v19772_v47  ;;  %v9776_v12 = vsel %vm517_vm3, %v19776_v19, 0.0  ;;  %v9329_v48 = vsel %vm517_vm3, %v9319_v26, 0.0  ;;  %v14638_v41 = vld [vmem:[%s18984_s30 + $0x90] sm:$0xff]  ;;  %v14641_v26 = vld [vmem:[%s18984_s30 + $0xa8] sm:$0xff] }
0x3ea7   :  { %9777 = vadd.xlane.f32.xlu0 %v9776_v12  ;;  %16910 = vmatprep.subr.bf16.mxu0 %v16909_v2 }
0x3ea8   :  { %v19783_v28 = vadd.f32 %v9743_v15, %v19591_v9  ;;  %v16911_v15 = vpack.c.bf16 %v14638_v41, %v14636_v3 }
0x3eaa   :  { %v9779_v4 = vsel %vm517_vm3, %v19783_v28, 0.0  ;;  %16912 = vmatpush1.bf16.msra.mxu0 %v16911_v15 }
0x3eab   :  { %9780 = vadd.xlane.f32.xlu0 %v9779_v4 }
0x3eaf   :  { %9330 = vadd.xlane.f32.xlu0 %v9329_v48 }
0x3eb3   :  { %9333 = vadd.xlane.f32.xlu0 %v9332_v17  ;;  %v14640_v17 = vld [vmem:[%s18984_s30 + $0xa0] sm:$0xff] }
0x3f09   :  { %v9301_v1 = vpop.xlane.xlu0 %9300 }
0x3f0a   :  { %v9309_v53 = vmul.f32 0.015625, %v9301_v1  ;;  %v14642_v1 = vld [vmem:[%s18984_s30 + $0xb0] sm:$0xff] }
0x3f0c   :  { %v19791_v58 = vsub.f32 %v19757_v27, %v9309_v53  ;;  %v16915_v53 = vpack.c.bf16 %v14642_v1, %v14640_v17 }
0x3f0d   :  { %v9304_v9 = vpop.xlane.xlu0 %9303 }
0x3f0e   :  { %v9310_v25 = vmul.f32 0.015625, %v9304_v9  ;;  %v9321_v63 = vmul.f32 %v19791_v58, %v19791_v58  ;;  %v14645_v9 = vld [vmem:[%s18984_s30 + $0xc8] sm:$0xff] }
0x3f10   :  { %v19796_v14 = vsub.f32 %v19760_v24, %v9310_v25  ;;  %v9335_v60 = vsel %vm517_vm3, %v9321_v63, 0.0  ;;  %v14647_v25 = vld [vmem:[%s18984_s30 + $0xd8] sm:$0xff] }
0x3f11   :  { %9336 = vadd.xlane.f32.xlu0 %v9335_v60  ;;  %v16917_v63 = vpack.c.bf16 %v14647_v25, %v14645_v9  ;;  %v14644_v60 = vld [vmem:[%s18984_s30 + $0xc0] sm:$0xff] }
0x3f12   :  { %v9322_v10 = vmul.f32 %v19796_v14, %v19796_v14 }
0x3f14   :  { %v9338_v51 = vsel %vm517_vm3, %v9322_v10, 0.0  ;;  %v14646_v10 = vld [vmem:[%s18984_s30 + $0xd0] sm:$0xff] }
0x3f15   :  { %9339 = vadd.xlane.f32.xlu1 %v9338_v51  ;;  %v16919_v51 = vpack.c.bf16 %v14646_v10, %v14644_v60 }
0x3f34   :  { %v9778_v29 = vpop.xlane.xlu0 %9777 }
0x3f35   :  { %v9794_v49 = vmul.f32 0.015625, %v9778_v29  ;;  %v14649_v29 = vld [vmem:[%s18984_s30 + $0xe8] sm:$0xff] }
0x3f37   :  { %v19803_v8 = vsub.f32 %v19776_v19, %v9794_v49  ;;  %v14651_v49 = vld [vmem:[%s18984_s30 + $0xf8] sm:$0xff] }
0x3f38   :  { %v9781_v6 = vpop.xlane.xlu0 %9780 }
0x3f39   :  { %v9795_v54 = vmul.f32 0.015625, %v9781_v6  ;;  %v9806_v55 = vmul.f32 %v19803_v8, %v19803_v8  ;;  %v16921_v6 = vpack.c.bf16 %v14651_v49, %v14649_v29 }
0x3f3b   :  { %v19808_v42 = vsub.f32 %v19783_v28, %v9795_v54  ;;  %v9812_v40 = vsel %vm517_vm3, %v9806_v55, 0.0  ;;  %v14648_v54 = vld [vmem:[%s18984_s30 + $0xe0] sm:$0xff]  ;;  %v14650_v55 = vld [vmem:[%s18984_s30 + $0xf0] sm:$0xff] }
0x3f3c   :  { %9813 = vadd.xlane.f32.xlu0 %v9812_v40  ;;  %v9331_v30 = vpop.xlane.xlu0 %9330  ;;  %v16923_v40 = vpack.c.bf16 %v14650_v55, %v14648_v54 }
0x3f3d   :  { %v9343_v45 = vmul.f32 0.015625, %v9331_v30  ;;  %v9807_v7 = vmul.f32 %v19808_v42, %v19808_v42 }
0x3f3f   :  { %v9349_v31 = vadd.f32 1e-05, %v9343_v45  ;;  %v9815_v34 = vsel %vm517_vm3, %v9807_v7, 0.0 }
0x3f40   :  { %9816 = vadd.xlane.f32.xlu1 %v9815_v34  ;;  %v9334_v20 = vpop.xlane.xlu0 %9333 }
0x3f41   :  { %17732 = vrsqrt.f32 %v9349_v31  ;;  %v9344_v52 = vmul.f32 0.015625, %v9334_v20 }
0x3f43   :  { %v9350_v50 = vadd.f32 1e-05, %v9344_v52 }
0x3f45   :  { %17734 = vrsqrt.f32 %v9350_v50 }
0x3f4b   :  { %v17733_v21 = vpop.eup %17732 }
0x3f4c   :  { %v9361_v35 = vmul.f32 %v17733_v21, %v9313_v36  ;;  %v14643_v36 = vld [vmem:[%s18984_s30 + $0xb8] sm:$0xff] }
0x3f4d   :  { %v16913_v62 = vpack.c.bf16 %v14643_v36, %v14641_v26  ;;  %v19853_v26 = vld [vmem:[%s19019_s29 + $0x1] ss:$0 sm:$0xff] }
0x3f4e   :  { %v9373_v23 = vmul.f32 %v19678_v57, %v9361_v35 }
0x3f4f   :  { %v17735_v5 = vpop.eup %17734  ;;  %16914 = vmatprep.subr.bf16.mxu0 %v16913_v62 }
0x3f50   :  { %v9385_v12 = vadd.f32 %v19682_v61, %v9373_v23  ;;  %v9362_v4 = vmul.f32 %v17735_v5, %v9314_v32  ;;  %16916 = vmatpush1.bf16.msra.mxu0 %v16915_v53 }
0x3f51   :  { %16918 = vmatprep.subr.bf16.mxu0 %v16917_v63 }
0x3f52   :  { %14615 = vmatmul.mubr.msk.f32.gmra.mrb[98].mxu0 %vm517_vm3, %v9385_v12  ;;  %v9374_v48 = vmul.f32 %v19678_v57, %v9362_v4  ;;  %v19849_v4 = vld [vmem:[%s19008_s20 + $0x1] ss:$0 sm:$0xff]  ;;  %s17997_s20 = smov 38  }
0x3f53   :  { %9517 = vmatprep.mubr.f32.mxu0 %v17957_v37 }
0x3f54   :  { %v9386_v32 = vadd.f32 %v19682_v61, %v9374_v48  ;;  %16920 = vmatpush1.bf16.msra.mxu0 %v16919_v51 }
0x3f55   :  { %16922 = vmatprep.subr.bf16.mxu0 %v16921_v6 }
0x3f56   :  { %14616 = vmatmul.mubr.msk.f32.gmra.mrb[100].mxu0 %vm517_vm3, %v9386_v32 }
0x3f57   :  { %9523 = vmatprep.mubr.f32.mxu0 %v17957_v37 }
0x3f58   :  { %16924 = vmatpush1.bf16.msra.mxu0 %v16923_v40 }
0x3f9e   :  { %v9337_v30 = vpop.xlane.xlu0 %9336 }
0x3f9f   :  { %v9345_v45 = vmul.f32 0.015625, %v9337_v30 }
0x3fa1   :  { %v9351_v7 = vadd.f32 1e-05, %v9345_v45 }
0x3fa2   :  { %v9340_v31 = vpop.xlane.xlu1 %9339 }
0x3fa3   :  { %17736 = vrsqrt.f32 %v9351_v7  ;;  %v9346_v34 = vmul.f32 0.015625, %v9340_v31 }
0x3fa5   :  { %v9352_v20 = vadd.f32 1e-05, %v9346_v34 }
0x3fa7   :  { %17738 = vrsqrt.f32 %v9352_v20 }
0x3fad   :  { %v17737_v52 = vpop.eup %17736 }
0x3fae   :  { %v9363_v50 = vmul.f32 %v17737_v52, %v19791_v58 }
0x3fb0   :  { %v9375_v21 = vmul.f32 %v19678_v57, %v9363_v50 }
0x3fb1   :  { %v17739_v35 = vpop.eup %17738 }
0x3fb2   :  { %v9387_v18 = vadd.f32 %v19682_v61, %v9375_v21  ;;  %v9364_v59 = vmul.f32 %v17739_v35, %v19796_v14 }
0x3fb4   :  { %14617 = vmatmul.mubr.msk.f32.gmra.mrb[102].mxu0 %vm517_vm3, %v9387_v18  ;;  %v9376_v23 = vmul.f32 %v19678_v57, %v9364_v59 }
0x3fb5   :  { %9529 = vmatprep.mubr.f32.mxu0 %v17957_v37 }
0x3fb6   :  { %v9388_v2 = vadd.f32 %v19682_v61, %v9376_v23 }
0x3fb8   :  { %14618 = vmatmul.mubr.msk.f32.gmra.mrb[104].mxu0 %vm517_vm3, %v9388_v2 }
0x3fb9   :  { %9990 = vmatprep.mubr.f32.mxu0 %v17957_v37 }
0x3fc9   :  { %v9814_v58 = vpop.xlane.xlu0 %9813 }
0x3fca   :  { %v9830_v3 = vmul.f32 0.015625, %v9814_v58 }
0x3fcc   :  { %v9836_v41 = vadd.f32 1e-05, %v9830_v3 }
0x3fcd   :  { %v9817_v5 = vpop.xlane.xlu1 %9816 }
0x3fce   :  { %17740 = vrsqrt.f32 %v9836_v41  ;;  %v9831_v14 = vmul.f32 0.015625, %v9817_v5 }
0x3fd0   :  { %v9837_v15 = vadd.f32 1e-05, %v9831_v14 }
0x3fd2   :  { %17742 = vrsqrt.f32 %v9837_v15 }
0x3fd8   :  { %v17741_v12 = vpop.eup %17740 }
0x3fd9   :  { %v9848_v57 = vmul.f32 %v17741_v12, %v19803_v8 }
0x3fdb   :  { %v9860_v61 = vmul.f32 %v19849_v4, %v9848_v57 }
0x3fdc   :  { %v17743_v36 = vpop.eup %17742 }
0x3fdd   :  { %v9872_v48 = vadd.f32 %v19853_v26, %v9860_v61  ;;  %v9849_v62 = vmul.f32 %v17743_v36, %v19808_v42 }
0x3fdf   :  { %14653 = vmatmul.mubr.msk.f32.vlgmr.msra.gmra.mrb[106].mxu0 %vm517_vm3, %v9872_v48  ;;  %v9861_v17 = vmul.f32 %v19849_v4, %v9849_v62 }
0x3fe0   :  { %9996 = vmatprep.mubr.f32.mxu0 %v17957_v37 }
0x3fe1   :  { %v9873_v1 = vadd.f32 %v19853_v26, %v9861_v17 }
0x3fe3   :  { %14654 = vmatmul.mubr.msk.f32.gmra.mrb[108].mxu0 %vm517_vm3, %v9873_v1 }
0x3fe4   :  { %10002 = vmatprep.mubr.f32.mxu0 %v17957_v37 }
0x4025   :  { %v9513_v8 = vpop.f32.mrb[98].mxu0 }
0x4026   :  { %v9514_v53 = vadd.f32 %v9513_v8, %v19717_v43  ;;  %v9515_v32 = vpop.f32.mrb[99].mxu0 }
0x4027   :  { %v9516_v9 = vadd.f32 %v9515_v32, %v19722_v0 }
0x4028   :  { %v14623_v25 = vmul.f32 -1.702, %v9514_v53 }
0x4029   :  { %v14624_v42 = vmul.f32 -1.702, %v9516_v9  ;;  %v9519_v63 = vpop.f32.mrb[100].mxu0 }
0x402a   :  { %v9568_v60 = vmul.f32 1.442695, %v14623_v25  ;;  %v9520_v10 = vadd.f32 %v9519_v63, %v19717_v43  ;;  %v9521_v51 = vpop.f32.mrb[101].mxu0 }
0x402b   :  { %v9570_v29 = vmul.f32 1.442695, %v14624_v42  ;;  %v9522_v49 = vadd.f32 %v9521_v51, %v19722_v0 }
0x402c   :  { %17744 = vpow2.f32 %v9568_v60  ;;  %v14625_v6 = vmul.f32 -1.702, %v9520_v10 }
0x402d   :  { %17746 = vpow2.f32 %v9570_v29  ;;  %v14626_v54 = vmul.f32 -1.702, %v9522_v49 }
0x402e   :  { %v9572_v55 = vmul.f32 1.442695, %v14625_v6 }
0x402f   :  { %v9574_v40 = vmul.f32 1.442695, %v14626_v54 }
0x4030   :  { %17748 = vpow2.f32 %v9572_v55 }
0x4031   :  { %17750 = vpow2.f32 %v9574_v40 }
0x4036   :  { %v17745_v30 = vpop.eup %17744 }
0x4037   :  { %v17747_v45 = vpop.eup %17746  ;;  %v9588_v7 = vadd.f32 1.0, %v17745_v30 }
0x4038   :  { %v9589_v31 = vadd.f32 1.0, %v17747_v45 }
0x4039   :  { %17752 = vrcp.f32 %v9588_v7  ;;  %v14652_v7 = vld [vmem:[%s19046_s6 + $0x2] sm:$0x3] }
0x403a   :  { %v17749_v34 = vpop.eup %17748  ;;  %17754 = vrcp.f32 %v9589_v31  ;;  %v19874_v31 = vrot.slane %v14652_v7, %v18127_v39 }
0x403b   :  { %v17751_v20 = vpop.eup %17750  ;;  %v9590_v52 = vadd.f32 1.0, %v17749_v34 }
0x403c   :  { %v9591_v50 = vadd.f32 1.0, %v17751_v20 }
0x403d   :  { %17756 = vrcp.f32 %v9590_v52 }
0x403e   :  { %17758 = vrcp.f32 %v9591_v50  ;;  %v19880_v50 = vrot.slane %v14652_v7, %v18227_v11 }
0x4043   :  { %v17753_v21 = vpop.eup %17752 }
0x4044   :  { %v17755_v35 = vpop.eup %17754  ;;  %v9624_v59 = vmul.f32 %v17753_v21, %v9514_v53 }
0x4045   :  { %v9625_v18 = vmul.f32 %v17755_v35, %v9516_v9 }
0x4047   :  { %v17757_v23 = vpop.eup %17756  ;;  %9745 = vmatprep.mubr.f32.mxu1 %v9625_v18 }
0x4048   :  { %v17759_v2 = vpop.eup %17758  ;;  %9746 = vmatmul.mubr.f32.gmra.mrb[80].mxu1 %v9624_v59  ;;  %v9626_v3 = vmul.f32 %v17757_v23, %v9520_v10 }
0x4049   :  { %v9627_v58 = vmul.f32 %v17759_v2, %v9522_v49 }
0x404b   :  { %9750 = vmatprep.mubr.f32.mxu1 %v9627_v58 }
0x404c   :  { %9751 = vmatmul.mubr.f32.gmra.mrb[82].mxu1 %v9626_v3 }
0x4087   :  { %v9525_v41 = vpop.f32.mrb[102].mxu0 }
0x4088   :  { %v9526_v5 = vadd.f32 %v9525_v41, %v19717_v43  ;;  %v9527_v14 = vpop.f32.mrb[103].mxu0 }
0x4089   :  { %v9528_v15 = vadd.f32 %v9527_v14, %v19722_v0 }
0x408a   :  { %v14627_v12 = vmul.f32 -1.702, %v9526_v5 }
0x408b   :  { %v14628_v57 = vmul.f32 -1.702, %v9528_v15  ;;  %v9531_v61 = vpop.f32.mrb[104].mxu0 }
0x408c   :  { %v9576_v36 = vmul.f32 1.442695, %v14627_v12  ;;  %v9532_v48 = vadd.f32 %v9531_v61, %v19717_v43  ;;  %v9533_v62 = vpop.f32.mrb[105].mxu0 }
0x408d   :  { %v9578_v17 = vmul.f32 1.442695, %v14628_v57  ;;  %v9534_v1 = vadd.f32 %v9533_v62, %v19722_v0 }
0x408e   :  { %17760 = vpow2.f32 %v9576_v36  ;;  %v14629_v8 = vmul.f32 -1.702, %v9532_v48 }
0x408f   :  { %17762 = vpow2.f32 %v9578_v17  ;;  %v14630_v53 = vmul.f32 -1.702, %v9534_v1 }
0x4090   :  { %v9580_v32 = vmul.f32 1.442695, %v14629_v8 }
0x4091   :  { %v9582_v9 = vmul.f32 1.442695, %v14630_v53 }
0x4092   :  { %17764 = vpow2.f32 %v9580_v32 }
0x4093   :  { %17766 = vpow2.f32 %v9582_v9 }
0x4098   :  { %v17761_v25 = vpop.eup %17760 }
0x4099   :  { %v17763_v42 = vpop.eup %17762  ;;  %v9592_v63 = vadd.f32 1.0, %v17761_v25 }
0x409a   :  { %v9593_v60 = vadd.f32 1.0, %v17763_v42 }
0x409b   :  { %17768 = vrcp.f32 %v9592_v63 }
0x409c   :  { %v17765_v10 = vpop.eup %17764  ;;  %17770 = vrcp.f32 %v9593_v60 }
0x409d   :  { %v17767_v43 = vpop.eup %17766  ;;  %v9594_v51 = vadd.f32 1.0, %v17765_v10 }
0x409e   :  { %v9595_v29 = vadd.f32 1.0, %v17767_v43 }
0x409f   :  { %17772 = vrcp.f32 %v9594_v51 }
0x40a0   :  { %17774 = vrcp.f32 %v9595_v29 }
0x40a5   :  { %v17769_v0 = vpop.eup %17768 }
0x40a6   :  { %v17771_v49 = vpop.eup %17770  ;;  %v9628_v54 = vmul.f32 %v17769_v0, %v9526_v5 }
0x40a7   :  { %v9629_v6 = vmul.f32 %v17771_v49, %v9528_v15 }
0x40a9   :  { %v17773_v55 = vpop.eup %17772  ;;  %9755 = vmatprep.mubr.f32.mxu1 %v9629_v6 }
0x40aa   :  { %v17775_v40 = vpop.eup %17774  ;;  %9756 = vmatmul.mubr.f32.gmra.mrb[84].mxu1 %v9628_v54  ;;  %v9630_v45 = vmul.f32 %v17773_v55, %v9532_v48 }
0x40ab   :  { %v9631_v30 = vmul.f32 %v17775_v40, %v9534_v1 }
0x40ad   :  { %9760 = vmatprep.mubr.f32.mxu1 %v9631_v30 }
0x40ae   :  { %9761 = vmatmul.mubr.f32.gmra.mrb[86].mxu1 %v9630_v45 }
0x40b2   :  { %v9992_v34 = vpop.f32.mrb[106].mxu0 }
0x40b3   :  { %v19877_v20 = vadd.f32 %v9992_v34, %v19874_v31  ;;  %v9994_v52 = vpop.f32.mrb[107].mxu0 }
0x40b4   :  { %v9995_v59 = vadd.f32 %v9994_v52, %v19880_v50 }
0x40b5   :  { %16102 = vmatprep.mubr.msk.f32.mxu1 %vm728_vm6, %v19877_v20 }
0x40b6   :  { %v9998_v21 = vpop.f32.mrb[108].mxu0 }
0x40b7   :  { %v19885_v35 = vadd.f32 %v9998_v21, %v19874_v31  ;;  %v10000_v18 = vpop.f32.mrb[109].mxu0 }
0x40b8   :  { %v10001_v23 = vadd.f32 %v10000_v18, %v19880_v50 }
0x40b9   :  { %v19891_v2 = vpack.i.bf16 %v19885_v35, %v19877_v20 }
0x40ba   :  { %v16931_v58 = vpack.c.bf16 %v10001_v23, %v9995_v59  ;;  %v19893_v3 = vpack.i.bf16 %v10001_v23, %v9995_v59 }
0x40bb   :  { %17385 = vrot.lane.b32.xlu1 %v19891_v2, %s17964_s15  ;;  %17380 = vrot.lane.b32.xlu0 %v19891_v2, %s17962_s13 }
0x40bc   :  { %16932 = vmatprep.subr.bf16.mxu0 %v16931_v58 }
0x40bd   :  { %16934 = vmatpush3.bf16.msra.mxu0 %v16931_v58 }
0x40bf   :  { %10232 = vrot.lane.b32.xlu1 %v19877_v20, %s17963_s14  ;;  %10234 = vrot.lane.b32.xlu0 %v19885_v35, %s17963_s14 }
0x40c3   :  { %17390 = vrot.lane.b32.xlu1 %v19891_v2, %s17965_s16  ;;  %10600 = vrot.lane.b32.xlu0 %v19877_v20, %s17966_s17 }
0x40c7   :  { %10602 = vrot.lane.b32.xlu1 %v19885_v35, %s17966_s17 }
0x411b   :  { %v15330_v41 = vpop.f32.mrb[80].mxu1 }
0x411c   :  { %v15331_v5 = vpop.f32.mrb[81].mxu1 }
0x411d   :  { %v15332_v14 = vadd.f32 %v15331_v5, %v15330_v41 }
0x411f   :  { %v9748_v15 = vadd.f32 %v15332_v14, %v19772_v47  ;;  %v15333_v12 = vpop.f32.mrb[82].mxu1 }
0x4120   :  { %v15334_v57 = vpop.f32.mrb[83].mxu1 }
0x4121   :  { %v19911_v61 = vadd.f32 %v9748_v15, %v19652_v56  ;;  %v15335_v36 = vadd.f32 %v15334_v57, %v15333_v12 }
0x4123   :  { %v9753_v48 = vadd.f32 %v15335_v36, %v19772_v47  ;;  %v9782_v62 = vsel %vm517_vm3, %v19911_v61, 0.0 }
0x4124   :  { %9783 = vadd.xlane.f32.xlu0 %v9782_v62 }
0x4125   :  { %v19917_v17 = vadd.f32 %v9753_v48, %v19616_v33 }
0x4127   :  { %v9785_v1 = vsel %vm517_vm3, %v19917_v17, 0.0 }
0x4128   :  { %9786 = vadd.xlane.f32.xlu1 %v9785_v1 }
0x412d   :  { %v17386_v8 = vpop.permute.xlu1 %17385  ;;  %v17381_v53 = vpop.permute.xlu0 %17380 }
0x412e   :  { %v17388_v32 = vunpack.i.h.bf16 %v17386_v8  ;;  %v17387_v9 = vunpack.i.l.bf16 %v17386_v8  ;;  %v17383_v56 = vunpack.i.h.bf16 %v17381_v53  ;;  %v17382_v25 = vunpack.i.l.bf16 %v17381_v53 }
0x4130   :  { %v16925_v42 = vpack.c.bf16 %v17383_v56, %v17382_v25  ;;  %v16935_v60 = vpack.c.bf16 %v17388_v32, %v17387_v9 }
0x4131   :  { %v10233_v63 = vpop.permute.xlu1 %10232  ;;  %v10235_v29 = vpop.permute.xlu0 %10234 }
0x4132   :  { %16927 = vmatprep.subr.msk.bf16.mxu1 %vm19113_vm10, %v16925_v42 }
0x4133   :  { %16930 = vmatpush3.bf16.xpose.msk.msra.mxu1 %vm19113_vm10, %v16925_v42 }
0x4134   :  { %16937 = vmatprep.subr.msk.bf16.mxu1 %vm19113_vm10, %v16935_v60 }
0x4135   :  { %v17391_v33 = vpop.permute.xlu1 %17390  ;;  %v10601_v0 = vpop.permute.xlu0 %10600 }
0x4136   :  { %v17393_v10 = vunpack.i.h.bf16 %v17391_v33  ;;  %v17392_v43 = vunpack.i.l.bf16 %v17391_v33 }
0x4138   :  { %v16953_v51 = vpack.c.bf16 %v17393_v10, %v17392_v43 }
0x4139   :  { %v10603_v49 = vpop.permute.xlu1 %10602 }
0x413a   :  { %16103 = vmatmul.mubr.msk.f32.vlgmr.msra.gmra.mrb[88].mxu1 %vm728_vm6, %v19885_v35 }
0x413b   :  { %16940 = vmatpush3.bf16.xpose.msk.msra.mxu1 %vm19113_vm10, %v16935_v60  ;;  %16116 = vmatprep.mubr.msk.f32.mxu1 %vm728_vm6, %v10233_v63 }
0x413c   :  { %16955 = vmatprep.subr.msk.bf16.mxu1 %vm19113_vm10, %v16953_v51 }
0x4142   :  { %16117 = vmatmul.mubr.msk.f32.vlgmr.msra.gmra.mrb[90].mxu1 %vm728_vm6, %v10235_v29 }
0x4143   :  { %16958 = vmatpush3.bf16.xpose.msk.msra.mxu1 %vm19113_vm10, %v16953_v51  ;;  %16144 = vmatprep.mubr.msk.f32.mxu1 %vm728_vm6, %v10601_v0 }
0x414a   :  { %16145 = vmatmul.mubr.msk.f32.vlgmr.msra.gmra.mrb[92].mxu1 %vm728_vm6, %v10603_v49 }
0x417d   :  { %v15336_v6 = vpop.f32.mrb[84].mxu1 }
0x417e   :  { %v15337_v54 = vpop.f32.mrb[85].mxu1 }
0x417f   :  { %v15338_v55 = vadd.f32 %v15337_v54, %v15336_v6 }
0x4181   :  { %v9758_v40 = vadd.f32 %v15338_v55, %v19772_v47  ;;  %v15339_v30 = vpop.f32.mrb[86].mxu1 }
0x4182   :  { %v15340_v45 = vpop.f32.mrb[87].mxu1 }
0x4183   :  { %v19941_v7 = vadd.f32 %v9758_v40, %v19757_v27  ;;  %v15341_v34 = vadd.f32 %v15340_v45, %v15339_v30 }
0x4185   :  { %v9763_v52 = vadd.f32 %v15341_v34, %v19772_v47  ;;  %v9788_v21 = vsel %vm517_vm3, %v19941_v7, 0.0 }
0x4186   :  { %9789 = vadd.xlane.f32.xlu0 %v9788_v21 }
0x4187   :  { %v19947_v18 = vadd.f32 %v9763_v52, %v19760_v24 }
0x4189   :  { %v9791_v59 = vsel %vm517_vm3, %v19947_v18, 0.0 }
0x418a   :  { %9792 = vadd.xlane.f32.xlu0 %v9791_v59 }
0x41b1   :  { %v9784_v27 = vpop.xlane.xlu0 %9783 }
0x41b2   :  { %v9796_v57 = vmul.f32 0.015625, %v9784_v27 }
0x41b4   :  { %v19961_v8 = vsub.f32 %v19911_v61, %v9796_v57 }
0x41b5   :  { %v9787_v58 = vpop.xlane.xlu1 %9786 }
0x41b6   :  { %v9797_v15 = vmul.f32 0.015625, %v9787_v58  ;;  %v9808_v0 = vmul.f32 %v19961_v8, %v19961_v8 }
0x41b8   :  { %v19958_v62 = vsub.f32 %v19917_v17, %v9797_v15  ;;  %v9818_v40 = vsel %vm517_vm3, %v9808_v0, 0.0 }
0x41ba   :  { %v9809_v10 = vmul.f32 %v19958_v62, %v19958_v62 }
0x41bc   :  { %v9821_v6 = vsel %vm517_vm3, %v9809_v10, 0.0 }
0x420d   :  { %v16104_v23 = vpop.f32.mrb[88].mxu1 }
0x420e   :  { %v10126_v41 = vmul.f32 0.25, %v16104_v23  ;;  %v10116_v5 = vpop.f32.mrb[89].mxu1 }
0x420f   :  { %v10125_v14 = vmul.f32 0.25, %v10116_v5 }
0x4210   :  { %v10128_v47 = vsel %vm19153_vm12, %v10126_v41, -3.4028235e+38 }
0x4211   :  { %v10127_v12 = vsel %vm19149_vm11, %v10125_v14, -3.4028235e+38  ;;  %v10132_v24 = vsel %vm728_vm6, %v10128_v47, -inf }
0x4212   :  { %10133 = vmax.xlane.f32.xlu0 %v10132_v24  ;;  %v10129_v36 = vsel %vm728_vm6, %v10127_v12, -inf }
0x4213   :  { %v9790_v48 = vpop.xlane.xlu0 %9789  ;;  %10130 = vmax.xlane.f32.xlu1 %v10129_v36 }
0x4214   :  { %v9798_v53 = vmul.f32 0.015625, %v9790_v48 }
0x4215   :  { %v16118_v1 = vpop.f32.mrb[90].mxu1 }
0x4216   :  { %v10324_v32 = vmul.f32 0.25, %v16118_v1  ;;  %v10314_v9 = vpop.f32.mrb[91].mxu1  ;;  %v19971_v43 = vsub.f32 %v19941_v7, %v9798_v53 }
0x4217   :  { %v10323_v56 = vmul.f32 0.25, %v10314_v9  ;;  %v9793_v25 = vpop.xlane.xlu0 %9792 }
0x4218   :  { %v10326_v42 = vsel %vm19153_vm12, %v10324_v32, -3.4028235e+38  ;;  %v9799_v63 = vmul.f32 0.015625, %v9793_v25  ;;  %v9810_v30 = vmul.f32 %v19971_v43, %v19971_v43 }
0x4219   :  { %v10325_v60 = vsel %vm19149_vm11, %v10323_v56, -3.4028235e+38  ;;  %v10330_v33 = vsel %vm728_vm6, %v10326_v42, -inf }
0x421a   :  { %v19974_v51 = vsub.f32 %v19947_v18, %v9799_v63  ;;  %10331 = vmax.xlane.f32.xlu0 %v10330_v33  ;;  %v10327_v29 = vsel %vm728_vm6, %v10325_v60, -inf  ;;  %v9824_v34 = vsel %vm517_vm3, %v9810_v30, 0.0 }
0x421b   :  { %10328 = vmax.xlane.f32.xlu1 %v10327_v29 }
0x421c   :  { %v9811_v54 = vmul.f32 %v19974_v51, %v19974_v51 }
0x421d   :  { %v19979_v49 = vpop.f32.mrb[92].mxu1 }
0x421e   :  { %9822 = vadd.xlane.f32.xlu0 %v9821_v6  ;;  %v19984_v55 = vpop.f32.mrb[93].mxu1  ;;  %v9827_v45 = vsel %vm517_vm3, %v9811_v54, 0.0 }
0x421f   :  { %9819 = vadd.xlane.f32.xlu1 %v9818_v40 }
0x4222   :  { %9828 = vadd.xlane.f32.xlu0 %v9827_v45 }
0x4223   :  { %9825 = vadd.xlane.f32.xlu1 %v9824_v34 }
0x429f   :  { %v10134_v52 = vpop.xlane.xlu0 %10133 }
0x42a0   :  { %v10136_v21 = vsub.f32 %v10128_v47, %v10134_v52  ;;  %v10131_v59 = vpop.xlane.xlu1 %10130 }
0x42a1   :  { %v10135_v23 = vsub.f32 %v10127_v12, %v10131_v59 }
0x42a2   :  { %v10139_v58 = vmul.f32 1.442695, %v10136_v21 }
0x42a3   :  { %v10137_v41 = vmul.f32 1.442695, %v10135_v23 }
0x42a4   :  { %17776 = vpow2.f32 %v10139_v58 }
0x42a5   :  { %17778 = vpow2.f32 %v10137_v41 }
0x42a7   :  { %v10332_v5 = vpop.xlane.xlu0 %10331 }
0x42a8   :  { %v10334_v27 = vsub.f32 %v10326_v42, %v10332_v5  ;;  %v10329_v14 = vpop.xlane.xlu1 %10328 }
0x42a9   :  { %v10333_v15 = vsub.f32 %v10325_v60, %v10329_v14 }
0x42aa   :  { %v10337_v24 = vmul.f32 1.442695, %v10334_v27 }
0x42ab   :  { %v10335_v57 = vmul.f32 1.442695, %v10333_v15  ;;  %v9823_v36 = vpop.xlane.xlu0 %9822 }
0x42ac   :  { %17780 = vpow2.f32 %v10337_v24  ;;  %v9833_v48 = vmul.f32 0.015625, %v9823_v36  ;;  %v9820_v1 = vpop.xlane.xlu1 %9819 }
0x42ad   :  { %17782 = vpow2.f32 %v10335_v57  ;;  %v9832_v53 = vmul.f32 0.015625, %v9820_v1 }
0x42ae   :  { %v19991_v32 = vpop.eup %17776  ;;  %v9839_v47 = vadd.f32 1e-05, %v9833_v48 }
0x42af   :  { %v19993_v12 = vpop.eup %17778  ;;  %v9838_v9 = vadd.f32 1e-05, %v9832_v53  ;;  %v9829_v56 = vpop.xlane.xlu0 %9828  ;;  %v10144_v25 = vsel %vm728_vm6, %v19991_v32, 0.0 }
0x42b0   :  { %17784 = vrsqrt.f32 %v9839_v47  ;;  %v9835_v42 = vmul.f32 0.015625, %v9829_v56  ;;  %10145 = vadd.xlane.f32.xlu0 %v10144_v25  ;;  %v9826_v63 = vpop.xlane.xlu1 %9825  ;;  %v10141_v60 = vsel %vm728_vm6, %v19993_v12, 0.0 }
0x42b1   :  { %17786 = vrsqrt.f32 %v9838_v9  ;;  %v9834_v33 = vmul.f32 0.015625, %v9826_v63  ;;  %10142 = vadd.xlane.f32.xlu1 %v10141_v60 }
0x42b2   :  { %v9841_v29 = vadd.f32 1e-05, %v9835_v42 }
0x42b3   :  { %v9840_v10 = vadd.f32 1e-05, %v9834_v33 }
0x42b5   :  { %17788 = vrsqrt.f32 %v9840_v10 }
0x42b6   :  { %v19999_v0 = vpop.eup %17780  ;;  %17790 = vrsqrt.f32 %v9841_v29 }
0x42b7   :  { %v20001_v6 = vpop.eup %17782  ;;  %v10342_v54 = vsel %vm728_vm6, %v19999_v0, 0.0 }
0x42b8   :  { %10343 = vadd.xlane.f32.xlu0 %v10342_v54  ;;  %v10339_v40 = vsel %vm728_vm6, %v20001_v6, 0.0 }
0x42b9   :  { %10340 = vadd.xlane.f32.xlu1 %v10339_v40 }
0x42ba   :  { %v17785_v30 = vpop.eup %17784 }
0x42bb   :  { %v17787_v45 = vpop.eup %17786  ;;  %v9851_v52 = vmul.f32 %v17785_v30, %v19958_v62 }
0x42bc   :  { %v9850_v34 = vmul.f32 %v17787_v45, %v19961_v8 }
0x42bd   :  { %v9863_v58 = vmul.f32 %v19849_v4, %v9851_v52 }
0x42be   :  { %v9862_v21 = vmul.f32 %v19849_v4, %v9850_v34 }
0x42bf   :  { %v17789_v59 = vpop.eup %17788  ;;  %v9875_v27 = vadd.f32 %v19853_v26, %v9863_v58 }
0x42c0   :  { %v9874_v23 = vadd.f32 %v19853_v26, %v9862_v21  ;;  %v9852_v41 = vmul.f32 %v17789_v59, %v19971_v43  ;;  %v17791_v5 = vpop.eup %17790 }
0x42c1   :  { %v9853_v62 = vmul.f32 %v17791_v5, %v19974_v51 }
0x42c2   :  { %14655 = vmatmul.mubr.msk.f32.gmra.mrb[110].mxu0 %vm517_vm3, %v9874_v23  ;;  %v9864_v8 = vmul.f32 %v19849_v4, %v9852_v41 }
0x42c3   :  { %10008 = vmatprep.mubr.f32.mxu0 %v17957_v37  ;;  %v9865_v15 = vmul.f32 %v19849_v4, %v9853_v62  ;;  %v10691_v4 = vmul.f32 0.25, %v19984_v55 }
0x42c4   :  { %v9876_v14 = vadd.f32 %v19853_v26, %v9864_v8 }
0x42c5   :  { %v9877_v43 = vadd.f32 %v19853_v26, %v9865_v15  ;;  %v10693_v51 = vsel %vm19149_vm11, %v10691_v4, -3.4028235e+38  ;;  %v10692_v26 = vmul.f32 0.25, %v19979_v49 }
0x42c6   :  { %14656 = vmatmul.mubr.msk.f32.gmra.mrb[112].mxu0 %vm517_vm3, %v9875_v27  ;;  %v10695_v24 = vsel %vm728_vm6, %v10693_v51, -inf }
0x42c7   :  { %10014 = vmatprep.mubr.f32.mxu0 %v17957_v37 }
0x42ca   :  { %17395 = vrot.lane.b32.xlu1 %v19893_v3, %s17963_s14  ;;  %14657 = vmatmul.mubr.msk.f32.gmra.mrb[114].mxu0 %vm517_vm3, %v9876_v14 }
0x42cb   :  { %10020 = vmatprep.mubr.f32.mxu0 %v17957_v37 }
0x42ce   :  { %17400 = vrot.lane.b32.xlu0 %v19891_v2, %s17970_s23  ;;  %10887 = vrot.lane.b32.xlu1 %v19877_v20, %s17969_s22  ;;  %v10694_v2 = vsel %vm19153_vm12, %v10692_v26, -3.4028235e+38 }
0x42cf   :  { %14658 = vmatmul.mubr.msk.f32.gmra.mrb[116].mxu0 %vm517_vm3, %v9877_v43  ;;  %v10698_v20 = vsel %vm728_vm6, %v10694_v2, -inf }
0x42d2   :  { %10889 = vrot.lane.b32.xlu1 %v19885_v35, %s17969_s22 }
0x42ed   :  { %10696 = vmax.xlane.f32.xlu0 %v10695_v24 }
0x42f6   :  { %10699 = vmax.xlane.f32.xlu1 %v10698_v20 }
0x4307   :  { %17405 = vrot.lane.b32.xlu1 %v19893_v3, %s17966_s17 }
0x433d   :  { %v10146_v35 = vpop.xlane.xlu0 %10145 }
0x433e   :  { %17792 = vrcp.f32 %v10146_v35  ;;  %v10143_v55 = vpop.xlane.xlu1 %10142 }
0x433f   :  { %17794 = vrcp.f32 %v10143_v55 }
0x4345   :  { %v10344_v57 = vpop.xlane.xlu0 %10343 }
0x4346   :  { %17796 = vrcp.f32 %v10344_v57  ;;  %v10341_v36 = vpop.xlane.xlu1 %10340 }
0x4347   :  { %17798 = vrcp.f32 %v10341_v36  ;;  %v14661_v36 = vld [vmem:[%s19292_s8 + $0x50] sm:$0xff] }
0x4348   :  { %v17793_v48 = vpop.eup %17792 }
0x4349   :  { %v17795_v1 = vpop.eup %17794  ;;  %v17401_v49 = vpop.permute.xlu0 %17400  ;;  %v10150_v25 = vmul.f32 %v17793_v48, %v19991_v32  ;;  %v14662_v48 = vld [vmem:[%s19292_s8 + $0x58] sm:$0xff] }
0x434a   :  { %v17403_v53 = vunpack.i.h.bf16 %v17401_v49  ;;  %v17402_v47 = vunpack.i.l.bf16 %v17401_v49  ;;  %v17396_v9 = vpop.permute.xlu1 %17395  ;;  %v10149_v56 = vmul.f32 %v17795_v1, %v19993_v12  ;;  %v20096_v1 = vpack.c.bf16 %v14662_v48, %v14661_v36 }
0x434b   :  { %v17398_v42 = vunpack.i.h.bf16 %v17396_v9  ;;  %v17397_v63 = vunpack.i.l.bf16 %v17396_v9  ;;  %v14660_v9 = vld [vmem:[%s19292_s8 + $0x48] sm:$0xff] }
0x434c   :  { %v16967_v60 = vpack.c.bf16 %v17403_v53, %v17402_v47  ;;  %16109 = vmatprep.mubr.msk.f32.mxu0 %vm728_vm6, %v10149_v56  ;;  %v14659_v47 = vld [vmem:[%s19292_s8 + $0x40] sm:$0xff] }
0x434d   :  { %v16941_v33 = vpack.c.bf16 %v17398_v42, %v17397_v63  ;;  %16110 = vmatmul.mubr.msk.f32.vlgmr.msra.gmra.mrb[118].mxu0 %vm728_vm6, %v10150_v25  ;;  %v20106_v56 = vpack.c.bf16 %v14660_v9, %v14659_v47  ;;  %v14663_v47 = vld [vmem:[%s19292_s8 + $0x60] sm:$0xff]  ;;  %v14664_v9 = vld [vmem:[%s19292_s8 + $0x68] sm:$0xff] }
0x434e   :  { %16969 = vmatprep.subr.msk.bf16.mxu1 %vm19113_vm10, %v16967_v60  ;;  %v10888_v10 = vpop.permute.xlu1 %10887 }
0x434f   :  { %16942 = vmatprep.subr.bf16.mxu0 %v16941_v33  ;;  %16972 = vmatpush3.bf16.xpose.msk.msra.mxu1 %vm19113_vm10, %v16967_v60 }
0x4350   :  { %v17797_v29 = vpop.eup %17796  ;;  %16165 = vmatprep.mubr.msk.f32.mxu1 %vm728_vm6, %v10888_v10  ;;  %16944 = vmatpush3.bf16.msra.mxu0 %v16941_v33 }
0x4351   :  { %v17799_v32 = vpop.eup %17798  ;;  %v10348_v54 = vmul.f32 %v17797_v29, %v19999_v0  ;;  %16946 = vmatprep.subr.bf16.mxu0 %v20096_v1 }
0x4352   :  { %v10347_v12 = vmul.f32 %v17799_v32, %v20001_v6  ;;  %v10890_v40 = vpop.permute.xlu1 %10889 }
0x4354   :  { %16123 = vmatprep.mubr.msk.f32.mxu0 %vm728_vm6, %v10347_v12 }
0x4355   :  { %16124 = vmatmul.mubr.msk.f32.vlgmr.msra.gmra.mrb[120].mxu0 %vm728_vm6, %v10348_v54 }
0x4356   :  { %16166 = vmatmul.mubr.msk.f32.vlgmr.msra.gmra.mrb[94].mxu1 %vm728_vm6, %v10890_v40  ;;  %16948 = vmatpush3.bf16.msra.mxu0 %v20096_v1 }
0x4357   :  { %16950 = vmatprep.subr.bf16.mxu0 %v20106_v56 }
0x437a   :  { %v10697_v30 = vpop.xlane.xlu0 %10696 }
0x437b   :  { %v10701_v45 = vsub.f32 %v10693_v51, %v10697_v30 }
0x437d   :  { %v10703_v34 = vmul.f32 1.442695, %v10701_v45 }
0x437f   :  { %17800 = vpow2.f32 %v10703_v34 }
0x4383   :  { %v10700_v52 = vpop.xlane.xlu1 %10699 }
0x4384   :  { %v10702_v21 = vsub.f32 %v10694_v2, %v10700_v52 }
0x4386   :  { %v10705_v59 = vmul.f32 1.442695, %v10702_v21 }
0x4387   :  { %v17406_v25 = vpop.permute.xlu1 %17405 }
0x4388   :  { %17802 = vpow2.f32 %v10705_v59  ;;  %v17408_v40 = vunpack.i.h.bf16 %v17406_v25  ;;  %v17407_v30 = vunpack.i.l.bf16 %v17406_v25 }
0x4389   :  { %v20058_v23 = vpop.eup %17800 }
0x438a   :  { %v10707_v0 = vsel %vm728_vm6, %v20058_v23, 0.0 }
0x438b   :  { %10708 = vadd.xlane.f32.xlu0 %v10707_v0 }
0x4392   :  { %v20062_v6 = vpop.eup %17802 }
0x4393   :  { %v10710_v58 = vsel %vm728_vm6, %v20062_v6, 0.0 }
0x4394   :  { %10711 = vadd.xlane.f32.xlu0 %v10710_v58 }
0x4395   :  { %v10004_v41 = vpop.f32.mrb[110].mxu0 }
0x4396   :  { %v20067_v5 = vadd.f32 %v10004_v41, %v19874_v31  ;;  %v10006_v27 = vpop.f32.mrb[111].mxu0 }
0x4397   :  { %v10007_v15 = vadd.f32 %v10006_v27, %v19880_v50  ;;  %v16959_v27 = vpack.c.bf16 %v17408_v40, %v17407_v30 }
0x4398   :  { %16186 = vmatprep.mubr.msk.f32.mxu1 %vm728_vm6, %v20067_v5 }
0x4399   :  { %v10010_v8 = vpop.f32.mrb[112].mxu0 }
0x439a   :  { %v20072_v62 = vadd.f32 %v10010_v8, %v19874_v31  ;;  %v10012_v14 = vpop.f32.mrb[113].mxu0 }
0x439b   :  { %v10013_v43 = vadd.f32 %v10012_v14, %v19880_v50 }
0x439c   :  { %v20078_v4 = vpack.i.bf16 %v20072_v62, %v20067_v5 }
0x439d   :  { %v20080_v51 = vpop.f32.mrb[114].mxu0  ;;  %v20082_v24 = vpack.c.bf16 %v10013_v43, %v10007_v15  ;;  %v20084_v26 = vpack.i.bf16 %v10013_v43, %v10007_v15 }
0x439e   :  { %17415 = vrot.lane.b32.xlu1 %v20078_v4, %s17964_s15  ;;  %v10018_v2 = vpop.f32.mrb[115].mxu0 }
0x439f   :  { %v10019_v55 = vadd.f32 %v10018_v2, %v19880_v50 }
0x43a2   :  { %v20088_v20 = vpop.f32.mrb[116].mxu0  ;;  %11370 = vrot.lane.b32.xlu1 %v20067_v5, %s17963_s14 }
0x43a3   :  { %v10024_v35 = vpop.f32.mrb[117].mxu0 }
0x43a4   :  { %v10025_v57 = vadd.f32 %v10024_v35, %v19880_v50 }
0x43a6   :  { %v20098_v49 = vpack.c.bf16 %v10025_v57, %v10019_v55  ;;  %v20100_v53 = vpack.i.bf16 %v10025_v57, %v10019_v55 }
0x43aa   :  { %17410 = vrot.lane.b32.xlu0 %v20078_v4, %s17962_s13 }
0x43ae   :  { %11372 = vrot.lane.b32.xlu0 %v20072_v62, %s17963_s14 }
0x4410   :  { %v17416_v33 = vpop.permute.xlu1 %17415 }
0x4411   :  { %v17418_v10 = vunpack.i.h.bf16 %v17416_v33  ;;  %v17417_v32 = vunpack.i.l.bf16 %v17416_v33 }
0x4413   :  { %v16991_v21 = vpack.c.bf16 %v17418_v10, %v17417_v32 }
0x4414   :  { %v11371_v35 = vpop.permute.xlu1 %11370 }
0x4418   :  { %v10709_v50 = vpop.xlane.xlu0 %10708 }
0x4419   :  { %17804 = vrcp.f32 %v10709_v50  ;;  %v20142_v50 = vpack.c.bf16 %v14664_v9, %v14663_v47  ;;  %v14665_v47 = vld [vmem:[%s19292_s8 + $0x70] sm:$0xff]  ;;  %v14666_v9 = vld [vmem:[%s19292_s8 + $0x78] sm:$0xff]  ;;  %s14307_s8 = sld [smem:[%s20612_s0 + %s17997_s20]]  }
0x4420   :  { %v16111_v42 = vpop.f32.mrb[118].mxu0 }
0x4421   :  { %v10223_v63 = vpop.f32.mrb[119].mxu0  ;;  %v10712_v60 = vpop.xlane.xlu0 %10711 }
0x4422   :  { %17806 = vrcp.f32 %v10712_v60 }
0x4423   :  { %v17805_v2 = vpop.eup %17804 }
0x4424   :  { %v10715_v57 = vmul.f32 %v17805_v2, %v20058_v23 }
0x4425   :  { %v17411_v29 = vpop.permute.xlu0 %17410 }
0x4426   :  { %v17413_v12 = vunpack.i.h.bf16 %v17411_v29  ;;  %v17412_v54 = vunpack.i.l.bf16 %v17411_v29 }
0x4428   :  { %v16981_v45 = vpack.c.bf16 %v17413_v12, %v17412_v54  ;;  %v16125_v34 = vpop.f32.mrb[120].mxu0 }
0x4429   :  { %v16167_v52 = vpop.f32.mrb[94].mxu1  ;;  %v10429_v0 = vpop.f32.mrb[121].mxu0 }
0x442a   :  { %v10979_v59 = vmul.f32 0.25, %v16167_v52  ;;  %v10969_v58 = vpop.f32.mrb[95].mxu1  ;;  %16983 = vmatprep.subr.msk.bf16.mxu1 %vm19113_vm10, %v16981_v45  ;;  %16130 = vmatprep.mubr.msk.f32.mxu0 %vm728_vm6, %v10429_v0  ;;  %v11373_v48 = vpop.permute.xlu0 %11372 }
0x442b   :  { %v10978_v41 = vmul.f32 0.25, %v10969_v58  ;;  %16986 = vmatpush3.bf16.xpose.msk.msra.mxu1 %vm19113_vm10, %v16981_v45  ;;  %16131 = vmatmul.mubr.msk.f32.vlgmr.msra.gmra.mrb[122].mxu0 %vm728_vm6, %v16125_v34 }
0x442c   :  { %v10981_v8 = vsel %vm19153_vm12, %v10979_v59, -3.4028235e+38  ;;  %16993 = vmatprep.subr.msk.bf16.mxu1 %vm19113_vm10, %v16991_v21  ;;  %16952 = vmatpush3.bf16.msra.mxu0 %v20106_v56  ;;  %v17807_v55 = vpop.eup %17806 }
0x442d   :  { %v10980_v14 = vsel %vm19149_vm11, %v10978_v41, -3.4028235e+38  ;;  %16137 = vmatprep.mubr.msk.f32.mxu0 %vm728_vm6, %v10223_v63  ;;  %v10985_v15 = vsel %vm728_vm6, %v10981_v8, -inf  ;;  %16960 = vmatprep.subr.bf16.mxu0 %v16959_v27  ;;  %v10716_v36 = vmul.f32 %v17807_v55, %v20062_v6 }
0x442e   :  { %10986 = vmax.xlane.f32.xlu0 %v10985_v15  ;;  %v10982_v43 = vsel %vm728_vm6, %v10980_v14, -inf }
0x442f   :  { %10983 = vmax.xlane.f32.xlu1 %v10982_v43 }
0x4432   :  { %16187 = vmatmul.mubr.msk.f32.vlgmr.msra.gmra.mrb[96].mxu1 %vm728_vm6, %v20072_v62 }
0x4433   :  { %16996 = vmatpush3.bf16.xpose.msk.msra.mxu1 %vm19113_vm10, %v16991_v21  ;;  %16200 = vmatprep.mubr.msk.f32.mxu1 %vm728_vm6, %v11371_v35 }
0x4434   :  { %16138 = vmatmul.mubr.msk.f32.vlgmr.msra.gmra.mrb[122].mxu0 %vm728_vm6, %v16111_v42 }
0x4435   :  { %16962 = vmatpush3.bf16.msra.mxu0 %v16959_v27  ;;  %16151 = vmatprep.mubr.msk.f32.mxu0 %vm728_vm6, %v10715_v57 }
0x4436   :  { %16964 = vmatprep.subr.bf16.mxu0 %v20142_v50 }
0x4438   :  { %16152 = vmatmul.mubr.msk.f32.vlgmr.msra.gmra.mrb[124].mxu0 %vm728_vm6, %v10716_v36 }
0x4439   :  { %16966 = vmatpush3.bf16.msra.mxu0 %v20142_v50 }
0x443a   :  { %16201 = vmatmul.mubr.msk.f32.vlgmr.msra.gmra.mrb[98].mxu1 %vm728_vm6, %v11373_v48 }
0x44bb   :  { %v10987_v23 = vpop.xlane.xlu0 %10986 }
0x44bc   :  { %v10989_v25 = vsub.f32 %v10981_v8, %v10987_v23  ;;  %v10984_v42 = vpop.xlane.xlu1 %10983 }
0x44bd   :  { %v10988_v63 = vsub.f32 %v10980_v14, %v10984_v42 }
0x44be   :  { %v10992_v60 = vmul.f32 1.442695, %v10989_v25 }
0x44bf   :  { %v10990_v33 = vmul.f32 1.442695, %v10988_v63 }
0x44c0   :  { %17808 = vpow2.f32 %v10992_v60 }
0x44c1   :  { %17810 = vpow2.f32 %v10990_v33  ;;  %v20172_v33 = vpack.c.bf16 %v14666_v9, %v14665_v47 }
0x44ca   :  { %v17809_v6 = vpop.eup %17808 }
0x44cb   :  { %v17811_v10 = vpop.eup %17810  ;;  %v10997_v29 = vsel %vm728_vm6, %v17809_v6, 0.0 }
0x44cc   :  { %10998 = vadd.xlane.f32.xlu1 %v10997_v29  ;;  %v10994_v32 = vsel %vm728_vm6, %v17811_v10, 0.0 }
0x44cd   :  { %10995 = vadd.xlane.f32.xlu0 %v10994_v32 }
0x44dd   :  { %17425 = vrot.lane.b32.xlu1 %v20078_v4, %s17965_s16 }
0x44e1   :  { %11738 = vrot.lane.b32.xlu1 %v20067_v5, %s17966_s17 }
0x44e3   :  { %17420 = vrot.lane.b32.xlu0 %v19893_v3, %s17969_s22 }
0x44e7   :  { %11740 = vrot.lane.b32.xlu0 %v20072_v62, %s17966_s17 }
0x4505   :  { %v16188_v12 = vpop.f32.mrb[96].mxu1 }
0x4506   :  { %v11264_v54 = vmul.f32 0.25, %v16188_v12  ;;  %v11254_v40 = vpop.f32.mrb[97].mxu1 }
0x4507   :  { %v11263_v30 = vmul.f32 0.25, %v11254_v40 }
0x4508   :  { %v11266_v45 = vsel %vm19153_vm12, %v11264_v54, -3.4028235e+38 }
0x4509   :  { %v11265_v34 = vsel %vm19149_vm11, %v11263_v30, -3.4028235e+38  ;;  %v11270_v52 = vsel %vm728_vm6, %v11266_v45, -inf }
0x450a   :  { %11271 = vmax.xlane.f32.xlu0 %v11270_v52  ;;  %v11267_v21 = vsel %vm728_vm6, %v11265_v34, -inf }
0x450b   :  { %v16153_v59 = vpop.f32.mrb[124].mxu0  ;;  %11268 = vmax.xlane.f32.xlu1 %v11267_v21 }
0x450c   :  { %v10795_v3 = vpop.f32.mrb[125].mxu0 }
0x450d   :  { %16158 = vmatprep.mubr.msk.f32.mxu0 %vm728_vm6, %v10795_v3  ;;  %v16202_v0 = vpop.f32.mrb[98].mxu1 }
0x450e   :  { %16159 = vmatmul.mubr.msk.f32.vlgmr.msra.gmra.mrb[122].mxu0 %vm728_vm6, %v16153_v59  ;;  %v11462_v58 = vmul.f32 0.25, %v16202_v0  ;;  %v11452_v41 = vpop.f32.mrb[99].mxu1 }
0x450f   :  { %v11461_v27 = vmul.f32 0.25, %v11452_v41 }
0x4510   :  { %v11464_v8 = vsel %vm19153_vm12, %v11462_v58, -3.4028235e+38 }
0x4511   :  { %v11463_v14 = vsel %vm19149_vm11, %v11461_v27, -3.4028235e+38  ;;  %v11468_v15 = vsel %vm728_vm6, %v11464_v8, -inf }
0x4512   :  { %11469 = vmax.xlane.f32.xlu1 %v11468_v15  ;;  %v11465_v43 = vsel %vm728_vm6, %v11463_v14, -inf }
0x4513   :  { %11466 = vmax.xlane.f32.xlu0 %v11465_v43 }
0x4559   :  { %v10999_v2 = vpop.xlane.xlu1 %10998 }
0x455a   :  { %17812 = vrcp.f32 %v10999_v2  ;;  %v10996_v35 = vpop.xlane.xlu0 %10995 }
0x455b   :  { %17814 = vrcp.f32 %v10996_v35 }
0x455d   :  { %v17426_v55 = vpop.permute.xlu1 %17425 }
0x455e   :  { %v17428_v57 = vunpack.i.h.bf16 %v17426_v55  ;;  %v17427_v36 = vunpack.i.l.bf16 %v17426_v55  ;;  %v17421_v48 = vpop.permute.xlu0 %17420 }
0x455f   :  { %v17423_v23 = vunpack.i.h.bf16 %v17421_v48  ;;  %v17422_v25 = vunpack.i.l.bf16 %v17421_v48 }
0x4560   :  { %v17009_v42 = vpack.c.bf16 %v17428_v57, %v17427_v36 }
0x4561   :  { %v16973_v63 = vpack.c.bf16 %v17423_v23, %v17422_v25  ;;  %v11739_v60 = vpop.permute.xlu1 %11738 }
0x4562   :  { %17011 = vmatprep.subr.msk.bf16.mxu1 %vm19113_vm10, %v17009_v42  ;;  %16228 = vmatprep.mubr.msk.f32.mxu1 %vm728_vm6, %v11739_v60  ;;  %v11741_v40 = vpop.permute.xlu0 %11740 }
0x4563   :  { %16974 = vmatprep.subr.bf16.mxu0 %v16973_v63  ;;  %17014 = vmatpush3.bf16.xpose.msk.msra.mxu1 %vm19113_vm10, %v17009_v42 }
0x4564   :  { %v17813_v29 = vpop.eup %17812  ;;  %16976 = vmatpush3.bf16.msra.mxu0 %v16973_v63 }
0x4565   :  { %v17815_v32 = vpop.eup %17814  ;;  %16978 = vmatprep.subr.bf16.mxu0 %v20172_v33  ;;  %v11003_v54 = vmul.f32 %v17813_v29, %v17809_v6 }
0x4566   :  { %v11002_v12 = vmul.f32 %v17815_v32, %v17811_v10 }
0x4568   :  { %16172 = vmatprep.mubr.msk.f32.mxu0 %vm728_vm6, %v11002_v12 }
0x4569   :  { %16173 = vmatmul.mubr.msk.f32.vlgmr.msra.gmra.mrb[126].mxu0 %vm728_vm6, %v11003_v54 }
0x456a   :  { %16980 = vmatpush3.bf16.msra.mxu0 %v20172_v33  ;;  %16229 = vmatmul.mubr.msk.f32.vlgmr.msra.gmra.mrb[100].mxu1 %vm728_vm6, %v11741_v40 }
0x456b   :  { %16988 = vmatprep.subr.bf16.mxu0 %v20082_v24 }
0x4597   :  { %v11272_v30 = vpop.xlane.xlu0 %11271 }
0x4598   :  { %v11274_v52 = vsub.f32 %v11266_v45, %v11272_v30  ;;  %v11269_v21 = vpop.xlane.xlu1 %11268 }
0x4599   :  { %v11273_v59 = vsub.f32 %v11265_v34, %v11269_v21 }
0x459a   :  { %v11277_v3 = vmul.f32 1.442695, %v11274_v52 }
0x459b   :  { %v11275_v0 = vmul.f32 1.442695, %v11273_v59 }
0x459c   :  { %17816 = vpow2.f32 %v11277_v3 }
0x459d   :  { %17818 = vpow2.f32 %v11275_v0 }
0x459f   :  { %v11470_v6 = vpop.xlane.xlu1 %11469 }
0x45a0   :  { %v11472_v10 = vsub.f32 %v11464_v8, %v11470_v6  ;;  %v11467_v58 = vpop.xlane.xlu0 %11466 }
0x45a1   :  { %v11471_v41 = vsub.f32 %v11463_v14, %v11467_v58 }
0x45a2   :  { %v11475_v27 = vmul.f32 1.442695, %v11472_v10 }
0x45a3   :  { %v11473_v15 = vmul.f32 1.442695, %v11471_v41 }
0x45a4   :  { %17820 = vpow2.f32 %v11475_v27 }
0x45a5   :  { %17822 = vpow2.f32 %v11473_v15 }
0x45a6   :  { %v17817_v43 = vpop.eup %17816 }
0x45a7   :  { %v17819_v2 = vpop.eup %17818  ;;  %v11282_v35 = vsel %vm728_vm6, %v17817_v43, 0.0 }
0x45a8   :  { %11283 = vadd.xlane.f32.xlu1 %v11282_v35  ;;  %v11279_v45 = vsel %vm728_vm6, %v17819_v2, 0.0 }
0x45a9   :  { %11280 = vadd.xlane.f32.xlu0 %v11279_v45 }
0x45ae   :  { %v17821_v34 = vpop.eup %17820 }
0x45af   :  { %v17823_v55 = vpop.eup %17822  ;;  %v11480_v57 = vsel %vm728_vm6, %v17821_v34, 0.0 }
0x45b0   :  { %11481 = vadd.xlane.f32.xlu1 %v11480_v57  ;;  %v11477_v8 = vsel %vm728_vm6, %v17823_v55, 0.0 }
0x45b1   :  { %11478 = vadd.xlane.f32.xlu0 %v11477_v8 }
0x45c1   :  { %17435 = vrot.lane.b32.xlu1 %v20078_v4, %s17970_s23 }
0x45c5   :  { %12025 = vrot.lane.b32.xlu1 %v20067_v5, %s17969_s22 }
0x45c7   :  { %17430 = vrot.lane.b32.xlu0 %v20084_v26, %s17963_s14 }
0x45cb   :  { %12027 = vrot.lane.b32.xlu0 %v20072_v62, %s17969_s22 }
0x4635   :  { %v11284_v14 = vpop.xlane.xlu1 %11283 }
0x4636   :  { %17824 = vrcp.f32 %v11284_v14  ;;  %v11281_v36 = vpop.xlane.xlu0 %11280 }
0x4637   :  { %17826 = vrcp.f32 %v11281_v36 }
0x463c   :  { %v16174_v48 = vpop.f32.mrb[126].mxu0 }
0x463d   :  { %v11482_v47 = vpop.xlane.xlu1 %11481  ;;  %v11082_v9 = vpop.f32.mrb[127].mxu0 }
0x463e   :  { %17828 = vrcp.f32 %v11482_v47  ;;  %v16230_v23 = vpop.f32.mrb[100].mxu1  ;;  %v11479_v25 = vpop.xlane.xlu0 %11478  ;;  %16179 = vmatprep.mubr.msk.f32.mxu0 %vm728_vm6, %v11082_v9  ;;  %v20229_v47 = vadd.f32 %v20088_v20, %v19874_v31 }
0x463f   :  { %v11830_v4 = vmul.f32 0.25, %v16230_v23  ;;  %v11820_v5 = vpop.f32.mrb[101].mxu1  ;;  %17830 = vrcp.f32 %v11479_v25  ;;  %16180 = vmatmul.mubr.msk.f32.vlgmr.msra.gmra.mrb[122].mxu0 %vm728_vm6, %v16174_v48 }
0x4640   :  { %v17825_v42 = vpop.eup %17824  ;;  %v11829_v63 = vmul.f32 0.25, %v11820_v5  ;;  %16990 = vmatpush3.bf16.msra.mxu0 %v20082_v24 }
0x4641   :  { %v17827_v62 = vpop.eup %17826  ;;  %v11832_v60 = vsel %vm19153_vm12, %v11830_v4, -3.4028235e+38  ;;  %v17436_v29 = vpop.permute.xlu1 %17435  ;;  %v11288_v24 = vmul.f32 %v17825_v42, %v17817_v43  ;;  %v20218_v43 = vadd.f32 %v20080_v51, %v19874_v31 }
0x4642   :  { %v11831_v32 = vsel %vm19149_vm11, %v11829_v63, -3.4028235e+38  ;;  %v17438_v12 = vunpack.i.h.bf16 %v17436_v29  ;;  %v17437_v54 = vunpack.i.l.bf16 %v17436_v29  ;;  %v11836_v40 = vsel %vm728_vm6, %v11832_v60, -inf  ;;  %v17431_v30 = vpop.permute.xlu0 %17430 }
0x4643   :  { %11837 = vmax.xlane.f32.xlu0 %v11836_v40  ;;  %v17433_v52 = vunpack.i.h.bf16 %v17431_v30  ;;  %v17432_v21 = vunpack.i.l.bf16 %v17431_v30  ;;  %v11833_v59 = vsel %vm728_vm6, %v11831_v32, -inf  ;;  %v11287_v3 = vmul.f32 %v17827_v62, %v17819_v2 }
0x4644   :  { %v17023_v0 = vpack.c.bf16 %v17438_v12, %v17437_v54  ;;  %11834 = vmax.xlane.f32.xlu1 %v11833_v59  ;;  %v20233_v9 = vpack.i.bf16 %v20229_v47, %v20218_v43 }
0x4645   :  { %v16997_v6 = vpack.c.bf16 %v17433_v52, %v17432_v21  ;;  %16193 = vmatprep.mubr.msk.f32.mxu0 %vm728_vm6, %v11287_v3  ;;  %v12026_v10 = vpop.permute.xlu1 %12025 }
0x4646   :  { %16194 = vmatmul.mubr.msk.f32.vlgmr.msra.gmra.mrb[128].mxu0 %vm728_vm6, %v11288_v24  ;;  %17025 = vmatprep.subr.msk.bf16.mxu1 %vm19113_vm10, %v17023_v0  ;;  %v12028_v2 = vpop.permute.xlu0 %12027 }
0x4647   :  { %16249 = vmatprep.mubr.msk.f32.mxu1 %vm728_vm6, %v12026_v10  ;;  %16998 = vmatprep.subr.bf16.mxu0 %v16997_v6 }
0x4648   :  { %v17829_v58 = vpop.eup %17828  ;;  %17028 = vmatpush3.bf16.xpose.msk.msra.mxu1 %vm19113_vm10, %v17023_v0  ;;  %17000 = vmatpush3.bf16.msra.mxu0 %v16997_v6 }
0x4649   :  { %v17831_v41 = vpop.eup %17830  ;;  %17002 = vmatprep.subr.bf16.mxu0 %v20096_v1  ;;  %v11486_v15 = vmul.f32 %v17829_v58, %v17821_v34 }
0x464a   :  { %v11485_v27 = vmul.f32 %v17831_v41, %v17823_v55 }
0x464c   :  { %16207 = vmatprep.mubr.msk.f32.mxu0 %vm728_vm6, %v11485_v27 }
0x464d   :  { %16208 = vmatmul.mubr.msk.f32.vlgmr.msra.gmra.mrb[130].mxu0 %vm728_vm6, %v11486_v15 }
0x464e   :  { %17004 = vmatpush3.bf16.msra.mxu0 %v20096_v1 }
0x464f   :  { %16250 = vmatmul.mubr.msk.f32.vlgmr.msra.gmra.mrb[102].mxu1 %vm728_vm6, %v12028_v2  ;;  %17006 = vmatprep.subr.bf16.mxu0 %v20106_v56 }
0x4650   :  { %16270 = vmatprep.mubr.msk.f32.mxu1 %vm728_vm6, %v20218_v43 }
0x46d0   :  { %v11838_v35 = vpop.xlane.xlu0 %11837 }
0x46d1   :  { %v11840_v45 = vsub.f32 %v11832_v60, %v11838_v35  ;;  %v11835_v34 = vpop.xlane.xlu1 %11834 }
0x46d2   :  { %v11839_v55 = vsub.f32 %v11831_v32, %v11835_v34 }
0x46d3   :  { %v11843_v57 = vmul.f32 1.442695, %v11840_v45 }
0x46d4   :  { %v11841_v8 = vmul.f32 1.442695, %v11839_v55 }
0x46d5   :  { %17832 = vpow2.f32 %v11843_v57 }
0x46d6   :  { %17834 = vpow2.f32 %v11841_v8 }
0x46df   :  { %v17833_v51 = vpop.eup %17832 }
0x46e0   :  { %v17835_v14 = vpop.eup %17834  ;;  %v11848_v36 = vsel %vm728_vm6, %v17833_v51, 0.0 }
0x46e1   :  { %11849 = vadd.xlane.f32.xlu1 %v11848_v36  ;;  %v11845_v48 = vsel %vm728_vm6, %v17835_v14, 0.0 }
0x46e2   :  { %11846 = vadd.xlane.f32.xlu0 %v11845_v48 }
0x46f2   :  { %17445 = vrot.lane.b32.xlu1 %v20233_v9, %s17962_s13  ;;  %s17995_s13 = smov 41  }
0x46f6   :  { %17450 = vrot.lane.b32.xlu1 %v20233_v9, %s17964_s15 }
0x46f8   :  { %17440 = vrot.lane.b32.xlu0 %v20084_v26, %s17966_s17 }
0x46fa   :  { %12510 = vrot.lane.b32.xlu1 %v20229_v47, %s17963_s14 }
0x46fc   :  { %12508 = vrot.lane.b32.xlu0 %v20218_v43, %s17963_s14 }
0x4712   :  { %v20245_v31 = vpop.f32.mrb[122].mxu0 }
0x4713   :  { %v20247_v20 = vpop.f32.mrb[123].mxu0 }
0x4719   :  { %v16195_v23 = vpop.f32.mrb[128].mxu0 }
0x471a   :  { %v11361_v25 = vpop.f32.mrb[129].mxu0 }
0x4720   :  { %v16209_v4 = vpop.f32.mrb[130].mxu0 }
0x4721   :  { %v11567_v5 = vpop.f32.mrb[131].mxu0 }
0x4722   :  { %v16251_v42 = vpop.f32.mrb[102].mxu1  ;;  %16214 = vmatprep.mubr.msk.f32.mxu0 %vm728_vm6, %v11567_v5 }
0x4723   :  { %v12117_v63 = vmul.f32 0.25, %v16251_v42  ;;  %v12107_v62 = vpop.f32.mrb[103].mxu1  ;;  %16215 = vmatmul.mubr.msk.f32.vlgmr.msra.gmra.mrb[132].mxu0 %vm728_vm6, %v16209_v4 }
0x4724   :  { %v12116_v60 = vmul.f32 0.25, %v12107_v62  ;;  %16221 = vmatprep.mubr.msk.f32.mxu0 %vm728_vm6, %v11361_v25  ;;  %17008 = vmatpush3.bf16.msra.mxu0 %v20106_v56 }
0x4725   :  { %v12119_v29 = vsel %vm19153_vm12, %v12117_v63, -3.4028235e+38 }
0x4726   :  { %v12118_v32 = vsel %vm19149_vm11, %v12116_v60, -3.4028235e+38  ;;  %v12123_v12 = vsel %vm728_vm6, %v12119_v29, -inf }
0x4727   :  { %12124 = vmax.xlane.f32.xlu1 %v12123_v12  ;;  %v12120_v54 = vsel %vm728_vm6, %v12118_v32, -inf }
0x4728   :  { %12121 = vmax.xlane.f32.xlu0 %v12120_v54 }
0x472b   :  { %16222 = vmatmul.mubr.msk.f32.vlgmr.msra.gmra.mrb[132].mxu0 %vm728_vm6, %v16195_v23 }
0x4738   :  { %17455 = vrot.lane.b32.xlu1 %v20084_v26, %s17969_s22 }
0x473c   :  { %12876 = vrot.lane.b32.xlu1 %v20218_v43, %s17966_s17 }
0x4740   :  { %12878 = vrot.lane.b32.xlu1 %v20229_v47, %s17966_s17 }
0x476e   :  { %v11850_v40 = vpop.xlane.xlu1 %11849 }
0x476f   :  { %17836 = vrcp.f32 %v11850_v40  ;;  %v11847_v30 = vpop.xlane.xlu0 %11846 }
0x4770   :  { %17838 = vrcp.f32 %v11847_v30 }
0x4772   :  { %v17446_v52 = vpop.permute.xlu1 %17445 }
0x4773   :  { %v17448_v21 = vunpack.i.h.bf16 %v17446_v52  ;;  %v17447_v59 = vunpack.i.l.bf16 %v17446_v52  ;;  %v17441_v3 = vpop.permute.xlu0 %17440 }
0x4774   :  { %v17443_v24 = vunpack.i.h.bf16 %v17441_v3  ;;  %v17442_v0 = vunpack.i.l.bf16 %v17441_v3 }
0x4775   :  { %v17037_v6 = vpack.c.bf16 %v17448_v21, %v17447_v59 }
0x4776   :  { %v17015_v10 = vpack.c.bf16 %v17443_v24, %v17442_v0  ;;  %v17451_v58 = vpop.permute.xlu1 %17450 }
0x4777   :  { %v17453_v26 = vunpack.i.h.bf16 %v17451_v58  ;;  %v17452_v41 = vunpack.i.l.bf16 %v17451_v58  ;;  %17039 = vmatprep.subr.msk.bf16.mxu1 %vm19113_vm10, %v17037_v6  ;;  %v12509_v34 = vpop.permute.xlu0 %12508 }
0x4778   :  { %17016 = vmatprep.subr.bf16.mxu0 %v17015_v10  ;;  %17042 = vmatpush3.bf16.xpose.msk.msra.mxu1 %vm19113_vm10, %v17037_v6 }
0x4779   :  { %v17837_v27 = vpop.eup %17836  ;;  %v17047_v15 = vpack.c.bf16 %v17453_v26, %v17452_v41  ;;  %17018 = vmatpush3.bf16.msra.mxu0 %v17015_v10 }
0x477a   :  { %v17839_v2 = vpop.eup %17838  ;;  %17020 = vmatprep.subr.bf16.mxu0 %v20142_v50  ;;  %v11854_v45 = vmul.f32 %v17837_v27, %v17833_v51  ;;  %v12511_v55 = vpop.permute.xlu1 %12510 }
0x477b   :  { %17049 = vmatprep.subr.msk.bf16.mxu1 %vm19113_vm10, %v17047_v15  ;;  %v11853_v35 = vmul.f32 %v17839_v2, %v17835_v14 }
0x477d   :  { %16235 = vmatprep.mubr.msk.f32.mxu0 %vm728_vm6, %v11853_v35 }
0x477e   :  { %16236 = vmatmul.mubr.msk.f32.vlgmr.msra.gmra.mrb[134].mxu0 %vm728_vm6, %v11854_v45 }
0x477f   :  { %16271 = vmatmul.mubr.msk.f32.vlgmr.msra.gmra.mrb[104].mxu1 %vm728_vm6, %v20229_v47  ;;  %17022 = vmatpush3.bf16.msra.mxu0 %v20142_v50 }
0x4780   :  { %17052 = vmatpush3.bf16.xpose.msk.msra.mxu1 %vm19113_vm10, %v17047_v15  ;;  %16284 = vmatprep.mubr.msk.f32.mxu1 %vm728_vm6, %v12509_v34 }
0x4787   :  { %16285 = vmatmul.mubr.msk.f32.vlgmr.msra.gmra.mrb[106].mxu1 %vm728_vm6, %v12511_v55 }
0x47b4   :  { %v12125_v57 = vpop.xlane.xlu1 %12124 }
0x47b5   :  { %v12127_v8 = vsub.f32 %v12119_v29, %v12125_v57  ;;  %v12122_v51 = vpop.xlane.xlu0 %12121 }
0x47b6   :  { %v12126_v14 = vsub.f32 %v12118_v32, %v12122_v51 }
0x47b7   :  { %v12130_v36 = vmul.f32 1.442695, %v12127_v8 }
0x47b8   :  { %v12128_v48 = vmul.f32 1.442695, %v12126_v14  ;;  %v17456_v23 = vpop.permute.xlu1 %17455 }
0x47b9   :  { %v17458_v25 = vunpack.i.h.bf16 %v17456_v23  ;;  %v17457_v4 = vunpack.i.l.bf16 %v17456_v23 }
0x47ba   :  { %17840 = vpow2.f32 %v12128_v48 }
0x47bb   :  { %v17029_v5 = vpack.c.bf16 %v17458_v25, %v17457_v4  ;;  %17842 = vpow2.f32 %v12130_v36 }
0x47bc   :  { %v12877_v42 = vpop.permute.xlu1 %12876 }
0x47bd   :  { %17030 = vmatprep.subr.bf16.mxu0 %v17029_v5  ;;  %16312 = vmatprep.mubr.msk.f32.mxu1 %vm728_vm6, %v12877_v42 }
0x47c0   :  { %v12879_v48 = vpop.permute.xlu1 %12878 }
0x47c4   :  { %v17841_v63 = vpop.eup %17840 }
0x47c5   :  { %v12132_v62 = vsel %vm728_vm6, %v17841_v63, 0.0  ;;  %v17843_v60 = vpop.eup %17842 }
0x47c6   :  { %12133 = vadd.xlane.f32.xlu0 %v12132_v62  ;;  %v12135_v29 = vsel %vm728_vm6, %v17843_v60, 0.0 }
0x47ca   :  { %12136 = vadd.xlane.f32.xlu0 %v12135_v29 }
0x47e0   :  { %17460 = vrot.lane.b32.xlu0 %v20233_v9, %s17965_s16  ;;  %s14310_s16 = sld [smem:[%s20612_s0 + %s17995_s13]]  }
0x4851   :  { %v16237_v32 = vpop.f32.mrb[134].mxu0 }
0x4852   :  { %v11933_v12 = vpop.f32.mrb[135].mxu0  ;;  %v16272_v54 = vpop.f32.mrb[104].mxu1 }
0x4853   :  { %v12402_v40 = vmul.f32 0.25, %v16272_v54  ;;  %v12392_v30 = vpop.f32.mrb[105].mxu1  ;;  %v12134_v52 = vpop.xlane.xlu0 %12133  ;;  %16242 = vmatprep.mubr.msk.f32.mxu0 %vm728_vm6, %v11933_v12 }
0x4854   :  { %v12401_v21 = vmul.f32 0.25, %v12392_v30  ;;  %17844 = vrcp.f32 %v12134_v52  ;;  %16243 = vmatmul.mubr.msk.f32.vlgmr.msra.gmra.mrb[132].mxu0 %vm728_vm6, %v16237_v32 }
0x4855   :  { %v12404_v59 = vsel %vm19153_vm12, %v12402_v40, -3.4028235e+38  ;;  %17032 = vmatpush3.bf16.msra.mxu0 %v17029_v5 }
0x4856   :  { %v12403_v3 = vsel %vm19149_vm11, %v12401_v21, -3.4028235e+38  ;;  %v12408_v24 = vsel %vm728_vm6, %v12404_v59, -inf  ;;  %17034 = vmatprep.subr.bf16.mxu0 %v20172_v33 }
0x4857   :  { %12409 = vmax.xlane.f32.xlu1 %v12408_v24  ;;  %v12137_v0 = vpop.xlane.xlu0 %12136  ;;  %v12405_v6 = vsel %vm728_vm6, %v12403_v3, -inf }
0x4858   :  { %17846 = vrcp.f32 %v12137_v0  ;;  %12406 = vmax.xlane.f32.xlu0 %v12405_v6 }
0x485a   :  { %v16286_v10 = vpop.f32.mrb[106].mxu1 }
0x485b   :  { %v12590_v58 = vpop.f32.mrb[107].mxu1  ;;  %v17461_v26 = vpop.permute.xlu0 %17460  ;;  %v12600_v41 = vmul.f32 0.25, %v16286_v10 }
0x485c   :  { %v12599_v27 = vmul.f32 0.25, %v12590_v58  ;;  %v17463_v15 = vunpack.i.h.bf16 %v17461_v26  ;;  %v17462_v2 = vunpack.i.l.bf16 %v17461_v26 }
0x485d   :  { %v12602_v8 = vsel %vm19153_vm12, %v12600_v41, -3.4028235e+38 }
0x485e   :  { %v17845_v35 = vpop.eup %17844  ;;  %v12601_v45 = vsel %vm19149_vm11, %v12599_v27, -3.4028235e+38  ;;  %v17065_v34 = vpack.c.bf16 %v17463_v15, %v17462_v2  ;;  %v12606_v36 = vsel %vm728_vm6, %v12602_v8, -inf }
0x485f   :  { %v12603_v55 = vsel %vm728_vm6, %v12601_v45, -inf  ;;  %v12140_v57 = vmul.f32 %v17845_v35, %v17841_v63 }
0x4860   :  { %12604 = vmax.xlane.f32.xlu0 %v12603_v55  ;;  %17067 = vmatprep.subr.msk.bf16.mxu1 %vm19113_vm10, %v17065_v34 }
0x4861   :  { %16256 = vmatprep.mubr.msk.f32.mxu0 %vm728_vm6, %v12140_v57  ;;  %17070 = vmatpush3.bf16.xpose.msk.msra.mxu1 %vm19113_vm10, %v17065_v34 }
0x4862   :  { %v17847_v51 = vpop.eup %17846 }
0x4863   :  { %v12141_v14 = vmul.f32 %v17847_v51, %v17843_v60 }
0x4864   :  { %12607 = vmax.xlane.f32.xlu0 %v12606_v36 }
0x4865   :  { %16257 = vmatmul.mubr.msk.f32.vlgmr.msra.gmra.mrb[136].mxu0 %vm728_vm6, %v12141_v14 }
0x4866   :  { %17036 = vmatpush3.bf16.msra.mxu0 %v20172_v33 }
0x4867   :  { %17044 = vmatprep.subr.bf16.mxu0 %v20098_v49 }
0x4868   :  { %16313 = vmatmul.mubr.msk.f32.vlgmr.msra.gmra.mrb[108].mxu1 %vm728_vm6, %v12879_v48 }
0x48e4   :  { %v12410_v23 = vpop.xlane.xlu1 %12409 }
0x48e5   :  { %v12412_v25 = vsub.f32 %v12404_v59, %v12410_v23  ;;  %v12407_v4 = vpop.xlane.xlu0 %12406 }
0x48e6   :  { %v12411_v5 = vsub.f32 %v12403_v3, %v12407_v4 }
0x48e7   :  { %v12415_v42 = vmul.f32 1.442695, %v12412_v25 }
0x48e8   :  { %v12413_v63 = vmul.f32 1.442695, %v12411_v5 }
0x48e9   :  { %17848 = vpow2.f32 %v12415_v42 }
0x48ea   :  { %17850 = vpow2.f32 %v12413_v63 }
0x48ed   :  { %v12605_v62 = vpop.xlane.xlu0 %12604 }
0x48ee   :  { %v12609_v60 = vsub.f32 %v12601_v45, %v12605_v62 }
0x48f0   :  { %v12611_v29 = vmul.f32 1.442695, %v12609_v60 }
0x48f1   :  { %v12608_v32 = vpop.xlane.xlu0 %12607 }
0x48f2   :  { %17852 = vpow2.f32 %v12611_v29  ;;  %v12610_v12 = vsub.f32 %v12602_v8, %v12608_v32 }
0x48f3   :  { %v17849_v54 = vpop.eup %17848 }
0x48f4   :  { %v17851_v40 = vpop.eup %17850  ;;  %v12613_v30 = vmul.f32 1.442695, %v12610_v12  ;;  %v12420_v52 = vsel %vm728_vm6, %v17849_v54, 0.0 }
0x48f5   :  { %12421 = vadd.xlane.f32.xlu0 %v12420_v52  ;;  %v12417_v21 = vsel %vm728_vm6, %v17851_v40, 0.0 }
0x48f6   :  { %17854 = vpow2.f32 %v12613_v30  ;;  %12418 = vadd.xlane.f32.xlu1 %v12417_v21 }
0x48fc   :  { %v17853_v59 = vpop.eup %17852 }
0x48fd   :  { %v12615_v3 = vsel %vm728_vm6, %v17853_v59, 0.0 }
0x48fe   :  { %12616 = vadd.xlane.f32.xlu1 %v12615_v3 }
0x4900   :  { %v17855_v24 = vpop.eup %17854 }
0x4901   :  { %v12618_v0 = vsel %vm728_vm6, %v17855_v24, 0.0 }
0x4902   :  { %12619 = vadd.xlane.f32.xlu0 %v12618_v0 }
0x490f   :  { %17465 = vrot.lane.b32.xlu1 %v20100_v53, %s17963_s14 }
0x4913   :  { %13163 = vrot.lane.b32.xlu1 %v20218_v43, %s17969_s22 }
0x4917   :  { %13165 = vrot.lane.b32.xlu1 %v20229_v47, %s17969_s22 }
0x4918   :  { %17470 = vrot.lane.b32.xlu0 %v20233_v9, %s17970_s23 }
0x4938   :  { %v16258_v6 = vpop.f32.mrb[136].mxu0 }
0x4939   :  { %v12220_v10 = vpop.f32.mrb[137].mxu0 }
0x493a   :  { %16263 = vmatprep.mubr.msk.f32.mxu0 %vm728_vm6, %v12220_v10 }
0x493b   :  { %16264 = vmatmul.mubr.msk.f32.vlgmr.msra.gmra.mrb[132].mxu0 %vm728_vm6, %v16258_v6  ;;  %v16314_v58 = vpop.f32.mrb[108].mxu1 }
0x493c   :  { %17046 = vmatpush3.bf16.msra.mxu0 %v20098_v49  ;;  %v12968_v26 = vmul.f32 0.25, %v16314_v58  ;;  %v12958_v41 = vpop.f32.mrb[109].mxu1  ;;  %v20337_v49 = vld [vmem:[%s19565_s2 + $0x1] ss:$0 sm:$0xff]  ;;  %s17998_s2 = smov 39  }
0x493d   :  { %v12967_v27 = vmul.f32 0.25, %v12958_v41  ;;  %v13459_v2 = vadd.f32 %v20245_v31, %v20337_v49  ;;  %s14308_s1 = sld [smem:[%s20612_s0 + %s17998_s2]]  }
0x493e   :  { %v12970_v43 = vsel %vm19153_vm12, %v12968_v26, -3.4028235e+38 }
0x493f   :  { %v12969_v47 = vsel %vm19149_vm11, %v12967_v27, -3.4028235e+38  ;;  %v12974_v9 = vsel %vm728_vm6, %v12970_v43, -inf  ;;  %v20342_v35 = vadd.f32 %v13459_v2, %v19783_v28 }
0x4940   :  { %12975 = vmax.xlane.f32.xlu1 %v12974_v9  ;;  %v12971_v15 = vsel %vm728_vm6, %v12969_v47, -inf }
0x4941   :  { %12972 = vmax.xlane.f32.xlu0 %v12971_v15  ;;  %v13477_v45 = vsel %vm517_vm3, %v20342_v35, 0.0 }
0x4951   :  { %17475 = vrot.lane.b32.xlu1 %v20100_v53, %s17966_s17  ;;  %s17996_s17 = smov 40  }
0x4952   :  { %s14309_s30 = sld [smem:[%s20612_s0 + %s17996_s17]]  }
0x4955   :  { %17480 = vrot.lane.b32.xlu1 %v20100_v53, %s17969_s22 }
0x4979   :  { %13478 = vadd.xlane.f32.xlu1 %v13477_v45 }
0x4982   :  { %v12422_v34 = vpop.xlane.xlu0 %12421 }
0x4983   :  { %17856 = vrcp.f32 %v12422_v34  ;;  %v12419_v55 = vpop.xlane.xlu1 %12418 }
0x4984   :  { %17858 = vrcp.f32 %v12419_v55 }
0x498b   :  { %v12617_v57 = vpop.xlane.xlu1 %12616 }
0x498c   :  { %17860 = vrcp.f32 %v12617_v57 }
0x498d   :  { %v17857_v8 = vpop.eup %17856 }
0x498e   :  { %v17859_v53 = vpop.eup %17858  ;;  %v12426_v48 = vmul.f32 %v17857_v8, %v17849_v54 }
0x498f   :  { %v17466_v51 = vpop.permute.xlu1 %17465  ;;  %v12620_v14 = vpop.xlane.xlu0 %12619  ;;  %v12425_v36 = vmul.f32 %v17859_v53, %v17851_v40 }
0x4990   :  { %v17468_v31 = vunpack.i.h.bf16 %v17466_v51  ;;  %v17467_v23 = vunpack.i.l.bf16 %v17466_v51  ;;  %17862 = vrcp.f32 %v12620_v14 }
0x4991   :  { %16277 = vmatprep.mubr.msk.f32.mxu0 %vm728_vm6, %v12425_v36 }
0x4992   :  { %v17053_v28 = vpack.c.bf16 %v17468_v31, %v17467_v23  ;;  %16278 = vmatmul.mubr.msk.f32.vlgmr.msra.gmra.mrb[138].mxu0 %vm728_vm6, %v12426_v48 }
0x4993   :  { %v13164_v25 = vpop.permute.xlu1 %13163  ;;  %v17471_v4 = vpop.permute.xlu0 %17470 }
0x4994   :  { %v17473_v5 = vunpack.i.h.bf16 %v17471_v4  ;;  %v17472_v42 = vunpack.i.l.bf16 %v17471_v4  ;;  %17054 = vmatprep.subr.bf16.mxu0 %v17053_v28  ;;  %16333 = vmatprep.mubr.msk.f32.mxu1 %vm728_vm6, %v13164_v25 }
0x4995   :  { %17056 = vmatpush3.bf16.msra.mxu0 %v17053_v28 }
0x4996   :  { %v17861_v63 = vpop.eup %17860  ;;  %v17079_v62 = vpack.c.bf16 %v17473_v5, %v17472_v42  ;;  %17058 = vmatprep.subr.bf16.mxu0 %v20096_v1 }
0x4997   :  { %v12623_v60 = vmul.f32 %v17861_v63, %v17853_v59  ;;  %v13166_v12 = vpop.permute.xlu1 %13165 }
0x4998   :  { %17081 = vmatprep.subr.msk.bf16.mxu1 %vm19113_vm10, %v17079_v62 }
0x4999   :  { %16291 = vmatprep.mubr.msk.f32.mxu0 %vm728_vm6, %v12623_v60  ;;  %17084 = vmatpush3.bf16.xpose.msk.msra.mxu1 %vm19113_vm10, %v17079_v62 }
0x499a   :  { %v17863_v29 = vpop.eup %17862 }
0x499b   :  { %v12624_v32 = vmul.f32 %v17863_v29, %v17855_v24  ;;  %v13458_v29 = vadd.f32 %v20337_v49, %v20247_v20 }
0x499d   :  { %16292 = vmatmul.mubr.msk.f32.vlgmr.msra.gmra.mrb[140].mxu0 %vm728_vm6, %v12624_v32 }
0x499e   :  { %17060 = vmatpush3.bf16.msra.mxu0 %v20096_v1 }
0x499f   :  { %17062 = vmatprep.subr.bf16.mxu0 %v20106_v56 }
0x49a0   :  { %16334 = vmatmul.mubr.msk.f32.vlgmr.msra.gmra.mrb[110].mxu1 %vm728_vm6, %v13166_v12 }
0x49a1   :  { %13688 = vmatprep.mubr.f32.mxu1 %v17957_v37 }
0x49cd   :  { %v12976_v54 = vpop.xlane.xlu1 %12975 }
0x49ce   :  { %v12978_v40 = vsub.f32 %v12970_v43, %v12976_v54  ;;  %v12973_v30 = vpop.xlane.xlu0 %12972  ;;  %v20381_v54 = vadd.f32 %v13458_v29, %v19776_v19  ;;  %v14776_v29 = vld [vmem:[%s19629_s11 + $0xb8] sm:$0xff] }
0x49cf   :  { %v12977_v52 = vsub.f32 %v12969_v47, %v12973_v30 }
0x49d0   :  { %v12981_v21 = vmul.f32 1.442695, %v12978_v40  ;;  %v13474_v20 = vsel %vm517_vm3, %v20381_v54, 0.0 }
0x49d1   :  { %v12979_v22 = vmul.f32 1.442695, %v12977_v52  ;;  %v17476_v26 = vpop.permute.xlu1 %17475 }
0x49d2   :  { %v17478_v27 = vunpack.i.h.bf16 %v17476_v26  ;;  %v17477_v43 = vunpack.i.l.bf16 %v17476_v26 }
0x49d3   :  { %17864 = vpow2.f32 %v12979_v22 }
0x49d4   :  { %17866 = vpow2.f32 %v12981_v21  ;;  %v17071_v2 = vpack.c.bf16 %v17478_v27, %v17477_v43 }
0x49d5   :  { %v17481_v51 = vpop.permute.xlu1 %17480 }
0x49d6   :  { %v17482_v23 = vunpack.i.l.bf16 %v17481_v51 }
0x49dd   :  { %v17865_v59 = vpop.eup %17864 }
0x49de   :  { %v12983_v3 = vsel %vm728_vm6, %v17865_v59, 0.0  ;;  %v17867_v24 = vpop.eup %17866 }
0x49df   :  { %12984 = vadd.xlane.f32.xlu0 %v12983_v3  ;;  %v12986_v1 = vsel %vm728_vm6, %v17867_v24, 0.0 }
0x49e3   :  { %12987 = vadd.xlane.f32.xlu0 %v12986_v1 }
0x4a0e   :  { %v16265_v0 = vpop.f32.mrb[132].mxu0 }
0x4a0f   :  { %v12301_v6 = vpop.f32.mrb[133].mxu0  ;;  %v13461_v30 = vadd.f32 %v16265_v0, %v20337_v49 }
0x4a11   :  { %v20392_v21 = vadd.f32 %v13461_v30, %v19917_v17  ;;  %v14778_v30 = vld [vmem:[%s19629_s11 + $0xc8] sm:$0xff] }
0x4a13   :  { %v13483_v22 = vsel %vm517_vm3, %v20392_v21, 0.0 }
0x4a65   :  { %v16279_v10 = vpop.f32.mrb[138].mxu0 }
0x4a66   :  { %v12499_v58 = vpop.f32.mrb[139].mxu0 }
0x4a6c   :  { %v12985_v41 = vpop.xlane.xlu0 %12984 }
0x4a6d   :  { %17868 = vrcp.f32 %v12985_v41 }
0x4a70   :  { %v12988_v47 = vpop.xlane.xlu0 %12987  ;;  %v16293_v9 = vpop.f32.mrb[140].mxu0 }
0x4a71   :  { %17870 = vrcp.f32 %v12988_v47  ;;  %v12705_v15 = vpop.f32.mrb[141].mxu0 }
0x4a72   :  { %16298 = vmatprep.mubr.msk.f32.mxu0 %vm728_vm6, %v12705_v15  ;;  %v13479_v15 = vpop.xlane.xlu1 %13478 }
0x4a73   :  { %16299 = vmatmul.mubr.msk.f32.vlgmr.msra.gmra.mrb[142].mxu0 %vm728_vm6, %v16293_v9  ;;  %v16335_v45 = vpop.f32.mrb[110].mxu1 }
0x4a74   :  { %17064 = vmatpush3.bf16.msra.mxu0 %v20106_v56  ;;  %16305 = vmatprep.mubr.msk.f32.mxu0 %vm728_vm6, %v12499_v58  ;;  %v13245_v34 = vpop.f32.mrb[111].mxu1  ;;  %v13255_v55 = vmul.f32 0.25, %v16335_v45  ;;  %v17483_v56 = vunpack.i.h.bf16 %v17481_v51 }
0x4a75   :  { %17072 = vmatprep.subr.bf16.mxu0 %v17071_v2  ;;  %v13254_v57 = vmul.f32 0.25, %v13245_v34 }
0x4a76   :  { %v13257_v36 = vsel %vm19153_vm12, %v13255_v55, -3.4028235e+38  ;;  %v17085_v25 = vpack.c.bf16 %v17483_v56, %v17482_v23 }
0x4a77   :  { %v17869_v8 = vpop.eup %17868  ;;  %v13256_v53 = vsel %vm19149_vm11, %v13254_v57, -3.4028235e+38  ;;  %v13261_v44 = vsel %vm728_vm6, %v13257_v36, -inf }
0x4a78   :  { %v13258_v14 = vsel %vm728_vm6, %v13256_v53, -inf  ;;  %v12991_v48 = vmul.f32 %v17869_v8, %v17865_v59 }
0x4a79   :  { %13259 = vmax.xlane.f32.xlu0 %v13258_v14 }
0x4a7b   :  { %v17871_v31 = vpop.eup %17870  ;;  %16306 = vmatmul.mubr.msk.f32.vlgmr.msra.gmra.mrb[142].mxu0 %vm728_vm6, %v16279_v10 }
0x4a7c   :  { %v12992_v28 = vmul.f32 %v17871_v31, %v17867_v24  ;;  %17074 = vmatpush3.bf16.msra.mxu0 %v17071_v2  ;;  %16319 = vmatprep.mubr.msk.f32.mxu0 %vm728_vm6, %v12991_v48 }
0x4a7d   :  { %13262 = vmax.xlane.f32.xlu0 %v13261_v44  ;;  %17076 = vmatprep.subr.bf16.mxu0 %v20142_v50 }
0x4a7f   :  { %16320 = vmatmul.mubr.msk.f32.vlgmr.msra.gmra.mrb[144].mxu0 %vm728_vm6, %v12992_v28 }
0x4a80   :  { %17078 = vmatpush3.bf16.msra.mxu0 %v20142_v50  ;;  %v13460_v50 = vadd.f32 %v20337_v49, %v12301_v6 }
0x4a81   :  { %17086 = vmatprep.subr.bf16.mxu0 %v17085_v25 }
0x4a82   :  { %v20387_v52 = vadd.f32 %v13460_v50, %v19911_v61  ;;  %v14775_v50 = vld [vmem:[%s19629_s11 + $0xb0] sm:$0xff] }
0x4a84   :  { %v13480_v19 = vsel %vm517_vm3, %v20387_v52, 0.0 }
0x4b06   :  { %v13260_v16 = vpop.xlane.xlu0 %13259 }
0x4b07   :  { %v13264_v4 = vsub.f32 %v13256_v53, %v13260_v16  ;;  %v14770_v16 = vld [vmem:[%s19629_s11 + $0x88] sm:$0xff] }
0x4b09   :  { %v13266_v5 = vmul.f32 1.442695, %v13264_v4  ;;  %v14772_v4 = vld [vmem:[%s19629_s11 + $0x98] sm:$0xff] }
0x4b0a   :  { %v13263_v42 = vpop.xlane.xlu0 %13262 }
0x4b0b   :  { %17872 = vpow2.f32 %v13266_v5  ;;  %v13265_v63 = vsub.f32 %v13257_v36, %v13263_v42  ;;  %v17093_v5 = vpack.c.bf16 %v14772_v4, %v14770_v16  ;;  %v14769_v42 = vld [vmem:[%s19629_s11 + $0x80] sm:$0xff] }
0x4b0c   :  { %v20476_v4 = vld [vmem:[%s19670_s5 + $0x1] ss:$0 sm:$0xff] }
0x4b0d   :  { %v13268_v62 = vmul.f32 1.442695, %v13265_v63  ;;  %v14771_v63 = vld [vmem:[%s19629_s11 + $0x90] sm:$0xff]  ;;  %17094 = vmatprep.subr.bf16.mxu1 %v17093_v5 }
0x4b0f   :  { %17874 = vpow2.f32 %v13268_v62  ;;  %v17095_v62 = vpack.c.bf16 %v14771_v63, %v14769_v42 }
0x4b11   :  { %17096 = vmatpush1.bf16.msra.mxu1 %v17095_v62 }
0x4b15   :  { %v17873_v60 = vpop.eup %17872 }
0x4b16   :  { %v13270_v32 = vsel %vm728_vm6, %v17873_v60, 0.0 }
0x4b17   :  { %13271 = vadd.xlane.f32.xlu0 %v13270_v32 }
0x4b19   :  { %v17875_v12 = vpop.eup %17874 }
0x4b1a   :  { %v13273_v40 = vsel %vm728_vm6, %v17875_v12, 0.0 }
0x4b1b   :  { %13274 = vadd.xlane.f32.xlu0 %v13273_v40 }
0x4b1f   :  { %13475 = vadd.xlane.f32.xlu0 %v13474_v20  ;;  %v14780_v20 = vld [vmem:[%s19629_s11 + $0xd8] sm:$0xff] }
0x4b23   :  { %13481 = vadd.xlane.f32.xlu0 %v13480_v19  ;;  %v17101_v19 = vpack.c.bf16 %v14780_v20, %v14778_v30  ;;  %v14820_v20 = vld [vmem:[%s19694_s12 + $0x180] sm:$0xff] }
0x4b27   :  { %13484 = vadd.xlane.f32.xlu0 %v13483_v22  ;;  %v14777_v22 = vld [vmem:[%s19629_s11 + $0xc0] sm:$0xff] }
0x4b52   :  { %v16321_v59 = vpop.f32.mrb[144].mxu0 }
0x4b53   :  { %v13071_v3 = vpop.f32.mrb[145].mxu0 }
0x4b54   :  { %16326 = vmatprep.mubr.msk.f32.mxu0 %vm728_vm6, %v13071_v3 }
0x4b55   :  { %16327 = vmatmul.mubr.msk.f32.vlgmr.msra.gmra.mrb[142].mxu0 %vm728_vm6, %v16321_v59  ;;  %v14779_v59 = vld [vmem:[%s19629_s11 + $0xd0] sm:$0xff] }
0x4b56   :  { %17088 = vmatpush3.bf16.msra.mxu0 %v17085_v25  ;;  %v17103_v3 = vpack.c.bf16 %v14779_v59, %v14777_v22  ;;  %v14804_v22 = vld [vmem:[%s19694_s12 + $0x100] sm:$0xff]  ;;  %v14805_v59 = vld [vmem:[%s19694_s12 + $0x108] sm:$0xff] }
0x4b57   :  { %17090 = vmatprep.subr.bf16.mxu0 %v20172_v33 }
0x4ba4   :  { %v13272_v61 = vpop.xlane.xlu0 %13271 }
0x4ba5   :  { %17876 = vrcp.f32 %v13272_v61  ;;  %v14782_v61 = vld [vmem:[%s19629_s11 + $0xe8] sm:$0xff] }
0x4ba8   :  { %v13275_v17 = vpop.xlane.xlu0 %13274 }
0x4ba9   :  { %17878 = vrcp.f32 %v13275_v17  ;;  %v14784_v17 = vld [vmem:[%s19629_s11 + $0xf8] sm:$0xff] }
0x4bac   :  { %v13476_v26 = vpop.xlane.xlu0 %13475 }
0x4bad   :  { %v13492_v43 = vmul.f32 0.015625, %v13476_v26 }
0x4baf   :  { %v17877_v24 = vpop.eup %17876  ;;  %v20412_v34 = vsub.f32 %v20381_v54, %v13492_v43 }
0x4bb0   :  { %v13278_v1 = vmul.f32 %v17877_v24, %v17873_v60  ;;  %v13482_v45 = vpop.xlane.xlu0 %13481  ;;  %v14774_v60 = vld [vmem:[%s19629_s11 + $0xa8] sm:$0xff]  ;;  %v17105_v24 = vpack.c.bf16 %v14784_v17, %v14782_v61  ;;  %v14822_v61 = vld [vmem:[%s19694_s12 + $0x190] sm:$0xff]  ;;  %v14823_v17 = vld [vmem:[%s19694_s12 + $0x198] sm:$0xff] }
0x4bb1   :  { %v13504_v53 = vmul.f32 %v20412_v34, %v20412_v34  ;;  %v17097_v32 = vpack.c.bf16 %v14776_v29, %v14774_v60 }
0x4bb2   :  { %16340 = vmatprep.mubr.msk.f32.mxu0 %vm728_vm6, %v13278_v1  ;;  %v14781_v1 = vld [vmem:[%s19629_s11 + $0xe0] sm:$0xff] }
0x4bb3   :  { %v17879_v0 = vpop.eup %17878  ;;  %v13510_v36 = vsel %vm517_vm3, %v13504_v53, 0.0  ;;  %17098 = vmatprep.subr.bf16.mxu1 %v17097_v32 }
0x4bb4   :  { %v13279_v6 = vmul.f32 %v17879_v0, %v17875_v12  ;;  %v13485_v51 = vpop.xlane.xlu0 %13484  ;;  %v14773_v12 = vld [vmem:[%s19629_s11 + $0xa0] sm:$0xff]  ;;  %v14783_v0 = vld [vmem:[%s19629_s11 + $0xf0] sm:$0xff] }
0x4bb5   :  { %v13495_v14 = vmul.f32 0.015625, %v13485_v51  ;;  %v17099_v40 = vpack.c.bf16 %v14775_v50, %v14773_v12 }
0x4bb6   :  { %16341 = vmatmul.mubr.msk.f32.vlgmr.msra.gmra.mrb[146].mxu0 %vm728_vm6, %v13279_v6  ;;  %v17107_v6 = vpack.c.bf16 %v14783_v0, %v14781_v1  ;;  %v14806_v1 = vld [vmem:[%s19694_s12 + $0x110] sm:$0xff]  ;;  %v14807_v0 = vld [vmem:[%s19694_s12 + $0x118] sm:$0xff] }
0x4bb7   :  { %17092 = vmatpush3.bf16.msra.mxu0 %v20172_v33  ;;  %v13493_v33 = vmul.f32 0.015625, %v13479_v15  ;;  %v20433_v31 = vsub.f32 %v20392_v21, %v13495_v14  ;;  %17100 = vmatpush1.bf16.msra.mxu1 %v17099_v40 }
0x4bb8   :  { %17102 = vmatprep.subr.bf16.mxu1 %v17101_v19  ;;  %v14821_v19 = vld [vmem:[%s19694_s12 + $0x188] sm:$0xff] }
0x4bb9   :  { %v20420_v8 = vsub.f32 %v20342_v35, %v13493_v33  ;;  %v13507_v44 = vmul.f32 %v20433_v31, %v20433_v31 }
0x4bbb   :  { %v13505_v48 = vmul.f32 %v20420_v8, %v20420_v8  ;;  %v13519_v25 = vsel %vm517_vm3, %v13507_v44, 0.0  ;;  %17104 = vmatpush1.bf16.msra.mxu1 %v17103_v3  ;;  %v17111_v3 = vpack.c.bf16 %v14805_v59, %v14804_v22 }
0x4bbc   :  { %17106 = vmatprep.subr.bf16.mxu1 %v17105_v24  ;;  %v17113_v24 = vpack.c.bf16 %v14823_v17, %v14822_v61 }
0x4bbd   :  { %v13513_v56 = vsel %vm517_vm3, %v13505_v48, 0.0 }
0x4bbf   :  { %17108 = vmatpush1.bf16.msra.mxu1 %v17107_v6  ;;  %v17115_v6 = vpack.c.bf16 %v14807_v0, %v14806_v1 }
0x4bc0   :  { %17141 = vmatprep.subr.bf16.mxu1 %v17967_v46 }
0x4c89   :  { %v16342_v10 = vpop.f32.mrb[146].mxu0 }
0x4c8a   :  { %v13358_v58 = vpop.f32.mrb[147].mxu0 }
0x4c8b   :  { %16347 = vmatprep.mubr.msk.f32.mxu0 %vm728_vm6, %v13358_v58 }
0x4c8c   :  { %16348 = vmatmul.mubr.msk.f32.vlgmr.msra.gmra.mrb[142].mxu0 %vm728_vm6, %v16342_v10 }
0x4d5f   :  { %v16349_v41 = vpop.f32.mrb[142].mxu0 }
0x4d60   :  { %v13439_v27 = vpop.f32.mrb[143].mxu0  ;;  %v13463_v47 = vadd.f32 %v16349_v41, %v20337_v49 }
0x4d61   :  { %v13462_v9 = vadd.f32 %v20337_v49, %v13439_v27  ;;  %v13494_v49 = vmul.f32 0.015625, %v13482_v45 }
0x4d62   :  { %v20415_v55 = vadd.f32 %v13463_v47, %v19947_v18 }
0x4d63   :  { %v20409_v2 = vadd.f32 %v13462_v9, %v19941_v7  ;;  %v20427_v18 = vsub.f32 %v20387_v52, %v13494_v49 }
0x4d64   :  { %v13489_v7 = vsel %vm517_vm3, %v20415_v55, 0.0 }
0x4d65   :  { %v13486_v57 = vsel %vm517_vm3, %v20409_v2, 0.0  ;;  %v13506_v23 = vmul.f32 %v20427_v18, %v20427_v18 }
0x4d66   :  { %13487 = vadd.xlane.f32.xlu0 %v13486_v57 }
0x4d67   :  { %v13516_v28 = vsel %vm517_vm3, %v13506_v23, 0.0 }
0x4d6a   :  { %13490 = vadd.xlane.f32.xlu0 %v13489_v7 }
0x4d6e   :  { %13511 = vadd.xlane.f32.xlu0 %v13510_v36 }
0x4d72   :  { %13514 = vadd.xlane.f32.xlu0 %v13513_v56 }
0x4d76   :  { %13517 = vadd.xlane.f32.xlu0 %v13516_v28 }
0x4d7a   :  { %13520 = vadd.xlane.f32.xlu0 %v13519_v25  ;;  %v20472_v25 = vld [vmem:[%s19664_s26 + $0x1] ss:$0 sm:$0xff] }
0x4df3   :  { %v13488_v10 = vpop.xlane.xlu0 %13487 }
0x4df4   :  { %v13496_v58 = vmul.f32 0.015625, %v13488_v10  ;;  %v14824_v10 = vld [vmem:[%s19694_s12 + $0x1a0] sm:$0xff] }
0x4df6   :  { %v20460_v26 = vsub.f32 %v20409_v2, %v13496_v58  ;;  %v14825_v58 = vld [vmem:[%s19694_s12 + $0x1a8] sm:$0xff] }
0x4df7   :  { %v13491_v41 = vpop.xlane.xlu0 %13490 }
0x4df8   :  { %v13497_v27 = vmul.f32 0.015625, %v13491_v41  ;;  %v13508_v43 = vmul.f32 %v20460_v26, %v20460_v26  ;;  %v17117_v41 = vpack.c.bf16 %v14825_v58, %v14824_v10 }
0x4dfa   :  { %v20465_v47 = vsub.f32 %v20415_v55, %v13497_v27  ;;  %v13522_v9 = vsel %vm517_vm3, %v13508_v43, 0.0  ;;  %v14808_v27 = vld [vmem:[%s19694_s12 + $0x120] sm:$0xff]  ;;  %v14809_v43 = vld [vmem:[%s19694_s12 + $0x128] sm:$0xff] }
0x4dfb   :  { %13523 = vadd.xlane.f32.xlu0 %v13522_v9  ;;  %v13512_v15 = vpop.xlane.xlu0 %13511  ;;  %v17119_v9 = vpack.c.bf16 %v14809_v43, %v14808_v27 }
0x4dfc   :  { %v13528_v45 = vmul.f32 0.015625, %v13512_v15  ;;  %v13509_v33 = vmul.f32 %v20465_v47, %v20465_v47  ;;  %v14826_v15 = vld [vmem:[%s19694_s12 + $0x1b0] sm:$0xff] }
0x4dfe   :  { %v13534_v57 = vadd.f32 1e-05, %v13528_v45  ;;  %v13525_v49 = vsel %vm517_vm3, %v13509_v33, 0.0  ;;  %v14827_v45 = vld [vmem:[%s19694_s12 + $0x1b8] sm:$0xff] }
0x4dff   :  { %13526 = vadd.xlane.f32.xlu1 %v13525_v49  ;;  %v13515_v7 = vpop.xlane.xlu0 %13514  ;;  %v17121_v33 = vpack.c.bf16 %v14827_v45, %v14826_v15  ;;  %v14811_v49 = vld [vmem:[%s19694_s12 + $0x138] sm:$0xff] }
0x4e00   :  { %17880 = vrsqrt.f32 %v13534_v57  ;;  %v13529_v53 = vmul.f32 0.015625, %v13515_v7  ;;  %v14810_v57 = vld [vmem:[%s19694_s12 + $0x130] sm:$0xff] }
0x4e01   :  { %v17123_v7 = vpack.c.bf16 %v14811_v49, %v14810_v57 }
0x4e02   :  { %v13535_v51 = vadd.f32 1e-05, %v13529_v53  ;;  %v14828_v53 = vld [vmem:[%s19694_s12 + $0x1c0] sm:$0xff] }
0x4e03   :  { %v13518_v14 = vpop.xlane.xlu0 %13517 }
0x4e04   :  { %17882 = vrsqrt.f32 %v13535_v51  ;;  %v13530_v36 = vmul.f32 0.015625, %v13518_v14  ;;  %v14829_v51 = vld [vmem:[%s19694_s12 + $0x1c8] sm:$0xff] }
0x4e05   :  { %v17125_v14 = vpack.c.bf16 %v14829_v51, %v14828_v53 }
0x4e06   :  { %v13536_v48 = vadd.f32 1e-05, %v13530_v36  ;;  %v14812_v36 = vld [vmem:[%s19694_s12 + $0x140] sm:$0xff] }
0x4e07   :  { %v13521_v56 = vpop.xlane.xlu0 %13520 }
0x4e08   :  { %17884 = vrsqrt.f32 %v13536_v48  ;;  %v13531_v23 = vmul.f32 0.015625, %v13521_v56  ;;  %v14813_v48 = vld [vmem:[%s19694_s12 + $0x148] sm:$0xff] }
0x4e09   :  { %v17127_v56 = vpack.c.bf16 %v14813_v48, %v14812_v36 }
0x4e0a   :  { %v17881_v28 = vpop.eup %17880  ;;  %v13537_v44 = vadd.f32 1e-05, %v13531_v23  ;;  %v14830_v23 = vld [vmem:[%s19694_s12 + $0x1d0] sm:$0xff] }
0x4e0b   :  { %v13546_v16 = vmul.f32 %v17881_v28, %v20412_v34  ;;  %v14831_v28 = vld [vmem:[%s19694_s12 + $0x1d8] sm:$0xff] }
0x4e0c   :  { %17886 = vrsqrt.f32 %v13537_v44  ;;  %v17129_v44 = vpack.c.bf16 %v14831_v28, %v14830_v23 }
0x4e0d   :  { %v13558_v5 = vmul.f32 %v20472_v25, %v13546_v16  ;;  %v14814_v16 = vld [vmem:[%s19694_s12 + $0x150] sm:$0xff] }
0x4e0e   :  { %v17883_v42 = vpop.eup %17882 }
0x4e0f   :  { %v13570_v63 = vadd.f32 %v20476_v4, %v13558_v5  ;;  %v13547_v62 = vmul.f32 %v17883_v42, %v20420_v8  ;;  %v14815_v5 = vld [vmem:[%s19694_s12 + $0x158] sm:$0xff] }
0x4e10   :  { %v17131_v42 = vpack.c.bf16 %v14815_v5, %v14814_v16 }
0x4e11   :  { %14786 = vmatmul.mubr.msk.f32.vlgmr.msra.gmra.mrb[112].mxu1 %vm517_vm3, %v13570_v63  ;;  %v13559_v60 = vmul.f32 %v20472_v25, %v13547_v62  ;;  %v14832_v63 = vld [vmem:[%s19694_s12 + $0x1e0] sm:$0xff]  ;;  %v14833_v62 = vld [vmem:[%s19694_s12 + $0x1e8] sm:$0xff] }
0x4e12   :  { %v17885_v29 = vpop.eup %17884  ;;  %13694 = vmatprep.mubr.f32.mxu1 %v17957_v37 }
0x4e13   :  { %v13571_v34 = vadd.f32 %v20476_v4, %v13559_v60  ;;  %v13548_v32 = vmul.f32 %v17885_v29, %v20427_v18  ;;  %v17133_v60 = vpack.c.bf16 %v14833_v62, %v14832_v63  ;;  %v14816_v29 = vld [vmem:[%s19694_s12 + $0x160] sm:$0xff] }
0x4e15   :  { %14787 = vmatmul.mubr.msk.f32.gmra.mrb[114].mxu1 %vm517_vm3, %v13571_v34  ;;  %v13560_v12 = vmul.f32 %v20472_v25, %v13548_v32  ;;  %v14817_v34 = vld [vmem:[%s19694_s12 + $0x168] sm:$0xff] }
0x4e16   :  { %v17887_v8 = vpop.eup %17886  ;;  %13700 = vmatprep.mubr.f32.mxu1 %v17957_v37  ;;  %v17135_v32 = vpack.c.bf16 %v14817_v34, %v14816_v29 }
0x4e17   :  { %v13572_v50 = vadd.f32 %v20476_v4, %v13560_v12  ;;  %v13549_v40 = vmul.f32 %v17887_v8, %v20433_v31  ;;  %v17109_v31 = vpack.c.bf16 %v14821_v19, %v14820_v20  ;;  %v14834_v12 = vld [vmem:[%s19694_s12 + $0x1f0] sm:$0xff]  ;;  %v14835_v8 = vld [vmem:[%s19694_s12 + $0x1f8] sm:$0xff] }
0x4e19   :  { %14788 = vmatmul.mubr.msk.f32.gmra.mrb[116].mxu1 %vm517_vm3, %v13572_v50  ;;  %v13561_v30 = vmul.f32 %v20472_v25, %v13549_v40  ;;  %17110 = vmatprep.subr.bf16.mxu0 %v17109_v31  ;;  %v17137_v50 = vpack.c.bf16 %v14835_v8, %v14834_v12  ;;  %v14818_v40 = vld [vmem:[%s19694_s12 + $0x170] sm:$0xff] }
0x4e1a   :  { %13706 = vmatprep.mubr.f32.mxu1 %v17957_v37  ;;  %17112 = vmatpush3.bf16.msra.mxu0 %v17111_v3 }
0x4e1b   :  { %v13573_v18 = vadd.f32 %v20476_v4, %v13561_v30  ;;  %17114 = vmatprep.subr.bf16.mxu0 %v17113_v24  ;;  %v14819_v30 = vld [vmem:[%s19694_s12 + $0x178] sm:$0xff] }
0x4e1d   :  { %14789 = vmatmul.mubr.msk.f32.gmra.mrb[118].mxu1 %vm517_vm3, %v13573_v18  ;;  %v17139_v18 = vpack.c.bf16 %v14819_v30, %v14818_v40 }
0x4e1e   :  { %13712 = vmatprep.mubr.f32.mxu1 %v17957_v37  ;;  %17116 = vmatpush3.bf16.msra.mxu0 %v17115_v6 }
0x4e1f   :  { %17118 = vmatprep.subr.bf16.mxu0 %v17117_v41 }
0x4e22   :  { %17120 = vmatpush3.bf16.msra.mxu0 %v17119_v9 }
0x4e23   :  { %17122 = vmatprep.subr.bf16.mxu0 %v17121_v33 }
0x4e26   :  { %17124 = vmatpush3.bf16.msra.mxu0 %v17123_v7 }
0x4e27   :  { %17126 = vmatprep.subr.bf16.mxu0 %v17125_v14 }
0x4e2a   :  { %17128 = vmatpush3.bf16.msra.mxu0 %v17127_v56 }
0x4e2b   :  { %17130 = vmatprep.subr.bf16.mxu0 %v17129_v44 }
0x4e2e   :  { %17132 = vmatpush3.bf16.msra.mxu0 %v17131_v42 }
0x4e2f   :  { %17134 = vmatprep.subr.bf16.mxu0 %v17133_v60 }
0x4e32   :  { %17136 = vmatpush3.bf16.msra.mxu0 %v17135_v32 }
0x4e33   :  { %17138 = vmatprep.subr.bf16.mxu0 %v17137_v50 }
0x4e36   :  { %17140 = vmatpush3.bf16.msra.mxu0 %v17139_v18 }
0x4e88   :  { %v13524_v20 = vpop.xlane.xlu0 %13523 }
0x4e89   :  { %v13532_v19 = vmul.f32 0.015625, %v13524_v20 }
0x4e8b   :  { %v13538_v31 = vadd.f32 1e-05, %v13532_v19 }
0x4e8c   :  { %v13527_v22 = vpop.xlane.xlu1 %13526 }
0x4e8d   :  { %17888 = vrsqrt.f32 %v13538_v31  ;;  %v13533_v59 = vmul.f32 0.015625, %v13527_v22 }
0x4e8f   :  { %v13539_v3 = vadd.f32 1e-05, %v13533_v59 }
0x4e91   :  { %17890 = vrsqrt.f32 %v13539_v3 }
0x4e97   :  { %v17889_v61 = vpop.eup %17888 }
0x4e98   :  { %v13550_v17 = vmul.f32 %v17889_v61, %v20460_v26  ;;  %v14785_v26 = vld [vmem:[%s19701_s9 + $0x2] sm:$0x3] }
0x4e99   :  { %v20542_v41 = vrot.slane %v14785_v26, %v18127_v39  ;;  %v20545_v27 = vrot.slane %v14785_v26, %v18227_v11 }
0x4e9a   :  { %v13562_v24 = vmul.f32 %v20472_v25, %v13550_v17 }
0x4e9b   :  { %v17891_v1 = vpop.eup %17890 }
0x4e9c   :  { %v13574_v0 = vadd.f32 %v20476_v4, %v13562_v24  ;;  %v13551_v6 = vmul.f32 %v17891_v1, %v20465_v47 }
0x4e9e   :  { %14790 = vmatmul.mubr.msk.f32.gmra.mrb[120].mxu1 %vm517_vm3, %v13574_v0  ;;  %v13563_v10 = vmul.f32 %v20472_v25, %v13551_v6 }
0x4e9f   :  { %13718 = vmatprep.mubr.f32.mxu1 %v17957_v37 }
0x4ea0   :  { %v13575_v58 = vadd.f32 %v20476_v4, %v13563_v10 }
0x4ea2   :  { %14791 = vmatmul.mubr.msk.f32.gmra.mrb[122].mxu1 %vm517_vm3, %v13575_v58 }
0x4ea3   :  { %16362 = vmatprep.mubr.msk.f32.mxu1 %vm17961_vm5, %v17957_v37 }
0x4ee4   :  { %v13690_v47 = vpop.f32.mrb[112].mxu1 }
0x4ee5   :  { %v20548_v43 = vadd.f32 %v13690_v47, %v20542_v41  ;;  %v13692_v25 = vpop.f32.mrb[113].mxu1 }
0x4ee6   :  { %v13693_v9 = vadd.f32 %v13692_v25, %v20545_v27 }
0x4ee7   :  { %v14792_v4 = vmul.f32 -1.702, %v20548_v43 }
0x4ee8   :  { %v14793_v15 = vmul.f32 -1.702, %v13693_v9  ;;  %v13696_v45 = vpop.f32.mrb[114].mxu1 }
0x4ee9   :  { %v13749_v33 = vmul.f32 1.442695, %v14792_v4  ;;  %v20553_v57 = vadd.f32 %v13696_v45, %v20542_v41  ;;  %v13698_v39 = vpop.f32.mrb[115].mxu1 }
0x4eea   :  { %v13751_v49 = vmul.f32 1.442695, %v14793_v15  ;;  %v13699_v11 = vadd.f32 %v13698_v39, %v20545_v27 }
0x4eeb   :  { %17892 = vpow2.f32 %v13749_v33  ;;  %v14794_v7 = vmul.f32 -1.702, %v20553_v57 }
0x4eec   :  { %17894 = vpow2.f32 %v13751_v49  ;;  %v14795_v53 = vmul.f32 -1.702, %v13699_v11  ;;  %v13702_v51 = vpop.f32.mrb[116].mxu1 }
0x4eed   :  { %v13753_v14 = vmul.f32 1.442695, %v14794_v7  ;;  %v13703_v36 = vadd.f32 %v13702_v51, %v20542_v41  ;;  %v13704_v48 = vpop.f32.mrb[117].mxu1 }
0x4eee   :  { %v13755_v56 = vmul.f32 1.442695, %v14795_v53  ;;  %v13705_v23 = vadd.f32 %v13704_v48, %v20545_v27 }
0x4eef   :  { %17896 = vpow2.f32 %v13753_v14  ;;  %v14796_v28 = vmul.f32 -1.702, %v13703_v36 }
0x4ef0   :  { %17898 = vpow2.f32 %v13755_v56  ;;  %v14797_v44 = vmul.f32 -1.702, %v13705_v23  ;;  %v13708_v16 = vpop.f32.mrb[118].mxu1 }
0x4ef1   :  { %v13757_v5 = vmul.f32 1.442695, %v14796_v28  ;;  %v13709_v42 = vadd.f32 %v13708_v16, %v20542_v41  ;;  %v13710_v63 = vpop.f32.mrb[119].mxu1 }
0x4ef2   :  { %v13759_v62 = vmul.f32 1.442695, %v14797_v44  ;;  %v13711_v60 = vadd.f32 %v13710_v63, %v20545_v27 }
0x4ef3   :  { %17900 = vpow2.f32 %v13757_v5  ;;  %v14798_v29 = vmul.f32 -1.702, %v13709_v42 }
0x4ef4   :  { %17902 = vpow2.f32 %v13759_v62  ;;  %v14799_v34 = vmul.f32 -1.702, %v13711_v60 }
0x4ef5   :  { %v17893_v32 = vpop.eup %17892  ;;  %v13761_v12 = vmul.f32 1.442695, %v14798_v29 }
0x4ef6   :  { %v17895_v8 = vpop.eup %17894  ;;  %v13773_v50 = vadd.f32 1.0, %v17893_v32  ;;  %v13763_v40 = vmul.f32 1.442695, %v14799_v34 }
0x4ef7   :  { %v13774_v30 = vadd.f32 1.0, %v17895_v8  ;;  %17904 = vpow2.f32 %v13761_v12 }
0x4ef8   :  { %17906 = vrcp.f32 %v13773_v50 }
0x4ef9   :  { %v17897_v18 = vpop.eup %17896  ;;  %17908 = vrcp.f32 %v13774_v30 }
0x4efa   :  { %v17899_v20 = vpop.eup %17898  ;;  %v13775_v19 = vadd.f32 1.0, %v17897_v18  ;;  %17910 = vpow2.f32 %v13763_v40 }
0x4efb   :  { %v13776_v31 = vadd.f32 1.0, %v17899_v20 }
0x4efc   :  { %17912 = vrcp.f32 %v13775_v19 }
0x4efd   :  { %v17901_v22 = vpop.eup %17900  ;;  %17914 = vrcp.f32 %v13776_v31 }
0x4efe   :  { %v17903_v59 = vpop.eup %17902  ;;  %v13777_v3 = vadd.f32 1.0, %v17901_v22 }
0x4eff   :  { %v13778_v61 = vadd.f32 1.0, %v17903_v59 }
0x4f00   :  { %17916 = vrcp.f32 %v13777_v3 }
0x4f01   :  { %v17905_v17 = vpop.eup %17904  ;;  %17918 = vrcp.f32 %v13778_v61 }
0x4f02   :  { %v17907_v24 = vpop.eup %17906  ;;  %v13779_v1 = vadd.f32 1.0, %v17905_v17 }
0x4f03   :  { %v17909_v0 = vpop.eup %17908  ;;  %v13809_v58 = vmul.f32 %v17907_v24, %v20548_v43  ;;  %v14837_v24 = vld [vmem:[%s19769_s28 + $0x1] ss:$0 sm:$0xff] }
0x4f04   :  { %v17911_v6 = vpop.eup %17910  ;;  %v13810_v10 = vmul.f32 %v17909_v0, %v13693_v9  ;;  %17920 = vrcp.f32 %v13779_v1 }
0x4f05   :  { %v13780_v26 = vadd.f32 1.0, %v17911_v6 }
0x4f06   :  { %v17913_v47 = vpop.eup %17912  ;;  %13926 = vmatprep.mubr.f32.mxu0 %v13810_v10 }
0x4f07   :  { %v17915_v25 = vpop.eup %17914  ;;  %17922 = vrcp.f32 %v13780_v26  ;;  %13927 = vmatmul.mubr.f32.vlgmr.msra.gmra.mrb[148].mxu0 %v13809_v58  ;;  %v13811_v15 = vmul.f32 %v17913_v47, %v20553_v57 }
0x4f08   :  { %v13812_v4 = vmul.f32 %v17915_v25, %v13699_v11 }
0x4f0a   :  { %v17917_v45 = vpop.eup %17916  ;;  %13931 = vmatprep.mubr.f32.mxu0 %v13812_v4 }
0x4f0b   :  { %v17919_v33 = vpop.eup %17918  ;;  %13932 = vmatmul.mubr.f32.gmra.mrb[150].mxu0 %v13811_v15  ;;  %v13813_v49 = vmul.f32 %v17917_v45, %v13703_v36 }
0x4f0c   :  { %v13814_v39 = vmul.f32 %v17919_v33, %v13705_v23 }
0x4f0e   :  { %13936 = vmatprep.mubr.f32.mxu0 %v13814_v39  ;;  %v17921_v9 = vpop.eup %17920 }
0x4f0f   :  { %13937 = vmatmul.mubr.f32.gmra.mrb[152].mxu0 %v13813_v49  ;;  %v13815_v53 = vmul.f32 %v17921_v9, %v13709_v42 }
0x4f11   :  { %v17923_v43 = vpop.eup %17922 }
0x4f12   :  { %v13816_v7 = vmul.f32 %v17923_v43, %v13711_v60 }
0x4f14   :  { %13941 = vmatprep.mubr.f32.mxu0 %v13816_v7 }
0x4f15   :  { %13942 = vmatmul.mubr.f32.gmra.mrb[154].mxu0 %v13815_v53 }
0x4f71   :  { %v13714_v51 = vpop.f32.mrb[120].mxu1 }
0x4f72   :  { %v13715_v14 = vadd.f32 %v13714_v51, %v20542_v41  ;;  %v13716_v11 = vpop.f32.mrb[121].mxu1 }
0x4f73   :  { %v13717_v57 = vadd.f32 %v13716_v11, %v20545_v27 }
0x4f74   :  { %v14800_v48 = vmul.f32 -1.702, %v13715_v14 }
0x4f75   :  { %v14801_v56 = vmul.f32 -1.702, %v13717_v57  ;;  %v13720_v28 = vpop.f32.mrb[122].mxu1 }
0x4f76   :  { %v13765_v44 = vmul.f32 1.442695, %v14800_v48  ;;  %v13721_v36 = vadd.f32 %v13720_v28, %v20542_v41  ;;  %v13722_v23 = vpop.f32.mrb[123].mxu1 }
0x4f77   :  { %v13767_v16 = vmul.f32 1.442695, %v14801_v56  ;;  %v13723_v5 = vadd.f32 %v13722_v23, %v20545_v27 }
0x4f78   :  { %17924 = vpow2.f32 %v13765_v44  ;;  %v14802_v42 = vmul.f32 -1.702, %v13721_v36 }
0x4f79   :  { %17926 = vpow2.f32 %v13767_v16  ;;  %v14803_v63 = vmul.f32 -1.702, %v13723_v5 }
0x4f7a   :  { %v13769_v62 = vmul.f32 1.442695, %v14802_v42 }
0x4f7b   :  { %v13771_v60 = vmul.f32 1.442695, %v14803_v63 }
0x4f7c   :  { %17928 = vpow2.f32 %v13769_v62 }
0x4f7d   :  { %17930 = vpow2.f32 %v13771_v60 }
0x4f82   :  { %v17925_v29 = vpop.eup %17924 }
0x4f83   :  { %v17927_v34 = vpop.eup %17926  ;;  %v13781_v32 = vadd.f32 1.0, %v17925_v29 }
0x4f84   :  { %v13782_v12 = vadd.f32 1.0, %v17927_v34  ;;  %v14069_v34 = vld [vmem:[%s14309_s30 + $0x8] sm:$0xff] }
0x4f85   :  { %17932 = vrcp.f32 %v13781_v32 }
0x4f86   :  { %v17929_v8 = vpop.eup %17928  ;;  %17934 = vrcp.f32 %v13782_v12  ;;  %v14070_v12 = vld [vmem:[%s14309_s30 + $0x10] sm:$0xff] }
0x4f87   :  { %v17931_v41 = vpop.eup %17930  ;;  %v13783_v50 = vadd.f32 1.0, %v17929_v8  ;;  %v14071_v8 = vld [vmem:[%s14309_s30 + $0x18] sm:$0xff] }
0x4f88   :  { %v13784_v40 = vadd.f32 1.0, %v17931_v41  ;;  %v17154_v41 = vpack.c.bf16 %v14071_v8, %v14070_v12 }
0x4f89   :  { %17936 = vrcp.f32 %v13783_v50  ;;  %v14072_v50 = vld [vmem:[%s14309_s30 + $0x20] sm:$0xff] }
0x4f8a   :  { %17938 = vrcp.f32 %v13784_v40  ;;  %v14073_v40 = vld [vmem:[%s14309_s30 + $0x28] sm:$0xff] }
0x4f8f   :  { %v17933_v27 = vpop.eup %17932 }
0x4f90   :  { %v17935_v30 = vpop.eup %17934  ;;  %v13817_v20 = vmul.f32 %v17933_v27, %v13715_v14  ;;  %v17157_v27 = vpack.c.bf16 %v14073_v40, %v14072_v50 }
0x4f91   :  { %v13818_v18 = vmul.f32 %v17935_v30, %v13717_v57  ;;  %v14074_v30 = vld [vmem:[%s14309_s30 + $0x30] sm:$0xff] }
0x4f93   :  { %v17937_v19 = vpop.eup %17936  ;;  %13946 = vmatprep.mubr.f32.mxu0 %v13818_v18  ;;  %v14075_v18 = vld [vmem:[%s14309_s30 + $0x38] sm:$0xff] }
0x4f94   :  { %v17939_v31 = vpop.eup %17938  ;;  %13947 = vmatmul.mubr.f32.gmra.mrb[156].mxu0 %v13817_v20  ;;  %v13819_v59 = vmul.f32 %v17937_v19, %v13721_v36  ;;  %v13963_v36 = vld [vmem:[%s14310_s16] sm:$0x7]  ;;  %v17160_v20 = vpack.c.bf16 %v14075_v18, %v14074_v30 }
0x4f95   :  { %v13820_v22 = vmul.f32 %v17939_v31, %v13723_v5 }
0x4f97   :  { %13951 = vmatprep.mubr.f32.mxu0 %v13820_v22 }
0x4f98   :  { %13952 = vmatmul.mubr.f32.gmra.mrb[158].mxu0 %v13819_v59 }
0x4fda   :  { %v15518_v3 = vpop.f32.mrb[148].mxu0 }
0x4fdb   :  { %v15519_v61 = vpop.f32.mrb[149].mxu0 }
0x4fdc   :  { %v15520_v17 = vadd.f32 %v15519_v61, %v15518_v3  ;;  %v14839_v61 = vld [vmem:[%s14307_s8] ss:$0 sm:$0xff] }
0x4fde   :  { %v15521_v1 = vpop.f32.mrb[150].mxu0  ;;  %v13929_v6 = vadd.f32 %v15520_v17, %v14837_v24  ;;  %v14840_v17 = vld [vmem:[%s14308_s1] ss:$0 sm:$0xff] }
0x4fdf   :  { %v15522_v0 = vpop.f32.mrb[151].mxu0 }
0x4fe0   :  { %v15523_v10 = vadd.f32 %v15522_v0, %v15521_v1  ;;  %v13957_v25 = vadd.f32 %v13929_v6, %v20381_v54 }
0x4fe2   :  { %v13934_v58 = vadd.f32 %v15523_v10, %v14837_v24  ;;  %v15524_v26 = vpop.f32.mrb[152].mxu0 }
0x4fe3   :  { %v15525_v47 = vpop.f32.mrb[153].mxu0 }
0x4fe4   :  { %v13958_v4 = vadd.f32 %v13934_v58, %v20342_v35  ;;  %v15526_v15 = vadd.f32 %v15525_v47, %v15524_v26  ;;  %v14150_v47 = vmul.f32 %v19039_v38, %v19039_v38 }
0x4fe6   :  { %v17142_v45 = vpack.c.bf16 %v13958_v4, %v13957_v25  ;;  %v13939_v49 = vadd.f32 %v15526_v15, %v14837_v24  ;;  %v14156_v4 = vsel %vm14155_vm1, %v14150_v47, 0.0 }
0x4fe8   :  { %v15527_v33 = vpop.f32.mrb[154].mxu0  ;;  %17143 = vmatpush3.bf16.msra.mxu1 %v17142_v45  ;;  %v13959_v7 = vadd.f32 %v13939_v49, %v20387_v52 }
0x4fe9   :  { %v15528_v39 = vpop.f32.mrb[155].mxu0  ;;  %17144 = vmatprep.subr.bf16.mxu1 %v17967_v46 }
0x4fea   :  { %v15529_v9 = vadd.f32 %v15528_v39, %v15527_v33 }
0x4fec   :  { %v13944_v43 = vadd.f32 %v15529_v9, %v14837_v24 }
0x4fee   :  { %v13960_v53 = vadd.f32 %v13944_v43, %v20392_v21 }
0x4ff0   :  { %v17145_v51 = vpack.c.bf16 %v13960_v53, %v13959_v7 }
0x4ff2   :  { %17146 = vmatpush3.bf16.msra.mxu1 %v17145_v51 }
0x4ff3   :  { %17147 = vmatprep.subr.bf16.mxu1 %v17967_v46 }
0x5067   :  { %v15530_v54 = vpop.f32.mrb[156].mxu0 }
0x5068   :  { %v15531_v35 = vpop.f32.mrb[157].mxu0 }
0x5069   :  { %v15532_v14 = vadd.f32 %v15531_v35, %v15530_v54 }
0x506b   :  { %v15533_v11 = vpop.f32.mrb[158].mxu0  ;;  %v13949_v48 = vadd.f32 %v15532_v14, %v14837_v24 }
0x506c   :  { %v15534_v57 = vpop.f32.mrb[159].mxu0 }
0x506d   :  { %v15535_v56 = vadd.f32 %v15534_v57, %v15533_v11  ;;  %v13961_v52 = vadd.f32 %v13949_v48, %v20409_v2 }
0x506f   :  { %v13954_v28 = vadd.f32 %v15535_v56, %v14837_v24 }
0x5071   :  { %v13962_v21 = vadd.f32 %v13954_v28, %v20415_v55  ;;  %v14149_v55 = vmul.f32 %v19041_v13, %v19041_v13 }
0x5073   :  { %v17148_v44 = vpack.c.bf16 %v13962_v21, %v13961_v52  ;;  %v14152_v29 = vsel %vm14151_vm15, %v14149_v55, 0.0 }
0x5075   :  { %17149 = vmatpush3.bf16.msra.mxu1 %v17148_v44 }
0x5076   :  { %17150 = vmatprep.subr.bf16.mxu1 %v17967_v46 }
0x5078   :  { %16363 = vmatmul.mubr.msk.f32.vlgmr.msra.gmra.mrb[124].mxu1 %vm13964_vm13, %v13963_v36 }
0x5079   :  { %16381 = vmatprep.mubr.msk.f32.mxu1 %vm17961_vm5, %v17957_v37  ;;  %v14068_v37 = vld [vmem:[%s14309_s30] sm:$0xff] }
0x507a   :  { %v17151_v32 = vpack.c.bf16 %v14069_v34, %v14068_v37 }
0x507c   :  { %17152 = vmatpush3.bf16.msra.mxu1 %v17151_v32 }
0x507d   :  { %17153 = vmatprep.subr.bf16.mxu1 %v17967_v46 }
0x5080   :  { %17155 = vmatpush3.bf16.msra.mxu1 %v17154_v41 }
0x5081   :  { %17156 = vmatprep.subr.bf16.mxu1 %v17967_v46 }
0x5084   :  { %17158 = vmatpush3.bf16.msra.mxu1 %v17157_v27 }
0x5085   :  { %17159 = vmatprep.subr.bf16.mxu1 %v17967_v46 }
0x5088   :  { %17161 = vmatpush3.bf16.msra.mxu1 %v17160_v20 }
0x514b   :  { %v14034_v23 = vpop.f32.mrb[124].mxu1 }
0x514c   :  { %v14041_v16 = vsel %vm14040_vm14, %v14034_v23, 0.0  ;;  %v16364_v5 = vpop.f32.mrb[125].mxu1 }
0x514d   :  { %14042 = vadd.xlane.f32.xlu0 %v14041_v16 }
0x51da   :  { %v14043_v42 = vpop.xlane.xlu0 %14042 }
0x51db   :  { %v14044_v63 = vmul.f32 0.015625, %v14043_v42 }
0x51dd   :  { %v14045_v2 = vsub.f32 %v14034_v23, %v14044_v63 }
0x51df   :  { %v14046_v62 = vmul.f32 %v14045_v2, %v14045_v2 }
0x51e1   :  { %v14047_v60 = vsel %vm14040_vm14, %v14046_v62, 0.0 }
0x51e2   :  { %14048 = vadd.xlane.f32.xlu1 %v14047_v60 }
0x51e6   :  { %14153 = vadd.xlane.f32.xlu1 %v14152_v29 }
0x526f   :  { %v14049_v19 = vpop.xlane.xlu1 %14048 }
0x5270   :  { %v14050_v31 = vmul.f32 0.015625, %v14049_v19 }
0x5272   :  { %v14051_v22 = vadd.f32 1e-05, %v14050_v31 }
0x5273   :  { %v14154_v59 = vpop.xlane.xlu1 %14153 }
0x5274   :  { %17940 = vrsqrt.f32 %v14051_v22 }
0x5275   :  { %17942 = vrsqrt.f32 %v14154_v59 }
0x527e   :  { %v17941_v3 = vpop.eup %17940 }
0x527f   :  { %v14053_v46 = vmul.f32 %v17941_v3, %v14045_v2  ;;  %v17943_v24 = vpop.eup %17942 }
0x5280   :  { %v14161_v6 = vmul.f32 %v17943_v24, %v19041_v13  ;;  %v14255_v13 = vstv %s1_s18 }
0x5281   :  { %v14060_v1 = vmul.f32 %v14839_v61, %v14053_v46  ;;  %v14256_v15 = vmul.f32 1.442695, %v14255_v13 }
0x5283   :  { %v14067_v0 = vadd.f32 %v14840_v17, %v14060_v1  ;;  %17944 = vpow2.f32 %v14256_v15 }
0x5285   :  { %16382 = vmatmul.mubr.msk.f32.vlgmr.msra.gmra.mrb[126].mxu1 %vm517_vm3, %v14067_v0  ;;  %vm14262_vm3 = vcmask 23552  }
0x5286   :  { %16386 = vmatprep.mubr.msk.f32.mxu1 %vm14151_vm15, %v14161_v6 }
0x528d   :  { %v17945_v45 = vpop.eup %17944 }
0x528e   :  { %17222 = vpush %v17945_v45 }
0x52bf   :  { %s17223_s25 = spop %17222 }
0x52c0   :  { %v14259_v53 = vstv %s17223_s25 }
0x5358   :  { %v14145_v10 = vpop.f32.mrb[126].mxu1 }
0x5359   :  { %v14163_v58 = vmul.f32 %v14145_v10, %v14145_v10  ;;  %v16383_v26 = vpop.f32.mrb[127].mxu1 }
0x535b   :  { %v14165_v25 = vsel %vm14164_vm0, %v14163_v58, 0.0 }
0x535c   :  { %14166 = vadd.xlane.f32.xlu0 %v14165_v25 }
0x5360   :  { %14157 = vadd.xlane.f32.xlu0 %v14156_v4 }
0x53e9   :  { %v14167_v33 = vpop.xlane.xlu0 %14166 }
0x53ea   :  { %17946 = vrsqrt.f32 %v14167_v33 }
0x53ed   :  { %v14158_v39 = vpop.xlane.xlu0 %14157 }
0x53ee   :  { %17948 = vrsqrt.f32 %v14158_v39 }
0x53f4   :  { %v17947_v49 = vpop.eup %17946 }
0x53f5   :  { %v14169_v9 = vmul.f32 %v17947_v49, %v14145_v10 }
0x53f7   :  { %16384 = vmatprep.subr.msk.mxu1 %vm14151_vm15, %v14169_v9 }
0x53f8   :  { %v17949_v43 = vpop.eup %17948  ;;  %16385 = vmatpush3.xpose.msk.msra.mxu1 %vm14151_vm15, %v14169_v9 }
0x53f9   :  { %v14162_v7 = vmul.f32 %v17949_v43, %v19039_v38 }
0x53fb   :  { %16387 = vmatmul.mubr.msk.f32.vlgmr.msra.gmra.mrb[128].mxu1 %vm14151_vm15, %v14162_v7 }
0x54ce   :  { %v16388_v51 = vpop.f32.mrb[128].mxu1 }
0x54cf   :  { %v14261_v54 = vmul.f32 %v16388_v51, %v14259_v53  ;;  %v14245_v35 = vpop.f32.mrb[129].mxu1 }
0x54d0   :  { %v14260_v14 = vmul.f32 %v14259_v53, %v14245_v35 }
0x54d1   :  { %14265 = vst.msk [vmem:[%s14311_s27 + $0x8] sm:$0x3] %vm14264_vm2, %v14261_v54 }
0x54d2   :  { %14263 = vst.msk [vmem:[%s14311_s27] sm:$0xff] %vm14262_vm3, %v14260_v14 }

</bundles_post_ra>
